<compile_context>
chip_gen: v5e
topology: v5e:2x2
jax: 0.10.0
libtpu: 0.0.40
codegen_flags: <defaults>
</compile_context>

<pallas_src>
import functools

import jax
import jax.numpy as jnp
from jax.experimental import pallas as pl
from jax.experimental.pallas import tpu as pltpu


def _round_up(x, m):
    return ((x + m - 1) // m) * m


def _pick_tile(dim, cap):
    """Largest multiple of 128 <= cap that divides `dim` (dim is a 128-multiple)."""
    best = 128
    t = 128
    while t <= min(cap, dim):
        if dim % t == 0:
            best = t
        t += 128
    return best


# ----------------------------------------------------------------------------
# Pallas kernel: tiled matmul with K-accumulation, fused bias (+ optional ReLU)
# ----------------------------------------------------------------------------
def _matmul_bias_kernel(a_ref, b_ref, bias_ref, o_ref, acc_ref, *, relu):
    k = pl.program_id(2)

    @pl.when(k == 0)
    def _():
        acc_ref[...] = jnp.zeros_like(acc_ref)

    acc_ref[...] += jnp.dot(
        a_ref[...], b_ref[...], preferred_element_type=jnp.float32
    )

    @pl.when(k == pl.num_programs(2) - 1)
    def _():
        out = acc_ref[...] + bias_ref[...]  # bias block is (1, tn), broadcasts
        if relu:
            out = jnp.maximum(out, 0.0)
        o_ref[...] = out.astype(o_ref.dtype)


def pallas_matmul_bias(a, b, bias, *, relu):
    """out = relu?(a @ b + bias); a:(M,K) b:(K,N) bias:(N,). Returns float32.

    Operands are cast to bf16 for the MXU; accumulation/epilogue are f32.
    Tile heuristics: tm=8 for tiny M (batch-2 FC layers), <=128 otherwise;
    tn/tk are the largest 128-multiples (<=512 / <=1024) dividing the padded
    N/K so pre-padded weights never need a runtime copy.  Worst-case VMEM
    working set (~3.5 MB double-buffered) fits v5e's 16 MiB scoped default.
    """
    M, K = a.shape
    K2, N = b.shape
    assert K == K2 and bias.shape == (N,), (a.shape, b.shape, bias.shape)

    if M <= 8:
        tm = 8
    elif M < 128:
        tm = _round_up(M, 8)
    else:
        tm = 128
    Kp = _round_up(K, 128)
    Np = _round_up(N, 128)
    tk = _pick_tile(Kp, 1024)
    tn = _pick_tile(Np, 512)
    Mp = _round_up(M, tm)

    a_p = a.astype(jnp.bfloat16)
    if (Mp, Kp) != (M, K):
        a_p = jnp.pad(a_p, ((0, Mp - M), (0, Kp - K)))
    b_p = b.astype(jnp.bfloat16)
    if (Kp, Np) != (K, N):
        b_p = jnp.pad(b_p, ((0, Kp - K), (0, Np - N)))
    bias_p = bias.astype(jnp.float32)
    if Np != N:
        bias_p = jnp.pad(bias_p, (0, Np - N))
    bias_p = bias_p.reshape(1, Np)

    out = pl.pallas_call(
        functools.partial(_matmul_bias_kernel, relu=relu),
        out_shape=jax.ShapeDtypeStruct((Mp, Np), jnp.float32),
        grid=(Mp // tm, Np // tn, Kp // tk),
        in_specs=[
            pl.BlockSpec((tm, tk), lambda i, j, k: (i, k)),
            pl.BlockSpec((tk, tn), lambda i, j, k: (k, j)),
            pl.BlockSpec((1, tn), lambda i, j, k: (0, j)),
        ],
        out_specs=pl.BlockSpec((tm, tn), lambda i, j, k: (i, j)),
        scratch_shapes=[pltpu.VMEM((tm, tn), jnp.float32)],
        compiler_params=pltpu.CompilerParams(
            dimension_semantics=("parallel", "parallel", "arbitrary")
        ),
    )(a_p, b_p, bias_p)

    if (Mp, Np) != (M, N):
        out = out[:M, :N]
    return out


# ----------------------------------------------------------------------------
# JAX glue: pooling / im2col / adaptive average pool
# ----------------------------------------------------------------------------
def maxpool2d(x, k, s):
    """MaxPool2d(k, s) on NHWC via a max-fold over shifted strided views.

    No (k*k, M, C) window stack is materialized; XLA fuses the k*k maxes.
    """
    N, H, W, C = x.shape
    Ho = (H - k) // s + 1
    Wo = (W - k) // s + 1
    out = None
    for dy in range(k):
        for dx in range(k):
            win = x[:, dy : dy + s * (Ho - 1) + 1 : s,
                       dx : dx + s * (Wo - 1) + 1 : s, :]
            out = win if out is None else jnp.maximum(out, win)
    return out


def _im2col(x, kh, kw, stride, pad):
    """x: NHWC -> patches (N*Ho*Wo, kh*kw*C) in (dy, dx, c) order (glue)."""
    x = jnp.pad(x, ((0, 0), (pad, pad), (pad, pad), (0, 0)))
    N, H, W, C = x.shape
    Ho = (H - kh) // stride + 1
    Wo = (W - kw) // stride + 1
    cols = [
        x[:, dy : dy + stride * (Ho - 1) + 1 : stride,
             dx : dx + stride * (Wo - 1) + 1 : stride, :]
        for dy in range(kh)
        for dx in range(kw)
    ]
    patches = jnp.stack(cols, axis=3)  # (N, Ho, Wo, kh*kw, C)
    return patches.reshape(N * Ho * Wo, kh * kw * C), (N, Ho, Wo)


def pallas_conv2d_relu(x, w2d, b, *, k, stride, pad):
    """Conv2d + ReLU via im2col + the Pallas matmul kernel.

    w2d is (k*k*Cin_pad, Cout_pad), reshaped + channel-padded at init; x must
    carry Cin_pad channels (lane-dense padding is propagated through the net).
    """
    cout = w2d.shape[1]
    patches, (N, Ho, Wo) = _im2col(x, k, k, stride, pad)
    y = pallas_matmul_bias(patches, w2d, b, relu=True)
    return y.reshape(N, Ho, Wo, cout)


def adaptive_avg_pool2d(x, out_h, out_w):
    """PyTorch AdaptiveAvgPool2d on NHWC input (tiny, plain JAX glue)."""
    N, H, W, C = x.shape
    if H == 1 and W == 1:
        # 1x1 -> out_h x out_w is an exact broadcast (every output cell averages
        # the single input cell); avoids 36 tiny mean ops.
        return jnp.broadcast_to(x, (N, out_h, out_w, C))
    rows = []
    for i in range(out_h):
        hs, he = (i * H) // out_h, -((-(i + 1) * H) // out_h)
        cols = []
        for j in range(out_w):
            ws, we = (j * W) // out_w, -((-(j + 1) * W) // out_w)
            cols.append(jnp.mean(x[:, hs:he, ws:we, :], axis=(1, 2)))
        rows.append(jnp.stack(cols, axis=1))
    return jnp.stack(rows, axis=1)  # (N, out_h, out_w, C)


# ----------------------------------------------------------------------------
# Model: parameter init + forward
# ----------------------------------------------------------------------------
def init_params(key, num_classes):
    ks = jax.random.split(key, 8)

    def conv_w2d(k, ksize, cin, cout, cin_pad, cout_pad):
        """Conv weight -> (ksize*ksize*cin_pad, cout_pad) bf16. Zero-padded
        input/output channels keep lane-dense (128-multiple) activations
        end-to-end while leaving the real channels' math unchanged."""
        w = 0.05 * jax.random.normal(k, (ksize, ksize, cin, cout), jnp.float32)
        w = jnp.pad(w, ((0, 0), (0, 0), (0, cin_pad - cin), (0, cout_pad - cout)))
        return w.reshape(ksize * ksize * cin_pad, cout_pad).astype(jnp.bfloat16)

    def fc_w(k, din, dout):
        return (0.02 * jax.random.normal(k, (din, dout), jnp.float32)).astype(jnp.bfloat16)

    def zeros_b(n):
        return jnp.zeros((n,), jnp.float32)

    return {
        # features (conv1 cout 65->128, conv2 cin 65->128 / cout 192->256,
        # conv3 cin 192->256; all padded slots are exactly zero)
        "conv1_w": conv_w2d(ks[0], 11, 3, 65, 3, 128),     "conv1_b": zeros_b(128),
        "conv2_w": conv_w2d(ks[1], 5, 65, 192, 128, 256),  "conv2_b": zeros_b(256),
        "conv3_w": conv_w2d(ks[2], 3, 192, 384, 256, 384), "conv3_b": zeros_b(384),
        "conv4_w": conv_w2d(ks[3], 3, 384, 256, 384, 256), "conv4_b": zeros_b(256),
        "conv5_w": conv_w2d(ks[4], 3, 256, 256, 256, 256), "conv5_b": zeros_b(256),
        # classifier
        "fc1_w": fc_w(ks[5], 256 * 6 * 6, 4096), "fc1_b": zeros_b(4096),
        "fc2_w": fc_w(ks[6], 4096, 4096),        "fc2_b": zeros_b(4096),
        "fc3_w": fc_w(ks[7], 4096, num_classes), "fc3_b": zeros_b(num_classes),
    }


def forward(params, x_nchw):
    # PyTorch input is NCHW; convert to NHWC for the TPU-friendly layout.
    x = jnp.transpose(x_nchw, (0, 2, 3, 1)).astype(jnp.float32)

    # features (channels carried lane-dense: 128 / 256 / 384 / 256 / 256)
    x = pallas_conv2d_relu(x, params["conv1_w"], params["conv1_b"], k=11, stride=4, pad=2)
    x = maxpool2d(x, 3, 2)
    x = pallas_conv2d_relu(x, params["conv2_w"], params["conv2_b"], k=5, stride=1, pad=2)
    x = maxpool2d(x, 3, 2)
    x = pallas_conv2d_relu(x, params["conv3_w"], params["conv3_b"], k=3, stride=1, pad=1)
    x = pallas_conv2d_relu(x, params["conv4_w"], params["conv4_b"], k=3, stride=1, pad=1)
    x = pallas_conv2d_relu(x, params["conv5_w"], params["conv5_b"], k=3, stride=1, pad=1)
    x = maxpool2d(x, 3, 2)

    # avgpool + flatten in NCHW order (== torch.flatten). conv5's cout is exactly
    # 256 (no padding), so the flattened vector is the true 256*6*6 = 9216.
    x = adaptive_avg_pool2d(x, 6, 6)
    x = jnp.transpose(x, (0, 3, 1, 2)).reshape(x.shape[0], -1)

    # classifier (Dropout == identity at inference)
    x = pallas_matmul_bias(x, params["fc1_w"], params["fc1_b"], relu=True)
    x = pallas_matmul_bias(x, params["fc2_w"], params["fc2_b"], relu=True)
    logits = pallas_matmul_bias(x, params["fc3_w"], params["fc3_b"], relu=False)
    return logits


if __name__ == "__main__":
    num_classes = 10
    key = jax.random.PRNGKey(0)
    k_param, k_input = jax.random.split(key)

    params = init_params(k_param, num_classes)
    # 64x64 is the smallest spatial size that survives the AlexNet downsampling chain.
    x = jax.random.normal(k_input, (2, 3, 64, 64), jnp.float32)

    logits = jax.jit(forward)(params, x)
    logits = jax.block_until_ready(logits)
    assert logits.shape == (2, num_classes), logits.shape
    print("KERNEL_OK")
</pallas_src>

<mosaic_0001>
module attributes {stable_mosaic.version = 11 : i64} {
  func.func @_matmul_bias_kernel(%arg0: i32, %arg1: i32, %arg2: i32, %arg3: memref<128x384xbf16, #tpu.memory_space<vmem>>, %arg4: memref<384x128xbf16, #tpu.memory_space<vmem>>, %arg5: memref<1x128xf32, #tpu.memory_space<vmem>>, %arg6: memref<128x128xf32, #tpu.memory_space<vmem>>, %arg7: memref<128x128xf32, #tpu.memory_space<vmem>>) attributes {dimension_semantics = [#tpu.dimension_semantics<parallel>, #tpu.dimension_semantics<parallel>, #tpu.dimension_semantics<arbitrary>], iteration_bounds = array<i64: 4, 1, 1>, scalar_prefetch = 0 : i64, scratch_operands = 1 : i64, tpu.core_type = #tpu.core_type<tc>, window_params = [{transform_indices = @transform_0, window_bounds = array<i64: 128, 384>}, {transform_indices = @transform_1, window_bounds = array<i64: 384, 128>}, {transform_indices = @transform_2, window_bounds = array<i64: 1, 128>}, {transform_indices = @transform_3, window_bounds = array<i64: 128, 128>}]} {
    %c0_i32 = arith.constant 0 : i32
    %0 = arith.cmpi eq, %arg2, %c0_i32 : i32
    %1 = arith.extui %0 : i1 to i32
    %c0_i32_0 = arith.constant 0 : i32
    %2 = arith.cmpi ne, %1, %c0_i32_0 : i32
    scf.if %2 {
      %cst_10 = arith.constant 0.000000e+00 : f32
      %12 = vector.broadcast %cst_10 : f32 to vector<128x128xf32>
      %c0_11 = arith.constant 0 : index
      %c0_12 = arith.constant 0 : index
      %13 = vector.load %arg7[%c0_11, %c0_12] : memref<128x128xf32, #tpu.memory_space<vmem>>, vector<128x128xf32>
      tpu.vector_store %arg7[%c0_11, %c0_12], %12 {strides = array<i32>} : memref<128x128xf32, #tpu.memory_space<vmem>>, vector<128x128xf32>,
    } else {
    }
    %c0 = arith.constant 0 : index
    %c0_1 = arith.constant 0 : index
    %3 = vector.load %arg7[%c0, %c0_1] : memref<128x128xf32, #tpu.memory_space<vmem>>, vector<128x128xf32>
    %c0_2 = arith.constant 0 : index
    %c0_3 = arith.constant 0 : index
    %4 = vector.load %arg3[%c0_2, %c0_3] : memref<128x384xbf16, #tpu.memory_space<vmem>>, vector<128x384xbf16>
    %c0_4 = arith.constant 0 : index
    %c0_5 = arith.constant 0 : index
    %5 = vector.load %arg4[%c0_4, %c0_5] : memref<384x128xbf16, #tpu.memory_space<vmem>>, vector<384x128xbf16>
    %cst = arith.constant dense<0.000000e+00> : vector<128x128xf32>
    %6 = tpu.matmul %4, %5, %cst {dimension_numbers = #tpu.dot_dimension_numbers<[1], [0], [0], [1], [0, 0, 1, 1], [], []>} : vector<128x384xbf16>, vector<384x128xbf16>, vector<128x128xf32> -> vector<128x128xf32>
    %7 = arith.addf %3, %6 : vector<128x128xf32>
    %c0_6 = arith.constant 0 : index
    %c0_7 = arith.constant 0 : index
    %8 = vector.load %arg7[%c0_6, %c0_7] : memref<128x128xf32, #tpu.memory_space<vmem>>, vector<128x128xf32>
    tpu.vector_store %arg7[%c0_6, %c0_7], %7 {strides = array<i32>} : memref<128x128xf32, #tpu.memory_space<vmem>>, vector<128x128xf32>,
    %c0_i32_8 = arith.constant 0 : i32
    %9 = arith.cmpi eq, %arg2, %c0_i32_8 : i32
    %10 = arith.extui %9 : i1 to i32
    %c0_i32_9 = arith.constant 0 : i32
    %11 = arith.cmpi ne, %10, %c0_i32_9 : i32
    scf.if %11 {
      %c0_10 = arith.constant 0 : index
      %c0_11 = arith.constant 0 : index
      %12 = vector.load %arg7[%c0_10, %c0_11] : memref<128x128xf32, #tpu.memory_space<vmem>>, vector<128x128xf32>
      %c0_12 = arith.constant 0 : index
      %c0_13 = arith.constant 0 : index
      %13 = vector.load %arg5[%c0_12, %c0_13] : memref<1x128xf32, #tpu.memory_space<vmem>>, vector<1x128xf32>
      %14 = vector.broadcast %13 : vector<1x128xf32> to vector<128x128xf32>
      %15 = arith.addf %12, %14 : vector<128x128xf32>
      %cst_14 = arith.constant 0.000000e+00 : f32
      %16 = vector.broadcast %cst_14 : f32 to vector<128x128xf32>
      %17 = arith.maximumf %15, %16 : vector<128x128xf32>
      %c0_15 = arith.constant 0 : index
      %c0_16 = arith.constant 0 : index
      %18 = vector.load %arg6[%c0_15, %c0_16] : memref<128x128xf32, #tpu.memory_space<vmem>>, vector<128x128xf32>
      tpu.vector_store %arg6[%c0_15, %c0_16], %17 {strides = array<i32>} : memref<128x128xf32, #tpu.memory_space<vmem>>, vector<128x128xf32>,
    } else {
    }
    return
  }
  func.func @transform_0(%arg0: i32, %arg1: i32, %arg2: i32) -> (i32, i32) {
    %c0_i32 = arith.constant 0 : i32
    return %arg0, %arg2 : i32, i32
  }
  func.func @transform_1(%arg0: i32, %arg1: i32, %arg2: i32) -> (i32, i32) {
    %c0_i32 = arith.constant 0 : i32
    return %arg2, %arg1 : i32, i32
  }
  func.func @transform_2(%arg0: i32, %arg1: i32, %arg2: i32) -> (i32, i32) {
    %c0_i32 = arith.constant 0 : i32
    %c0_i32_0 = arith.constant 0 : i32
    return %c0_i32, %arg1 : i32, i32
  }
  func.func @transform_3(%arg0: i32, %arg1: i32, %arg2: i32) -> (i32, i32) {
    %c0_i32 = arith.constant 0 : i32
    return %arg0, %arg1 : i32, i32
  }
}

module attributes {stable_mosaic.version = 11 : i64} {
  func.func @_matmul_bias_kernel(%arg0: i32, %arg1: i32, %arg2: i32, %arg3: memref<104x640xbf16, #tpu.memory_space<vmem>>, %arg4: memref<640x256xbf16, #tpu.memory_space<vmem>>, %arg5: memref<1x256xf32, #tpu.memory_space<vmem>>, %arg6: memref<104x256xf32, #tpu.memory_space<vmem>>, %arg7: memref<104x256xf32, #tpu.memory_space<vmem>>) attributes {dimension_semantics = [#tpu.dimension_semantics<parallel>, #tpu.dimension_semantics<parallel>, #tpu.dimension_semantics<arbitrary>], iteration_bounds = array<i64: 1, 1, 5>, scalar_prefetch = 0 : i64, scratch_operands = 1 : i64, tpu.core_type = #tpu.core_type<tc>, window_params = [{transform_indices = @transform_0, window_bounds = array<i64: 104, 640>}, {transform_indices = @transform_1, window_bounds = array<i64: 640, 256>}, {transform_indices = @transform_2, window_bounds = array<i64: 1, 256>}, {transform_indices = @transform_3, window_bounds = array<i64: 104, 256>}]} {
    %c0_i32 = arith.constant 0 : i32
    %0 = arith.cmpi eq, %arg2, %c0_i32 : i32
    %1 = arith.extui %0 : i1 to i32
    %c0_i32_0 = arith.constant 0 : i32
    %2 = arith.cmpi ne, %1, %c0_i32_0 : i32
    scf.if %2 {
      %cst_9 = arith.constant 0.000000e+00 : f32
      %12 = vector.broadcast %cst_9 : f32 to vector<104x256xf32>
      %c0_10 = arith.constant 0 : index
      %c0_11 = arith.constant 0 : index
      %13 = vector.load %arg7[%c0_10, %c0_11] : memref<104x256xf32, #tpu.memory_space<vmem>>, vector<104x256xf32>
      tpu.vector_store %arg7[%c0_10, %c0_11], %12 {strides = array<i32>} : memref<104x256xf32, #tpu.memory_space<vmem>>, vector<104x256xf32>,
    } else {
    }
    %c0 = arith.constant 0 : index
    %c0_1 = arith.constant 0 : index
    %3 = vector.load %arg7[%c0, %c0_1] : memref<104x256xf32, #tpu.memory_space<vmem>>, vector<104x256xf32>
    %c0_2 = arith.constant 0 : index
    %c0_3 = arith.constant 0 : index
    %4 = vector.load %arg3[%c0_2, %c0_3] : memref<104x640xbf16, #tpu.memory_space<vmem>>, vector<104x640xbf16>
    %c0_4 = arith.constant 0 : index
    %c0_5 = arith.constant 0 : index
    %5 = vector.load %arg4[%c0_4, %c0_5] : memref<640x256xbf16, #tpu.memory_space<vmem>>, vector<640x256xbf16>
    %cst = arith.constant dense<0.000000e+00> : vector<104x256xf32>
    %6 = tpu.matmul %4, %5, %cst {dimension_numbers = #tpu.dot_dimension_numbers<[1], [0], [0], [1], [0, 0, 1, 1], [], []>} : vector<104x640xbf16>, vector<640x256xbf16>, vector<104x256xf32> -> vector<104x256xf32>
    %7 = arith.addf %3, %6 : vector<104x256xf32>
    %c0_6 = arith.constant 0 : index
    %c0_7 = arith.constant 0 : index
    %8 = vector.load %arg7[%c0_6, %c0_7] : memref<104x256xf32, #tpu.memory_space<vmem>>, vector<104x256xf32>
    tpu.vector_store %arg7[%c0_6, %c0_7], %7 {strides = array<i32>} : memref<104x256xf32, #tpu.memory_space<vmem>>, vector<104x256xf32>,
    %c4_i32 = arith.constant 4 : i32
    %9 = arith.cmpi eq, %arg2, %c4_i32 : i32
    %10 = arith.extui %9 : i1 to i32
    %c0_i32_8 = arith.constant 0 : i32
    %11 = arith.cmpi ne, %10, %c0_i32_8 : i32
    scf.if %11 {
      %c0_9 = arith.constant 0 : index
      %c0_10 = arith.constant 0 : index
      %12 = vector.load %arg7[%c0_9, %c0_10] : memref<104x256xf32, #tpu.memory_space<vmem>>, vector<104x256xf32>
      %c0_11 = arith.constant 0 : index
      %c0_12 = arith.constant 0 : index
      %13 = vector.load %arg5[%c0_11, %c0_12] : memref<1x256xf32, #tpu.memory_space<vmem>>, vector<1x256xf32>
      %14 = vector.broadcast %13 : vector<1x256xf32> to vector<104x256xf32>
      %15 = arith.addf %12, %14 : vector<104x256xf32>
      %cst_13 = arith.constant 0.000000e+00 : f32
      %16 = vector.broadcast %cst_13 : f32 to vector<104x256xf32>
      %17 = arith.maximumf %15, %16 : vector<104x256xf32>
      %c0_14 = arith.constant 0 : index
      %c0_15 = arith.constant 0 : index
      %18 = vector.load %arg6[%c0_14, %c0_15] : memref<104x256xf32, #tpu.memory_space<vmem>>, vector<104x256xf32>
      tpu.vector_store %arg6[%c0_14, %c0_15], %17 {strides = array<i32>} : memref<104x256xf32, #tpu.memory_space<vmem>>, vector<104x256xf32>,
    } else {
    }
    return
  }
  func.func @transform_0(%arg0: i32, %arg1: i32, %arg2: i32) -> (i32, i32) {
    %c0_i32 = arith.constant 0 : i32
    return %arg0, %arg2 : i32, i32
  }
  func.func @transform_1(%arg0: i32, %arg1: i32, %arg2: i32) -> (i32, i32) {
    %c0_i32 = arith.constant 0 : i32
    return %arg2, %arg1 : i32, i32
  }
  func.func @transform_2(%arg0: i32, %arg1: i32, %arg2: i32) -> (i32, i32) {
    %c0_i32 = arith.constant 0 : i32
    %c0_i32_0 = arith.constant 0 : i32
    return %c0_i32, %arg1 : i32, i32
  }
  func.func @transform_3(%arg0: i32, %arg1: i32, %arg2: i32) -> (i32, i32) {
    %c0_i32 = arith.constant 0 : i32
    return %arg0, %arg1 : i32, i32
  }
}

module attributes {stable_mosaic.version = 11 : i64} {
  func.func @_matmul_bias_kernel(%arg0: i32, %arg1: i32, %arg2: i32, %arg3: memref<24x768xbf16, #tpu.memory_space<vmem>>, %arg4: memref<768x384xbf16, #tpu.memory_space<vmem>>, %arg5: memref<1x384xf32, #tpu.memory_space<vmem>>, %arg6: memref<24x384xf32, #tpu.memory_space<vmem>>, %arg7: memref<24x384xf32, #tpu.memory_space<vmem>>) attributes {dimension_semantics = [#tpu.dimension_semantics<parallel>, #tpu.dimension_semantics<parallel>, #tpu.dimension_semantics<arbitrary>], iteration_bounds = array<i64: 1, 1, 3>, scalar_prefetch = 0 : i64, scratch_operands = 1 : i64, tpu.core_type = #tpu.core_type<tc>, window_params = [{transform_indices = @transform_0, window_bounds = array<i64: 24, 768>}, {transform_indices = @transform_1, window_bounds = array<i64: 768, 384>}, {transform_indices = @transform_2, window_bounds = array<i64: 1, 384>}, {transform_indices = @transform_3, window_bounds = array<i64: 24, 384>}]} {
    %c0_i32 = arith.constant 0 : i32
    %0 = arith.cmpi eq, %arg2, %c0_i32 : i32
    %1 = arith.extui %0 : i1 to i32
    %c0_i32_0 = arith.constant 0 : i32
    %2 = arith.cmpi ne, %1, %c0_i32_0 : i32
    scf.if %2 {
      %cst_9 = arith.constant 0.000000e+00 : f32
      %12 = vector.broadcast %cst_9 : f32 to vector<24x384xf32>
      %c0_10 = arith.constant 0 : index
      %c0_11 = arith.constant 0 : index
      %13 = vector.load %arg7[%c0_10, %c0_11] : memref<24x384xf32, #tpu.memory_space<vmem>>, vector<24x384xf32>
      tpu.vector_store %arg7[%c0_10, %c0_11], %12 {strides = array<i32>} : memref<24x384xf32, #tpu.memory_space<vmem>>, vector<24x384xf32>,
    } else {
    }
    %c0 = arith.constant 0 : index
    %c0_1 = arith.constant 0 : index
    %3 = vector.load %arg7[%c0, %c0_1] : memref<24x384xf32, #tpu.memory_space<vmem>>, vector<24x384xf32>
    %c0_2 = arith.constant 0 : index
    %c0_3 = arith.constant 0 : index
    %4 = vector.load %arg3[%c0_2, %c0_3] : memref<24x768xbf16, #tpu.memory_space<vmem>>, vector<24x768xbf16>
    %c0_4 = arith.constant 0 : index
    %c0_5 = arith.constant 0 : index
    %5 = vector.load %arg4[%c0_4, %c0_5] : memref<768x384xbf16, #tpu.memory_space<vmem>>, vector<768x384xbf16>
    %cst = arith.constant dense<0.000000e+00> : vector<24x384xf32>
    %6 = tpu.matmul %4, %5, %cst {dimension_numbers = #tpu.dot_dimension_numbers<[1], [0], [0], [1], [0, 0, 1, 1], [], []>} : vector<24x768xbf16>, vector<768x384xbf16>, vector<24x384xf32> -> vector<24x384xf32>
    %7 = arith.addf %3, %6 : vector<24x384xf32>
    %c0_6 = arith.constant 0 : index
    %c0_7 = arith.constant 0 : index
    %8 = vector.load %arg7[%c0_6, %c0_7] : memref<24x384xf32, #tpu.memory_space<vmem>>, vector<24x384xf32>
    tpu.vector_store %arg7[%c0_6, %c0_7], %7 {strides = array<i32>} : memref<24x384xf32, #tpu.memory_space<vmem>>, vector<24x384xf32>,
    %c2_i32 = arith.constant 2 : i32
    %9 = arith.cmpi eq, %arg2, %c2_i32 : i32
    %10 = arith.extui %9 : i1 to i32
    %c0_i32_8 = arith.constant 0 : i32
    %11 = arith.cmpi ne, %10, %c0_i32_8 : i32
    scf.if %11 {
      %c0_9 = arith.constant 0 : index
      %c0_10 = arith.constant 0 : index
      %12 = vector.load %arg7[%c0_9, %c0_10] : memref<24x384xf32, #tpu.memory_space<vmem>>, vector<24x384xf32>
      %c0_11 = arith.constant 0 : index
      %c0_12 = arith.constant 0 : index
      %13 = vector.load %arg5[%c0_11, %c0_12] : memref<1x384xf32, #tpu.memory_space<vmem>>, vector<1x384xf32>
      %14 = vector.broadcast %13 : vector<1x384xf32> to vector<24x384xf32>
      %15 = arith.addf %12, %14 : vector<24x384xf32>
      %cst_13 = arith.constant 0.000000e+00 : f32
      %16 = vector.broadcast %cst_13 : f32 to vector<24x384xf32>
      %17 = arith.maximumf %15, %16 : vector<24x384xf32>
      %c0_14 = arith.constant 0 : index
      %c0_15 = arith.constant 0 : index
      %18 = vector.load %arg6[%c0_14, %c0_15] : memref<24x384xf32, #tpu.memory_space<vmem>>, vector<24x384xf32>
      tpu.vector_store %arg6[%c0_14, %c0_15], %17 {strides = array<i32>} : memref<24x384xf32, #tpu.memory_space<vmem>>, vector<24x384xf32>,
    } else {
    }
    return
  }
  func.func @transform_0(%arg0: i32, %arg1: i32, %arg2: i32) -> (i32, i32) {
    %c0_i32 = arith.constant 0 : i32
    return %arg0, %arg2 : i32, i32
  }
  func.func @transform_1(%arg0: i32, %arg1: i32, %arg2: i32) -> (i32, i32) {
    %c0_i32 = arith.constant 0 : i32
    return %arg2, %arg1 : i32, i32
  }
  func.func @transform_2(%arg0: i32, %arg1: i32, %arg2: i32) -> (i32, i32) {
    %c0_i32 = arith.constant 0 : i32
    %c0_i32_0 = arith.constant 0 : i32
    return %c0_i32, %arg1 : i32, i32
  }
  func.func @transform_3(%arg0: i32, %arg1: i32, %arg2: i32) -> (i32, i32) {
    %c0_i32 = arith.constant 0 : i32
    return %arg0, %arg1 : i32, i32
  }
}

module attributes {stable_mosaic.version = 11 : i64} {
  func.func @_matmul_bias_kernel(%arg0: i32, %arg1: i32, %arg2: i32, %arg3: memref<24x384xbf16, #tpu.memory_space<vmem>>, %arg4: memref<384x256xbf16, #tpu.memory_space<vmem>>, %arg5: memref<1x256xf32, #tpu.memory_space<vmem>>, %arg6: memref<24x256xf32, #tpu.memory_space<vmem>>, %arg7: memref<24x256xf32, #tpu.memory_space<vmem>>) attributes {dimension_semantics = [#tpu.dimension_semantics<parallel>, #tpu.dimension_semantics<parallel>, #tpu.dimension_semantics<arbitrary>], iteration_bounds = array<i64: 1, 1, 9>, scalar_prefetch = 0 : i64, scratch_operands = 1 : i64, tpu.core_type = #tpu.core_type<tc>, window_params = [{transform_indices = @transform_0, window_bounds = array<i64: 24, 384>}, {transform_indices = @transform_1, window_bounds = array<i64: 384, 256>}, {transform_indices = @transform_2, window_bounds = array<i64: 1, 256>}, {transform_indices = @transform_3, window_bounds = array<i64: 24, 256>}]} {
    %c0_i32 = arith.constant 0 : i32
    %0 = arith.cmpi eq, %arg2, %c0_i32 : i32
    %1 = arith.extui %0 : i1 to i32
    %c0_i32_0 = arith.constant 0 : i32
    %2 = arith.cmpi ne, %1, %c0_i32_0 : i32
    scf.if %2 {
      %cst_9 = arith.constant 0.000000e+00 : f32
      %12 = vector.broadcast %cst_9 : f32 to vector<24x256xf32>
      %c0_10 = arith.constant 0 : index
      %c0_11 = arith.constant 0 : index
      %13 = vector.load %arg7[%c0_10, %c0_11] : memref<24x256xf32, #tpu.memory_space<vmem>>, vector<24x256xf32>
      tpu.vector_store %arg7[%c0_10, %c0_11], %12 {strides = array<i32>} : memref<24x256xf32, #tpu.memory_space<vmem>>, vector<24x256xf32>,
    } else {
    }
    %c0 = arith.constant 0 : index
    %c0_1 = arith.constant 0 : index
    %3 = vector.load %arg7[%c0, %c0_1] : memref<24x256xf32, #tpu.memory_space<vmem>>, vector<24x256xf32>
    %c0_2 = arith.constant 0 : index
    %c0_3 = arith.constant 0 : index
    %4 = vector.load %arg3[%c0_2, %c0_3] : memref<24x384xbf16, #tpu.memory_space<vmem>>, vector<24x384xbf16>
    %c0_4 = arith.constant 0 : index
    %c0_5 = arith.constant 0 : index
    %5 = vector.load %arg4[%c0_4, %c0_5] : memref<384x256xbf16, #tpu.memory_space<vmem>>, vector<384x256xbf16>
    %cst = arith.constant dense<0.000000e+00> : vector<24x256xf32>
    %6 = tpu.matmul %4, %5, %cst {dimension_numbers = #tpu.dot_dimension_numbers<[1], [0], [0], [1], [0, 0, 1, 1], [], []>} : vector<24x384xbf16>, vector<384x256xbf16>, vector<24x256xf32> -> vector<24x256xf32>
    %7 = arith.addf %3, %6 : vector<24x256xf32>
    %c0_6 = arith.constant 0 : index
    %c0_7 = arith.constant 0 : index
    %8 = vector.load %arg7[%c0_6, %c0_7] : memref<24x256xf32, #tpu.memory_space<vmem>>, vector<24x256xf32>
    tpu.vector_store %arg7[%c0_6, %c0_7], %7 {strides = array<i32>} : memref<24x256xf32, #tpu.memory_space<vmem>>, vector<24x256xf32>,
    %c8_i32 = arith.constant 8 : i32
    %9 = arith.cmpi eq, %arg2, %c8_i32 : i32
    %10 = arith.extui %9 : i1 to i32
    %c0_i32_8 = arith.constant 0 : i32
    %11 = arith.cmpi ne, %10, %c0_i32_8 : i32
    scf.if %11 {
      %c0_9 = arith.constant 0 : index
      %c0_10 = arith.constant 0 : index
      %12 = vector.load %arg7[%c0_9, %c0_10] : memref<24x256xf32, #tpu.memory_space<vmem>>, vector<24x256xf32>
      %c0_11 = arith.constant 0 : index
      %c0_12 = arith.constant 0 : index
      %13 = vector.load %arg5[%c0_11, %c0_12] : memref<1x256xf32, #tpu.memory_space<vmem>>, vector<1x256xf32>
      %14 = vector.broadcast %13 : vector<1x256xf32> to vector<24x256xf32>
      %15 = arith.addf %12, %14 : vector<24x256xf32>
      %cst_13 = arith.constant 0.000000e+00 : f32
      %16 = vector.broadcast %cst_13 : f32 to vector<24x256xf32>
      %17 = arith.maximumf %15, %16 : vector<24x256xf32>
      %c0_14 = arith.constant 0 : index
      %c0_15 = arith.constant 0 : index
      %18 = vector.load %arg6[%c0_14, %c0_15] : memref<24x256xf32, #tpu.memory_space<vmem>>, vector<24x256xf32>
      tpu.vector_store %arg6[%c0_14, %c0_15], %17 {strides = array<i32>} : memref<24x256xf32, #tpu.memory_space<vmem>>, vector<24x256xf32>,
    } else {
    }
    return
  }
  func.func @transform_0(%arg0: i32, %arg1: i32, %arg2: i32) -> (i32, i32) {
    %c0_i32 = arith.constant 0 : i32
    return %arg0, %arg2 : i32, i32
  }
  func.func @transform_1(%arg0: i32, %arg1: i32, %arg2: i32) -> (i32, i32) {
    %c0_i32 = arith.constant 0 : i32
    return %arg2, %arg1 : i32, i32
  }
  func.func @transform_2(%arg0: i32, %arg1: i32, %arg2: i32) -> (i32, i32) {
    %c0_i32 = arith.constant 0 : i32
    %c0_i32_0 = arith.constant 0 : i32
    return %c0_i32, %arg1 : i32, i32
  }
  func.func @transform_3(%arg0: i32, %arg1: i32, %arg2: i32) -> (i32, i32) {
    %c0_i32 = arith.constant 0 : i32
    return %arg0, %arg1 : i32, i32
  }
}

module attributes {stable_mosaic.version = 11 : i64} {
  func.func @_matmul_bias_kernel(%arg0: i32, %arg1: i32, %arg2: i32, %arg3: memref<24x768xbf16, #tpu.memory_space<vmem>>, %arg4: memref<768x256xbf16, #tpu.memory_space<vmem>>, %arg5: memref<1x256xf32, #tpu.memory_space<vmem>>, %arg6: memref<24x256xf32, #tpu.memory_space<vmem>>, %arg7: memref<24x256xf32, #tpu.memory_space<vmem>>) attributes {dimension_semantics = [#tpu.dimension_semantics<parallel>, #tpu.dimension_semantics<parallel>, #tpu.dimension_semantics<arbitrary>], iteration_bounds = array<i64: 1, 1, 3>, scalar_prefetch = 0 : i64, scratch_operands = 1 : i64, tpu.core_type = #tpu.core_type<tc>, window_params = [{transform_indices = @transform_0, window_bounds = array<i64: 24, 768>}, {transform_indices = @transform_1, window_bounds = array<i64: 768, 256>}, {transform_indices = @transform_2, window_bounds = array<i64: 1, 256>}, {transform_indices = @transform_3, window_bounds = array<i64: 24, 256>}]} {
    %c0_i32 = arith.constant 0 : i32
    %0 = arith.cmpi eq, %arg2, %c0_i32 : i32
    %1 = arith.extui %0 : i1 to i32
    %c0_i32_0 = arith.constant 0 : i32
    %2 = arith.cmpi ne, %1, %c0_i32_0 : i32
    scf.if %2 {
      %cst_9 = arith.constant 0.000000e+00 : f32
      %12 = vector.broadcast %cst_9 : f32 to vector<24x256xf32>
      %c0_10 = arith.constant 0 : index
      %c0_11 = arith.constant 0 : index
      %13 = vector.load %arg7[%c0_10, %c0_11] : memref<24x256xf32, #tpu.memory_space<vmem>>, vector<24x256xf32>
      tpu.vector_store %arg7[%c0_10, %c0_11], %12 {strides = array<i32>} : memref<24x256xf32, #tpu.memory_space<vmem>>, vector<24x256xf32>,
    } else {
    }
    %c0 = arith.constant 0 : index
    %c0_1 = arith.constant 0 : index
    %3 = vector.load %arg7[%c0, %c0_1] : memref<24x256xf32, #tpu.memory_space<vmem>>, vector<24x256xf32>
    %c0_2 = arith.constant 0 : index
    %c0_3 = arith.constant 0 : index
    %4 = vector.load %arg3[%c0_2, %c0_3] : memref<24x768xbf16, #tpu.memory_space<vmem>>, vector<24x768xbf16>
    %c0_4 = arith.constant 0 : index
    %c0_5 = arith.constant 0 : index
    %5 = vector.load %arg4[%c0_4, %c0_5] : memref<768x256xbf16, #tpu.memory_space<vmem>>, vector<768x256xbf16>
    %cst = arith.constant dense<0.000000e+00> : vector<24x256xf32>
    %6 = tpu.matmul %4, %5, %cst {dimension_numbers = #tpu.dot_dimension_numbers<[1], [0], [0], [1], [0, 0, 1, 1], [], []>} : vector<24x768xbf16>, vector<768x256xbf16>, vector<24x256xf32> -> vector<24x256xf32>
    %7 = arith.addf %3, %6 : vector<24x256xf32>
    %c0_6 = arith.constant 0 : index
    %c0_7 = arith.constant 0 : index
    %8 = vector.load %arg7[%c0_6, %c0_7] : memref<24x256xf32, #tpu.memory_space<vmem>>, vector<24x256xf32>
    tpu.vector_store %arg7[%c0_6, %c0_7], %7 {strides = array<i32>} : memref<24x256xf32, #tpu.memory_space<vmem>>, vector<24x256xf32>,
    %c2_i32 = arith.constant 2 : i32
    %9 = arith.cmpi eq, %arg2, %c2_i32 : i32
    %10 = arith.extui %9 : i1 to i32
    %c0_i32_8 = arith.constant 0 : i32
    %11 = arith.cmpi ne, %10, %c0_i32_8 : i32
    scf.if %11 {
      %c0_9 = arith.constant 0 : index
      %c0_10 = arith.constant 0 : index
      %12 = vector.load %arg7[%c0_9, %c0_10] : memref<24x256xf32, #tpu.memory_space<vmem>>, vector<24x256xf32>
      %c0_11 = arith.constant 0 : index
      %c0_12 = arith.constant 0 : index
      %13 = vector.load %arg5[%c0_11, %c0_12] : memref<1x256xf32, #tpu.memory_space<vmem>>, vector<1x256xf32>
      %14 = vector.broadcast %13 : vector<1x256xf32> to vector<24x256xf32>
      %15 = arith.addf %12, %14 : vector<24x256xf32>
      %cst_13 = arith.constant 0.000000e+00 : f32
      %16 = vector.broadcast %cst_13 : f32 to vector<24x256xf32>
      %17 = arith.maximumf %15, %16 : vector<24x256xf32>
      %c0_14 = arith.constant 0 : index
      %c0_15 = arith.constant 0 : index
      %18 = vector.load %arg6[%c0_14, %c0_15] : memref<24x256xf32, #tpu.memory_space<vmem>>, vector<24x256xf32>
      tpu.vector_store %arg6[%c0_14, %c0_15], %17 {strides = array<i32>} : memref<24x256xf32, #tpu.memory_space<vmem>>, vector<24x256xf32>,
    } else {
    }
    return
  }
  func.func @transform_0(%arg0: i32, %arg1: i32, %arg2: i32) -> (i32, i32) {
    %c0_i32 = arith.constant 0 : i32
    return %arg0, %arg2 : i32, i32
  }
  func.func @transform_1(%arg0: i32, %arg1: i32, %arg2: i32) -> (i32, i32) {
    %c0_i32 = arith.constant 0 : i32
    return %arg2, %arg1 : i32, i32
  }
  func.func @transform_2(%arg0: i32, %arg1: i32, %arg2: i32) -> (i32, i32) {
    %c0_i32 = arith.constant 0 : i32
    %c0_i32_0 = arith.constant 0 : i32
    return %c0_i32, %arg1 : i32, i32
  }
  func.func @transform_3(%arg0: i32, %arg1: i32, %arg2: i32) -> (i32, i32) {
    %c0_i32 = arith.constant 0 : i32
    return %arg0, %arg1 : i32, i32
  }
}

module attributes {stable_mosaic.version = 11 : i64} {
  func.func @_matmul_bias_kernel(%arg0: i32, %arg1: i32, %arg2: i32, %arg3: memref<8x1024xbf16, #tpu.memory_space<vmem>>, %arg4: memref<1024x512xbf16, #tpu.memory_space<vmem>>, %arg5: memref<1x512xf32, #tpu.memory_space<vmem>>, %arg6: memref<8x512xf32, #tpu.memory_space<vmem>>, %arg7: memref<8x512xf32, #tpu.memory_space<vmem>>) attributes {dimension_semantics = [#tpu.dimension_semantics<parallel>, #tpu.dimension_semantics<parallel>, #tpu.dimension_semantics<arbitrary>], iteration_bounds = array<i64: 1, 8, 9>, scalar_prefetch = 0 : i64, scratch_operands = 1 : i64, tpu.core_type = #tpu.core_type<tc>, window_params = [{transform_indices = @transform_0, window_bounds = array<i64: 8, 1024>}, {transform_indices = @transform_1, window_bounds = array<i64: 1024, 512>}, {transform_indices = @transform_2, window_bounds = array<i64: 1, 512>}, {transform_indices = @transform_3, window_bounds = array<i64: 8, 512>}]} {
    %c0_i32 = arith.constant 0 : i32
    %0 = arith.cmpi eq, %arg2, %c0_i32 : i32
    %1 = arith.extui %0 : i1 to i32
    %c0_i32_0 = arith.constant 0 : i32
    %2 = arith.cmpi ne, %1, %c0_i32_0 : i32
    scf.if %2 {
      %cst_9 = arith.constant 0.000000e+00 : f32
      %12 = vector.broadcast %cst_9 : f32 to vector<8x512xf32>
      %c0_10 = arith.constant 0 : index
      %c0_11 = arith.constant 0 : index
      %13 = vector.load %arg7[%c0_10, %c0_11] : memref<8x512xf32, #tpu.memory_space<vmem>>, vector<8x512xf32>
      tpu.vector_store %arg7[%c0_10, %c0_11], %12 {strides = array<i32>} : memref<8x512xf32, #tpu.memory_space<vmem>>, vector<8x512xf32>,
    } else {
    }
    %c0 = arith.constant 0 : index
    %c0_1 = arith.constant 0 : index
    %3 = vector.load %arg7[%c0, %c0_1] : memref<8x512xf32, #tpu.memory_space<vmem>>, vector<8x512xf32>
    %c0_2 = arith.constant 0 : index
    %c0_3 = arith.constant 0 : index
    %4 = vector.load %arg3[%c0_2, %c0_3] : memref<8x1024xbf16, #tpu.memory_space<vmem>>, vector<8x1024xbf16>
    %c0_4 = arith.constant 0 : index
    %c0_5 = arith.constant 0 : index
    %5 = vector.load %arg4[%c0_4, %c0_5] : memref<1024x512xbf16, #tpu.memory_space<vmem>>, vector<1024x512xbf16>
    %cst = arith.constant dense<0.000000e+00> : vector<8x512xf32>
    %6 = tpu.matmul %4, %5, %cst {dimension_numbers = #tpu.dot_dimension_numbers<[1], [0], [0], [1], [0, 0, 1, 1], [], []>} : vector<8x1024xbf16>, vector<1024x512xbf16>, vector<8x512xf32> -> vector<8x512xf32>
    %7 = arith.addf %3, %6 : vector<8x512xf32>
    %c0_6 = arith.constant 0 : index
    %c0_7 = arith.constant 0 : index
    %8 = vector.load %arg7[%c0_6, %c0_7] : memref<8x512xf32, #tpu.memory_space<vmem>>, vector<8x512xf32>
    tpu.vector_store %arg7[%c0_6, %c0_7], %7 {strides = array<i32>} : memref<8x512xf32, #tpu.memory_space<vmem>>, vector<8x512xf32>,
    %c8_i32 = arith.constant 8 : i32
    %9 = arith.cmpi eq, %arg2, %c8_i32 : i32
    %10 = arith.extui %9 : i1 to i32
    %c0_i32_8 = arith.constant 0 : i32
    %11 = arith.cmpi ne, %10, %c0_i32_8 : i32
    scf.if %11 {
      %c0_9 = arith.constant 0 : index
      %c0_10 = arith.constant 0 : index
      %12 = vector.load %arg7[%c0_9, %c0_10] : memref<8x512xf32, #tpu.memory_space<vmem>>, vector<8x512xf32>
      %c0_11 = arith.constant 0 : index
      %c0_12 = arith.constant 0 : index
      %13 = vector.load %arg5[%c0_11, %c0_12] : memref<1x512xf32, #tpu.memory_space<vmem>>, vector<1x512xf32>
      %14 = vector.broadcast %13 : vector<1x512xf32> to vector<8x512xf32>
      %15 = arith.addf %12, %14 : vector<8x512xf32>
      %cst_13 = arith.constant 0.000000e+00 : f32
      %16 = vector.broadcast %cst_13 : f32 to vector<8x512xf32>
      %17 = arith.maximumf %15, %16 : vector<8x512xf32>
      %c0_14 = arith.constant 0 : index
      %c0_15 = arith.constant 0 : index
      %18 = vector.load %arg6[%c0_14, %c0_15] : memref<8x512xf32, #tpu.memory_space<vmem>>, vector<8x512xf32>
      tpu.vector_store %arg6[%c0_14, %c0_15], %17 {strides = array<i32>} : memref<8x512xf32, #tpu.memory_space<vmem>>, vector<8x512xf32>,
    } else {
    }
    return
  }
  func.func @transform_0(%arg0: i32, %arg1: i32, %arg2: i32) -> (i32, i32) {
    %c0_i32 = arith.constant 0 : i32
    return %arg0, %arg2 : i32, i32
  }
  func.func @transform_1(%arg0: i32, %arg1: i32, %arg2: i32) -> (i32, i32) {
    %c0_i32 = arith.constant 0 : i32
    return %arg2, %arg1 : i32, i32
  }
  func.func @transform_2(%arg0: i32, %arg1: i32, %arg2: i32) -> (i32, i32) {
    %c0_i32 = arith.constant 0 : i32
    %c0_i32_0 = arith.constant 0 : i32
    return %c0_i32, %arg1 : i32, i32
  }
  func.func @transform_3(%arg0: i32, %arg1: i32, %arg2: i32) -> (i32, i32) {
    %c0_i32 = arith.constant 0 : i32
    return %arg0, %arg1 : i32, i32
  }
}

module attributes {stable_mosaic.version = 11 : i64} {
  func.func @_matmul_bias_kernel(%arg0: i32, %arg1: i32, %arg2: i32, %arg3: memref<8x1024xbf16, #tpu.memory_space<vmem>>, %arg4: memref<1024x512xbf16, #tpu.memory_space<vmem>>, %arg5: memref<1x512xf32, #tpu.memory_space<vmem>>, %arg6: memref<8x512xf32, #tpu.memory_space<vmem>>, %arg7: memref<8x512xf32, #tpu.memory_space<vmem>>) attributes {dimension_semantics = [#tpu.dimension_semantics<parallel>, #tpu.dimension_semantics<parallel>, #tpu.dimension_semantics<arbitrary>], iteration_bounds = array<i64: 1, 8, 4>, scalar_prefetch = 0 : i64, scratch_operands = 1 : i64, tpu.core_type = #tpu.core_type<tc>, window_params = [{transform_indices = @transform_0, window_bounds = array<i64: 8, 1024>}, {transform_indices = @transform_1, window_bounds = array<i64: 1024, 512>}, {transform_indices = @transform_2, window_bounds = array<i64: 1, 512>}, {transform_indices = @transform_3, window_bounds = array<i64: 8, 512>}]} {
    %c0_i32 = arith.constant 0 : i32
    %0 = arith.cmpi eq, %arg2, %c0_i32 : i32
    %1 = arith.extui %0 : i1 to i32
    %c0_i32_0 = arith.constant 0 : i32
    %2 = arith.cmpi ne, %1, %c0_i32_0 : i32
    scf.if %2 {
      %cst_9 = arith.constant 0.000000e+00 : f32
      %12 = vector.broadcast %cst_9 : f32 to vector<8x512xf32>
      %c0_10 = arith.constant 0 : index
      %c0_11 = arith.constant 0 : index
      %13 = vector.load %arg7[%c0_10, %c0_11] : memref<8x512xf32, #tpu.memory_space<vmem>>, vector<8x512xf32>
      tpu.vector_store %arg7[%c0_10, %c0_11], %12 {strides = array<i32>} : memref<8x512xf32, #tpu.memory_space<vmem>>, vector<8x512xf32>,
    } else {
    }
    %c0 = arith.constant 0 : index
    %c0_1 = arith.constant 0 : index
    %3 = vector.load %arg7[%c0, %c0_1] : memref<8x512xf32, #tpu.memory_space<vmem>>, vector<8x512xf32>
    %c0_2 = arith.constant 0 : index
    %c0_3 = arith.constant 0 : index
    %4 = vector.load %arg3[%c0_2, %c0_3] : memref<8x1024xbf16, #tpu.memory_space<vmem>>, vector<8x1024xbf16>
    %c0_4 = arith.constant 0 : index
    %c0_5 = arith.constant 0 : index
    %5 = vector.load %arg4[%c0_4, %c0_5] : memref<1024x512xbf16, #tpu.memory_space<vmem>>, vector<1024x512xbf16>
    %cst = arith.constant dense<0.000000e+00> : vector<8x512xf32>
    %6 = tpu.matmul %4, %5, %cst {dimension_numbers = #tpu.dot_dimension_numbers<[1], [0], [0], [1], [0, 0, 1, 1], [], []>} : vector<8x1024xbf16>, vector<1024x512xbf16>, vector<8x512xf32> -> vector<8x512xf32>
    %7 = arith.addf %3, %6 : vector<8x512xf32>
    %c0_6 = arith.constant 0 : index
    %c0_7 = arith.constant 0 : index
    %8 = vector.load %arg7[%c0_6, %c0_7] : memref<8x512xf32, #tpu.memory_space<vmem>>, vector<8x512xf32>
    tpu.vector_store %arg7[%c0_6, %c0_7], %7 {strides = array<i32>} : memref<8x512xf32, #tpu.memory_space<vmem>>, vector<8x512xf32>,
    %c3_i32 = arith.constant 3 : i32
    %9 = arith.cmpi eq, %arg2, %c3_i32 : i32
    %10 = arith.extui %9 : i1 to i32
    %c0_i32_8 = arith.constant 0 : i32
    %11 = arith.cmpi ne, %10, %c0_i32_8 : i32
    scf.if %11 {
      %c0_9 = arith.constant 0 : index
      %c0_10 = arith.constant 0 : index
      %12 = vector.load %arg7[%c0_9, %c0_10] : memref<8x512xf32, #tpu.memory_space<vmem>>, vector<8x512xf32>
      %c0_11 = arith.constant 0 : index
      %c0_12 = arith.constant 0 : index
      %13 = vector.load %arg5[%c0_11, %c0_12] : memref<1x512xf32, #tpu.memory_space<vmem>>, vector<1x512xf32>
      %14 = vector.broadcast %13 : vector<1x512xf32> to vector<8x512xf32>
      %15 = arith.addf %12, %14 : vector<8x512xf32>
      %cst_13 = arith.constant 0.000000e+00 : f32
      %16 = vector.broadcast %cst_13 : f32 to vector<8x512xf32>
      %17 = arith.maximumf %15, %16 : vector<8x512xf32>
      %c0_14 = arith.constant 0 : index
      %c0_15 = arith.constant 0 : index
      %18 = vector.load %arg6[%c0_14, %c0_15] : memref<8x512xf32, #tpu.memory_space<vmem>>, vector<8x512xf32>
      tpu.vector_store %arg6[%c0_14, %c0_15], %17 {strides = array<i32>} : memref<8x512xf32, #tpu.memory_space<vmem>>, vector<8x512xf32>,
    } else {
    }
    return
  }
  func.func @transform_0(%arg0: i32, %arg1: i32, %arg2: i32) -> (i32, i32) {
    %c0_i32 = arith.constant 0 : i32
    return %arg0, %arg2 : i32, i32
  }
  func.func @transform_1(%arg0: i32, %arg1: i32, %arg2: i32) -> (i32, i32) {
    %c0_i32 = arith.constant 0 : i32
    return %arg2, %arg1 : i32, i32
  }
  func.func @transform_2(%arg0: i32, %arg1: i32, %arg2: i32) -> (i32, i32) {
    %c0_i32 = arith.constant 0 : i32
    %c0_i32_0 = arith.constant 0 : i32
    return %c0_i32, %arg1 : i32, i32
  }
  func.func @transform_3(%arg0: i32, %arg1: i32, %arg2: i32) -> (i32, i32) {
    %c0_i32 = arith.constant 0 : i32
    return %arg0, %arg1 : i32, i32
  }
}

module attributes {stable_mosaic.version = 11 : i64} {
  func.func @_matmul_bias_kernel(%arg0: i32, %arg1: i32, %arg2: i32, %arg3: memref<8x1024xbf16, #tpu.memory_space<vmem>>, %arg4: memref<1024x128xbf16, #tpu.memory_space<vmem>>, %arg5: memref<1x128xf32, #tpu.memory_space<vmem>>, %arg6: memref<8x128xf32, #tpu.memory_space<vmem>>, %arg7: memref<8x128xf32, #tpu.memory_space<vmem>>) attributes {dimension_semantics = [#tpu.dimension_semantics<parallel>, #tpu.dimension_semantics<parallel>, #tpu.dimension_semantics<arbitrary>], iteration_bounds = array<i64: 1, 1, 4>, scalar_prefetch = 0 : i64, scratch_operands = 1 : i64, tpu.core_type = #tpu.core_type<tc>, window_params = [{transform_indices = @transform_0, window_bounds = array<i64: 8, 1024>}, {transform_indices = @transform_1, window_bounds = array<i64: 1024, 128>}, {transform_indices = @transform_2, window_bounds = array<i64: 1, 128>}, {transform_indices = @transform_3, window_bounds = array<i64: 8, 128>}]} {
    %c0_i32 = arith.constant 0 : i32
    %0 = arith.cmpi eq, %arg2, %c0_i32 : i32
    %1 = arith.extui %0 : i1 to i32
    %c0_i32_0 = arith.constant 0 : i32
    %2 = arith.cmpi ne, %1, %c0_i32_0 : i32
    scf.if %2 {
      %cst_9 = arith.constant 0.000000e+00 : f32
      %12 = vector.broadcast %cst_9 : f32 to vector<8x128xf32>
      %c0_10 = arith.constant 0 : index
      %c0_11 = arith.constant 0 : index
      %13 = vector.load %arg7[%c0_10, %c0_11] : memref<8x128xf32, #tpu.memory_space<vmem>>, vector<8x128xf32>
      tpu.vector_store %arg7[%c0_10, %c0_11], %12 {strides = array<i32>} : memref<8x128xf32, #tpu.memory_space<vmem>>, vector<8x128xf32>,
    } else {
    }
    %c0 = arith.constant 0 : index
    %c0_1 = arith.constant 0 : index
    %3 = vector.load %arg7[%c0, %c0_1] : memref<8x128xf32, #tpu.memory_space<vmem>>, vector<8x128xf32>
    %c0_2 = arith.constant 0 : index
    %c0_3 = arith.constant 0 : index
    %4 = vector.load %arg3[%c0_2, %c0_3] : memref<8x1024xbf16, #tpu.memory_space<vmem>>, vector<8x1024xbf16>
    %c0_4 = arith.constant 0 : index
    %c0_5 = arith.constant 0 : index
    %5 = vector.load %arg4[%c0_4, %c0_5] : memref<1024x128xbf16, #tpu.memory_space<vmem>>, vector<1024x128xbf16>
    %cst = arith.constant dense<0.000000e+00> : vector<8x128xf32>
    %6 = tpu.matmul %4, %5, %cst {dimension_numbers = #tpu.dot_dimension_numbers<[1], [0], [0], [1], [0, 0, 1, 1], [], []>} : vector<8x1024xbf16>, vector<1024x128xbf16>, vector<8x128xf32> -> vector<8x128xf32>
    %7 = arith.addf %3, %6 : vector<8x128xf32>
    %c0_6 = arith.constant 0 : index
    %c0_7 = arith.constant 0 : index
    %8 = vector.load %arg7[%c0_6, %c0_7] : memref<8x128xf32, #tpu.memory_space<vmem>>, vector<8x128xf32>
    tpu.vector_store %arg7[%c0_6, %c0_7], %7 {strides = array<i32>} : memref<8x128xf32, #tpu.memory_space<vmem>>, vector<8x128xf32>,
    %c3_i32 = arith.constant 3 : i32
    %9 = arith.cmpi eq, %arg2, %c3_i32 : i32
    %10 = arith.extui %9 : i1 to i32
    %c0_i32_8 = arith.constant 0 : i32
    %11 = arith.cmpi ne, %10, %c0_i32_8 : i32
    scf.if %11 {
      %c0_9 = arith.constant 0 : index
      %c0_10 = arith.constant 0 : index
      %12 = vector.load %arg7[%c0_9, %c0_10] : memref<8x128xf32, #tpu.memory_space<vmem>>, vector<8x128xf32>
      %c0_11 = arith.constant 0 : index
      %c0_12 = arith.constant 0 : index
      %13 = vector.load %arg5[%c0_11, %c0_12] : memref<1x128xf32, #tpu.memory_space<vmem>>, vector<1x128xf32>
      %14 = vector.broadcast %13 : vector<1x128xf32> to vector<8x128xf32>
      %15 = arith.addf %12, %14 : vector<8x128xf32>
      %c0_13 = arith.constant 0 : index
      %c0_14 = arith.constant 0 : index
      %16 = vector.load %arg6[%c0_13, %c0_14] : memref<8x128xf32, #tpu.memory_space<vmem>>, vector<8x128xf32>
      tpu.vector_store %arg6[%c0_13, %c0_14], %15 {strides = array<i32>} : memref<8x128xf32, #tpu.memory_space<vmem>>, vector<8x128xf32>,
    } else {
    }
    return
  }
  func.func @transform_0(%arg0: i32, %arg1: i32, %arg2: i32) -> (i32, i32) {
    %c0_i32 = arith.constant 0 : i32
    return %arg0, %arg2 : i32, i32
  }
  func.func @transform_1(%arg0: i32, %arg1: i32, %arg2: i32) -> (i32, i32) {
    %c0_i32 = arith.constant 0 : i32
    return %arg2, %arg1 : i32, i32
  }
  func.func @transform_2(%arg0: i32, %arg1: i32, %arg2: i32) -> (i32, i32) {
    %c0_i32 = arith.constant 0 : i32
    %c0_i32_0 = arith.constant 0 : i32
    return %c0_i32, %arg1 : i32, i32
  }
  func.func @transform_3(%arg0: i32, %arg1: i32, %arg2: i32) -> (i32, i32) {
    %c0_i32 = arith.constant 0 : i32
    return %arg0, %arg1 : i32, i32
  }
}

</mosaic_0001>

<bundles_post_ra>
// kernel: forward.8
= control target key start
LH: loop header
LB: loop body
LE: loop exit
PB: predicated region body
PF: predicated region fallthrough
CT: control target
= control target key end

     0   :  { %s1366_s12 = smov 0   ;;  %s1368_s13 = smov 0   ;;  %s1627_s0 = inlined_call_operand.vmem [shape: bf16[512,384], index: 0, kind: input, shape index: {}]   ;;  %s1628_s1 = inlined_call_operand.vmem [shape: bf16[384,128], index: 1, kind: input, shape index: {}]   ;;  %s1629_s2 = inlined_call_operand.vmem [shape: f32[1,128], index: 2, kind: input, shape index: {}]   ;;  %s1630_s3 = inlined_call_operand.vmem [shape: f32[512,128], index: 3, kind: output, shape index: {}]  }
   0x1   :  { %s1370_s14 = smov 0  }
   0x2 LB: > { %s32_s15 = sadd.s32 1, %s1340_s13  ;;  %p1025_p0 = scmp.ge.s32.totalorder %s1344_s14, 1  ;;  %s1344_s14 = sphi %s1370_s14, %s13_s14   ;;  %s1340_s13 = sphi %s1368_s13, %s1632_s13   ;;  %s1336_s12 = sphi %s1366_s12, %s1631_s12  }
   0x3   : > { %p34_p1 = scmp.ge.s32.totalorder %s32_s15, 4  ;;  %p191_p2 = scmp.lt.s32.totalorder %s1344_s14, 5 }
   0x5   : > { %s1634_s15 = smov (%p34_p1, %s32_s15), 0  ;;  %p192_p3 = pnand %p1025_p0, %p191_p2 }
   0x6   : > { %s1026_s7 = sshll.u32 (!%p192_p3), %s1336_s12, 4 }
   0x7   : > { %195 = sbr.rel (%p192_p3) target bundleno = 273 (0x111), region = 32  ;;  %p236_p4 = scmp.lt.s32.totalorder (!%p192_p3), %s1026_s7, 63 }
   0xc   : > { %v1255_v0 = vld [vmem:[%s1628_s1 + $0x38] sm:$0xff]  ;;  %v1254_v3 = vld [vmem:[%s1628_s1 + $0x30] sm:$0xff]  ;;  %v1253_v6 = vld [vmem:[%s1628_s1 + $0x28] sm:$0xff]  ;;  %s1636_s7 = smov (!%p236_p4, %s1026_s7), 63 }
   0xd   : > { %v1392_v1 = vld [vmem:[%s1628_s1 + $0x78] sm:$0xff]  ;;  %655 = vmatpush.bf16.msra.mxu0 %v1255_v0  ;;  %1272 = vmatpush.bf16.msra.mxu3 %v1255_v0  ;;  %v1407_v4 = vld [vmem:[%s1628_s1 + $0x70] sm:$0xff]  ;;  %v1422_v7 = vld [vmem:[%s1628_s1 + $0x68] sm:$0xff]  ;;  %s1296_s25 = smul.u32 12, %s1636_s7  ;;  %s1029_s24 = sshll.u32 %s1636_s7, 3 }
   0xe   : > { %v1397_v2 = vld [vmem:[%s1628_s1 + $0xb8] sm:$0xff]  ;;  %704 = vmatpush.bf16.msra.mxu1 %v1392_v1  ;;  %v1412_v5 = vld [vmem:[%s1628_s1 + $0xb0] sm:$0xff]  ;;  %v1427_v8 = vld [vmem:[%s1628_s1 + $0xa8] sm:$0xff]  ;;  %s1575_s27 = scalar_lea.vmem %s1630_s3, %s1029_s24 }
   0xf   : > { %753 = vmatpush.bf16.msra.mxu2 %v1397_v2  ;;  %v1252_v9 = vld [vmem:[%s1628_s1 + $0x20] sm:$0xff]  ;;  %v1251_v12 = vld [vmem:[%s1628_s1 + $0x18] sm:$0xff]  ;;  %v1250_v15 = vld [vmem:[%s1628_s1 + $0x10] sm:$0xff]  ;;  %s1479_s8 = scalar_lea.vmem %s1627_s0, %s1296_s25 }
  0x10   : > { %v1438_v10 = vld [vmem:[%s1628_s1 + $0x60] sm:$0xff]  ;;  %v1259_v13 = vld [vmem:[%s1628_s1 + $0x58] sm:$0xff]  ;;  %v1258_v16 = vld [vmem:[%s1628_s1 + $0x50] sm:$0xff] }
  0x11   : > { %656 = vmatpush.bf16.msra.mxu0 %v1254_v3  ;;  %1273 = vmatpush.bf16.msra.mxu3 %v1254_v3  ;;  %v1443_v11 = vld [vmem:[%s1628_s1 + $0xa0] sm:$0xff]  ;;  %v1458_v14 = vld [vmem:[%s1628_s1 + $0x98] sm:$0xff]  ;;  %v1471_v17 = vld [vmem:[%s1628_s1 + $0x90] sm:$0xff] }
  0x12   : > { %705 = vmatpush.bf16.msra.mxu1 %v1407_v4  ;;  %v1249_v18 = vld [vmem:[%s1628_s1 + $0x8] sm:$0xff]  ;;  %v1248_v21 = vld [vmem:[%s1628_s1] sm:$0xff]  ;;  %v1104_v26 = vld [vmem:[%s1479_s8 + $0x90] sm:$0xf] }
  0x13   : > { %754 = vmatpush.bf16.msra.mxu2 %v1412_v5  ;;  %v1257_v19 = vld [vmem:[%s1628_s1 + $0x48] sm:$0xff]  ;;  %v1256_v22 = vld [vmem:[%s1628_s1 + $0x40] sm:$0xff]  ;;  %v1243_v27 = vld [vmem:[%s1479_s8 + $0x98] sm:$0xf0] }
  0x14   : > { %v1488_v20 = vld [vmem:[%s1628_s1 + $0x88] sm:$0xff]  ;;  %v1499_v23 = vld [vmem:[%s1628_s1 + $0x80] sm:$0xff]  ;;  %v1034_v29 = vld [vmem:[%s1479_s8 + $0xc] sm:$0xf0]  ;;  %v1105_v33 = vor.u32 %v1243_v27, %v1104_v26 }
  0x15   : > { %657 = vmatpush.bf16.msra.mxu0 %v1253_v6  ;;  %1274 = vmatpush.bf16.msra.mxu3 %v1253_v6  ;;  %v1032_v24 = vld [vmem:[%s1479_s8] sm:$0xf]  ;;  %v1225_v25 = vld [vmem:[%s1479_s8 + $0x8] sm:$0xf0]  ;;  %v1224_v28 = vld [vmem:[%s1479_s8 + $0x4] sm:$0xf] }
  0x16   : > { %706 = vmatpush.bf16.msra.mxu1 %v1422_v7  ;;  %v1040_v30 = vld [vmem:[%s1479_s8 + $0x8] sm:$0xf]  ;;  %v1226_v31 = vld [vmem:[%s1479_s8 + $0x10] sm:$0xf0]  ;;  %v1033_v32 = vor.u32 %v1225_v25, %v1032_v24  ;;  %v1037_v34 = vor.u32 %v1224_v28, %v1034_v29  ;;  %v1044_v36 = vld [vmem:[%s1479_s8 + $0x18] sm:$0xf] }
  0x17   : > { %755 = vmatpush.bf16.msra.mxu2 %v1427_v8  ;;  %v1041_v35 = vor.u32 %v1226_v31, %v1040_v30  ;;  %v1228_v37 = vld [vmem:[%s1479_s8 + $0x20] sm:$0xf0]  ;;  %v1116_v38 = vld [vmem:[%s1479_s8 + $0xa8] sm:$0xf]  ;;  %v1246_v39 = vld [vmem:[%s1479_s8 + $0xb0] sm:$0xf0] }
  0x18   : > { %v1227_v40 = vld [vmem:[%s1479_s8 + $0x1c] sm:$0xf]  ;;  %v1046_v41 = vld [vmem:[%s1479_s8 + $0x24] sm:$0xf0]  ;;  %v1052_v42 = vld [vmem:[%s1479_s8 + $0x20] sm:$0xf]  ;;  %v1045_v44 = vor.u32 %v1228_v37, %v1044_v36  ;;  %v1117_v45 = vor.u32 %v1246_v39, %v1116_v38 }
  0x19   : > { %658 = vmatpush.bf16.msra.mxu0 %v1252_v9  ;;  %1275 = vmatpush.bf16.msra.mxu3 %v1252_v9  ;;  %v1229_v43 = vld [vmem:[%s1479_s8 + $0x28] sm:$0xf0]  ;;  %v1049_v46 = vor.u32 %v1227_v40, %v1046_v41  ;;  %v1056_v48 = vld [vmem:[%s1479_s8 + $0x30] sm:$0xf]  ;;  %v1231_v49 = vld [vmem:[%s1479_s8 + $0x38] sm:$0xf0] }
  0x1a   : > { %707 = vmatpush.bf16.msra.mxu1 %v1438_v10  ;;  %v1053_v47 = vor.u32 %v1229_v43, %v1052_v42  ;;  %v1230_v50 = vld [vmem:[%s1479_s8 + $0x34] sm:$0xf]  ;;  %v1106_v52 = vld [vmem:[%s1479_s8 + $0x9c] sm:$0xf0]  ;;  %v1064_v54 = vld [vmem:[%s1479_s8 + $0x38] sm:$0xf]  ;;  %v1057_v56 = vor.u32 %v1231_v49, %v1056_v48 }
  0x1b   : > { %756 = vmatpush.bf16.msra.mxu2 %v1443_v11  ;;  %v1242_v51 = vld [vmem:[%s1479_s8 + $0x94] sm:$0xf]  ;;  %v1058_v53 = vld [vmem:[%s1479_s8 + $0x3c] sm:$0xf0]  ;;  %v1232_v55 = vld [vmem:[%s1479_s8 + $0x40] sm:$0xf0] }
  0x1c   : > { %v1109_v57 = vor.u32 %v1242_v51, %v1106_v52  ;;  %v1061_v58 = vor.u32 %v1230_v50, %v1058_v53  ;;  %v1065_v59 = vor.u32 %v1232_v55, %v1064_v54  ;;  %v1068_v60 = vld [vmem:[%s1479_s8 + $0x48] sm:$0xf]  ;;  %v1234_v61 = vld [vmem:[%s1479_s8 + $0x50] sm:$0xf0]  ;;  %v1233_v62 = vld [vmem:[%s1479_s8 + $0x4c] sm:$0xf] }
  0x1d   : > { %659 = vmatpush.bf16.msra.mxu0 %v1251_v12  ;;  %1276 = vmatpush.bf16.msra.mxu3 %v1251_v12  ;;  %v1245_v63 = vld [vmem:[%s1479_s8 + $0xac] sm:$0xf]  ;;  %v1118_v0 = vld [vmem:[%s1479_s8 + $0xb4] sm:$0xf0]  ;;  %v1235_v3 = vld [vmem:[%s1479_s8 + $0x58] sm:$0xf0] }
  0x1e   : > { %708 = vmatpush.bf16.msra.mxu1 %v1259_v13  ;;  %v1121_v6 = vor.u32 %v1245_v63, %v1118_v0  ;;  %v1237_v9 = vld [vmem:[%s1479_s8 + $0x68] sm:$0xf0]  ;;  %v1244_v12 = vld [vmem:[%s1479_s8 + $0xa0] sm:$0xf0]  ;;  %v1124_v24 = vld [vmem:[%s1479_s8 + $0xb0] sm:$0xf] }
  0x1f   : > { %757 = vmatpush.bf16.msra.mxu2 %v1458_v14  ;;  %v1094_v25 = vld [vmem:[%s1479_s8 + $0x84] sm:$0xf0]  ;;  %v1100_v26 = vld [vmem:[%s1479_s8 + $0x80] sm:$0xf]  ;;  %v1241_v27 = vld [vmem:[%s1479_s8 + $0x88] sm:$0xf0] }
  0x20   : > { %v1101_v31 = vor.u32 %v1241_v27, %v1100_v26  ;;  %v1568_v36 = vld [vmem:[%s1629_s2] ss:$0 sm:$0xff] }
  0x21   : > { %660 = vmatpush.bf16.msra.mxu0 %v1250_v15  ;;  %1277 = vmatpush.bf16.msra.mxu3 %v1250_v15  ;;  %v1238_v15 = vld [vmem:[%s1479_s8 + $0x70] sm:$0xf0] }
  0x22   : > { %709 = vmatpush.bf16.msra.mxu1 %v1258_v16 }
  0x23   : > { %758 = vmatpush.bf16.msra.mxu2 %v1471_v17 }
  0x25   : > { %661 = vmatpush.bf16.msra.mxu0 %v1249_v18  ;;  %1278 = vmatpush.bf16.msra.mxu3 %v1249_v18 }
  0x26   : > { %710 = vmatpush.bf16.msra.mxu1 %v1257_v19 }
  0x27   : > { %759 = vmatpush.bf16.msra.mxu2 %v1488_v20 }
  0x29   : > { %662 = vmatpush.bf16.msra.mxu0 %v1248_v21  ;;  %1279 = vmatpush.bf16.msra.mxu3 %v1248_v21  ;;  %v1240_v21 = vld [vmem:[%s1479_s8 + $0x80] sm:$0xf0] }
  0x2a   : > { %711 = vmatpush.bf16.msra.mxu1 %v1256_v22 }
  0x2b   : > { %760 = vmatpush.bf16.msra.mxu2 %v1499_v23 }
  0x2c   : > { %663 = vmatmul.bf16.vlgmr.msra.gmra.mxu0 %v1033_v32  ;;  %693 = vmatmul.bf16.vlgmr.msra.gmra.mxu3 %v1105_v33 }
  0x2d   : > { %1280 = vmatpush.bf16.msrb.mxu3 %v1392_v1  ;;  %712 = vmatmul.bf16.vlgmr.msra.gmra.mxu1 %v1037_v34  ;;  %v1070_v1 = vld [vmem:[%s1479_s8 + $0x54] sm:$0xf0] }
  0x2e   : > { %761 = vmatmul.bf16.vlgmr.msra.gmra.mxu2 %v1041_v35 }
  0x31   : > { %1281 = vmatpush.bf16.msrb.mxu3 %v1407_v4  ;;  %v1069_v4 = vor.u32 %v1234_v61, %v1068_v60 }
  0x35   : > { %1282 = vmatpush.bf16.msrb.mxu3 %v1422_v7 }
  0x39   : > { %1283 = vmatpush.bf16.msrb.mxu3 %v1438_v10  ;;  %v1236_v10 = vld [vmem:[%s1479_s8 + $0x64] sm:$0xf] }
  0x3c   : > { %668 = vmatmul.bf16.gmra.mxu0 %v1045_v44  ;;  %698 = vmatmul.bf16.gmra.mxu3 %v1117_v45 }
  0x3d   : > { %1284 = vmatpush.bf16.msrb.mxu3 %v1259_v13  ;;  %717 = vmatmul.bf16.gmra.mxu1 %v1049_v46  ;;  %v1082_v13 = vld [vmem:[%s1479_s8 + $0x6c] sm:$0xf0] }
  0x3e   : > { %766 = vmatmul.bf16.gmra.mxu2 %v1053_v47  ;;  %v1085_v18 = vor.u32 %v1236_v10, %v1082_v13 }
  0x41   : > { %1285 = vmatpush.bf16.msrb.mxu3 %v1258_v16 }
  0x45   : > { %1286 = vmatpush.bf16.msrb.mxu3 %v1257_v19 }
  0x49   : > { %1287 = vmatpush.bf16.msrb.mxu3 %v1256_v22  ;;  %v1239_v22 = vld [vmem:[%s1479_s8 + $0x7c] sm:$0xf] }
  0x4a   : > { %v1097_v30 = vor.u32 %v1239_v22, %v1094_v25 }
  0x4c   : > { %673 = vmatmul.bf16.gmra.mxu0 %v1057_v56  ;;  %742 = vmatmul.bf16.vlgmr.msrb.gmra.mxu3 %v1109_v57 }
  0x4d   : > { %1288 = vmatpush.bf16.msra.mxu3 %v1397_v2  ;;  %722 = vmatmul.bf16.gmra.mxu1 %v1061_v58  ;;  %v1076_v2 = vld [vmem:[%s1479_s8 + $0x50] sm:$0xf] }
  0x4e   : > { %771 = vmatmul.bf16.gmra.mxu2 %v1065_v59  ;;  %v1077_v7 = vor.u32 %v1235_v3, %v1076_v2 }
  0x51   : > { %1289 = vmatpush.bf16.msra.mxu3 %v1412_v5  ;;  %v1073_v5 = vor.u32 %v1233_v62, %v1070_v1 }
  0x55   : > { %1290 = vmatpush.bf16.msra.mxu3 %v1427_v8  ;;  %v1080_v8 = vld [vmem:[%s1479_s8 + $0x60] sm:$0xf] }
  0x56   : > { %v1081_v16 = vor.u32 %v1237_v9, %v1080_v8 }
  0x59   : > { %1291 = vmatpush.bf16.msra.mxu3 %v1443_v11  ;;  %v1112_v11 = vld [vmem:[%s1479_s8 + $0x98] sm:$0xf] }
  0x5c   : > { %678 = vmatmul.bf16.gmra.mxu0 %v1069_v4  ;;  %747 = vmatmul.bf16.gmra.mxu3 %v1121_v6 }
  0x5d   : > { %1292 = vmatpush.bf16.msra.mxu3 %v1458_v14  ;;  %727 = vmatmul.bf16.gmra.mxu1 %v1073_v5  ;;  %v1088_v14 = vld [vmem:[%s1479_s8 + $0x68] sm:$0xf] }
  0x5e   : > { %776 = vmatmul.bf16.gmra.mxu2 %v1077_v7  ;;  %v1089_v19 = vor.u32 %v1238_v15, %v1088_v14 }
  0x61   : > { %1293 = vmatpush.bf16.msra.mxu3 %v1471_v17  ;;  %v1113_v17 = vor.u32 %v1244_v12, %v1112_v11 }
  0x65   : > { %1294 = vmatpush.bf16.msra.mxu3 %v1488_v20  ;;  %v1092_v20 = vld [vmem:[%s1479_s8 + $0x78] sm:$0xf] }
  0x66   : > { %v1093_v28 = vor.u32 %v1240_v21, %v1092_v20 }
  0x69   : > { %1295 = vmatpush.bf16.msra.mxu3 %v1499_v23  ;;  %v1247_v23 = vld [vmem:[%s1479_s8 + $0xb8] sm:$0xf0] }
  0x6a   : > { %v1125_v29 = vor.u32 %v1247_v23, %v1124_v24 }
  0x6c   : > { %683 = vmatmul.bf16.gmra.mxu0 %v1081_v16  ;;  %791 = vmatmul.bf16.vlgmr.msra.gmra.mxu3 %v1113_v17 }
  0x6d   : > { %732 = vmatmul.bf16.gmra.mxu1 %v1085_v18 }
  0x6e   : > { %781 = vmatmul.bf16.gmra.mxu2 %v1089_v19 }
  0x7c   : > { %688 = vmatmul.bf16.gmra.mxu0 %v1093_v28  ;;  %796 = vmatmul.bf16.gmra.mxu3 %v1125_v29 }
  0x7d   : > { %737 = vmatmul.bf16.gmra.mxu1 %v1097_v30 }
  0x7e   : > { %786 = vmatmul.bf16.gmra.mxu2 %v1101_v31 }
  0xa9   : > { %v664_v32 = vpop.f32.mrf.mxu0 }
  0xaa   : > { %v713_v33 = vpop.f32.mrf.mxu1 }
  0xab   : > { %v714_v34 = vadd.f32 %v713_v33, %v664_v32 }
  0xaf   : > { %v1563_v35 = vpop.f32.mrf.mxu3 }
  0xb1   : > { %v762_v37 = vpop.f32.mrf.mxu2  ;;  %v666_v39 = vpop.f32.mrf.mxu0 }
  0xb2   : > { %v763_v38 = vadd.f32 %v762_v37, %v714_v34  ;;  %v715_v40 = vpop.f32.mrf.mxu1 }
  0xb3   : > { %v716_v43 = vadd.f32 %v715_v40, %v666_v39 }
  0xb4   : > { %v857_v41 = vadd.f32 %v1568_v36, %v763_v38 }
  0xb6   : > { %v873_v42 = vmax.f32 %v857_v41, 0.0 }
  0xb7   : > { %v1578_v44 = vpop.f32.mrf.mxu3 }
  0xb8   : > { %889 = vst [vmem:[%s1575_s27] sm:$0xff] %v873_v42 }
  0xb9   : > { %v764_v45 = vpop.f32.mrf.mxu2  ;;  %v669_v47 = vpop.f32.mrf.mxu0 }
  0xba   : > { %v765_v46 = vadd.f32 %v764_v45, %v716_v43  ;;  %v718_v48 = vpop.f32.mrf.mxu1 }
  0xbb   : > { %v719_v51 = vadd.f32 %v718_v48, %v669_v47 }
  0xbc   : > { %v858_v49 = vadd.f32 %v1568_v36, %v765_v46 }
  0xbe   : > { %v874_v50 = vmax.f32 %v858_v49, 0.0 }
  0xbf   : > { %v1582_v52 = vpop.f32.mrf.mxu3 }
  0xc0   : > { %890 = vst [vmem:[%s1575_s27 + $0x8] sm:$0xff] %v874_v50 }
  0xc1   : > { %v767_v53 = vpop.f32.mrf.mxu2  ;;  %v671_v55 = vpop.f32.mrf.mxu0 }
  0xc2   : > { %v768_v54 = vadd.f32 %v767_v53, %v719_v51  ;;  %v720_v56 = vpop.f32.mrf.mxu1 }
  0xc3   : > { %v721_v59 = vadd.f32 %v720_v56, %v671_v55 }
  0xc4   : > { %v859_v57 = vadd.f32 %v1568_v36, %v768_v54 }
  0xc6   : > { %v875_v58 = vmax.f32 %v859_v57, 0.0 }
  0xc7   : > { %v1586_v60 = vpop.f32.mrf.mxu3 }
  0xc8   : > { %891 = vst [vmem:[%s1575_s27 + $0x10] sm:$0xff] %v875_v58 }
  0xc9   : > { %v769_v61 = vpop.f32.mrf.mxu2  ;;  %v674_v63 = vpop.f32.mrf.mxu0 }
  0xca   : > { %v770_v62 = vadd.f32 %v769_v61, %v721_v59  ;;  %v723_v0 = vpop.f32.mrf.mxu1 }
  0xcb   : > { %v724_v3 = vadd.f32 %v723_v0, %v674_v63 }
  0xcc   : > { %v860_v1 = vadd.f32 %v1568_v36, %v770_v62 }
  0xce   : > { %v876_v2 = vmax.f32 %v860_v1, 0.0 }
  0xcf   : > { %v743_v4 = vpop.f32.mrf.mxu3 }
  0xd0   : > { %892 = vst [vmem:[%s1575_s27 + $0x18] sm:$0xff] %v876_v2  ;;  %v744_v38 = vadd.f32 %v743_v4, %v1563_v35 }
  0xd1   : > { %v772_v6 = vpop.f32.mrf.mxu2  ;;  %v676_v7 = vpop.f32.mrf.mxu0 }
  0xd2   : > { %v773_v5 = vadd.f32 %v772_v6, %v724_v3  ;;  %v725_v8 = vpop.f32.mrf.mxu1 }
  0xd3   : > { %v726_v11 = vadd.f32 %v725_v8, %v676_v7 }
  0xd4   : > { %v861_v9 = vadd.f32 %v1568_v36, %v773_v5 }
  0xd6   : > { %v877_v10 = vmax.f32 %v861_v9, 0.0 }
  0xd7   : > { %v745_v12 = vpop.f32.mrf.mxu3 }
  0xd8   : > { %893 = vst [vmem:[%s1575_s27 + $0x20] sm:$0xff] %v877_v10  ;;  %v746_v50 = vadd.f32 %v745_v12, %v1578_v44 }
  0xd9   : > { %v774_v13 = vpop.f32.mrf.mxu2  ;;  %v679_v15 = vpop.f32.mrf.mxu0 }
  0xda   : > { %v775_v14 = vadd.f32 %v774_v13, %v726_v11  ;;  %v728_v16 = vpop.f32.mrf.mxu1 }
  0xdb   : > { %v729_v19 = vadd.f32 %v728_v16, %v679_v15 }
  0xdc   : > { %v862_v17 = vadd.f32 %v1568_v36, %v775_v14 }
  0xde   : > { %v878_v18 = vmax.f32 %v862_v17, 0.0 }
  0xdf   : > { %v748_v20 = vpop.f32.mrf.mxu3 }
  0xe0   : > { %894 = vst [vmem:[%s1575_s27 + $0x28] sm:$0xff] %v878_v18  ;;  %v749_v44 = vadd.f32 %v748_v20, %v1582_v52 }
  0xe1   : > { %v777_v21 = vpop.f32.mrf.mxu2  ;;  %v681_v24 = vpop.f32.mrf.mxu0 }
  0xe2   : > { %v778_v22 = vadd.f32 %v777_v21, %v729_v19  ;;  %v730_v23 = vpop.f32.mrf.mxu1 }
  0xe3   : > { %v731_v27 = vadd.f32 %v730_v23, %v681_v24 }
  0xe4   : > { %v863_v25 = vadd.f32 %v1568_v36, %v778_v22 }
  0xe6   : > { %v879_v26 = vmax.f32 %v863_v25, 0.0 }
  0xe7   : > { %v750_v28 = vpop.f32.mrf.mxu3 }
  0xe8   : > { %895 = vst [vmem:[%s1575_s27 + $0x30] sm:$0xff] %v879_v26  ;;  %v751_v10 = vadd.f32 %v750_v28, %v1586_v60 }
  0xe9   : > { %v779_v29 = vpop.f32.mrf.mxu2  ;;  %v684_v31 = vpop.f32.mrf.mxu0 }
  0xea   : > { %v780_v30 = vadd.f32 %v779_v29, %v731_v27  ;;  %v733_v32 = vpop.f32.mrf.mxu1 }
  0xeb   : > { %v734_v37 = vadd.f32 %v733_v32, %v684_v31 }
  0xec   : > { %v864_v33 = vadd.f32 %v1568_v36, %v780_v30 }
  0xee   : > { %v880_v34 = vmax.f32 %v864_v33, 0.0 }
  0xef   : > { %v792_v39 = vpop.f32.mrf.mxu3 }
  0xf0   : > { %896 = vst [vmem:[%s1575_s27 + $0x38] sm:$0xff] %v880_v34  ;;  %v793_v41 = vadd.f32 %v792_v39, %v744_v38 }
  0xf1   : > { %v782_v40 = vpop.f32.mrf.mxu2  ;;  %v686_v43 = vpop.f32.mrf.mxu0 }
  0xf2   : > { %v783_v42 = vadd.f32 %v782_v40, %v734_v37  ;;  %v869_v45 = vadd.f32 %v1568_v36, %v793_v41  ;;  %v735_v46 = vpop.f32.mrf.mxu1 }
  0xf3   : > { %v736_v35 = vadd.f32 %v735_v46, %v686_v43 }
  0xf4   : > { %v865_v47 = vadd.f32 %v1568_v36, %v783_v42  ;;  %v885_v48 = vmax.f32 %v869_v45, 0.0 }
  0xf6   : > { %v881_v49 = vmax.f32 %v865_v47, 0.0  ;;  %901 = vst [vmem:[%s1575_s27 + $0x60] sm:$0xff] %v885_v48 }
  0xf7   : > { %v794_v51 = vpop.f32.mrf.mxu3 }
  0xf8   : > { %897 = vst [vmem:[%s1575_s27 + $0x40] sm:$0xff] %v881_v49  ;;  %v795_v54 = vadd.f32 %v794_v51, %v746_v50 }
  0xf9   : > { %v784_v53 = vpop.f32.mrf.mxu2  ;;  %v689_v57 = vpop.f32.mrf.mxu0 }
  0xfa   : > { %v785_v55 = vadd.f32 %v784_v53, %v736_v35  ;;  %v870_v56 = vadd.f32 %v1568_v36, %v795_v54  ;;  %v738_v58 = vpop.f32.mrf.mxu1 }
  0xfb   : > { %v739_v63 = vadd.f32 %v738_v58, %v689_v57 }
  0xfc   : > { %v866_v59 = vadd.f32 %v1568_v36, %v785_v55  ;;  %v886_v61 = vmax.f32 %v870_v56, 0.0 }
  0xfe   : > { %v882_v62 = vmax.f32 %v866_v59, 0.0  ;;  %902 = vst [vmem:[%s1575_s27 + $0x68] sm:$0xff] %v886_v61 }
  0xff   : > { %v797_v0 = vpop.f32.mrf.mxu3 }
 0x100   : > { %898 = vst [vmem:[%s1575_s27 + $0x48] sm:$0xff] %v882_v62  ;;  %v798_v2 = vadd.f32 %v797_v0, %v749_v44 }
 0x101   : > { %v787_v1 = vpop.f32.mrf.mxu2  ;;  %v691_v7 = vpop.f32.mrf.mxu0 }
 0x102   : > { %v788_v3 = vadd.f32 %v787_v1, %v739_v63  ;;  %v871_v4 = vadd.f32 %v1568_v36, %v798_v2  ;;  %v740_v8 = vpop.f32.mrf.mxu1 }
 0x103   : > { %v741_v52 = vadd.f32 %v740_v8, %v691_v7 }
 0x104   : > { %v867_v6 = vadd.f32 %v1568_v36, %v788_v3  ;;  %v887_v5 = vmax.f32 %v871_v4, 0.0 }
 0x106   : > { %v883_v9 = vmax.f32 %v867_v6, 0.0  ;;  %903 = vst [vmem:[%s1575_s27 + $0x70] sm:$0xff] %v887_v5 }
 0x107   : > { %v799_v11 = vpop.f32.mrf.mxu3 }
 0x108   : > { %899 = vst [vmem:[%s1575_s27 + $0x50] sm:$0xff] %v883_v9  ;;  %v800_v13 = vadd.f32 %v799_v11, %v751_v10 }
 0x109   : > { %v789_v12 = vpop.f32.mrf.mxu2 }
 0x10a   : > { %v790_v14 = vadd.f32 %v789_v12, %v741_v52  ;;  %v872_v15 = vadd.f32 %v1568_v36, %v800_v13 }
 0x10c   : > { %v868_v16 = vadd.f32 %v1568_v36, %v790_v14  ;;  %v888_v17 = vmax.f32 %v872_v15, 0.0 }
 0x10e   : > { %v884_v18 = vmax.f32 %v868_v16, 0.0  ;;  %904 = vst [vmem:[%s1575_s27 + $0x78] sm:$0xff] %v888_v17 }
 0x110   : > { %900 = vst [vmem:[%s1575_s27 + $0x58] sm:$0xff] %v884_v18 }
 0x111 PF: > { %s13_s14 = sadd.s32 1, %s1344_s14   ;;  %s1631_s12 = smov %s1340_s13 }
 0x112   : > { %p10_p5 = scmp.ge.s32.totalorder %s13_s14, 6   ;;  %s1632_s13 = smov %s1634_s15 }
 0x114   :  { %12 = sbr.rel (!%p10_p5) target bundleno = 2 (0x2), region = 76 }

// kernel: forward.9
= control target key start
LH: loop header
LB: loop body
LE: loop exit
PB: predicated region body
PF: predicated region fallthrough
CT: control target
= control target key end

     0   :  { %s2561_s12 = smov 0   ;;  %s2563_s13 = smov 0   ;;  %s3278_s0 = inlined_call_operand.vmem [shape: bf16[104,3200], index: 0, kind: input, shape index: {}]   ;;  %s3279_s1 = inlined_call_operand.vmem [shape: bf16[3200,256], index: 1, kind: input, shape index: {}]   ;;  %s3280_s2 = inlined_call_operand.vmem [shape: f32[1,256], index: 2, kind: input, shape index: {}]   ;;  %s3281_s3 = inlined_call_operand.vmem [shape: f32[104,256], index: 3, kind: output, shape index: {}]  }
   0x1   :  { %s2565_s14 = smov 0   ;;  %s2567_s15 = smov 0  }
   0x2   :  { %s2569_s16 = smov 0  }
   0x3 LB: > { %s25_s17 = sadd.s32 1, %s2534_s15  ;;  %p48_p1 = scmp.ne.s32.totalorder %s2526_s13, %s2522_s12  ;;  %s2538_s16 = sphi %s2569_s16, %s13_s16   ;;  %s2534_s15 = sphi %s2567_s15, %s3285_s15   ;;  %s2530_s14 = sphi %s2565_s14, %s3284_s14   ;;  %s2526_s13 = sphi %s2563_s13, %s3283_s13   ;;  %s2522_s12 = sphi %s2561_s12, %s3282_s12  }
   0x4   : > { %p26_p0 = scmp.ge.s32.totalorder %s25_s17, 5  ;;  %p49_p2 = scmp.eq.s32.totalorder %s2538_s16, 0 }
   0x5   : > { %s41_s19 = sadd.s32 1, %s2526_s13  ;;  %p1852_p5 = scmp.ge.s32.totalorder %s2538_s16, 5 }
   0x6   : > { %s3287_s17 = smov (%p26_p0, %s25_s17), 0  ;;  %p50_p3 = por %p49_p2, %p48_p1 }
   0x7   : > { %s37_s18 = ssub.s32 %s2534_s15, %s3287_s17  ;;  %164 = sbr.rel (%p1852_p5) target bundleno = 56 (0x38), region = 20 }
   0x8   : > { %p39_p4 = scmp.eq.s32.totalorder %s37_s18, 0 }
   0xa   : > { %s2596_s20 = scalar_select %p39_p4, %s2526_s13, %s41_s19  }
   0xc   : > { %167 = sbr.rel (!%p50_p3) target bundleno = 56 (0x38), region = 24  ;;  %s169_s21 = sand.u32 (%p50_p3), 1, %s2526_s13  }
   0xd   : > { %s2329_s22 = smul.u32 (%p50_p3), 20, %s2534_s15 }
   0xe   : > { %s2457_s23 = smul.u32 (%p50_p3), 260, %s169_s21 }
   0xf   : > { %s2604_s26 = scalar_lea.vmem (%p50_p3), %s3278_s0, %s2329_s22 }
  0x10   : > { %v192_v0 = vld [vmem:[%s2604_s26] sm:$0xff] (%p50_p3)  ;;  %v194_v1 = vld [vmem:[%s2604_s26 + $0x8] sm:$0xff] (%p50_p3)  ;;  %s2609_s27 = scalar_lea.vmem (%p50_p3), [#allocation3], %s2457_s23  ;;  %v202_v5 = vld [vmem:[%s2604_s26 + $0xd0] sm:$0xff] (%p50_p3) }
  0x11   : > { %v196_v2 = vld [vmem:[%s2604_s26 + $0x64] sm:$0xff]  ;;  %193 = vst [vmem:[%s2609_s27] sm:$0xff] %v192_v0  ;;  %v198_v3 = vld [vmem:[%s2604_s26 + $0x6c] sm:$0xff]  ;;  %v206_v7 = vld [vmem:[%s2604_s26 + $0x134] sm:$0xff] }
  0x12   : > { %195 = vst [vmem:[%s2609_s27 + $0x8] sm:$0xff] %v194_v1  ;;  %v200_v4 = vld [vmem:[%s2604_s26 + $0xc8] sm:$0xff]  ;;  %v208_v8 = vld [vmem:[%s2604_s26 + $0x190] sm:$0xff]  ;;  %v210_v9 = vld [vmem:[%s2604_s26 + $0x198] sm:$0xff] }
  0x13   : > { %197 = vst [vmem:[%s2609_s27 + $0x14] sm:$0xff] %v196_v2  ;;  %v204_v6 = vld [vmem:[%s2604_s26 + $0x12c] sm:$0xff]  ;;  %v212_v10 = vld [vmem:[%s2604_s26 + $0x1f4] sm:$0xff]  ;;  %v214_v11 = vld [vmem:[%s2604_s26 + $0x1fc] sm:$0xff] }
  0x14   : > { %199 = vst [vmem:[%s2609_s27 + $0x1c] sm:$0xff] %v198_v3  ;;  %v216_v12 = vld [vmem:[%s2604_s26 + $0x258] sm:$0xff]  ;;  %v218_v13 = vld [vmem:[%s2604_s26 + $0x260] sm:$0xff]  ;;  %v226_v17 = vld [vmem:[%s2604_s26 + $0x328] sm:$0xff] }
  0x15   : > { %201 = vst [vmem:[%s2609_s27 + $0x28] sm:$0xff] %v200_v4  ;;  %v220_v14 = vld [vmem:[%s2604_s26 + $0x2bc] sm:$0xff]  ;;  %v222_v15 = vld [vmem:[%s2604_s26 + $0x2c4] sm:$0xff]  ;;  %v230_v19 = vld [vmem:[%s2604_s26 + $0x38c] sm:$0xff] }
  0x16   : > { %203 = vst [vmem:[%s2609_s27 + $0x30] sm:$0xff] %v202_v5  ;;  %v224_v16 = vld [vmem:[%s2604_s26 + $0x320] sm:$0xff]  ;;  %v232_v20 = vld [vmem:[%s2604_s26 + $0x3e8] sm:$0xff]  ;;  %v234_v21 = vld [vmem:[%s2604_s26 + $0x3f0] sm:$0xff] }
  0x17   : > { %205 = vst [vmem:[%s2609_s27 + $0x3c] sm:$0xff] %v204_v6  ;;  %v228_v18 = vld [vmem:[%s2604_s26 + $0x384] sm:$0xff]  ;;  %v236_v22 = vld [vmem:[%s2604_s26 + $0x44c] sm:$0xff]  ;;  %v238_v23 = vld [vmem:[%s2604_s26 + $0x454] sm:$0xff] }
  0x18   : > { %207 = vst [vmem:[%s2609_s27 + $0x44] sm:$0xff] %v206_v7  ;;  %v240_v24 = vld [vmem:[%s2604_s26 + $0x4b0] sm:$0xff]  ;;  %v242_v25 = vld [vmem:[%s2604_s26 + $0x4b8] sm:$0xff]  ;;  %v1862_v30 = vld [vmem:[%s2604_s26 + $0x1a0] sm:$0xf] }
  0x19   : > { %209 = vst [vmem:[%s2609_s27 + $0x50] sm:$0xff] %v208_v8  ;;  %v1854_v26 = vld [vmem:[%s2604_s26 + $0x10] sm:$0xf]  ;;  %v1856_v27 = vld [vmem:[%s2604_s26 + $0x74] sm:$0xf] }
  0x1a   : > { %211 = vst [vmem:[%s2609_s27 + $0x58] sm:$0xff] %v210_v9  ;;  %v1858_v28 = vld [vmem:[%s2604_s26 + $0xd8] sm:$0xf]  ;;  %v1860_v29 = vld [vmem:[%s2604_s26 + $0x13c] sm:$0xf] }
  0x1b   : > { %213 = vst [vmem:[%s2609_s27 + $0x64] sm:$0xff] %v212_v10  ;;  %v1864_v31 = vld [vmem:[%s2604_s26 + $0x204] sm:$0xf]  ;;  %v1866_v32 = vld [vmem:[%s2604_s26 + $0x268] sm:$0xf] }
  0x1c   : > { %215 = vst [vmem:[%s2609_s27 + $0x6c] sm:$0xff] %v214_v11  ;;  %v1868_v33 = vld [vmem:[%s2604_s26 + $0x2cc] sm:$0xf]  ;;  %v1870_v34 = vld [vmem:[%s2604_s26 + $0x330] sm:$0xf] }
  0x1d   : > { %217 = vst [vmem:[%s2609_s27 + $0x78] sm:$0xff] %v216_v12  ;;  %v1872_v35 = vld [vmem:[%s2604_s26 + $0x394] sm:$0xf]  ;;  %v1874_v36 = vld [vmem:[%s2604_s26 + $0x3f8] sm:$0xf] }
  0x1e   : > { %219 = vst [vmem:[%s2609_s27 + $0x80] sm:$0xff] %v218_v13  ;;  %v1876_v37 = vld [vmem:[%s2604_s26 + $0x45c] sm:$0xf]  ;;  %v1878_v38 = vld [vmem:[%s2604_s26 + $0x4c0] sm:$0xf] }
  0x1f   : > { %221 = vst [vmem:[%s2609_s27 + $0x8c] sm:$0xff] %v220_v14 }
  0x20   : > { %223 = vst [vmem:[%s2609_s27 + $0x94] sm:$0xff] %v222_v15 }
  0x21   : > { %225 = vst [vmem:[%s2609_s27 + $0xa0] sm:$0xff] %v224_v16 }
  0x22   : > { %227 = vst [vmem:[%s2609_s27 + $0xa8] sm:$0xff] %v226_v17 }
  0x23   : > { %229 = vst [vmem:[%s2609_s27 + $0xb4] sm:$0xff] %v228_v18 }
  0x24   : > { %231 = vst [vmem:[%s2609_s27 + $0xbc] sm:$0xff] %v230_v19 }
  0x25   : > { %233 = vst [vmem:[%s2609_s27 + $0xc8] sm:$0xff] %v232_v20 }
  0x26   : > { %235 = vst [vmem:[%s2609_s27 + $0xd0] sm:$0xff] %v234_v21 }
  0x27   : > { %237 = vst [vmem:[%s2609_s27 + $0xdc] sm:$0xff] %v236_v22 }
  0x28   : > { %239 = vst [vmem:[%s2609_s27 + $0xe4] sm:$0xff] %v238_v23 }
  0x29   : > { %241 = vst [vmem:[%s2609_s27 + $0xf0] sm:$0xff] %v240_v24 }
  0x2a   : > { %243 = vst [vmem:[%s2609_s27 + $0xf8] sm:$0xff] %v242_v25 }
  0x2b   : > { %1855 = vst [vmem:[%s2609_s27 + $0x10] sm:$0xf] %v1854_v26 }
  0x2c   : > { %1857 = vst [vmem:[%s2609_s27 + $0x24] sm:$0xf] %v1856_v27 }
  0x2d   : > { %1859 = vst [vmem:[%s2609_s27 + $0x38] sm:$0xf] %v1858_v28 }
  0x2e   : > { %1861 = vst [vmem:[%s2609_s27 + $0x4c] sm:$0xf] %v1860_v29 }
  0x2f   : > { %1863 = vst [vmem:[%s2609_s27 + $0x60] sm:$0xf] %v1862_v30 }
  0x30   : > { %1865 = vst [vmem:[%s2609_s27 + $0x74] sm:$0xf] %v1864_v31 }
  0x31   : > { %1867 = vst [vmem:[%s2609_s27 + $0x88] sm:$0xf] %v1866_v32 }
  0x32   : > { %1869 = vst [vmem:[%s2609_s27 + $0x9c] sm:$0xf] %v1868_v33 }
  0x33   : > { %1871 = vst [vmem:[%s2609_s27 + $0xb0] sm:$0xf] %v1870_v34 }
  0x34   : > { %1873 = vst [vmem:[%s2609_s27 + $0xc4] sm:$0xf] %v1872_v35 }
  0x35   : > { %1875 = vst [vmem:[%s2609_s27 + $0xd8] sm:$0xf] %v1874_v36 }
  0x36   : > { %1877 = vst [vmem:[%s2609_s27 + $0xec] sm:$0xf] %v1876_v37 }
  0x37   : > { %1879 = vst [vmem:[%s2609_s27 + $0x100] sm:$0xf] %v1878_v38 }
  0x38 PF: > { %p1880_p6 = scmp.ge.s32.totalorder %s2538_s16, 1  ;;  %p297_p7 = scmp.lt.s32.totalorder %s2538_s16, 6 }
  0x3a   : > { %p298_p8 = pnand %p1880_p6, %p297_p7 }
  0x3b   : > { %s304_s28 = sand.u32 (!%p298_p8), 1, %s2522_s12   ;;  %s348_s29 = smul.u32 (!%p298_p8), 80, %s2530_s14 }
  0x3c   : > { %301 = sbr.rel (%p298_p8) target bundleno = 571 (0x23b), region = 54  ;;  %p1883_p10 = scmp.ne.s32.totalorder (!%p298_p8), %s2530_s14, 0 }
  0x3d   : > { %s2458_s30 = smul.u32 (!%p298_p8), 260, %s304_s28  ;;  %p350_p9 = scmp.lt.s32.totalorder (!%p298_p8), %s348_s29, 399 }
  0x3f   : > { %s2695_s8 = scalar_lea.vmem (!%p298_p8), [#allocation3], %s2458_s30 }
  0x41   : > { %s3289_s29 = smov (!%p350_p9, %s348_s29), 399  ;;  %380 = sbr.rel (%p1883_p10) target bundleno = 97 (0x61), region = 62 }
  0x42   : > { %s2330_s4 = sshll.u32 %s3289_s29, 3 }
  0x43   : > { %s2693_s7 = scalar_lea.vmem %s3279_s1, %s2330_s4 }
  0x46   : > { %v2540_v39 = vmov 0.0  }
  0x47   : > { %381 = vst [vmem:[#allocation2 + $0xb0] sm:$0xff] %v2540_v39 }
  0x48   : > { %382 = vst [vmem:[#allocation2] sm:$0xff] %v2540_v39 }
  0x49   : > { %383 = vst [vmem:[#allocation2 + $0x10] sm:$0xff] %v2540_v39 }
  0x4a   : > { %384 = vst [vmem:[#allocation2 + $0x48] sm:$0xff] %v2540_v39 }
  0x4b   : > { %385 = vst [vmem:[#allocation2 + $0x60] sm:$0xff] %v2540_v39 }
  0x4c   : > { %386 = vst [vmem:[#allocation2 + $0x28] sm:$0xff] %v2540_v39 }
  0x4d   : > { %387 = vst [vmem:[#allocation2 + $0x40] sm:$0xff] %v2540_v39 }
  0x4e   : > { %388 = vst [vmem:[#allocation2 + $0x78] sm:$0xff] %v2540_v39 }
  0x4f   : > { %389 = vst [vmem:[#allocation2 + $0x80] sm:$0xff] %v2540_v39 }
  0x50   : > { %390 = vst [vmem:[#allocation2 + $0xa8] sm:$0xff] %v2540_v39 }
  0x51   : > { %391 = vst [vmem:[#allocation2 + $0x50] sm:$0xff] %v2540_v39 }
  0x52   : > { %392 = vst [vmem:[#allocation2 + $0x30] sm:$0xff] %v2540_v39 }
  0x53   : > { %393 = vst [vmem:[#allocation2 + $0x88] sm:$0xff] %v2540_v39 }
  0x54   : > { %394 = vst [vmem:[#allocation2 + $0x70] sm:$0xff] %v2540_v39 }
  0x55   : > { %395 = vst [vmem:[#allocation2 + $0x8] sm:$0xff] %v2540_v39 }
  0x56   : > { %396 = vst [vmem:[#allocation2 + $0x38] sm:$0xff] %v2540_v39 }
  0x57   : > { %397 = vst [vmem:[#allocation2 + $0x20] sm:$0xff] %v2540_v39 }
  0x58   : > { %398 = vst [vmem:[#allocation2 + $0xb8] sm:$0xff] %v2540_v39 }
  0x59   : > { %399 = vst [vmem:[#allocation2 + $0x58] sm:$0xff] %v2540_v39 }
  0x5a   : > { %400 = vst [vmem:[#allocation2 + $0xc8] sm:$0xff] %v2540_v39 }
  0x5b   : > { %401 = vst [vmem:[#allocation2 + $0xa0] sm:$0xff] %v2540_v39 }
  0x5c   : > { %402 = vst [vmem:[#allocation2 + $0x90] sm:$0xff] %v2540_v39 }
  0x5d   : > { %403 = vst [vmem:[#allocation2 + $0x98] sm:$0xff] %v2540_v39 }
  0x5e   : > { %404 = vst [vmem:[#allocation2 + $0x18] sm:$0xff] %v2540_v39 }
  0x5f   : > { %405 = vst [vmem:[#allocation2 + $0xc0] sm:$0xff] %v2540_v39 }
  0x60   : > { %406 = vst [vmem:[#allocation2 + $0x68] sm:$0xff] %v2540_v39 }
  0x61 PF: > { %v2062_v40 = vld [vmem:[%s2693_s7 + $0x70] sm:$0xf]  ;;  %v2376_v41 = vld [vmem:[%s2693_s7 + $0x74] sm:$0xf0]  ;;  %v2054_v45 = vld [vmem:[%s2693_s7 + $0x60] sm:$0xf] }
  0x62   : > { %v2126_v42 = vld [vmem:[%s2693_s7 + $0xf0] sm:$0xf]  ;;  %v2063_v43 = vor.u32 %v2376_v41, %v2062_v40  ;;  %v2392_v44 = vld [vmem:[%s2693_s7 + $0xf4] sm:$0xf0]  ;;  %v2374_v46 = vld [vmem:[%s2693_s7 + $0x64] sm:$0xf0] }
  0x63   : > { %v2127_v47 = vor.u32 %v2392_v44, %v2126_v42  ;;  %v2118_v48 = vld [vmem:[%s2693_s7 + $0xe0] sm:$0xf]  ;;  %v2390_v49 = vld [vmem:[%s2693_s7 + $0xe4] sm:$0xf0]  ;;  %v2055_v50 = vor.u32 %v2374_v46, %v2054_v45  ;;  %v2046_v52 = vld [vmem:[%s2693_s7 + $0x50] sm:$0xf] }
  0x64   : > { %1126 = vmatpush.bf16.msra.mxu0 %v2063_v43  ;;  %2441 = vmatpush.bf16.msra.mxu2 %v2063_v43  ;;  %v2119_v51 = vor.u32 %v2390_v49, %v2118_v48  ;;  %v2372_v53 = vld [vmem:[%s2693_s7 + $0x54] sm:$0xf0]  ;;  %v2110_v54 = vld [vmem:[%s2693_s7 + $0xd0] sm:$0xf]  ;;  %v2038_v58 = vld [vmem:[%s2693_s7 + $0x40] sm:$0xf] }
  0x65   : > { %1169 = vmatpush.bf16.msra.mxu1 %v2127_v47  ;;  %2449 = vmatpush.bf16.msra.mxu3 %v2127_v47  ;;  %v2388_v55 = vld [vmem:[%s2693_s7 + $0xd4] sm:$0xf0]  ;;  %v2047_v56 = vor.u32 %v2372_v53, %v2046_v52  ;;  %v2370_v59 = vld [vmem:[%s2693_s7 + $0x44] sm:$0xf0]  ;;  %v2102_v60 = vld [vmem:[%s2693_s7 + $0xc0] sm:$0xf] }
  0x66   : > { %v2111_v57 = vor.u32 %v2388_v55, %v2110_v54  ;;  %v2386_v61 = vld [vmem:[%s2693_s7 + $0xc4] sm:$0xf0]  ;;  %v2039_v62 = vor.u32 %v2370_v59, %v2038_v58  ;;  %v2030_v0 = vld [vmem:[%s2693_s7 + $0x30] sm:$0xf]  ;;  %v2368_v1 = vld [vmem:[%s2693_s7 + $0x34] sm:$0xf0] }
  0x67   : > { %v2103_v63 = vor.u32 %v2386_v61, %v2102_v60  ;;  %v2094_v2 = vld [vmem:[%s2693_s7 + $0xb0] sm:$0xf]  ;;  %v2384_v3 = vld [vmem:[%s2693_s7 + $0xb4] sm:$0xf0]  ;;  %v2031_v4 = vor.u32 %v2368_v1, %v2030_v0  ;;  %v2022_v6 = vld [vmem:[%s2693_s7 + $0x20] sm:$0xf] }
  0x68   : > { %1127 = vmatpush.bf16.msra.mxu0 %v2055_v50  ;;  %2442 = vmatpush.bf16.msra.mxu2 %v2055_v50  ;;  %v2095_v5 = vor.u32 %v2384_v3, %v2094_v2  ;;  %v2366_v7 = vld [vmem:[%s2693_s7 + $0x24] sm:$0xf0]  ;;  %v2086_v8 = vld [vmem:[%s2693_s7 + $0xa0] sm:$0xf]  ;;  %v2014_v12 = vld [vmem:[%s2693_s7 + $0x10] sm:$0xf] }
  0x69   : > { %1170 = vmatpush.bf16.msra.mxu1 %v2119_v51  ;;  %2450 = vmatpush.bf16.msra.mxu3 %v2119_v51  ;;  %v2382_v9 = vld [vmem:[%s2693_s7 + $0xa4] sm:$0xf0]  ;;  %v2023_v10 = vor.u32 %v2366_v7, %v2022_v6  ;;  %v2364_v13 = vld [vmem:[%s2693_s7 + $0x14] sm:$0xf0]  ;;  %v2078_v14 = vld [vmem:[%s2693_s7 + $0x90] sm:$0xf] }
  0x6a   : > { %v2087_v11 = vor.u32 %v2382_v9, %v2086_v8  ;;  %v2380_v15 = vld [vmem:[%s2693_s7 + $0x94] sm:$0xf0]  ;;  %v2015_v16 = vor.u32 %v2364_v13, %v2014_v12  ;;  %v2006_v17 = vld [vmem:[%s2693_s7] sm:$0xf]  ;;  %v2362_v19 = vld [vmem:[%s2693_s7 + $0x4] sm:$0xf0] }
  0x6b   : > { %v2079_v18 = vor.u32 %v2380_v15, %v2078_v14  ;;  %v2070_v20 = vld [vmem:[%s2693_s7 + $0x80] sm:$0xf]  ;;  %v2378_v21 = vld [vmem:[%s2693_s7 + $0x84] sm:$0xf0]  ;;  %v1886_v22 = vld [vmem:[%s2695_s8] sm:$0xf]  ;;  %v2007_v30 = vor.u32 %v2362_v19, %v2006_v17 }
  0x6c   : > { %1128 = vmatpush.bf16.msra.mxu0 %v2047_v56  ;;  %2443 = vmatpush.bf16.msra.mxu2 %v2047_v56  ;;  %v2333_v23 = vld [vmem:[%s2695_s8 + $0x10] sm:$0xf0]  ;;  %v1966_v24 = vld [vmem:[%s2695_s8 + $0xa0] sm:$0xf]  ;;  %v2440_v27 = vld [vmem:[%s2693_s7 + $0x274] sm:$0xf0]  ;;  %v2071_v34 = vor.u32 %v2378_v21, %v2070_v20 }
  0x6d   : > { %1171 = vmatpush.bf16.msra.mxu1 %v2111_v57  ;;  %2451 = vmatpush.bf16.msra.mxu3 %v2111_v57  ;;  %v2353_v25 = vld [vmem:[%s2695_s8 + $0xb0] sm:$0xf0]  ;;  %v2318_v26 = vld [vmem:[%s2693_s7 + $0x270] sm:$0xf]  ;;  %v2375_v28 = vld [vmem:[%s2693_s7 + $0x74] sm:$0xf]  ;;  %v2747_v43 = vor.u32 %v2333_v23, %v1886_v22 }
  0x6e   : > { %v2064_v29 = vld [vmem:[%s2693_s7 + $0x78] sm:$0xf0]  ;;  %v2331_v31 = vld [vmem:[%s2695_s8 + $0x4] sm:$0xf]  ;;  %v1888_v32 = vld [vmem:[%s2695_s8 + $0x14] sm:$0xf0]  ;;  %v2319_v38 = vor.u32 %v2440_v27, %v2318_v26  ;;  %v2749_v44 = vor.u32 %v2353_v25, %v1966_v24 }
  0x6f   : > { %v2351_v33 = vld [vmem:[%s2695_s8 + $0xa4] sm:$0xf]  ;;  %v1968_v35 = vld [vmem:[%s2695_s8 + $0xb4] sm:$0xf0]  ;;  %v2190_v36 = vld [vmem:[%s2693_s7 + $0x170] sm:$0xf]  ;;  %v2067_v39 = vor.u32 %v2375_v28, %v2064_v29  ;;  %v2754_v48 = vor.u32 %v2331_v31, %v1888_v32 }
  0x70   : > { %1129 = vmatpush.bf16.msra.mxu0 %v2039_v62  ;;  %2444 = vmatpush.bf16.msra.mxu2 %v2039_v62  ;;  %v2408_v37 = vld [vmem:[%s2693_s7 + $0x174] sm:$0xf0]  ;;  %v2310_v40 = vld [vmem:[%s2693_s7 + $0x260] sm:$0xf]  ;;  %v2254_v41 = vld [vmem:[%s2693_s7 + $0x1f0] sm:$0xf]  ;;  %v2756_v49 = vor.u32 %v2351_v33, %v1968_v35 }
  0x71   : > { %1172 = vmatpush.bf16.msra.mxu1 %v2103_v63  ;;  %2452 = vmatpush.bf16.msra.mxu3 %v2103_v63  ;;  %v2424_v42 = vld [vmem:[%s2693_s7 + $0x1f4] sm:$0xf0]  ;;  %v2438_v45 = vld [vmem:[%s2693_s7 + $0x264] sm:$0xf0]  ;;  %v2373_v46 = vld [vmem:[%s2693_s7 + $0x64] sm:$0xf]  ;;  %v2191_v50 = vor.u32 %v2408_v37, %v2190_v36 }
  0x72   : > { %v2056_v47 = vld [vmem:[%s2693_s7 + $0x68] sm:$0xf0]  ;;  %v2255_v51 = vor.u32 %v2424_v42, %v2254_v41  ;;  %v2182_v52 = vld [vmem:[%s2693_s7 + $0x160] sm:$0xf]  ;;  %v2406_v53 = vld [vmem:[%s2693_s7 + $0x164] sm:$0xf0]  ;;  %v2311_v54 = vor.u32 %v2438_v45, %v2310_v40 }
  0x73   : > { %v2059_v55 = vor.u32 %v2373_v46, %v2056_v47  ;;  %v2246_v56 = vld [vmem:[%s2693_s7 + $0x1e0] sm:$0xf]  ;;  %v2422_v57 = vld [vmem:[%s2693_s7 + $0x1e4] sm:$0xf0]  ;;  %v2302_v58 = vld [vmem:[%s2693_s7 + $0x250] sm:$0xf]  ;;  %v2183_v62 = vor.u32 %v2406_v53, %v2182_v52 }
  0x74   : > { %1130 = vmatpush.bf16.msra.mxu0 %v2031_v4  ;;  %2445 = vmatpush.bf16.msra.mxu2 %v2031_v4  ;;  %v2436_v59 = vld [vmem:[%s2693_s7 + $0x254] sm:$0xf0]  ;;  %v2371_v60 = vld [vmem:[%s2693_s7 + $0x54] sm:$0xf]  ;;  %v2048_v61 = vld [vmem:[%s2693_s7 + $0x58] sm:$0xf0]  ;;  %v2247_v63 = vor.u32 %v2422_v57, %v2246_v56 }
  0x75   : > { %1173 = vmatpush.bf16.msra.mxu1 %v2095_v5  ;;  %2453 = vmatpush.bf16.msra.mxu3 %v2095_v5  ;;  %v2174_v0 = vld [vmem:[%s2693_s7 + $0x150] sm:$0xf]  ;;  %v2404_v1 = vld [vmem:[%s2693_s7 + $0x154] sm:$0xf0]  ;;  %v2303_v2 = vor.u32 %v2436_v59, %v2302_v58  ;;  %v2051_v3 = vor.u32 %v2371_v60, %v2048_v61  ;;  %v2294_v6 = vld [vmem:[%s2693_s7 + $0x240] sm:$0xf] }
  0x76   : > { %v2238_v4 = vld [vmem:[%s2693_s7 + $0x1d0] sm:$0xf]  ;;  %v2420_v5 = vld [vmem:[%s2693_s7 + $0x1d4] sm:$0xf0]  ;;  %v2434_v7 = vld [vmem:[%s2693_s7 + $0x244] sm:$0xf0] }
  0x77   : > { %v2369_v8 = vld [vmem:[%s2693_s7 + $0x44] sm:$0xf]  ;;  %v2040_v9 = vld [vmem:[%s2693_s7 + $0x48] sm:$0xf0]  ;;  %v2166_v12 = vld [vmem:[%s2693_s7 + $0x140] sm:$0xf] }
  0x78   : > { %1131 = vmatpush.bf16.msra.mxu0 %v2023_v10  ;;  %2446 = vmatpush.bf16.msra.mxu2 %v2023_v10  ;;  %v2175_v10 = vor.u32 %v2404_v1, %v2174_v0  ;;  %v2402_v13 = vld [vmem:[%s2693_s7 + $0x144] sm:$0xf0]  ;;  %v1906_v14 = vld [vmem:[%s2695_s8 + $0x28] sm:$0xf]  ;;  %v2338_v15 = vld [vmem:[%s2695_s8 + $0x38] sm:$0xf0]  ;;  %v2043_v19 = vor.u32 %v2369_v8, %v2040_v9 }
  0x79   : > { %1174 = vmatpush.bf16.msra.mxu1 %v2087_v11  ;;  %2454 = vmatpush.bf16.msra.mxu3 %v2087_v11  ;;  %v2239_v11 = vor.u32 %v2420_v5, %v2238_v4  ;;  %v2358_v17 = vld [vmem:[%s2695_s8 + $0xd8] sm:$0xf0]  ;;  %v2230_v20 = vld [vmem:[%s2693_s7 + $0x1c0] sm:$0xf]  ;;  %v2418_v21 = vld [vmem:[%s2693_s7 + $0x1c4] sm:$0xf0] }
  0x7a   : > { %v2286_v22 = vld [vmem:[%s2693_s7 + $0x230] sm:$0xf]  ;;  %v2432_v23 = vld [vmem:[%s2693_s7 + $0x234] sm:$0xf0]  ;;  %v2367_v24 = vld [vmem:[%s2693_s7 + $0x34] sm:$0xf]  ;;  %v2231_v31 = vor.u32 %v2418_v21, %v2230_v20 }
  0x7b   : > { %v2032_v25 = vld [vmem:[%s2693_s7 + $0x38] sm:$0xf0]  ;;  %v1908_v27 = vld [vmem:[%s2695_s8 + $0x3c] sm:$0xf0]  ;;  %v2400_v33 = vld [vmem:[%s2693_s7 + $0x134] sm:$0xf0] }
  0x7c   : > { %1132 = vmatpush.bf16.msra.mxu0 %v2015_v16  ;;  %2447 = vmatpush.bf16.msra.mxu2 %v2015_v16  ;;  %v1986_v16 = vld [vmem:[%s2695_s8 + $0xc8] sm:$0xf]  ;;  %v2336_v26 = vld [vmem:[%s2695_s8 + $0x2c] sm:$0xf]  ;;  %v1988_v29 = vld [vmem:[%s2695_s8 + $0xdc] sm:$0xf0]  ;;  %v2035_v35 = vor.u32 %v2367_v24, %v2032_v25 }
  0x7d   : > { %1175 = vmatpush.bf16.msra.mxu1 %v2079_v18  ;;  %2455 = vmatpush.bf16.msra.mxu3 %v2079_v18  ;;  %v2295_v18 = vor.u32 %v2434_v7, %v2294_v6  ;;  %v2356_v28 = vld [vmem:[%s2695_s8 + $0xcc] sm:$0xf]  ;;  %v2158_v32 = vld [vmem:[%s2693_s7 + $0x130] sm:$0xf]  ;;  %v2416_v37 = vld [vmem:[%s2693_s7 + $0x1b4] sm:$0xf0]  ;;  %v2801_v40 = vor.u32 %v2358_v17, %v1986_v16  ;;  %v2806_v46 = vor.u32 %v2336_v26, %v1908_v27 }
  0x7e   : > { %v2222_v36 = vld [vmem:[%s2693_s7 + $0x1b0] sm:$0xf]  ;;  %v2430_v41 = vld [vmem:[%s2693_s7 + $0x224] sm:$0xf0]  ;;  %v2365_v42 = vld [vmem:[%s2693_s7 + $0x24] sm:$0xf]  ;;  %v2808_v47 = vor.u32 %v2356_v28, %v1988_v29 }
  0x7f   : > { %v2024_v45 = vld [vmem:[%s2693_s7 + $0x28] sm:$0xf0]  ;;  %v2150_v52 = vld [vmem:[%s2693_s7 + $0x120] sm:$0xf]  ;;  %v2398_v53 = vld [vmem:[%s2693_s7 + $0x124] sm:$0xf0] }
  0x80   : > { %1133 = vmatpush.bf16.msra.mxu0 %v2007_v30  ;;  %2448 = vmatpush.bf16.msra.mxu2 %v2007_v30  ;;  %v2167_v30 = vor.u32 %v2402_v13, %v2166_v12  ;;  %v2027_v57 = vor.u32 %v2365_v42, %v2024_v45  ;;  %v2270_v58 = vld [vmem:[%s2693_s7 + $0x210] sm:$0xf]  ;;  %v2428_v59 = vld [vmem:[%s2693_s7 + $0x214] sm:$0xf0]  ;;  %v2363_v60 = vld [vmem:[%s2693_s7 + $0x14] sm:$0xf]  ;;  %v2151_v61 = vor.u32 %v2398_v53, %v2150_v52 }
  0x81   : > { %1176 = vmatpush.bf16.msra.mxu1 %v2071_v34  ;;  %2456 = vmatpush.bf16.msra.mxu3 %v2071_v34  ;;  %v2287_v34 = vor.u32 %v2432_v23, %v2286_v22  ;;  %v2396_v0 = vld [vmem:[%s2693_s7 + $0x114] sm:$0xf0]  ;;  %v2016_v1 = vld [vmem:[%s2693_s7 + $0x18] sm:$0xf0]  ;;  %v2271_v4 = vor.u32 %v2428_v59, %v2270_v58  ;;  %v2262_v6 = vld [vmem:[%s2693_s7 + $0x200] sm:$0xf] }
  0x82   : > { %v2019_v5 = vor.u32 %v2363_v60, %v2016_v1  ;;  %v2426_v7 = vld [vmem:[%s2693_s7 + $0x204] sm:$0xf0]  ;;  %v2361_v8 = vld [vmem:[%s2693_s7 + $0x4] sm:$0xf]  ;;  %v2008_v9 = vld [vmem:[%s2693_s7 + $0x8] sm:$0xf0] }
  0x83   : > { %1134 = vmatmul.bf16.vlgmr.msra.gmra.mxu0 %v2747_v43  ;;  %1154 = vmatmul.bf16.vlgmr.msra.gmra.mxu2 %v2749_v44  ;;  %v2134_v13 = vld [vmem:[%s2693_s7 + $0x100] sm:$0xf]  ;;  %v2410_v16 = vld [vmem:[%s2693_s7 + $0x184] sm:$0xf0]  ;;  %v2391_v17 = vld [vmem:[%s2693_s7 + $0xf4] sm:$0xf] }
  0x84   : > { %1298 = vmatpush.bf16.msrb.mxu0 %v2319_v38  ;;  %1177 = vmatmul.bf16.vlgmr.msra.gmra.mxu1 %v2754_v48  ;;  %v2278_v38 = vld [vmem:[%s2693_s7 + $0x220] sm:$0xf]  ;;  %v2128_v21 = vld [vmem:[%s2693_s7 + $0xf8] sm:$0xf0]  ;;  %v2407_v22 = vld [vmem:[%s2693_s7 + $0x174] sm:$0xf] }
  0x85   : > { %1341 = vmatpush.bf16.msrb.mxu1 %v2067_v39  ;;  %1197 = vmatmul.bf16.vlgmr.msra.gmra.mxu3 %v2756_v49  ;;  %v2799_v39 = vor.u32 %v2338_v15, %v1906_v14  ;;  %v2279_v56 = vor.u32 %v2430_v41, %v2278_v38  ;;  %v2394_v14 = vld [vmem:[%s2693_s7 + $0x104] sm:$0xf0]  ;;  %v2198_v15 = vld [vmem:[%s2693_s7 + $0x180] sm:$0xf]  ;;  %v2192_v23 = vld [vmem:[%s2693_s7 + $0x178] sm:$0xf0] }
  0x86   : > { %1212 = vmatpush.bf16.msrb.mxu2 %v2191_v50  ;;  %1255 = vmatpush.bf16.msrb.mxu3 %v2255_v51  ;;  %v2159_v50 = vor.u32 %v2400_v33, %v2158_v32  ;;  %v2223_v51 = vor.u32 %v2416_v37, %v2222_v36  ;;  %v1926_v24 = vld [vmem:[%s2695_s8 + $0x50] sm:$0xf]  ;;  %v2343_v25 = vld [vmem:[%s2695_s8 + $0x60] sm:$0xf0]  ;;  %v2341_v27 = vld [vmem:[%s2695_s8 + $0x54] sm:$0xf]  ;;  %v2135_v29 = vor.u32 %v2394_v14, %v2134_v13 }
  0x87   : > { %v1928_v28 = vld [vmem:[%s2695_s8 + $0x64] sm:$0xf0]  ;;  %v2195_v32 = vor.u32 %v2407_v22, %v2192_v23  ;;  %v2843_v33 = vor.u32 %v2343_v25, %v1926_v24  ;;  %v2423_v37 = vld [vmem:[%s2693_s7 + $0x1f4] sm:$0xf]  ;;  %v2248_v58 = vld [vmem:[%s2693_s7 + $0x1e8] sm:$0xf0] }
  0x88   : > { %1299 = vmatpush.bf16.msrb.mxu0 %v2311_v54  ;;  %v2214_v54 = vld [vmem:[%s2693_s7 + $0x1a0] sm:$0xf]  ;;  %v2256_v38 = vld [vmem:[%s2693_s7 + $0x1f8] sm:$0xf0]  ;;  %v2439_v41 = vld [vmem:[%s2693_s7 + $0x274] sm:$0xf] }
  0x89   : > { %1342 = vmatpush.bf16.msrb.mxu1 %v2059_v55  ;;  %v2414_v55 = vld [vmem:[%s2693_s7 + $0x1a4] sm:$0xf0]  ;;  %v2259_v42 = vor.u32 %v2423_v37, %v2256_v38  ;;  %v2320_v45 = vld [vmem:[%s2693_s7 + $0x278] sm:$0xf0]  ;;  %v2437_v59 = vld [vmem:[%s2693_s7 + $0x264] sm:$0xf] }
  0x8a   : > { %1213 = vmatpush.bf16.msrb.mxu2 %v2183_v62  ;;  %1256 = vmatpush.bf16.msrb.mxu3 %v2247_v63  ;;  %v2215_v62 = vor.u32 %v2414_v55, %v2214_v54  ;;  %v2142_v63 = vld [vmem:[%s2693_s7 + $0x110] sm:$0xf]  ;;  %v2323_v52 = vor.u32 %v2439_v41, %v2320_v45  ;;  %v2405_v54 = vld [vmem:[%s2693_s7 + $0x164] sm:$0xf]  ;;  %v2184_v55 = vld [vmem:[%s2693_s7 + $0x168] sm:$0xf0] }
  0x8b   : > { %v2312_v60 = vld [vmem:[%s2693_s7 + $0x268] sm:$0xf0]  ;;  %v2403_v13 = vld [vmem:[%s2693_s7 + $0x154] sm:$0xf]  ;;  %v1914_v23 = vld [vmem:[%s2695_s8 + $0x30] sm:$0xf] }
  0x8c   : > { %1300 = vmatpush.bf16.msrb.mxu0 %v2303_v2  ;;  %v2206_v2 = vld [vmem:[%s2693_s7 + $0x190] sm:$0xf]  ;;  %v2339_v24 = vld [vmem:[%s2695_s8 + $0x40] sm:$0xf0]  ;;  %v1902_v25 = vld [vmem:[%s2695_s8 + $0x10] sm:$0xf] }
  0x8d   : > { %1343 = vmatpush.bf16.msrb.mxu1 %v2051_v3  ;;  %v2412_v3 = vld [vmem:[%s2693_s7 + $0x194] sm:$0xf0]  ;;  %v2346_v1 = vld [vmem:[%s2695_s8 + $0x7c] sm:$0xf]  ;;  %v2401_v38 = vld [vmem:[%s2693_s7 + $0x144] sm:$0xf] }
  0x8e   : > { %1214 = vmatpush.bf16.msrb.mxu2 %v2175_v10  ;;  %1257 = vmatpush.bf16.msrb.mxu3 %v2239_v11  ;;  %v469_v10 = vld [vmem:[%s2695_s8 + $0xf0] sm:$0xff]  ;;  %v2143_v11 = vor.u32 %v2396_v0, %v2142_v63  ;;  %v2207_v12 = vor.u32 %v2412_v3, %v2206_v2  ;;  %v1946_v63 = vld [vmem:[%s2695_s8 + $0x78] sm:$0xf]  ;;  %v2348_v0 = vld [vmem:[%s2695_s8 + $0x88] sm:$0xf0]  ;;  %p2324_p11 = scmp.ne.s32.totalorder %s2530_s14, 4 }
  0x8f   : > { %v651_v20 = vunpack.c.l.b16 %v469_v10  ;;  %v652_v26 = vunpack.c.h.b16 %v469_v10  ;;  %v1894_v2 = vld [vmem:[%s2695_s8 + $0x8] sm:$0xf]  ;;  %v2334_v3 = vld [vmem:[%s2695_s8 + $0x18] sm:$0xf0]  ;;  %v2417_v45 = vld [vmem:[%s2693_s7 + $0x1c4] sm:$0xf] }
  0x90   : > { %1301 = vmatpush.bf16.msrb.mxu0 %v2295_v18  ;;  %v2263_v18 = vor.u32 %v2426_v7, %v2262_v6  ;;  %v1896_v6 = vld [vmem:[%s2695_s8 + $0x1c] sm:$0xf0]  ;;  %v2875_v7 = vor.u32 %v2348_v0, %v1946_v63  ;;  %v2104_v37 = vld [vmem:[%s2693_s7 + $0xc8] sm:$0xf0]  ;;  %v1936_v63 = vld [vmem:[%s2695_s8 + $0x6c] sm:$0xf0] }
  0x91   : > { %1344 = vmatpush.bf16.msrb.mxu1 %v2043_v19  ;;  %v2011_v19 = vor.u32 %v2361_v8, %v2008_v9  ;;  %v2849_v36 = vpack.c.b16 %v652_v26, %v652_v26  ;;  %v2877_v8 = vor.u32 %v2334_v3, %v1894_v2  ;;  %v2335_v26 = vld [vmem:[%s2695_s8 + $0x20] sm:$0xf0] }
  0x92   : > { %1215 = vmatpush.bf16.msrb.mxu2 %v2167_v30  ;;  %1258 = vmatpush.bf16.msrb.mxu3 %v2231_v31  ;;  %v2199_v30 = vor.u32 %v2410_v16, %v2198_v15  ;;  %v2131_v31 = vor.u32 %v2391_v17, %v2128_v21  ;;  %v2176_v15 = vld [vmem:[%s2693_s7 + $0x158] sm:$0xf0]  ;;  %v2419_v16 = vld [vmem:[%s2693_s7 + $0x1d4] sm:$0xf] }
  0x93   : > { %1139 = vmatmul.bf16.gmra.mxu0 %v2799_v39  ;;  %1159 = vmatmul.bf16.gmra.mxu2 %v2801_v40  ;;  %v2240_v17 = vld [vmem:[%s2693_s7 + $0x1d8] sm:$0xf0]  ;;  %v2399_v3 = vld [vmem:[%s2693_s7 + $0x134] sm:$0xf] }
  0x94   : > { %1302 = vmatpush.bf16.msrb.mxu0 %v2287_v34  ;;  %1182 = vmatmul.bf16.gmra.mxu1 %v2806_v46  ;;  %v2845_v34 = vpack.c.b16 %v651_v20, %v651_v20  ;;  %v2435_v20 = vld [vmem:[%s2693_s7 + $0x254] sm:$0xf]  ;;  %v2304_v21 = vld [vmem:[%s2693_s7 + $0x258] sm:$0xf0] }
  0x95   : > { %1345 = vmatpush.bf16.msrb.mxu1 %v2035_v35  ;;  %1202 = vmatmul.bf16.gmra.mxu3 %v2808_v47  ;;  %v2847_v35 = vor.u32 %v2341_v27, %v1928_v28  ;;  %v2307_v22 = vor.u32 %v2435_v20, %v2304_v21  ;;  %v2337_v27 = vld [vmem:[%s2695_s8 + $0x34] sm:$0xf]  ;;  %v1916_v28 = vld [vmem:[%s2695_s8 + $0x44] sm:$0xf0]  ;;  %v1956_v20 = vld [vmem:[%s2695_s8 + $0x94] sm:$0xf0] }
  0x96   : > { %1216 = vmatpush.bf16.msrb.mxu2 %v2159_v50  ;;  %1259 = vmatpush.bf16.msrb.mxu3 %v2223_v51  ;;  %v2389_v50 = vld [vmem:[%s2693_s7 + $0xe4] sm:$0xf]  ;;  %v2120_v51 = vld [vmem:[%s2693_s7 + $0xe8] sm:$0xf0] }
  0x97   : > { %v2123_v53 = vor.u32 %v2389_v50, %v2120_v51  ;;  %v2232_v50 = vld [vmem:[%s2693_s7 + $0x1c8] sm:$0xf0] }
  0x98   : > { %1303 = vmatpush.bf16.msrb.mxu0 %v2279_v56  ;;  %v2421_v56 = vld [vmem:[%s2693_s7 + $0x1e4] sm:$0xf] }
  0x99   : > { %1346 = vmatpush.bf16.msrb.mxu1 %v2027_v57  ;;  %v2187_v57 = vor.u32 %v2405_v54, %v2184_v55  ;;  %v2383_v54 = vld [vmem:[%s2693_s7 + $0xb4] sm:$0xf] }
  0x9a   : > { %1217 = vmatpush.bf16.msrb.mxu2 %v2151_v61  ;;  %1260 = vmatpush.bf16.msrb.mxu3 %v2215_v62  ;;  %v2251_v61 = vor.u32 %v2421_v56, %v2248_v58  ;;  %v2315_v62 = vor.u32 %v2437_v59, %v2312_v60  ;;  %v2096_v56 = vld [vmem:[%s2693_s7 + $0xb8] sm:$0xf0]  ;;  %v1934_v58 = vld [vmem:[%s2695_s8 + $0x58] sm:$0xf] }
  0x9b   : > { %v2344_v59 = vld [vmem:[%s2695_s8 + $0x68] sm:$0xf0]  ;;  %v1922_v60 = vld [vmem:[%s2695_s8 + $0x38] sm:$0xf] }
  0x9c   : > { %1304 = vmatpush.bf16.msrb.mxu0 %v2271_v4  ;;  %v1948_v4 = vld [vmem:[%s2695_s8 + $0x8c] sm:$0xf0]  ;;  %v2927_v0 = vor.u32 %v2344_v59, %v1934_v58  ;;  %v2379_v58 = vld [vmem:[%s2693_s7 + $0x94] sm:$0xf]  ;;  %v2080_v59 = vld [vmem:[%s2693_s7 + $0x98] sm:$0xf0] }
  0x9d   : > { %1347 = vmatpush.bf16.msrb.mxu1 %v2019_v5  ;;  %v2332_v5 = vld [vmem:[%s2695_s8 + $0xc] sm:$0xf]  ;;  %v2879_v9 = vor.u32 %v2346_v1, %v1948_v4 }
  0x9e   : > { %1218 = vmatpush.bf16.msrb.mxu2 %v2143_v11  ;;  %1261 = vmatpush.bf16.msrb.mxu3 %v2207_v12  ;;  %v2881_v10 = vor.u32 %v2332_v5, %v1896_v6  ;;  %v2387_v11 = vld [vmem:[%s2693_s7 + $0xd4] sm:$0xf]  ;;  %v2112_v12 = vld [vmem:[%s2693_s7 + $0xd8] sm:$0xf0] }
  0x9f   : > { %v2115_v14 = vor.u32 %v2387_v11, %v2112_v12  ;;  %v2160_v4 = vld [vmem:[%s2693_s7 + $0x138] sm:$0xf0]  ;;  %v2415_v5 = vld [vmem:[%s2693_s7 + $0x1b4] sm:$0xf] }
  0xa0   : > { %1305 = vmatpush.bf16.msrb.mxu0 %v2263_v18  ;;  %v2179_v18 = vor.u32 %v2403_v13, %v2176_v15  ;;  %v2163_v6 = vor.u32 %v2399_v3, %v2160_v4  ;;  %v2224_v11 = vld [vmem:[%s2693_s7 + $0x1b8] sm:$0xf0]  ;;  %v2431_v12 = vld [vmem:[%s2693_s7 + $0x234] sm:$0xf] }
  0xa1   : > { %1348 = vmatpush.bf16.msrb.mxu1 %v2011_v19  ;;  %v2243_v19 = vor.u32 %v2419_v16, %v2240_v17  ;;  %v2288_v13 = vld [vmem:[%s2693_s7 + $0x238] sm:$0xf0]  ;;  %v2349_v16 = vld [vmem:[%s2695_s8 + $0x90] sm:$0xf0]  ;;  %v1942_v17 = vld [vmem:[%s2695_s8 + $0x60] sm:$0xf] }
  0xa2   : > { %1219 = vmatpush.bf16.msrb.mxu2 %v2135_v29  ;;  %1262 = vmatpush.bf16.msrb.mxu3 %v2199_v30  ;;  %v2901_v29 = vor.u32 %v2339_v24, %v1914_v23  ;;  %v2903_v30 = vor.u32 %v2335_v26, %v1902_v25  ;;  %v2291_v15 = vor.u32 %v2431_v12, %v2288_v13  ;;  %v2381_v24 = vld [vmem:[%s2693_s7 + $0xa4] sm:$0xf]  ;;  %v2088_v25 = vld [vmem:[%s2693_s7 + $0xa8] sm:$0xf0]  ;;  %v2411_v3 = vld [vmem:[%s2693_s7 + $0x194] sm:$0xf] }
  0xa3   : > { %1144 = vmatmul.bf16.gmra.mxu0 %v2843_v33  ;;  %1164 = vmatmul.bf16.gmra.mxu2 %v2845_v34  ;;  %v2397_v26 = vld [vmem:[%s2693_s7 + $0x124] sm:$0xf]  ;;  %v2208_v4 = vld [vmem:[%s2693_s7 + $0x198] sm:$0xf0] }
  0xa4   : > { %1187 = vmatmul.bf16.gmra.mxu1 %v2847_v35  ;;  %1470 = vmatpush.bf16.msra.mxu0 %v2259_v42  ;;  %v2168_v42 = vld [vmem:[%s2693_s7 + $0x148] sm:$0xf0]  ;;  %v2377_v13 = vld [vmem:[%s2693_s7 + $0x84] sm:$0xf] }
  0xa5   : > { %1207 = vmatmul.bf16.gmra.mxu3 %v2849_v36  ;;  %1513 = vmatpush.bf16.msra.mxu1 %v2323_v52  ;;  %v2171_v51 = vor.u32 %v2401_v38, %v2168_v42  ;;  %v2235_v52 = vor.u32 %v2417_v45, %v2232_v50  ;;  %v2216_v38 = vld [vmem:[%s2693_s7 + $0x1a8] sm:$0xf0]  ;;  %v1974_v42 = vld [vmem:[%s2695_s8 + $0xa8] sm:$0xf] }
  0xa6   : > { %1384 = vmatpush.bf16.msra.mxu2 %v2131_v31  ;;  %1427 = vmatpush.bf16.msra.mxu3 %v2195_v32  ;;  %v2905_v31 = vor.u32 %v2337_v27, %v1916_v28  ;;  %v2385_v32 = vld [vmem:[%s2693_s7 + $0xc4] sm:$0xf]  ;;  %v2091_v27 = vor.u32 %v2381_v24, %v2088_v25  ;;  %v2152_v28 = vld [vmem:[%s2693_s7 + $0x128] sm:$0xf0] }
  0xa7   : > { %v2107_v41 = vor.u32 %v2385_v32, %v2104_v37  ;;  %v2155_v32 = vor.u32 %v2397_v26, %v2152_v28  ;;  %v2413_v37 = vld [vmem:[%s2693_s7 + $0x1a4] sm:$0xf]  ;;  %v2280_v50 = vld [vmem:[%s2693_s7 + $0x228] sm:$0xf0] }
  0xa8   : > { %1471 = vmatpush.bf16.msra.mxu0 %v2251_v61  ;;  %v2340_v61 = vld [vmem:[%s2695_s8 + $0x48] sm:$0xf0]  ;;  %v2219_v45 = vor.u32 %v2413_v37, %v2216_v38  ;;  %v2393_v25 = vld [vmem:[%s2693_s7 + $0x104] sm:$0xf]  ;;  %v2136_v26 = vld [vmem:[%s2693_s7 + $0x108] sm:$0xf0] }
  0xa9   : > { %1514 = vmatpush.bf16.msra.mxu1 %v2315_v62  ;;  %v2342_v62 = vld [vmem:[%s2695_s8 + $0x5c] sm:$0xf]  ;;  %v2929_v1 = vor.u32 %v2340_v61, %v1922_v60  ;;  %v2083_v60 = vor.u32 %v2379_v58, %v2080_v59  ;;  %v2395_v61 = vld [vmem:[%s2693_s7 + $0x114] sm:$0xf]  ;;  %v2409_v38 = vld [vmem:[%s2693_s7 + $0x184] sm:$0xf] }
  0xaa   : > { %1385 = vmatpush.bf16.msra.mxu2 %v2123_v53  ;;  %1428 = vmatpush.bf16.msra.mxu3 %v2187_v57  ;;  %v2433_v53 = vld [vmem:[%s2693_s7 + $0x244] sm:$0xf]  ;;  %v2099_v57 = vor.u32 %v2383_v54, %v2096_v56  ;;  %v2931_v2 = vor.u32 %v2342_v62, %v1936_v63  ;;  %v1976_v54 = vld [vmem:[%s2695_s8 + $0xbc] sm:$0xf0]  ;;  %v2144_v62 = vld [vmem:[%s2693_s7 + $0x118] sm:$0xf0] }
  0xab   : > { %v2147_v63 = vor.u32 %v2395_v61, %v2144_v62  ;;  %v2002_v59 = vld [vmem:[%s2695_s8 + $0xd8] sm:$0xf] }
  0xac   : > { %1472 = vmatpush.bf16.msra.mxu0 %v2243_v19  ;;  %v2347_v19 = vld [vmem:[%s2695_s8 + $0x84] sm:$0xf] }
  0xad   : > { %1515 = vmatpush.bf16.msra.mxu1 %v2307_v22  ;;  %v2953_v23 = vor.u32 %v2347_v19, %v1956_v20  ;;  %v1996_v19 = vld [vmem:[%s2695_s8 + $0xe4] sm:$0xf0] }
  0xae   : > { %1386 = vmatpush.bf16.msra.mxu2 %v2115_v14  ;;  %1429 = vmatpush.bf16.msra.mxu3 %v2179_v18  ;;  %v2227_v14 = vor.u32 %v2415_v5, %v2224_v11  ;;  %v2345_v18 = vld [vmem:[%s2695_s8 + $0x70] sm:$0xf0]  ;;  %v2427_v5 = vld [vmem:[%s2693_s7 + $0x214] sm:$0xf]  ;;  %v2272_v11 = vld [vmem:[%s2693_s7 + $0x218] sm:$0xf0] }
  0xaf   : > { %v2951_v22 = vor.u32 %v2345_v18, %v1942_v17  ;;  %v2275_v12 = vor.u32 %v2427_v5, %v2272_v11  ;;  %v2355_v17 = vld [vmem:[%s2695_s8 + $0xc0] sm:$0xf0]  ;;  %v2357_v18 = vld [vmem:[%s2695_s8 + $0xd4] sm:$0xf] }
  0xb0   : > { %1473 = vmatpush.bf16.msra.mxu0 %v2235_v52  ;;  %v1962_v52 = vld [vmem:[%s2695_s8 + $0x88] sm:$0xf]  ;;  %v3007_v28 = vor.u32 %v2357_v18, %v1996_v19 }
  0xb2   : > { %1387 = vmatpush.bf16.msra.mxu2 %v2107_v41  ;;  %1430 = vmatpush.bf16.msra.mxu3 %v2171_v51  ;;  %v2429_v41 = vld [vmem:[%s2693_s7 + $0x224] sm:$0xf]  ;;  %v2354_v51 = vld [vmem:[%s2695_s8 + $0xb8] sm:$0xf0] }
  0xb3   : > { %1149 = vmatmul.bf16.gmra.mxu0 %v2875_v7  ;;  %1220 = vmatmul.bf16.vlgmr.msrb.gmra.mxu2 %v2877_v8 }
  0xb4   : > { %1192 = vmatmul.bf16.gmra.mxu1 %v2879_v9  ;;  %1474 = vmatpush.bf16.msra.mxu0 %v2227_v14  ;;  %v2072_v14 = vld [vmem:[%s2693_s7 + $0x88] sm:$0xf0] }
  0xb5   : > { %1263 = vmatmul.bf16.vlgmr.msrb.gmra.mxu3 %v2881_v10 }
  0xb6   : > { %1388 = vmatpush.bf16.msra.mxu2 %v2099_v57  ;;  %1431 = vmatpush.bf16.msra.mxu3 %v2163_v6  ;;  %v2211_v6 = vor.u32 %v2411_v3, %v2208_v4 }
  0xb8   : > { %1475 = vmatpush.bf16.msra.mxu0 %v2219_v45 }
  0xba   : > { %1389 = vmatpush.bf16.msra.mxu2 %v2091_v27  ;;  %1432 = vmatpush.bf16.msra.mxu3 %v2155_v32  ;;  %v2139_v32 = vor.u32 %v2393_v25, %v2136_v26 }
  0xbc   : > { %1476 = vmatpush.bf16.msra.mxu0 %v2211_v6 }
  0xbe   : > { %1390 = vmatpush.bf16.msra.mxu2 %v2083_v60  ;;  %1433 = vmatpush.bf16.msra.mxu3 %v2147_v63  ;;  %v2360_v60 = vld [vmem:[%s2695_s8 + $0xe8] sm:$0xf0] }
  0xbf   : > { %v3026_v4 = vor.u32 %v2360_v60, %v2002_v59 }
  0xc2   : > { %1434 = vmatpush.bf16.msra.mxu3 %v2139_v32 }
  0xc3   : > { %1225 = vmatmul.bf16.gmra.mxu2 %v2901_v29  ;;  %1306 = vmatmul.bf16.vlgmr.msrb.gmra.mxu0 %v2903_v30 }
  0xc4   : > { %1349 = vmatmul.bf16.vlgmr.msrb.gmra.mxu1 %v2747_v43  ;;  %v2296_v43 = vld [vmem:[%s2693_s7 + $0x248] sm:$0xf0] }
  0xc5   : > { %1268 = vmatmul.bf16.gmra.mxu3 %v2905_v31  ;;  %v2299_v55 = vor.u32 %v2433_v53, %v2296_v43  ;;  %v2350_v53 = vld [vmem:[%s2695_s8 + $0x98] sm:$0xf0]  ;;  %v2352_v43 = vld [vmem:[%s2695_s8 + $0xac] sm:$0xf] }
  0xc6   : > { %v2975_v56 = vor.u32 %v2350_v53, %v1962_v52  ;;  %v2977_v57 = vor.u32 %v2352_v43, %v1976_v54  ;;  %v470_v54 = vld [vmem:[%s2695_s8 + $0xf8] sm:$0xff] }
  0xc7   : > { %1516 = vmatpush.bf16.msra.mxu1 %v2299_v55  ;;  %v2973_v55 = vor.u32 %v2354_v51, %v1974_v42  ;;  %v2425_v42 = vld [vmem:[%s2693_s7 + $0x204] sm:$0xf]  ;;  %v654_v61 = vunpack.c.h.b16 %v470_v54 }
  0xc9   : > { %v3032_v11 = vpack.c.b16 %v654_v61, %v654_v61 }
  0xcb   : > { %1517 = vmatpush.bf16.msra.mxu1 %v2291_v15  ;;  %v1994_v15 = vld [vmem:[%s2695_s8 + $0xd0] sm:$0xf] }
  0xd3   : > { %1230 = vmatmul.bf16.gmra.mxu2 %v2927_v0  ;;  %1311 = vmatmul.bf16.gmra.mxu0 %v2929_v1 }
  0xd4   : > { %1354 = vmatmul.bf16.gmra.mxu1 %v2799_v39  ;;  %v1954_v39 = vld [vmem:[%s2695_s8 + $0x80] sm:$0xf] }
  0xd5   : > { %1273 = vmatmul.bf16.gmra.mxu3 %v2931_v2  ;;  %v2949_v21 = vor.u32 %v2349_v16, %v1954_v39  ;;  %v2359_v39 = vld [vmem:[%s2695_s8 + $0xe0] sm:$0xf0]  ;;  %v1982_v16 = vld [vmem:[%s2695_s8 + $0xb0] sm:$0xf] }
  0xd6   : > { %v2999_v20 = vor.u32 %v2359_v39, %v1994_v15  ;;  %v3001_v24 = vor.u32 %v2355_v17, %v1982_v16  ;;  %v471_v39 = vld [vmem:[%s2695_s8 + $0x100] sm:$0xf] }
  0xd7   : > { %v655_v17 = vunpack.c.l.b16 %v471_v39 }
  0xd9   : > { %v3043_v25 = vpack.c.b16 %v655_v17, %v655_v17 }
  0xe3   : > { %1235 = vmatmul.bf16.gmra.mxu2 %v2949_v21  ;;  %1316 = vmatmul.bf16.gmra.mxu0 %v2951_v22 }
  0xe4   : > { %1359 = vmatmul.bf16.gmra.mxu1 %v2843_v33  ;;  %v2283_v33 = vor.u32 %v2429_v41, %v2280_v50  ;;  %v2200_v41 = vld [vmem:[%s2693_s7 + $0x188] sm:$0xf0] }
  0xe5   : > { %1278 = vmatmul.bf16.gmra.mxu3 %v2953_v23  ;;  %v2203_v45 = vor.u32 %v2409_v38, %v2200_v41  ;;  %v2264_v50 = vld [vmem:[%s2693_s7 + $0x208] sm:$0xf0] }
  0xe6   : > { %1518 = vmatpush.bf16.msra.mxu1 %v2283_v33  ;;  %v2267_v52 = vor.u32 %v2425_v42, %v2264_v50 }
  0xe7   : > { %1477 = vmatpush.bf16.msra.mxu0 %v2203_v45 }
  0xea   : > { %1519 = vmatpush.bf16.msra.mxu1 %v2275_v12 }
  0xee   : > { %1520 = vmatpush.bf16.msra.mxu1 %v2267_v52 }
  0xf3   : > { %1240 = vmatmul.bf16.gmra.mxu2 %v2973_v55  ;;  %1321 = vmatmul.bf16.gmra.mxu0 %v2975_v56 }
  0xf4   : > { %1364 = vmatmul.bf16.gmra.mxu1 %v2875_v7  ;;  %v2075_v7 = vor.u32 %v2377_v13, %v2072_v14 }
  0xf5   : > { %1283 = vmatmul.bf16.gmra.mxu3 %v2977_v57 }
  0xf6   : > { %1391 = vmatpush.bf16.msra.mxu2 %v2075_v7 }
 0x100   : > { %v3005_v27 = vpop.f32.mrf.mxu0 }
 0x101   : > { %v3009_v37 = vpop.f32.mrf.mxu1 }
 0x103   : > { %1245 = vmatmul.bf16.gmra.mxu2 %v2999_v20  ;;  %1326 = vmatmul.bf16.gmra.mxu0 %v3001_v24 }
 0x104   : > { %1369 = vmatmul.bf16.gmra.mxu1 %v2749_v44  ;;  %v653_v44 = vunpack.c.l.b16 %v470_v54 }
 0x105   : > { %1288 = vmatmul.bf16.gmra.mxu3 %v3007_v28 }
 0x106   : > { %v1155_v51 = vpop.f32.mrf.mxu2  ;;  %v3024_v3 = vpack.c.b16 %v653_v44, %v653_v44  ;;  %v1179_v44 = vadd.f32 %v3009_v37, %v3005_v27 }
 0x108   : > { %v1198_v53 = vpop.f32.mrf.mxu3  ;;  %v1137_v43 = vpop.f32.mrf.mxu0 }
 0x109   : > { %v3019_v33 = vadd.f32 %v1198_v53, %v1155_v51  ;;  %v1180_v58 = vpop.f32.mrf.mxu1 }
 0x10e   : > { %v1157_v62 = vpop.f32.mrf.mxu2 }
 0x110   : > { %v1200_v63 = vpop.f32.mrf.mxu3  ;;  %v3030_v6 = vpop.f32.mrf.mxu0 }
 0x111   : > { %v3028_v5 = vadd.f32 %v1200_v63, %v1157_v62  ;;  %v1183_v12 = vpop.f32.mrf.mxu1 }
 0x113   : > { %1250 = vmatmul.bf16.gmra.mxu2 %v3024_v3  ;;  %1331 = vmatmul.bf16.gmra.mxu0 %v3026_v4 }
 0x114   : > { %1374 = vmatmul.bf16.gmra.mxu1 %v2801_v40 }
 0x115   : > { %1293 = vmatmul.bf16.gmra.mxu3 %v3032_v11 }
 0x116   : > { %v1160_v13 = vpop.f32.mrf.mxu2 }
 0x118   : > { %v1203_v14 = vpop.f32.mrf.mxu3  ;;  %v3040_v7 = vpop.f32.mrf.mxu0 }
 0x119   : > { %v3038_v15 = vadd.f32 %v1203_v14, %v1160_v13  ;;  %v1185_v16 = vpop.f32.mrf.mxu1 }
 0x11e   : > { %v1162_v18 = vpop.f32.mrf.mxu2 }
 0x120   : > { %v1205_v19 = vpop.f32.mrf.mxu3  ;;  %v3047_v32 = vpop.f32.mrf.mxu0 }
 0x121   : > { %v3045_v26 = vadd.f32 %v1205_v19, %v1162_v18  ;;  %v3049_v40 = vpop.f32.mrf.mxu1  ;;  %v409_v18 = vld [vmem:[#allocation2 + $0x10] sm:$0xff] }
 0x123   : > { %1336 = vmatmul.bf16.gmra.mxu0 %v3043_v25  ;;  %1392 = vmatmul.bf16.vlgmr.msra.gmra.mxu2 %v2754_v48 }
 0x124   : > { %1379 = vmatmul.bf16.gmra.mxu1 %v2845_v34 }
 0x125   : > { %1435 = vmatmul.bf16.vlgmr.msra.gmra.mxu3 %v2877_v8 }
 0x126   : > { %v1165_v38 = vpop.f32.mrf.mxu2 }
 0x128   : > { %v1208_v41 = vpop.f32.mrf.mxu3  ;;  %v3057_v45 = vpop.f32.mrf.mxu0 }
 0x129   : > { %v3055_v42 = vadd.f32 %v1208_v41, %v1165_v38  ;;  %v3059_v50 = vpop.f32.mrf.mxu1 }
 0x12e   : > { %v1167_v51 = vpop.f32.mrf.mxu2 }
 0x130   : > { %v1210_v52 = vpop.f32.mrf.mxu3  ;;  %v3061_v53 = vpop.f32.mrf.mxu0 }
 0x131   : > { %v3063_v54 = vpop.f32.mrf.mxu1 }
 0x133   : > { %1397 = vmatmul.bf16.gmra.mxu2 %v2806_v46  ;;  %1478 = vmatmul.bf16.vlgmr.msra.gmra.mxu0 %v2881_v10  ;;  %v407_v46 = vld [vmem:[#allocation2 + $0xb0] sm:$0xff]  ;;  %v1181_v10 = vadd.f32 %v1180_v58, %v1137_v43  ;;  %v1184_v43 = vadd.f32 %v1183_v12, %v3030_v6 }
 0x134   : > { %1521 = vmatmul.bf16.vlgmr.msra.gmra.mxu1 %v2903_v30 }
 0x135   : > { %1440 = vmatmul.bf16.gmra.mxu3 %v2901_v29 }
 0x136   : > { %v1221_v48 = vpop.f32.mrf.mxu2 }
 0x137   : > { %v1222_v60 = vadd.f32 %v1221_v48, %v1179_v44 }
 0x138   : > { %v1264_v34 = vpop.f32.mrf.mxu3  ;;  %v3069_v8 = vpop.f32.mrf.mxu0 }
 0x139   : > { %v3073_v59 = vpop.f32.mrf.mxu1  ;;  %v1265_v62 = vadd.f32 %v1264_v34, %v1222_v60 }
 0x13e   : > { %v1223_v61 = vpop.f32.mrf.mxu2 }
 0x13f   : > { %v1224_v29 = vadd.f32 %v1223_v61, %v1181_v10 }
 0x140   : > { %v1266_v63 = vpop.f32.mrf.mxu3  ;;  %v1307_v13 = vpop.f32.mrf.mxu0 }
 0x141   : > { %v1308_v14 = vadd.f32 %v1307_v13, %v1265_v62  ;;  %v3075_v30 = vpop.f32.mrf.mxu1  ;;  %v1267_v37 = vadd.f32 %v1266_v63, %v1224_v29  ;;  %v413_v63 = vld [vmem:[#allocation2 + $0x40] sm:$0xff] }
 0x142   : > { %v415_v29 = vld [vmem:[#allocation2 + $0x80] sm:$0xff] }
 0x143   : > { %v1556_v39 = vadd.f32 %v1308_v14, %v407_v46  ;;  %1402 = vmatmul.bf16.gmra.mxu2 %v2847_v35  ;;  %1483 = vmatmul.bf16.gmra.mxu0 %v2905_v31 }
 0x144   : > { %1526 = vmatmul.bf16.gmra.mxu1 %v2929_v1  ;;  %v411_v1 = vld [vmem:[#allocation2 + $0x60] sm:$0xff] }
 0x145   : > { %1445 = vmatmul.bf16.gmra.mxu3 %v2927_v0  ;;  %1582 = vst [vmem:[#allocation2 + $0xb0] sm:$0xff] %v1556_v39  ;;  %v1186_v0 = vadd.f32 %v1185_v16, %v3040_v7  ;;  %v1189_v7 = vadd.f32 %v3049_v40, %v3047_v32  ;;  %v1191_v39 = vadd.f32 %v3059_v50, %v3057_v45 }
 0x146   : > { %v1226_v27 = vpop.f32.mrf.mxu2  ;;  %v1194_v45 = vadd.f32 %v3063_v54, %v3061_v53 }
 0x147   : > { %v1227_v41 = vadd.f32 %v1226_v27, %v1184_v43  ;;  %v417_v43 = vld [vmem:[#allocation2 + $0x50] sm:$0xff] }
 0x148   : > { %v1269_v17 = vpop.f32.mrf.mxu3  ;;  %v1309_v19 = vpop.f32.mrf.mxu0 }
 0x149   : > { %v1310_v58 = vadd.f32 %v1309_v19, %v1267_v37  ;;  %v3082_v38 = vpop.f32.mrf.mxu1  ;;  %v1270_v31 = vadd.f32 %v1269_v17, %v1227_v41 }
 0x14b   : > { %v1558_v51 = vadd.f32 %v1310_v58, %v409_v18 }
 0x14d   : > { %1584 = vst [vmem:[#allocation2 + $0x10] sm:$0xff] %v1558_v51 }
 0x14e   : > { %v1228_v35 = vpop.f32.mrf.mxu2 }
 0x14f   : > { %v1229_v60 = vadd.f32 %v1228_v35, %v1186_v0 }
 0x150   : > { %v1271_v52 = vpop.f32.mrf.mxu3  ;;  %v1312_v48 = vpop.f32.mrf.mxu0 }
 0x151   : > { %v1313_v34 = vadd.f32 %v1312_v48, %v1270_v31  ;;  %v3085_v44 = vpop.f32.mrf.mxu1  ;;  %v1272_v12 = vadd.f32 %v1271_v52, %v1229_v60  ;;  %v419_v31 = vld [vmem:[#allocation2 + $0x88] sm:$0xff]  ;;  %v1196_v52 = vadd.f32 %v3073_v59, %v3069_v8 }
 0x153   : > { %v1560_v61 = vadd.f32 %v1313_v34, %v411_v1  ;;  %1407 = vmatmul.bf16.gmra.mxu2 %v2879_v9  ;;  %1488 = vmatmul.bf16.gmra.mxu0 %v2931_v2 }
 0x154   : > { %1531 = vmatmul.bf16.gmra.mxu1 %v2951_v22 }
 0x155   : > { %1450 = vmatmul.bf16.gmra.mxu3 %v2949_v21  ;;  %1586 = vst [vmem:[#allocation2 + $0x60] sm:$0xff] %v1560_v61  ;;  %v421_v61 = vld [vmem:[#allocation2 + $0x8] sm:$0xff] }
 0x156   : > { %v1231_v6 = vpop.f32.mrf.mxu2 }
 0x157   : > { %v1232_v10 = vadd.f32 %v1231_v6, %v1189_v7 }
 0x158   : > { %v1274_v62 = vpop.f32.mrf.mxu3  ;;  %v1314_v46 = vpop.f32.mrf.mxu0 }
 0x159   : > { %v1315_v16 = vadd.f32 %v1314_v46, %v1272_v12  ;;  %v3093_v13 = vpop.f32.mrf.mxu1  ;;  %v1275_v14 = vadd.f32 %v1274_v62, %v1232_v10  ;;  %v423_v46 = vld [vmem:[#allocation2 + $0x20] sm:$0xff] }
 0x15b   : > { %v1562_v9 = vadd.f32 %v1315_v16, %v413_v63 }
 0x15d   : > { %1588 = vst [vmem:[#allocation2 + $0x40] sm:$0xff] %v1562_v9 }
 0x15e   : > { %v1233_v2 = vpop.f32.mrf.mxu2 }
 0x15f   : > { %v1234_v17 = vadd.f32 %v1233_v2, %v1191_v39 }
 0x160   : > { %v1276_v22 = vpop.f32.mrf.mxu3  ;;  %v1317_v21 = vpop.f32.mrf.mxu0 }
 0x161   : > { %v1318_v27 = vadd.f32 %v1317_v21, %v1275_v14  ;;  %v3097_v37 = vpop.f32.mrf.mxu1  ;;  %v1277_v40 = vadd.f32 %v1276_v22, %v1234_v17  ;;  %v425_v14 = vld [vmem:[#allocation2 + $0x58] sm:$0xff]  ;;  %v427_v17 = vld [vmem:[#allocation2 + $0xa0] sm:$0xff] }
 0x163   : > { %v1564_v18 = vadd.f32 %v1318_v27, %v415_v29  ;;  %1412 = vmatmul.bf16.gmra.mxu2 %v2756_v49  ;;  %1493 = vmatmul.bf16.gmra.mxu0 %v2953_v23 }
 0x164   : > { %1536 = vmatmul.bf16.gmra.mxu1 %v2975_v56 }
 0x165   : > { %1455 = vmatmul.bf16.gmra.mxu3 %v2973_v55  ;;  %1590 = vst [vmem:[#allocation2 + $0x80] sm:$0xff] %v1564_v18 }
 0x166   : > { %v1236_v32 = vpop.f32.mrf.mxu2 }
 0x167   : > { %v1237_v51 = vadd.f32 %v1236_v32, %v1194_v45 }
 0x168   : > { %v1279_v19 = vpop.f32.mrf.mxu3  ;;  %v1319_v58 = vpop.f32.mrf.mxu0 }
 0x169   : > { %v1320_v50 = vadd.f32 %v1319_v58, %v1277_v40  ;;  %v3105_v41 = vpop.f32.mrf.mxu1  ;;  %v1280_v35 = vadd.f32 %v1279_v19, %v1237_v51  ;;  %v429_v58 = vld [vmem:[#allocation2 + $0x98] sm:$0xff] }
 0x16b   : > { %v1566_v49 = vadd.f32 %v1320_v50, %v417_v43 }
 0x16d   : > { %1592 = vst [vmem:[#allocation2 + $0x50] sm:$0xff] %v1566_v49 }
 0x16e   : > { %v1238_v23 = vpop.f32.mrf.mxu2 }
 0x16f   : > { %v1239_v0 = vadd.f32 %v1238_v23, %v1196_v52 }
 0x170   : > { %v1281_v56 = vpop.f32.mrf.mxu3  ;;  %v1322_v55 = vpop.f32.mrf.mxu0 }
 0x171   : > { %v1323_v1 = vadd.f32 %v1322_v55, %v1280_v35  ;;  %v3109_v48 = vpop.f32.mrf.mxu1  ;;  %v1282_v54 = vadd.f32 %v1281_v56, %v1239_v0 }
 0x173   : > { %v1568_v34 = vadd.f32 %v1323_v1, %v419_v31  ;;  %1417 = vmatmul.bf16.gmra.mxu2 %v2808_v47  ;;  %1498 = vmatmul.bf16.gmra.mxu0 %v2977_v57  ;;  %v431_v31 = vld [vmem:[#allocation2 + $0xc0] sm:$0xff] }
 0x174   : > { %1541 = vmatmul.bf16.gmra.mxu1 %v3001_v24 }
 0x175   : > { %1460 = vmatmul.bf16.gmra.mxu3 %v2999_v20  ;;  %1594 = vst [vmem:[#allocation2 + $0x88] sm:$0xff] %v1568_v34 }
 0x176   : > { %v1241_v53 = vpop.f32.mrf.mxu2 }
 0x177   : > { %v1242_v12 = vadd.f32 %v1241_v53, %v3019_v33 }
 0x178   : > { %v1284_v60 = vpop.f32.mrf.mxu3  ;;  %v1324_v6 = vpop.f32.mrf.mxu0 }
 0x179   : > { %v1325_v8 = vadd.f32 %v1324_v6, %v1282_v54  ;;  %v3115_v59 = vpop.f32.mrf.mxu1  ;;  %v1285_v63 = vadd.f32 %v1284_v60, %v1242_v12 }
 0x17b   : > { %v1570_v62 = vadd.f32 %v1325_v8, %v421_v61 }
 0x17d   : > { %1596 = vst [vmem:[#allocation2 + $0x8] sm:$0xff] %v1570_v62  ;;  %v408_v62 = vld [vmem:[#allocation2] sm:$0xff] }
 0x17e   : > { %v1243_v47 = vpop.f32.mrf.mxu2 }
 0x17f   : > { %v1244_v16 = vadd.f32 %v1243_v47, %v3028_v5 }
 0x180   : > { %v1286_v57 = vpop.f32.mrf.mxu3  ;;  %v1327_v24 = vpop.f32.mrf.mxu0 }
 0x181   : > { %v1328_v7 = vadd.f32 %v1327_v24, %v1285_v63  ;;  %v3118_v20 = vpop.f32.mrf.mxu1  ;;  %v1287_v9 = vadd.f32 %v1286_v57, %v1244_v16 }
 0x183   : > { %v1572_v10 = vadd.f32 %v1328_v7, %v423_v46  ;;  %1422 = vmatmul.bf16.gmra.mxu2 %v2849_v36  ;;  %1503 = vmatmul.bf16.gmra.mxu0 %v3007_v28 }
 0x184   : > { %1546 = vmatmul.bf16.gmra.mxu1 %v3026_v4 }
 0x185   : > { %1465 = vmatmul.bf16.gmra.mxu3 %v3024_v3  ;;  %1598 = vst [vmem:[#allocation2 + $0x20] sm:$0xff] %v1572_v10 }
 0x186   : > { %v1246_v33 = vpop.f32.mrf.mxu2 }
 0x187   : > { %v1247_v5 = vadd.f32 %v1246_v33, %v3038_v15 }
 0x188   : > { %v1289_v2 = vpop.f32.mrf.mxu3  ;;  %v1329_v22 = vpop.f32.mrf.mxu0 }
 0x189   : > { %v1330_v29 = vadd.f32 %v1329_v22, %v1287_v9  ;;  %v3125_v21 = vpop.f32.mrf.mxu1  ;;  %v1290_v27 = vadd.f32 %v1289_v2, %v1247_v5  ;;  %v410_v9 = vld [vmem:[#allocation2 + $0x48] sm:$0xff] }
 0x18b   : > { %v1574_v39 = vadd.f32 %v1330_v29, %v425_v14 }
 0x18d   : > { %1600 = vst [vmem:[#allocation2 + $0x58] sm:$0xff] %v1574_v39 }
 0x18e   : > { %v1248_v36 = vpop.f32.mrf.mxu2 }
 0x18f   : > { %v1249_v32 = vadd.f32 %v1248_v36, %v3045_v26 }
 0x190   : > { %v1291_v28 = vpop.f32.mrf.mxu3  ;;  %v1332_v4 = vpop.f32.mrf.mxu0 }
 0x191   : > { %v1333_v18 = vadd.f32 %v1332_v4, %v1290_v27  ;;  %v3128_v3 = vpop.f32.mrf.mxu1  ;;  %v1292_v15 = vadd.f32 %v1291_v28, %v1249_v32  ;;  %v412_v27 = vld [vmem:[#allocation2 + $0x28] sm:$0xff] }
 0x193   : > { %v1576_v40 = vadd.f32 %v1333_v18, %v427_v17  ;;  %1508 = vmatmul.bf16.gmra.mxu0 %v3032_v11 }
 0x194   : > { %1551 = vmatmul.bf16.gmra.mxu1 %v3043_v25 }
 0x195   : > { %1602 = vst [vmem:[#allocation2 + $0xa0] sm:$0xff] %v1576_v40 }
 0x196   : > { %v1251_v19 = vpop.f32.mrf.mxu2 }
 0x197   : > { %v1252_v49 = vadd.f32 %v1251_v19, %v3055_v42 }
 0x198   : > { %v1294_v43 = vpop.f32.mrf.mxu3  ;;  %v1334_v45 = vpop.f32.mrf.mxu0 }
 0x199   : > { %v1335_v50 = vadd.f32 %v1334_v45, %v1292_v15  ;;  %v3133_v51 = vpop.f32.mrf.mxu1  ;;  %v1295_v26 = vadd.f32 %v1294_v43, %v1252_v49  ;;  %v414_v43 = vld [vmem:[#allocation2 + $0x78] sm:$0xff] }
 0x19b   : > { %v1578_v23 = vadd.f32 %v1335_v50, %v429_v58 }
 0x19d   : > { %1604 = vst [vmem:[#allocation2 + $0x98] sm:$0xff] %v1578_v23 }
 0x19e   : > { %v1253_v35 = vpop.f32.mrf.mxu2 }
 0x1a0   : > { %v1296_v56 = vpop.f32.mrf.mxu3  ;;  %v1337_v11 = vpop.f32.mrf.mxu0 }
 0x1a1   : > { %v1338_v55 = vadd.f32 %v1337_v11, %v1295_v26  ;;  %v3136_v25 = vpop.f32.mrf.mxu1 }
 0x1a3   : > { %v1580_v52 = vadd.f32 %v1338_v55, %v431_v31  ;;  %v416_v31 = vld [vmem:[#allocation2 + $0xa8] sm:$0xff] }
 0x1a5   : > { %1606 = vst [vmem:[#allocation2 + $0xc0] sm:$0xff] %v1580_v52 }
 0x1a6   : > { %v1393_v1 = vpop.f32.mrf.mxu2 }
 0x1a7   : > { %v1394_v54 = vadd.f32 %v1393_v1, %v3075_v30 }
 0x1a8   : > { %v1436_v0 = vpop.f32.mrf.mxu3  ;;  %v1339_v34 = vpop.f32.mrf.mxu0 }
 0x1a9   : > { %v1382_v53 = vpop.f32.mrf.mxu1  ;;  %v1437_v42 = vadd.f32 %v1436_v0, %v1394_v54 }
 0x1ae   : > { %v1395_v60 = vpop.f32.mrf.mxu2 }
 0x1af   : > { %v1396_v47 = vadd.f32 %v1395_v60, %v3082_v38  ;;  %v418_v60 = vld [vmem:[#allocation2 + $0x30] sm:$0xff] }
 0x1b0   : > { %v1438_v61 = vpop.f32.mrf.mxu3  ;;  %v1479_v6 = vpop.f32.mrf.mxu0 }
 0x1b1   : > { %v1480_v8 = vadd.f32 %v1479_v6, %v1437_v42  ;;  %v1522_v12 = vpop.f32.mrf.mxu1  ;;  %v1439_v24 = vadd.f32 %v1438_v61, %v1396_v47 }
 0x1b3   : > { %v1523_v63 = vadd.f32 %v1522_v12, %v1480_v8 }
 0x1b5   : > { %v1557_v57 = vadd.f32 %v1523_v63, %v408_v62 }
 0x1b6   : > { %v1398_v46 = vpop.f32.mrf.mxu2 }
 0x1b7   : > { %1583 = vst [vmem:[#allocation2] sm:$0xff] %v1557_v57  ;;  %v1399_v30 = vadd.f32 %v1398_v46, %v3085_v44  ;;  %v420_v57 = vld [vmem:[#allocation2 + $0x70] sm:$0xff] }
 0x1b8   : > { %v1441_v7 = vpop.f32.mrf.mxu3  ;;  %v1481_v16 = vpop.f32.mrf.mxu0 }
 0x1b9   : > { %v1482_v10 = vadd.f32 %v1481_v16, %v1439_v24  ;;  %v1524_v33 = vpop.f32.mrf.mxu1  ;;  %v1442_v29 = vadd.f32 %v1441_v7, %v1399_v30 }
 0x1bb   : > { %v1525_v2 = vadd.f32 %v1524_v33, %v1482_v10 }
 0x1bd   : > { %v1559_v14 = vadd.f32 %v1525_v2, %v410_v9  ;;  %v422_v2 = vld [vmem:[#allocation2 + $0x38] sm:$0xff] }
 0x1be   : > { %v1400_v22 = vpop.f32.mrf.mxu2 }
 0x1bf   : > { %1585 = vst [vmem:[#allocation2 + $0x48] sm:$0xff] %v1559_v14  ;;  %v1401_v28 = vadd.f32 %v1400_v22, %v3093_v13 }
 0x1c0   : > { %v1443_v5 = vpop.f32.mrf.mxu3  ;;  %v1484_v39 = vpop.f32.mrf.mxu0 }
 0x1c1   : > { %v1485_v38 = vadd.f32 %v1484_v39, %v1442_v29  ;;  %v1527_v36 = vpop.f32.mrf.mxu1  ;;  %v1444_v32 = vadd.f32 %v1443_v5, %v1401_v28  ;;  %v424_v28 = vld [vmem:[#allocation2 + $0xb8] sm:$0xff] }
 0x1c3   : > { %v1528_v17 = vadd.f32 %v1527_v36, %v1485_v38 }
 0x1c5   : > { %v1561_v4 = vadd.f32 %v1528_v17, %v412_v27 }
 0x1c6   : > { %v1403_v18 = vpop.f32.mrf.mxu2 }
 0x1c7   : > { %1587 = vst [vmem:[#allocation2 + $0x28] sm:$0xff] %v1561_v4  ;;  %v1404_v58 = vadd.f32 %v1403_v18, %v3097_v37 }
 0x1c8   : > { %v1446_v40 = vpop.f32.mrf.mxu3  ;;  %v1486_v19 = vpop.f32.mrf.mxu0 }
 0x1c9   : > { %v1487_v44 = vadd.f32 %v1486_v19, %v1444_v32  ;;  %v1529_v15 = vpop.f32.mrf.mxu1  ;;  %v1447_v23 = vadd.f32 %v1446_v40, %v1404_v58 }
 0x1cb   : > { %v1530_v45 = vadd.f32 %v1529_v15, %v1487_v44 }
 0x1cd   : > { %v1563_v50 = vadd.f32 %v1530_v45, %v414_v43  ;;  %v426_v43 = vld [vmem:[#allocation2 + $0xc8] sm:$0xff] }
 0x1ce   : > { %v1405_v49 = vpop.f32.mrf.mxu2 }
 0x1cf   : > { %1589 = vst [vmem:[#allocation2 + $0x78] sm:$0xff] %v1563_v50  ;;  %v1406_v11 = vadd.f32 %v1405_v49, %v3105_v41 }
 0x1d0   : > { %v1448_v35 = vpop.f32.mrf.mxu3  ;;  %v1489_v26 = vpop.f32.mrf.mxu0 }
 0x1d1   : > { %v1490_v13 = vadd.f32 %v1489_v26, %v1447_v23  ;;  %v1532_v56 = vpop.f32.mrf.mxu1  ;;  %v1449_v0 = vadd.f32 %v1448_v35, %v1406_v11 }
 0x1d3   : > { %v1533_v55 = vadd.f32 %v1532_v56, %v1490_v13  ;;  %v428_v56 = vld [vmem:[#allocation2 + $0x90] sm:$0xff] }
 0x1d5   : > { %v1565_v52 = vadd.f32 %v1533_v55, %v416_v31 }
 0x1d6   : > { %v1408_v1 = vpop.f32.mrf.mxu2 }
 0x1d7   : > { %1591 = vst [vmem:[#allocation2 + $0xa8] sm:$0xff] %v1565_v52  ;;  %v1409_v42 = vadd.f32 %v1408_v1, %v3109_v48 }
 0x1d8   : > { %v1451_v34 = vpop.f32.mrf.mxu3  ;;  %v1491_v53 = vpop.f32.mrf.mxu0 }
 0x1d9   : > { %v1492_v37 = vadd.f32 %v1491_v53, %v1449_v0  ;;  %v1534_v54 = vpop.f32.mrf.mxu1  ;;  %v1452_v12 = vadd.f32 %v1451_v34, %v1409_v42 }
 0x1db   : > { %v1535_v61 = vadd.f32 %v1534_v54, %v1492_v37  ;;  %v430_v37 = vld [vmem:[#allocation2 + $0x18] sm:$0xff] }
 0x1dd   : > { %v1567_v6 = vadd.f32 %v1535_v61, %v418_v60 }
 0x1de   : > { %v1410_v8 = vpop.f32.mrf.mxu2 }
 0x1df   : > { %1593 = vst [vmem:[#allocation2 + $0x30] sm:$0xff] %v1567_v6  ;;  %v1411_v46 = vadd.f32 %v1410_v8, %v3115_v59 }
 0x1e0   : > { %v1453_v62 = vpop.f32.mrf.mxu3  ;;  %v1494_v47 = vpop.f32.mrf.mxu0 }
 0x1e1   : > { %v1495_v41 = vadd.f32 %v1494_v47, %v1452_v12  ;;  %v1537_v63 = vpop.f32.mrf.mxu1  ;;  %v1454_v10 = vadd.f32 %v1453_v62, %v1411_v46  ;;  %v432_v47 = vld [vmem:[#allocation2 + $0x68] sm:$0xff] }
 0x1e3   : > { %v1538_v24 = vadd.f32 %v1537_v63, %v1495_v41 }
 0x1e5   : > { %v1569_v7 = vadd.f32 %v1538_v24, %v420_v57 }
 0x1e6   : > { %v1413_v16 = vpop.f32.mrf.mxu2 }
 0x1e7   : > { %1595 = vst [vmem:[#allocation2 + $0x70] sm:$0xff] %v1569_v7  ;;  %v1414_v14 = vadd.f32 %v1413_v16, %v3118_v20 }
 0x1e8   : > { %v1456_v33 = vpop.f32.mrf.mxu3  ;;  %v1496_v9 = vpop.f32.mrf.mxu0 }
 0x1e9   : > { %v1497_v48 = vadd.f32 %v1496_v9, %v1454_v10  ;;  %v1539_v30 = vpop.f32.mrf.mxu1  ;;  %v1457_v39 = vadd.f32 %v1456_v33, %v1414_v14 }
 0x1eb   : > { %v1540_v22 = vadd.f32 %v1539_v30, %v1497_v48 }
 0x1ed   : > { %v1571_v29 = vadd.f32 %v1540_v22, %v422_v2 }
 0x1ee   : > { %v1415_v5 = vpop.f32.mrf.mxu2 }
 0x1ef   : > { %1597 = vst [vmem:[#allocation2 + $0x38] sm:$0xff] %v1571_v29  ;;  %v1416_v17 = vadd.f32 %v1415_v5, %v3125_v21 }
 0x1f0   : > { %v1458_v38 = vpop.f32.mrf.mxu3  ;;  %v1499_v36 = vpop.f32.mrf.mxu0 }
 0x1f1   : > { %v1500_v59 = vadd.f32 %v1499_v36, %v1457_v39  ;;  %v1542_v27 = vpop.f32.mrf.mxu1  ;;  %v1459_v40 = vadd.f32 %v1458_v38, %v1416_v17 }
 0x1f3   : > { %v1543_v4 = vadd.f32 %v1542_v27, %v1500_v59 }
 0x1f5   : > { %v1573_v18 = vadd.f32 %v1543_v4, %v424_v28 }
 0x1f6   : > { %v1418_v32 = vpop.f32.mrf.mxu2 }
 0x1f7   : > { %1599 = vst [vmem:[#allocation2 + $0xb8] sm:$0xff] %v1573_v18  ;;  %v1419_v58 = vadd.f32 %v1418_v32, %v3128_v3 }
 0x1f8   : > { %v1461_v19 = vpop.f32.mrf.mxu3  ;;  %v1501_v44 = vpop.f32.mrf.mxu0 }
 0x1f9   : > { %v1502_v20 = vadd.f32 %v1501_v44, %v1459_v40  ;;  %v1544_v15 = vpop.f32.mrf.mxu1  ;;  %v1462_v23 = vadd.f32 %v1461_v19, %v1419_v58 }
 0x1fb   : > { %v1545_v45 = vadd.f32 %v1544_v15, %v1502_v20 }
 0x1fd   : > { %v1575_v50 = vadd.f32 %v1545_v45, %v426_v43 }
 0x1fe   : > { %v1420_v49 = vpop.f32.mrf.mxu2 }
 0x1ff   : > { %1601 = vst [vmem:[#allocation2 + $0xc8] sm:$0xff] %v1575_v50  ;;  %v1421_v31 = vadd.f32 %v1420_v49, %v3133_v51 }
 0x200   : > { %v1463_v35 = vpop.f32.mrf.mxu3  ;;  %v1504_v26 = vpop.f32.mrf.mxu0 }
 0x201   : > { %v1505_v21 = vadd.f32 %v1504_v26, %v1462_v23  ;;  %v1547_v13 = vpop.f32.mrf.mxu1  ;;  %v1464_v1 = vadd.f32 %v1463_v35, %v1421_v31 }
 0x203   : > { %v1548_v11 = vadd.f32 %v1547_v13, %v1505_v21 }
 0x205   : > { %v1577_v55 = vadd.f32 %v1548_v11, %v428_v56 }
 0x206   : > { %v1423_v52 = vpop.f32.mrf.mxu2 }
 0x207   : > { %1603 = vst [vmem:[#allocation2 + $0x90] sm:$0xff] %v1577_v55  ;;  %v1424_v54 = vadd.f32 %v1423_v52, %v3136_v25 }
 0x208   : > { %v1466_v0 = vpop.f32.mrf.mxu3  ;;  %v1506_v34 = vpop.f32.mrf.mxu0 }
 0x209   : > { %v1507_v3 = vadd.f32 %v1506_v34, %v1464_v1  ;;  %v1549_v53 = vpop.f32.mrf.mxu1  ;;  %v1467_v6 = vadd.f32 %v1466_v0, %v1424_v54 }
 0x20b   : > { %v1550_v60 = vadd.f32 %v1549_v53, %v1507_v3 }
 0x20d   : > { %v1579_v42 = vadd.f32 %v1550_v60, %v430_v37 }
 0x20e   : > { %v1425_v61 = vpop.f32.mrf.mxu2 }
 0x20f   : > { %1605 = vst [vmem:[#allocation2 + $0x18] sm:$0xff] %v1579_v42 }
 0x210   : > { %v1468_v8 = vpop.f32.mrf.mxu3  ;;  %v1509_v12 = vpop.f32.mrf.mxu0 }
 0x211   : > { %v1510_v51 = vadd.f32 %v1509_v12, %v1467_v6  ;;  %v1552_v62 = vpop.f32.mrf.mxu1 }
 0x213   : > { %v1553_v41 = vadd.f32 %v1552_v62, %v1510_v51 }
 0x215   : > { %v1581_v63 = vadd.f32 %v1553_v41, %v432_v47  ;;  %1611 = sbr.rel (%p2324_p11) target bundleno = 571 (0x23b), region = 66 }
 0x217   : > { %1607 = vst [vmem:[#allocation2 + $0x68] sm:$0xff] %v1581_v63 }
 0x218   : > { %v1511_v57 = vpop.f32.mrf.mxu0 }
 0x219   : > { %v1554_v46 = vpop.f32.mrf.mxu1 }
 0x21a   : > { %v1612_v24 = vld [vmem:[#allocation2 + $0xb0] sm:$0xff]  ;;  %v1638_v25 = vld [vmem:[%s3280_s2] sm:$0x3]  ;;  %v1615_v9 = vld [vmem:[#allocation2 + $0x48] sm:$0xff] }
 0x21b   : > { %v1613_v7 = vld [vmem:[#allocation2] sm:$0xff]  ;;  %v3155_v16 = vperm.slane %v1638_v25, 0  ;;  %v3157_v10 = vperm.slane %v1638_v25, 1  ;;  %v1614_v33 = vld [vmem:[#allocation2 + $0x10] sm:$0xff]  ;;  %v1617_v30 = vld [vmem:[#allocation2 + $0x28] sm:$0xff] }
 0x21c   : > { %v1616_v48 = vld [vmem:[#allocation2 + $0x60] sm:$0xff]  ;;  %v1619_v39 = vld [vmem:[#allocation2 + $0x78] sm:$0xff]  ;;  %v1621_v18 = vld [vmem:[#allocation2 + $0xa8] sm:$0xff] }
 0x21d   : > { %v1618_v2 = vld [vmem:[#allocation2 + $0x40] sm:$0xff]  ;;  %v1644_v14 = vadd.f32 %v3155_v16, %v1612_v24  ;;  %v1645_v22 = vadd.f32 %v3157_v10, %v1613_v7  ;;  %v1646_v29 = vadd.f32 %v3155_v16, %v1614_v33  ;;  %v1647_v5 = vadd.f32 %v3157_v10, %v1615_v9  ;;  %v1622_v19 = vld [vmem:[#allocation2 + $0x50] sm:$0xff]  ;;  %v1624_v45 = vld [vmem:[#allocation2 + $0x88] sm:$0xff] }
 0x21e   : > { %v1648_v38 = vadd.f32 %v3155_v16, %v1616_v48  ;;  %v1649_v36 = vadd.f32 %v3157_v10, %v1617_v30  ;;  %v1620_v59 = vld [vmem:[#allocation2 + $0x80] sm:$0xff]  ;;  %v1650_v4 = vadd.f32 %v3155_v16, %v1618_v2  ;;  %v1651_v40 = vadd.f32 %v3157_v10, %v1619_v39  ;;  %v1623_v15 = vld [vmem:[#allocation2 + $0x30] sm:$0xff]  ;;  %v1626_v21 = vld [vmem:[#allocation2 + $0x8] sm:$0xff] }
 0x21f   : > { %v1670_v27 = vmax.f32 %v1644_v14, 0.0  ;;  %v1671_v28 = vmax.f32 %v1645_v22, 0.0  ;;  %v1672_v17 = vmax.f32 %v1646_v29, 0.0  ;;  %v1673_v32 = vmax.f32 %v1647_v5, 0.0  ;;  %v1625_v23 = vld [vmem:[#allocation2 + $0x70] sm:$0xff]  ;;  %v1627_v31 = vld [vmem:[#allocation2 + $0x38] sm:$0xff] }
 0x220   : > { %v1674_v44 = vmax.f32 %v1648_v38, 0.0  ;;  %v1652_v20 = vadd.f32 %v3155_v16, %v1620_v59  ;;  %v1675_v43 = vmax.f32 %v1649_v36, 0.0  ;;  %v1653_v58 = vadd.f32 %v3157_v10, %v1621_v18  ;;  %v1628_v52 = vld [vmem:[#allocation2 + $0x20] sm:$0xff]  ;;  %v1629_v34 = vld [vmem:[#allocation2 + $0xb8] sm:$0xff]  ;;  %v1631_v42 = vld [vmem:[#allocation2 + $0xc8] sm:$0xff] }
 0x221   : > { %1696 = vst [vmem:[%s3281_s3] sm:$0xff] %v1670_v27  ;;  %v1676_v50 = vmax.f32 %v1650_v4, 0.0  ;;  %v1654_v49 = vadd.f32 %v3155_v16, %v1622_v19  ;;  %v1677_v35 = vmax.f32 %v1651_v40, 0.0  ;;  %v1655_v26 = vadd.f32 %v3157_v10, %v1623_v15  ;;  %v1630_v37 = vld [vmem:[#allocation2 + $0x58] sm:$0xff]  ;;  %v1632_v8 = vld [vmem:[#allocation2 + $0xa0] sm:$0xff]  ;;  %v1633_v62 = vld [vmem:[#allocation2 + $0x90] sm:$0xff] }
 0x222   : > { %1697 = vst [vmem:[%s3281_s3 + $0x8] sm:$0xff] %v1671_v28  ;;  %v1678_v13 = vmax.f32 %v1652_v20, 0.0  ;;  %v1656_v56 = vadd.f32 %v3155_v16, %v1624_v45  ;;  %v1679_v11 = vmax.f32 %v1653_v58, 0.0  ;;  %v1657_v55 = vadd.f32 %v3157_v10, %v1625_v23  ;;  %v1634_v63 = vld [vmem:[#allocation2 + $0x98] sm:$0xff]  ;;  %v1636_v33 = vld [vmem:[#allocation2 + $0xc0] sm:$0xff]  ;;  %v1637_v30 = vld [vmem:[#allocation2 + $0x68] sm:$0xff] }
 0x223   : > { %1698 = vst [vmem:[%s3281_s3 + $0x10] sm:$0xff] %v1672_v17  ;;  %v1680_v1 = vmax.f32 %v1654_v49, 0.0  ;;  %v1658_v0 = vadd.f32 %v3155_v16, %v1626_v21  ;;  %v1681_v3 = vmax.f32 %v1655_v26, 0.0  ;;  %v1659_v53 = vadd.f32 %v3157_v10, %v1627_v31  ;;  %v1635_v24 = vld [vmem:[#allocation2 + $0x18] sm:$0xff] }
 0x224   : > { %1699 = vst [vmem:[%s3281_s3 + $0x18] sm:$0xff] %v1673_v32  ;;  %v1682_v54 = vmax.f32 %v1656_v56, 0.0  ;;  %v1660_v60 = vadd.f32 %v3155_v16, %v1628_v52  ;;  %v1683_v61 = vmax.f32 %v1657_v55, 0.0  ;;  %v1661_v6 = vadd.f32 %v3157_v10, %v1629_v34 }
 0x225   : > { %1700 = vst [vmem:[%s3281_s3 + $0x20] sm:$0xff] %v1674_v44  ;;  %v1684_v12 = vmax.f32 %v1658_v0, 0.0  ;;  %v1662_v51 = vadd.f32 %v3155_v16, %v1630_v37  ;;  %v1685_v47 = vmax.f32 %v1659_v53, 0.0  ;;  %v1663_v41 = vadd.f32 %v3157_v10, %v1631_v42 }
 0x226   : > { %1701 = vst [vmem:[%s3281_s3 + $0x28] sm:$0xff] %v1675_v43  ;;  %v1686_v57 = vmax.f32 %v1660_v60, 0.0  ;;  %v1664_v46 = vadd.f32 %v3155_v16, %v1632_v8  ;;  %v1687_v25 = vmax.f32 %v1661_v6, 0.0  ;;  %v1665_v7 = vadd.f32 %v3157_v10, %v1633_v62 }
 0x227   : > { %1702 = vst [vmem:[%s3281_s3 + $0x30] sm:$0xff] %v1676_v50  ;;  %v1688_v9 = vmax.f32 %v1662_v51, 0.0  ;;  %v1666_v48 = vadd.f32 %v3155_v16, %v1634_v63  ;;  %v1689_v2 = vmax.f32 %v1663_v41, 0.0  ;;  %v1667_v14 = vadd.f32 %v3157_v10, %v1635_v24 }
 0x228   : > { %1703 = vst [vmem:[%s3281_s3 + $0x38] sm:$0xff] %v1677_v35  ;;  %v1690_v22 = vmax.f32 %v1664_v46, 0.0  ;;  %v1668_v29 = vadd.f32 %v3155_v16, %v1636_v33  ;;  %v1691_v5 = vmax.f32 %v1665_v7, 0.0  ;;  %v1669_v39 = vadd.f32 %v3157_v10, %v1637_v30 }
 0x229   : > { %1704 = vst [vmem:[%s3281_s3 + $0x40] sm:$0xff] %v1678_v13  ;;  %v1692_v38 = vmax.f32 %v1666_v48, 0.0  ;;  %v1693_v36 = vmax.f32 %v1667_v14, 0.0 }
 0x22a   : > { %1705 = vst [vmem:[%s3281_s3 + $0x48] sm:$0xff] %v1679_v11  ;;  %v1694_v16 = vmax.f32 %v1668_v29, 0.0  ;;  %v1695_v10 = vmax.f32 %v1669_v39, 0.0 }
 0x22b   : > { %1706 = vst [vmem:[%s3281_s3 + $0x50] sm:$0xff] %v1680_v1 }
 0x22c   : > { %1707 = vst [vmem:[%s3281_s3 + $0x58] sm:$0xff] %v1681_v3 }
 0x22d   : > { %1708 = vst [vmem:[%s3281_s3 + $0x60] sm:$0xff] %v1682_v54 }
 0x22e   : > { %1709 = vst [vmem:[%s3281_s3 + $0x68] sm:$0xff] %v1683_v61 }
 0x22f   : > { %1710 = vst [vmem:[%s3281_s3 + $0x70] sm:$0xff] %v1684_v12 }
 0x230   : > { %1711 = vst [vmem:[%s3281_s3 + $0x78] sm:$0xff] %v1685_v47 }
 0x231   : > { %1712 = vst [vmem:[%s3281_s3 + $0x80] sm:$0xff] %v1686_v57 }
 0x232   : > { %1713 = vst [vmem:[%s3281_s3 + $0x88] sm:$0xff] %v1687_v25 }
 0x233   : > { %1714 = vst [vmem:[%s3281_s3 + $0x90] sm:$0xff] %v1688_v9 }
 0x234   : > { %1715 = vst [vmem:[%s3281_s3 + $0x98] sm:$0xff] %v1689_v2 }
 0x235   : > { %1716 = vst [vmem:[%s3281_s3 + $0xa0] sm:$0xff] %v1690_v22 }
 0x236   : > { %1717 = vst [vmem:[%s3281_s3 + $0xa8] sm:$0xff] %v1691_v5 }
 0x237   : > { %1718 = vst [vmem:[%s3281_s3 + $0xb0] sm:$0xff] %v1692_v38 }
 0x238   : > { %1719 = vst [vmem:[%s3281_s3 + $0xb8] sm:$0xff] %v1693_v36 }
 0x239   : > { %1720 = vst [vmem:[%s3281_s3 + $0xc0] sm:$0xff] %v1694_v16 }
 0x23a   : > { %1721 = vst [vmem:[%s3281_s3 + $0xc8] sm:$0xff] %v1695_v10 }
 0x23b PF: > { %s13_s16 = sadd.s32 1, %s2538_s16   ;;  %s3282_s12 = smov %s2526_s13 }
 0x23c   : > { %p10_p12 = scmp.ge.s32.totalorder %s13_s16, 7   ;;  %s3283_s13 = smov %s2596_s20 }
 0x23d   : > { %s3284_s14 = smov %s2534_s15  ;;  %s3285_s15 = smov %s3287_s17 }
 0x23e   :  { %12 = sbr.rel (!%p10_p12) target bundleno = 3 (0x3), region = 113 }

// kernel: forward.10
= control target key start
LH: loop header
LB: loop body
LE: loop exit
PB: predicated region body
PF: predicated region fallthrough
CT: control target
= control target key end

     0   :  { %s2747_s12 = smov 0   ;;  %s2749_s13 = smov 0   ;;  %s3211_s0 = inlined_call_operand.vmem [shape: bf16[24,2304], index: 0, kind: input, shape index: {}]   ;;  %s3212_s1 = inlined_call_operand.vmem [shape: bf16[2304,384], index: 1, kind: input, shape index: {}]   ;;  %s3213_s2 = inlined_call_operand.vmem [shape: f32[1,384], index: 2, kind: input, shape index: {}]   ;;  %s3214_s3 = inlined_call_operand.vmem [shape: f32[24,384], index: 3, kind: output, shape index: {}]  }
   0x1   :  { %s2751_s14 = smov 0   ;;  %s2753_s15 = smov 0  }
   0x2   :  { %s2755_s16 = smov 0  }
   0x3 LB: > { %s25_s17 = sadd.s32 1, %s2720_s15  ;;  %p48_p1 = scmp.ne.s32.totalorder %s2712_s13, %s2708_s12  ;;  %s2724_s16 = sphi %s2755_s16, %s13_s16   ;;  %s2720_s15 = sphi %s2753_s15, %s3218_s15   ;;  %s2716_s14 = sphi %s2751_s14, %s3217_s14   ;;  %s2712_s13 = sphi %s2749_s13, %s3216_s13   ;;  %s2708_s12 = sphi %s2747_s12, %s3215_s12  }
   0x4   : > { %p26_p0 = scmp.ge.s32.totalorder %s25_s17, 3  ;;  %p49_p2 = scmp.eq.s32.totalorder %s2724_s16, 0 }
   0x5   : > { %s41_s19 = sadd.s32 1, %s2712_s13  ;;  %p1865_p5 = scmp.ge.s32.totalorder %s2724_s16, 3 }
   0x6   : > { %s3220_s17 = smov (%p26_p0, %s25_s17), 0  ;;  %p50_p3 = por %p49_p2, %p48_p1 }
   0x7   : > { %s37_s18 = ssub.s32 %s2720_s15, %s3220_s17  ;;  %164 = sbr.rel (%p1865_p5) target bundleno = 26 (0x1a), region = 20 }
   0x8   : > { %p39_p4 = scmp.eq.s32.totalorder %s37_s18, 0 }
   0xa   : > { %s2782_s20 = scalar_select %p39_p4, %s2712_s13, %s41_s19  }
   0xc   : > { %167 = sbr.rel (!%p50_p3) target bundleno = 26 (0x1a), region = 24  ;;  %s169_s21 = sand.u32 (%p50_p3), 1, %s2712_s13  }
   0xd   : > { %s2475_s22 = smul.u32 (%p50_p3), 24, %s2720_s15 }
   0xe   : > { %s2642_s23 = smul.u32 (%p50_p3), 72, %s169_s21 }
   0xf   : > { %s177_s26 = scalar_lea.vmem (%p50_p3), %s3211_s0, %s2475_s22 }
  0x10   : > { %v190_v0 = vld [vmem:[%s177_s26] sm:$0xff] (%p50_p3)  ;;  %v192_v1 = vld [vmem:[%s177_s26 + $0x8] sm:$0xff] (%p50_p3)  ;;  %v194_v2 = vld [vmem:[%s177_s26 + $0x10] sm:$0xff] (%p50_p3)  ;;  %s171_s27 = scalar_lea.vmem (%p50_p3), [#allocation3], %s2642_s23 }
  0x11   : > { %191 = vst [vmem:[%s171_s27] sm:$0xff] %v190_v0  ;;  %v196_v3 = vld [vmem:[%s177_s26 + $0x48] sm:$0xff]  ;;  %v198_v4 = vld [vmem:[%s177_s26 + $0x50] sm:$0xff]  ;;  %v200_v5 = vld [vmem:[%s177_s26 + $0x58] sm:$0xff] }
  0x12   : > { %193 = vst [vmem:[%s171_s27 + $0x8] sm:$0xff] %v192_v1  ;;  %v202_v6 = vld [vmem:[%s177_s26 + $0x90] sm:$0xff]  ;;  %v204_v7 = vld [vmem:[%s177_s26 + $0x98] sm:$0xff]  ;;  %v206_v8 = vld [vmem:[%s177_s26 + $0xa0] sm:$0xff] }
  0x13   : > { %195 = vst [vmem:[%s171_s27 + $0x10] sm:$0xff] %v194_v2 }
  0x14   : > { %197 = vst [vmem:[%s171_s27 + $0x18] sm:$0xff] %v196_v3 }
  0x15   : > { %199 = vst [vmem:[%s171_s27 + $0x20] sm:$0xff] %v198_v4 }
  0x16   : > { %201 = vst [vmem:[%s171_s27 + $0x28] sm:$0xff] %v200_v5 }
  0x17   : > { %203 = vst [vmem:[%s171_s27 + $0x30] sm:$0xff] %v202_v6 }
  0x18   : > { %205 = vst [vmem:[%s171_s27 + $0x38] sm:$0xff] %v204_v7 }
  0x19   : > { %207 = vst [vmem:[%s171_s27 + $0x40] sm:$0xff] %v206_v8 }
  0x1a PF: > { %p1867_p6 = scmp.ge.s32.totalorder %s2724_s16, 1  ;;  %p227_p7 = scmp.lt.s32.totalorder %s2724_s16, 4 }
  0x1c   : > { %p228_p8 = pnand %p1867_p6, %p227_p7 }
  0x1d   : > { %s234_s28 = sand.u32 (!%p228_p8), 1, %s2708_s12   ;;  %s278_s29 = smul.u32 (!%p228_p8), 96, %s2716_s14 }
  0x1e   : > { %231 = sbr.rel (%p228_p8) target bundleno = 371 (0x173), region = 51  ;;  %p1869_p10 = scmp.ne.s32.totalorder (!%p228_p8), %s2716_s14, 0 }
  0x1f   : > { %s2643_s30 = smul.u32 (!%p228_p8), 72, %s234_s28  ;;  %p280_p9 = scmp.lt.s32.totalorder (!%p228_p8), %s278_s29, 287 }
  0x21   : > { %s2799_s8 = scalar_lea.vmem (!%p228_p8), [#allocation3], %s2643_s30 }
  0x23   : > { %s3222_s29 = smov (!%p280_p9, %s278_s29), 287  ;;  %310 = sbr.rel (%p1869_p10) target bundleno = 50 (0x32), region = 59 }
  0x24   : > { %s2644_s4 = smul.u32 12, %s3222_s29 }
  0x26   : > { %s2797_s7 = scalar_lea.vmem %s3212_s1, %s2644_s4 }
  0x28   : > { %v2726_v9 = vmov 0.0  }
  0x29   : > { %311 = vst [vmem:[#allocation2 + $0x30] sm:$0xff] %v2726_v9 }
  0x2a   : > { %312 = vst [vmem:[#allocation2] sm:$0xff] %v2726_v9 }
  0x2b   : > { %313 = vst [vmem:[#allocation2 + $0x18] sm:$0xff] %v2726_v9 }
  0x2c   : > { %314 = vst [vmem:[#allocation2 + $0x10] sm:$0xff] %v2726_v9 }
  0x2d   : > { %315 = vst [vmem:[#allocation2 + $0x20] sm:$0xff] %v2726_v9 }
  0x2e   : > { %316 = vst [vmem:[#allocation2 + $0x28] sm:$0xff] %v2726_v9 }
  0x2f   : > { %317 = vst [vmem:[#allocation2 + $0x40] sm:$0xff] %v2726_v9 }
  0x30   : > { %318 = vst [vmem:[#allocation2 + $0x38] sm:$0xff] %v2726_v9 }
  0x31   : > { %319 = vst [vmem:[#allocation2 + $0x8] sm:$0xff] %v2726_v9 }
  0x32 PF: > { %v1980_v10 = vld [vmem:[%s2797_s7 + $0xa8] sm:$0xf]  ;;  %v2504_v11 = vld [vmem:[%s2797_s7 + $0xb0] sm:$0xf0]  ;;  %v1968_v21 = vld [vmem:[%s2797_s7 + $0x90] sm:$0xf] }
  0x33   : > { %v2076_v12 = vld [vmem:[%s2797_s7 + $0x168] sm:$0xf]  ;;  %v1981_v13 = vor.u32 %v2504_v11, %v1980_v10  ;;  %v2528_v14 = vld [vmem:[%s2797_s7 + $0x170] sm:$0xf0]  ;;  %v2501_v23 = vld [vmem:[%s2797_s7 + $0x98] sm:$0xf0] }
  0x34   : > { %v2172_v15 = vld [vmem:[%s2797_s7 + $0x228] sm:$0xf]  ;;  %v2552_v16 = vld [vmem:[%s2797_s7 + $0x230] sm:$0xf0]  ;;  %v2077_v17 = vor.u32 %v2528_v14, %v2076_v12  ;;  %v2064_v24 = vld [vmem:[%s2797_s7 + $0x150] sm:$0xf]  ;;  %v1969_v26 = vor.u32 %v2501_v23, %v1968_v21 }
  0x35   : > { %v2173_v18 = vor.u32 %v2552_v16, %v2172_v15  ;;  %v2268_v19 = vld [vmem:[%s2797_s7 + $0x2e8] sm:$0xf]  ;;  %v2576_v20 = vld [vmem:[%s2797_s7 + $0x2f0] sm:$0xf0]  ;;  %1349 = vmatpush.bf16.msra.mxu0 %v1981_v13  ;;  %v2525_v25 = vld [vmem:[%s2797_s7 + $0x158] sm:$0xf0] }
  0x36   : > { %v2269_v22 = vor.u32 %v2576_v20, %v2268_v19  ;;  %1367 = vmatpush.bf16.msra.mxu1 %v2077_v17  ;;  %v2065_v27 = vor.u32 %v2525_v25, %v2064_v24  ;;  %v2160_v28 = vld [vmem:[%s2797_s7 + $0x210] sm:$0xf]  ;;  %v2549_v29 = vld [vmem:[%s2797_s7 + $0x218] sm:$0xf0]  ;;  %v1956_v33 = vld [vmem:[%s2797_s7 + $0x78] sm:$0xf] }
  0x37   : > { %1385 = vmatpush.bf16.msra.mxu2 %v2173_v18  ;;  %v2256_v30 = vld [vmem:[%s2797_s7 + $0x2d0] sm:$0xf]  ;;  %v2161_v31 = vor.u32 %v2549_v29, %v2160_v28  ;;  %v2573_v32 = vld [vmem:[%s2797_s7 + $0x2d8] sm:$0xf0]  ;;  %v2498_v34 = vld [vmem:[%s2797_s7 + $0x80] sm:$0xf0] }
  0x38   : > { %1403 = vmatpush.bf16.msra.mxu3 %v2269_v22  ;;  %v2257_v35 = vor.u32 %v2573_v32, %v2256_v30  ;;  %v2052_v36 = vld [vmem:[%s2797_s7 + $0x138] sm:$0xf]  ;;  %v2522_v37 = vld [vmem:[%s2797_s7 + $0x140] sm:$0xf0]  ;;  %v1957_v39 = vor.u32 %v2498_v34, %v1956_v33  ;;  %v1944_v45 = vld [vmem:[%s2797_s7 + $0x60] sm:$0xf] }
  0x39   : > { %v2148_v38 = vld [vmem:[%s2797_s7 + $0x1f8] sm:$0xf]  ;;  %1350 = vmatpush.bf16.msra.mxu0 %v1969_v26  ;;  %v2546_v40 = vld [vmem:[%s2797_s7 + $0x200] sm:$0xf0]  ;;  %v2053_v43 = vor.u32 %v2522_v37, %v2052_v36  ;;  %v2495_v46 = vld [vmem:[%s2797_s7 + $0x68] sm:$0xf0] }
  0x3a   : > { %v2244_v41 = vld [vmem:[%s2797_s7 + $0x2b8] sm:$0xf]  ;;  %v2570_v42 = vld [vmem:[%s2797_s7 + $0x2c0] sm:$0xf0]  ;;  %1368 = vmatpush.bf16.msra.mxu1 %v2065_v27  ;;  %v2149_v44 = vor.u32 %v2546_v40, %v2148_v38  ;;  %v2040_v47 = vld [vmem:[%s2797_s7 + $0x120] sm:$0xf]  ;;  %v1945_v54 = vor.u32 %v2495_v46, %v1944_v45 }
  0x3b   : > { %1386 = vmatpush.bf16.msra.mxu2 %v2161_v31  ;;  %v2245_v48 = vor.u32 %v2570_v42, %v2244_v41  ;;  %v2519_v49 = vld [vmem:[%s2797_s7 + $0x128] sm:$0xf0]  ;;  %v2136_v50 = vld [vmem:[%s2797_s7 + $0x1e0] sm:$0xf]  ;;  %v1932_v57 = vld [vmem:[%s2797_s7 + $0x48] sm:$0xf] }
  0x3c   : > { %1404 = vmatpush.bf16.msra.mxu3 %v2257_v35  ;;  %v2543_v51 = vld [vmem:[%s2797_s7 + $0x1e8] sm:$0xf0]  ;;  %v2232_v52 = vld [vmem:[%s2797_s7 + $0x2a0] sm:$0xf]  ;;  %v2041_v55 = vor.u32 %v2519_v49, %v2040_v47  ;;  %v2492_v58 = vld [vmem:[%s2797_s7 + $0x50] sm:$0xf0] }
  0x3d   : > { %v2567_v53 = vld [vmem:[%s2797_s7 + $0x2a8] sm:$0xf0]  ;;  %1351 = vmatpush.bf16.msra.mxu0 %v1957_v39  ;;  %v2137_v56 = vor.u32 %v2543_v51, %v2136_v50  ;;  %v2028_v59 = vld [vmem:[%s2797_s7 + $0x108] sm:$0xf]  ;;  %v2516_v61 = vld [vmem:[%s2797_s7 + $0x110] sm:$0xf0]  ;;  %v1933_v2 = vor.u32 %v2492_v58, %v1932_v57 }
  0x3e   : > { %1369 = vmatpush.bf16.msra.mxu1 %v2053_v43  ;;  %v2233_v60 = vor.u32 %v2567_v53, %v2232_v52  ;;  %v2124_v62 = vld [vmem:[%s2797_s7 + $0x1c8] sm:$0xf]  ;;  %v2540_v63 = vld [vmem:[%s2797_s7 + $0x1d0] sm:$0xf0]  ;;  %v2029_v3 = vor.u32 %v2516_v61, %v2028_v59  ;;  %v1920_v5 = vld [vmem:[%s2797_s7 + $0x30] sm:$0xf] }
  0x3f   : > { %1387 = vmatpush.bf16.msra.mxu2 %v2149_v44  ;;  %v2220_v0 = vld [vmem:[%s2797_s7 + $0x288] sm:$0xf]  ;;  %v2564_v1 = vld [vmem:[%s2797_s7 + $0x290] sm:$0xf0]  ;;  %v2125_v4 = vor.u32 %v2540_v63, %v2124_v62  ;;  %v2489_v6 = vld [vmem:[%s2797_s7 + $0x38] sm:$0xf0] }
  0x40   : > { %1405 = vmatpush.bf16.msra.mxu3 %v2245_v48  ;;  %v2016_v7 = vld [vmem:[%s2797_s7 + $0xf0] sm:$0xf]  ;;  %v2221_v8 = vor.u32 %v2564_v1, %v2220_v0  ;;  %v2513_v9 = vld [vmem:[%s2797_s7 + $0xf8] sm:$0xf0]  ;;  %v1921_v14 = vor.u32 %v2489_v6, %v1920_v5  ;;  %v1908_v17 = vld [vmem:[%s2797_s7 + $0x18] sm:$0xf] }
  0x41   : > { %1352 = vmatpush.bf16.msra.mxu0 %v1945_v54  ;;  %v2112_v10 = vld [vmem:[%s2797_s7 + $0x1b0] sm:$0xf]  ;;  %v2537_v11 = vld [vmem:[%s2797_s7 + $0x1b8] sm:$0xf0]  ;;  %v2017_v15 = vor.u32 %v2513_v9, %v2016_v7  ;;  %v2486_v18 = vld [vmem:[%s2797_s7 + $0x20] sm:$0xf0] }
  0x42   : > { %1370 = vmatpush.bf16.msra.mxu1 %v2041_v55  ;;  %v2208_v12 = vld [vmem:[%s2797_s7 + $0x270] sm:$0xf]  ;;  %v2561_v13 = vld [vmem:[%s2797_s7 + $0x278] sm:$0xf0]  ;;  %v2113_v16 = vor.u32 %v2537_v11, %v2112_v10  ;;  %v2004_v19 = vld [vmem:[%s2797_s7 + $0xd8] sm:$0xf]  ;;  %v1909_v27 = vor.u32 %v2486_v18, %v1908_v17 }
  0x43   : > { %1388 = vmatpush.bf16.msra.mxu2 %v2137_v56  ;;  %v2209_v20 = vor.u32 %v2561_v13, %v2208_v12  ;;  %v2510_v21 = vld [vmem:[%s2797_s7 + $0xe0] sm:$0xf0]  ;;  %v2100_v22 = vld [vmem:[%s2797_s7 + $0x198] sm:$0xf]  ;;  %v1896_v26 = vld [vmem:[%s2797_s7] sm:$0xf] }
  0x44   : > { %1406 = vmatpush.bf16.msra.mxu3 %v2233_v60  ;;  %v2534_v23 = vld [vmem:[%s2797_s7 + $0x1a0] sm:$0xf0]  ;;  %v2196_v24 = vld [vmem:[%s2797_s7 + $0x258] sm:$0xf]  ;;  %v2483_v28 = vld [vmem:[%s2797_s7 + $0x8] sm:$0xf0]  ;;  %v2005_v31 = vor.u32 %v2510_v21, %v2004_v19 }
  0x45   : > { %1353 = vmatpush.bf16.msra.mxu0 %v1933_v2  ;;  %v2558_v25 = vld [vmem:[%s2797_s7 + $0x260] sm:$0xf0]  ;;  %v1992_v29 = vld [vmem:[%s2797_s7 + $0xc0] sm:$0xf]  ;;  %v2507_v30 = vld [vmem:[%s2797_s7 + $0xc8] sm:$0xf0]  ;;  %v2101_v32 = vor.u32 %v2534_v23, %v2100_v22  ;;  %v1897_v44 = vor.u32 %v2483_v28, %v1896_v26 }
  0x46   : > { %1371 = vmatpush.bf16.msra.mxu1 %v2029_v3  ;;  %v2088_v33 = vld [vmem:[%s2797_s7 + $0x180] sm:$0xf]  ;;  %v2531_v34 = vld [vmem:[%s2797_s7 + $0x188] sm:$0xf0]  ;;  %v2197_v36 = vor.u32 %v2558_v25, %v2196_v24  ;;  %v1872_v38 = vld [vmem:[%s2799_s8] sm:$0xf]  ;;  %v1993_v48 = vor.u32 %v2507_v30, %v1992_v29 }
  0x47   : > { %1389 = vmatpush.bf16.msra.mxu2 %v2125_v4  ;;  %v2184_v35 = vld [vmem:[%s2797_s7 + $0x240] sm:$0xf]  ;;  %v2555_v37 = vld [vmem:[%s2797_s7 + $0x248] sm:$0xf0]  ;;  %v2364_v42 = vld [vmem:[%s2797_s7 + $0x3a8] sm:$0xf]  ;;  %v2089_v49 = vor.u32 %v2531_v34, %v2088_v33 }
  0x48   : > { %1407 = vmatpush.bf16.msra.mxu3 %v2221_v8  ;;  %v2479_v39 = vld [vmem:[%s2799_s8 + $0x14] sm:$0xf0]  ;;  %v2476_v40 = vld [vmem:[%s2799_s8 + $0x4] sm:$0xf]  ;;  %v1874_v41 = vld [vmem:[%s2799_s8 + $0x18] sm:$0xf0]  ;;  %v2185_v53 = vor.u32 %v2555_v37, %v2184_v35 }
  0x49   : > { %1354 = vmatpush.bf16.msra.mxu0 %v1921_v14  ;;  %v2600_v43 = vld [vmem:[%s2797_s7 + $0x3b0] sm:$0xf0]  ;;  %v1880_v45 = vld [vmem:[%s2799_s8 + $0x8] sm:$0xf]  ;;  %v2460_v46 = vld [vmem:[%s2797_s7 + $0x468] sm:$0xf]  ;;  %v2881_v58 = vor.u32 %v2479_v39, %v1872_v38  ;;  %v2886_v63 = vor.u32 %v2476_v40, %v1874_v41 }
  0x4a   : > { %1372 = vmatpush.bf16.msra.mxu1 %v2017_v15  ;;  %v2624_v47 = vld [vmem:[%s2797_s7 + $0x470] sm:$0xf0]  ;;  %v2480_v50 = vld [vmem:[%s2799_s8 + $0x1c] sm:$0xf0]  ;;  %v2365_v54 = vor.u32 %v2600_v43, %v2364_v42  ;;  %v2503_v55 = vld [vmem:[%s2797_s7 + $0xac] sm:$0xf] }
  0x4b   : > { %1390 = vmatpush.bf16.msra.mxu2 %v2113_v16  ;;  %v2477_v51 = vld [vmem:[%s2799_s8 + $0xc] sm:$0xf]  ;;  %v1882_v52 = vld [vmem:[%s2799_s8 + $0x20] sm:$0xf0]  ;;  %v1982_v56 = vld [vmem:[%s2797_s7 + $0xb4] sm:$0xf0]  ;;  %v2461_v59 = vor.u32 %v2624_v47, %v2460_v46  ;;  %v2888_v0 = vor.u32 %v2480_v50, %v1880_v45 }
  0x4c   : > { %1408 = vmatpush.bf16.msra.mxu3 %v2209_v20  ;;  %v2527_v57 = vld [vmem:[%s2797_s7 + $0x16c] sm:$0xf]  ;;  %v2078_v60 = vld [vmem:[%s2797_s7 + $0x174] sm:$0xf0]  ;;  %v2352_v61 = vld [vmem:[%s2797_s7 + $0x390] sm:$0xf]  ;;  %v2892_v3 = vor.u32 %v2477_v51, %v1882_v52  ;;  %v1985_v4 = vor.u32 %v2503_v55, %v1982_v56 }
  0x4d   : > { %1355 = vmatpush.bf16.msra.mxu0 %v1909_v27  ;;  %v2597_v62 = vld [vmem:[%s2797_s7 + $0x398] sm:$0xf0]  ;;  %v2448_v1 = vld [vmem:[%s2797_s7 + $0x450] sm:$0xf]  ;;  %v2081_v5 = vor.u32 %v2527_v57, %v2078_v60  ;;  %v2500_v7 = vld [vmem:[%s2797_s7 + $0x94] sm:$0xf] }
  0x4e   : > { %1373 = vmatpush.bf16.msra.mxu1 %v2005_v31  ;;  %v2621_v2 = vld [vmem:[%s2797_s7 + $0x458] sm:$0xf0]  ;;  %v2353_v6 = vor.u32 %v2597_v62, %v2352_v61  ;;  %v1970_v8 = vld [vmem:[%s2797_s7 + $0x9c] sm:$0xf0]  ;;  %v2524_v9 = vld [vmem:[%s2797_s7 + $0x154] sm:$0xf] }
  0x4f   : > { %1391 = vmatpush.bf16.msra.mxu2 %v2101_v32  ;;  %v2449_v10 = vor.u32 %v2621_v2, %v2448_v1  ;;  %v2066_v11 = vld [vmem:[%s2797_s7 + $0x15c] sm:$0xf0]  ;;  %v2340_v12 = vld [vmem:[%s2797_s7 + $0x378] sm:$0xf]  ;;  %v2594_v13 = vld [vmem:[%s2797_s7 + $0x380] sm:$0xf0]  ;;  %v1973_v16 = vor.u32 %v2500_v7, %v1970_v8 }
  0x50   : > { %1409 = vmatpush.bf16.msra.mxu3 %v2197_v36  ;;  %v2436_v14 = vld [vmem:[%s2797_s7 + $0x438] sm:$0xf]  ;;  %v2618_v15 = vld [vmem:[%s2797_s7 + $0x440] sm:$0xf0]  ;;  %v2069_v17 = vor.u32 %v2524_v9, %v2066_v11  ;;  %v2341_v18 = vor.u32 %v2594_v13, %v2340_v12  ;;  %v2497_v19 = vld [vmem:[%s2797_s7 + $0x7c] sm:$0xf] }
  0x51   : > { %1356 = vmatpush.bf16.msra.mxu0 %v1897_v44  ;;  %v1958_v20 = vld [vmem:[%s2797_s7 + $0x84] sm:$0xf0]  ;;  %v2521_v21 = vld [vmem:[%s2797_s7 + $0x13c] sm:$0xf]  ;;  %v2437_v22 = vor.u32 %v2618_v15, %v2436_v14  ;;  %v2328_v24 = vld [vmem:[%s2797_s7 + $0x360] sm:$0xf] }
  0x52   : > { %1374 = vmatpush.bf16.msra.mxu1 %v1993_v48  ;;  %v2054_v23 = vld [vmem:[%s2797_s7 + $0x144] sm:$0xf0]  ;;  %v2591_v25 = vld [vmem:[%s2797_s7 + $0x368] sm:$0xf0]  ;;  %v2424_v26 = vld [vmem:[%s2797_s7 + $0x420] sm:$0xf]  ;;  %v1961_v29 = vor.u32 %v2497_v19, %v1958_v20 }
  0x53   : > { %1392 = vmatpush.bf16.msra.mxu2 %v2089_v49  ;;  %v2615_v27 = vld [vmem:[%s2797_s7 + $0x428] sm:$0xf0]  ;;  %v335_v28 = vld [vmem:[%s2799_s8 + $0x30] sm:$0xff]  ;;  %v2057_v31 = vor.u32 %v2521_v21, %v2054_v23  ;;  %v2329_v32 = vor.u32 %v2591_v25, %v2328_v24  ;;  %v1946_v34 = vld [vmem:[%s2797_s7 + $0x6c] sm:$0xf0]  ;;  %p2470_p11 = scmp.ne.s32.totalorder %s2716_s14, 2 }
  0x54   : > { %1410 = vmatpush.bf16.msra.mxu3 %v2185_v53  ;;  %1357 = vmatmul.bf16.vlgmr.msra.gmra.mxu0 %v2881_v58  ;;  %v336_v30 = vld [vmem:[%s2799_s8 + $0x38] sm:$0xff]  ;;  %v2425_v36 = vor.u32 %v2615_v27, %v2424_v26  ;;  %v2042_v37 = vld [vmem:[%s2797_s7 + $0x12c] sm:$0xf0]  ;;  %v551_v38 = vunpack.c.l.b16 %v335_v28  ;;  %v2588_v40 = vld [vmem:[%s2797_s7 + $0x350] sm:$0xf0]  ;;  %v552_v41 = vunpack.c.h.b16 %v335_v28 }
  0x55   : > { %1421 = vmatpush.bf16.msrb.mxu0 %v2365_v54  ;;  %1375 = vmatmul.bf16.vlgmr.msra.gmra.mxu1 %v2886_v63  ;;  %v2494_v33 = vld [vmem:[%s2797_s7 + $0x64] sm:$0xf]  ;;  %v2316_v39 = vld [vmem:[%s2797_s7 + $0x348] sm:$0xf]  ;;  %v553_v42 = vunpack.c.l.b16 %v336_v30  ;;  %v2612_v44 = vld [vmem:[%s2797_s7 + $0x410] sm:$0xf0]  ;;  %v554_v46 = vunpack.c.h.b16 %v336_v30 }
  0x56   : > { %1439 = vmatpush.bf16.msrb.mxu1 %v2461_v59  ;;  %1393 = vmatmul.bf16.vlgmr.msra.gmra.mxu2 %v2888_v0  ;;  %v2518_v35 = vld [vmem:[%s2797_s7 + $0x124] sm:$0xf]  ;;  %v2412_v43 = vld [vmem:[%s2797_s7 + $0x408] sm:$0xf]  ;;  %v1949_v45 = vor.u32 %v2494_v33, %v1946_v34  ;;  %v2317_v48 = vor.u32 %v2588_v40, %v2316_v39  ;;  %v2491_v49 = vld [vmem:[%s2797_s7 + $0x4c] sm:$0xf]  ;;  %v2927_v52 = vpack.c.b16 %v551_v38, %v551_v38 }
  0x57   : > { %1411 = vmatmul.bf16.vlgmr.msra.gmra.mxu3 %v2892_v3  ;;  %1457 = vmatpush.bf16.msrb.mxu2 %v1985_v4  ;;  %v2045_v47 = vor.u32 %v2518_v35, %v2042_v37  ;;  %v1934_v50 = vld [vmem:[%s2797_s7 + $0x54] sm:$0xf0]  ;;  %v2515_v51 = vld [vmem:[%s2797_s7 + $0x10c] sm:$0xf]  ;;  %v2413_v53 = vor.u32 %v2612_v44, %v2412_v43  ;;  %v2304_v55 = vld [vmem:[%s2797_s7 + $0x330] sm:$0xf]  ;;  %v2932_v57 = vpack.c.b16 %v552_v41, %v552_v41 }
  0x58   : > { %1475 = vmatpush.bf16.msrb.mxu3 %v2081_v5  ;;  %v2030_v54 = vld [vmem:[%s2797_s7 + $0x114] sm:$0xf0]  ;;  %v2585_v56 = vld [vmem:[%s2797_s7 + $0x338] sm:$0xf0]  ;;  %v2934_v59 = vpack.c.b16 %v553_v42, %v553_v42  ;;  %v2400_v60 = vld [vmem:[%s2797_s7 + $0x3f0] sm:$0xf]  ;;  %v2938_v62 = vpack.c.b16 %v554_v46, %v554_v46  ;;  %v1937_v1 = vor.u32 %v2491_v49, %v1934_v50 }
  0x59   : > { %1422 = vmatpush.bf16.msrb.mxu0 %v2353_v6  ;;  %v2609_v61 = vld [vmem:[%s2797_s7 + $0x3f8] sm:$0xf0]  ;;  %v2033_v2 = vor.u32 %v2515_v51, %v2030_v54  ;;  %v2305_v4 = vor.u32 %v2585_v56, %v2304_v55  ;;  %v2488_v5 = vld [vmem:[%s2797_s7 + $0x34] sm:$0xf]  ;;  %v1922_v6 = vld [vmem:[%s2797_s7 + $0x3c] sm:$0xf0] }
  0x5a   : > { %1440 = vmatpush.bf16.msrb.mxu1 %v2449_v10  ;;  %v2512_v7 = vld [vmem:[%s2797_s7 + $0xf4] sm:$0xf]  ;;  %v2401_v8 = vor.u32 %v2609_v61, %v2400_v60  ;;  %v2018_v9 = vld [vmem:[%s2797_s7 + $0xfc] sm:$0xf0]  ;;  %v2292_v10 = vld [vmem:[%s2797_s7 + $0x318] sm:$0xf]  ;;  %v1925_v14 = vor.u32 %v2488_v5, %v1922_v6 }
  0x5b   : > { %1458 = vmatpush.bf16.msrb.mxu2 %v1973_v16  ;;  %v2582_v11 = vld [vmem:[%s2797_s7 + $0x320] sm:$0xf0]  ;;  %v2388_v12 = vld [vmem:[%s2797_s7 + $0x3d8] sm:$0xf]  ;;  %v2485_v15 = vld [vmem:[%s2797_s7 + $0x1c] sm:$0xf]  ;;  %v2021_v16 = vor.u32 %v2512_v7, %v2018_v9 }
  0x5c   : > { %1476 = vmatpush.bf16.msrb.mxu3 %v2069_v17  ;;  %v2606_v13 = vld [vmem:[%s2797_s7 + $0x3e0] sm:$0xf0]  ;;  %v2293_v17 = vor.u32 %v2582_v11, %v2292_v10  ;;  %v2509_v19 = vld [vmem:[%s2797_s7 + $0xdc] sm:$0xf]  ;;  %v2006_v20 = vld [vmem:[%s2797_s7 + $0xe4] sm:$0xf0] }
  0x5d   : > { %1423 = vmatpush.bf16.msrb.mxu0 %v2341_v18  ;;  %v1910_v18 = vld [vmem:[%s2797_s7 + $0x24] sm:$0xf0]  ;;  %v2389_v21 = vor.u32 %v2606_v13, %v2388_v12  ;;  %v2579_v23 = vld [vmem:[%s2797_s7 + $0x308] sm:$0xf0]  ;;  %v2376_v24 = vld [vmem:[%s2797_s7 + $0x3c0] sm:$0xf] }
  0x5e   : > { %1441 = vmatpush.bf16.msrb.mxu1 %v2437_v22  ;;  %v2280_v22 = vld [vmem:[%s2797_s7 + $0x300] sm:$0xf]  ;;  %v2603_v25 = vld [vmem:[%s2797_s7 + $0x3c8] sm:$0xf0]  ;;  %v2174_v27 = vld [vmem:[%s2797_s7 + $0x234] sm:$0xf0]  ;;  %v1913_v28 = vor.u32 %v2485_v15, %v1910_v18 }
  0x5f   : > { %1459 = vmatpush.bf16.msrb.mxu2 %v1961_v29  ;;  %v2551_v26 = vld [vmem:[%s2797_s7 + $0x22c] sm:$0xf]  ;;  %v2482_v29 = vld [vmem:[%s2797_s7 + $0x4] sm:$0xf]  ;;  %v2281_v33 = vor.u32 %v2579_v23, %v2280_v22  ;;  %v1898_v34 = vld [vmem:[%s2797_s7 + $0xc] sm:$0xf0]  ;;  %v2377_v37 = vor.u32 %v2603_v25, %v2376_v24 }
  0x60   : > { %1477 = vmatpush.bf16.msrb.mxu3 %v2057_v31  ;;  %v2575_v30 = vld [vmem:[%s2797_s7 + $0x2ec] sm:$0xf]  ;;  %v2270_v31 = vld [vmem:[%s2797_s7 + $0x2f4] sm:$0xf0]  ;;  %v2506_v35 = vld [vmem:[%s2797_s7 + $0xc4] sm:$0xf]  ;;  %v2177_v39 = vor.u32 %v2551_v26, %v2174_v27  ;;  %v1901_v46 = vor.u32 %v2482_v29, %v1898_v34 }
  0x61   : > { %1424 = vmatpush.bf16.msrb.mxu0 %v2329_v32  ;;  %v2009_v32 = vor.u32 %v2509_v19, %v2006_v20  ;;  %v1888_v38 = vld [vmem:[%s2799_s8 + $0x10] sm:$0xf]  ;;  %v2599_v40 = vld [vmem:[%s2797_s7 + $0x3ac] sm:$0xf]  ;;  %v2481_v42 = vld [vmem:[%s2799_s8 + $0x24] sm:$0xf0]  ;;  %v2273_v43 = vor.u32 %v2575_v30, %v2270_v31 }
  0x62   : > { %1442 = vmatpush.bf16.msrb.mxu1 %v2425_v36  ;;  %v1994_v36 = vld [vmem:[%s2797_s7 + $0xcc] sm:$0xf0]  ;;  %v2366_v41 = vld [vmem:[%s2797_s7 + $0x3b4] sm:$0xf0]  ;;  %v2623_v44 = vld [vmem:[%s2797_s7 + $0x46c] sm:$0xf]  ;;  %v2979_v55 = vor.u32 %v2481_v42, %v1888_v38 }
  0x63   : > { %1460 = vmatpush.bf16.msrb.mxu2 %v1949_v45  ;;  %v2462_v45 = vld [vmem:[%s2797_s7 + $0x474] sm:$0xf0]  ;;  %v1997_v49 = vor.u32 %v2506_v35, %v1994_v36  ;;  %v2369_v50 = vor.u32 %v2599_v40, %v2366_v41  ;;  %v2548_v51 = vld [vmem:[%s2797_s7 + $0x214] sm:$0xf]  ;;  %v2258_v60 = vld [vmem:[%s2797_s7 + $0x2dc] sm:$0xf0] }
  0x64   : > { %1478 = vmatpush.bf16.msrb.mxu3 %v2045_v47  ;;  %1362 = vmatmul.bf16.gmra.mxu0 %v2927_v52  ;;  %v2478_v47 = vld [vmem:[%s2799_s8 + $0x14] sm:$0xf]  ;;  %v2572_v54 = vld [vmem:[%s2797_s7 + $0x2d4] sm:$0xf]  ;;  %v2465_v56 = vor.u32 %v2623_v44, %v2462_v45  ;;  %v2450_v5 = vld [vmem:[%s2797_s7 + $0x45c] sm:$0xf0] }
  0x65   : > { %1425 = vmatpush.bf16.msrb.mxu0 %v2317_v48  ;;  %1380 = vmatmul.bf16.gmra.mxu1 %v2932_v57  ;;  %v1890_v48 = vld [vmem:[%s2799_s8 + $0x28] sm:$0xf0]  ;;  %v2261_v7 = vor.u32 %v2572_v54, %v2258_v60  ;;  %v2150_v10 = vld [vmem:[%s2797_s7 + $0x204] sm:$0xf0]  ;;  %v2138_v22 = vld [vmem:[%s2797_s7 + $0x1ec] sm:$0xf0] }
  0x66   : > { %1443 = vmatpush.bf16.msrb.mxu1 %v2413_v53  ;;  %1398 = vmatmul.bf16.gmra.mxu2 %v2934_v59  ;;  %v2162_v53 = vld [vmem:[%s2797_s7 + $0x21c] sm:$0xf0]  ;;  %v2596_v61 = vld [vmem:[%s2797_s7 + $0x394] sm:$0xf]  ;;  %v2545_v9 = vld [vmem:[%s2797_s7 + $0x1fc] sm:$0xf] }
  0x67   : > { %1416 = vmatmul.bf16.gmra.mxu3 %v2938_v62  ;;  %1461 = vmatpush.bf16.msrb.mxu2 %v1937_v1  ;;  %v2354_v1 = vld [vmem:[%s2797_s7 + $0x39c] sm:$0xf0]  ;;  %v2165_v6 = vor.u32 %v2548_v51, %v2162_v53  ;;  %v2569_v11 = vld [vmem:[%s2797_s7 + $0x2bc] sm:$0xf]  ;;  %v2246_v13 = vld [vmem:[%s2797_s7 + $0x2c4] sm:$0xf0]  ;;  %v2153_v18 = vor.u32 %v2545_v9, %v2150_v10 }
  0x68   : > { %1479 = vmatpush.bf16.msrb.mxu3 %v2033_v2  ;;  %v2984_v2 = vor.u32 %v2478_v47, %v1890_v48  ;;  %v2342_v15 = vld [vmem:[%s2797_s7 + $0x384] sm:$0xf0]  ;;  %v2249_v19 = vor.u32 %v2569_v11, %v2246_v13  ;;  %v2566_v23 = vld [vmem:[%s2797_s7 + $0x2a4] sm:$0xf]  ;;  %v2234_v25 = vld [vmem:[%s2797_s7 + $0x2ac] sm:$0xf0] }
  0x69   : > { %1426 = vmatpush.bf16.msrb.mxu0 %v2305_v4  ;;  %v2620_v4 = vld [vmem:[%s2797_s7 + $0x454] sm:$0xf]  ;;  %v2590_v26 = vld [vmem:[%s2797_s7 + $0x364] sm:$0xf]  ;;  %v2330_v27 = vld [vmem:[%s2797_s7 + $0x36c] sm:$0xf0] }
  0x6a   : > { %1444 = vmatpush.bf16.msrb.mxu1 %v2401_v8  ;;  %v2357_v8 = vor.u32 %v2596_v61, %v2354_v1  ;;  %v2453_v12 = vor.u32 %v2620_v4, %v2450_v5  ;;  %v2426_v29 = vld [vmem:[%s2797_s7 + $0x42c] sm:$0xf0]  ;;  %v2539_v34 = vld [vmem:[%s2797_s7 + $0x1cc] sm:$0xf]  ;;  %v2126_v35 = vld [vmem:[%s2797_s7 + $0x1d4] sm:$0xf0] }
  0x6b   : > { %1462 = vmatpush.bf16.msrb.mxu2 %v1925_v14  ;;  %v2593_v14 = vld [vmem:[%s2797_s7 + $0x37c] sm:$0xf]  ;;  %v337_v30 = vld [vmem:[%s2799_s8 + $0x40] sm:$0xff]  ;;  %v2318_v41 = vld [vmem:[%s2797_s7 + $0x354] sm:$0xf0]  ;;  %v2129_v45 = vor.u32 %v2539_v34, %v2126_v35 }
  0x6c   : > { %1480 = vmatpush.bf16.msrb.mxu3 %v2021_v16  ;;  %v2617_v16 = vld [vmem:[%s2797_s7 + $0x43c] sm:$0xf]  ;;  %v2345_v20 = vor.u32 %v2593_v14, %v2342_v15  ;;  %v2563_v36 = vld [vmem:[%s2797_s7 + $0x28c] sm:$0xf]  ;;  %v555_v38 = vunpack.c.l.b16 %v337_v30  ;;  %v556_v42 = vunpack.c.h.b16 %v337_v30  ;;  %v2414_v44 = vld [vmem:[%s2797_s7 + $0x414] sm:$0xf0] }
  0x6d   : > { %1427 = vmatpush.bf16.msrb.mxu0 %v2293_v17  ;;  %v2438_v17 = vld [vmem:[%s2797_s7 + $0x444] sm:$0xf0]  ;;  %v2587_v40 = vld [vmem:[%s2797_s7 + $0x34c] sm:$0xf]  ;;  %v2536_v48 = vld [vmem:[%s2797_s7 + $0x1b4] sm:$0xf] }
  0x6e   : > { %1445 = vmatpush.bf16.msrb.mxu1 %v2389_v21  ;;  %v2542_v21 = vld [vmem:[%s2797_s7 + $0x1e4] sm:$0xf]  ;;  %v2441_v24 = vor.u32 %v2617_v16, %v2438_v17  ;;  %v2321_v47 = vor.u32 %v2587_v40, %v2318_v41  ;;  %v3020_v51 = vpack.c.b16 %v555_v38, %v555_v38  ;;  %v2210_v54 = vld [vmem:[%s2797_s7 + $0x27c] sm:$0xf0]  ;;  %v3025_v61 = vpack.c.b16 %v556_v42, %v556_v42  ;;  %v2608_v1 = vld [vmem:[%s2797_s7 + $0x3f4] sm:$0xf] }
  0x6f   : > { %1463 = vmatpush.bf16.msrb.mxu2 %v1913_v28  ;;  %v2614_v28 = vld [vmem:[%s2797_s7 + $0x424] sm:$0xf]  ;;  %v2141_v31 = vor.u32 %v2542_v21, %v2138_v22  ;;  %v2306_v60 = vld [vmem:[%s2797_s7 + $0x33c] sm:$0xf0]  ;;  %v2102_v9 = vld [vmem:[%s2797_s7 + $0x1a4] sm:$0xf0] }
  0x70   : > { %1481 = vmatpush.bf16.msrb.mxu3 %v2009_v32  ;;  %v2237_v32 = vor.u32 %v2566_v23, %v2234_v25  ;;  %v2402_v4 = vld [vmem:[%s2797_s7 + $0x3fc] sm:$0xf0]  ;;  %v2557_v10 = vld [vmem:[%s2797_s7 + $0x25c] sm:$0xf]  ;;  %v2294_v14 = vld [vmem:[%s2797_s7 + $0x324] sm:$0xf0] }
  0x71   : > { %1428 = vmatpush.bf16.msrb.mxu0 %v2281_v33  ;;  %v2333_v33 = vor.u32 %v2590_v26, %v2330_v27  ;;  %v2405_v11 = vor.u32 %v2608_v1, %v2402_v4  ;;  %v2581_v13 = vld [vmem:[%s2797_s7 + $0x31c] sm:$0xf]  ;;  %v2390_v16 = vld [vmem:[%s2797_s7 + $0x3e4] sm:$0xf0]  ;;  %v2554_v22 = vld [vmem:[%s2797_s7 + $0x244] sm:$0xf] }
  0x72   : > { %1446 = vmatpush.bf16.msrb.mxu1 %v2377_v37  ;;  %v2429_v37 = vor.u32 %v2614_v28, %v2426_v29  ;;  %v2605_v15 = vld [vmem:[%s2797_s7 + $0x3dc] sm:$0xf]  ;;  %v2297_v21 = vor.u32 %v2581_v13, %v2294_v14  ;;  %v2186_v23 = vld [vmem:[%s2797_s7 + $0x24c] sm:$0xf0]  ;;  %v2602_v27 = vld [vmem:[%s2797_s7 + $0x3c4] sm:$0xf] }
  0x73   : > { %1464 = vmatpush.bf16.msrb.mxu2 %v1901_v46  ;;  %v2393_v25 = vor.u32 %v2605_v15, %v2390_v16  ;;  %v2282_v26 = vld [vmem:[%s2797_s7 + $0x30c] sm:$0xf0]  ;;  %v2505_v30 = vld [vmem:[%s2797_s7 + $0xb8] sm:$0xf0]  ;;  %v1964_v4 = vld [vmem:[%s2797_s7 + $0x80] sm:$0xf] }
  0x74   : > { %1482 = vmatpush.bf16.msrb.mxu3 %v1997_v49  ;;  %1429 = vmatmul.bf16.vlgmr.msrb.gmra.mxu0 %v2979_v55  ;;  %v2114_v49 = vld [vmem:[%s2797_s7 + $0x1bc] sm:$0xf0]  ;;  %v2378_v28 = vld [vmem:[%s2797_s7 + $0x3cc] sm:$0xf0]  ;;  %v2553_v35 = vld [vmem:[%s2797_s7 + $0x238] sm:$0xf0] }
  0x75   : > { %1493 = vmatpush.bf16.msra.mxu0 %v2177_v39  ;;  %1447 = vmatmul.bf16.vlgmr.msrb.gmra.mxu1 %v2984_v2  ;;  %v2222_v39 = vld [vmem:[%s2797_s7 + $0x294] sm:$0xf0]  ;;  %v2117_v5 = vor.u32 %v2536_v48, %v2114_v49  ;;  %v1988_v29 = vld [vmem:[%s2797_s7 + $0xb0] sm:$0xf]  ;;  %v2381_v40 = vor.u32 %v2602_v27, %v2378_v28  ;;  %v2526_v48 = vld [vmem:[%s2797_s7 + $0x160] sm:$0xf0] }
  0x76   : > { %1511 = vmatpush.bf16.msra.mxu1 %v2273_v43  ;;  %1465 = vmatmul.bf16.vlgmr.msrb.gmra.mxu2 %v2881_v58  ;;  %v2611_v43 = vld [vmem:[%s2797_s7 + $0x40c] sm:$0xf]  ;;  %v2225_v46 = vor.u32 %v2563_v36, %v2222_v39  ;;  %v2180_v34 = vld [vmem:[%s2797_s7 + $0x230] sm:$0xf]  ;;  %v2189_v36 = vor.u32 %v2554_v22, %v2186_v23  ;;  %v2577_v39 = vld [vmem:[%s2797_s7 + $0x2f8] sm:$0xf0]  ;;  %v1989_v41 = vor.u32 %v2505_v30, %v1988_v29 }
  0x77   : > { %1529 = vmatpush.bf16.msra.mxu2 %v2369_v50  ;;  %1483 = vmatmul.bf16.vlgmr.msrb.gmra.mxu3 %v2886_v63  ;;  %v2560_v50 = vld [vmem:[%s2797_s7 + $0x274] sm:$0xf]  ;;  %v2417_v53 = vor.u32 %v2611_v43, %v2414_v44  ;;  %v2276_v38 = vld [vmem:[%s2797_s7 + $0x2f0] sm:$0xf]  ;;  %v2181_v43 = vor.u32 %v2553_v35, %v2180_v34  ;;  %v2168_v49 = vld [vmem:[%s2797_s7 + $0x218] sm:$0xf] }
  0x78   : > { %1547 = vmatpush.bf16.msra.mxu3 %v2465_v56  ;;  %v2584_v56 = vld [vmem:[%s2797_s7 + $0x334] sm:$0xf]  ;;  %v2277_v44 = vor.u32 %v2577_v39, %v2276_v38  ;;  %v1952_v16 = vld [vmem:[%s2797_s7 + $0x68] sm:$0xf]  ;;  %v1940_v28 = vld [vmem:[%s2797_s7 + $0x50] sm:$0xf] }
  0x79   : > { %1494 = vmatpush.bf16.msra.mxu0 %v2165_v6  ;;  %v2213_v6 = vor.u32 %v2560_v50, %v2210_v54  ;;  %v2550_v50 = vld [vmem:[%s2797_s7 + $0x220] sm:$0xf0]  ;;  %v2544_v22 = vld [vmem:[%s2797_s7 + $0x1f0] sm:$0xf0]  ;;  %v2240_v23 = vld [vmem:[%s2797_s7 + $0x2a8] sm:$0xf] }
  0x7a   : > { %1512 = vmatpush.bf16.msra.mxu1 %v2261_v7  ;;  %v2309_v7 = vor.u32 %v2584_v56, %v2306_v60  ;;  %v2574_v54 = vld [vmem:[%s2797_s7 + $0x2e0] sm:$0xf0]  ;;  %v2169_v1 = vor.u32 %v2550_v50, %v2168_v49  ;;  %v2493_v29 = vld [vmem:[%s2797_s7 + $0x58] sm:$0xf0]  ;;  %v2036_v30 = vld [vmem:[%s2797_s7 + $0x110] sm:$0xf] }
  0x7b   : > { %1530 = vmatpush.bf16.msra.mxu2 %v2357_v8  ;;  %v2533_v8 = vld [vmem:[%s2797_s7 + $0x19c] sm:$0xf]  ;;  %v2228_v35 = vld [vmem:[%s2797_s7 + $0x290] sm:$0xf] }
  0x7c   : > { %1548 = vmatpush.bf16.msra.mxu3 %v2453_v12  ;;  %v2198_v12 = vld [vmem:[%s2797_s7 + $0x264] sm:$0xf0]  ;;  %v2105_v17 = vor.u32 %v2533_v8, %v2102_v9  ;;  %v2523_v8 = vld [vmem:[%s2797_s7 + $0x148] sm:$0xf0]  ;;  %v2156_v9 = vld [vmem:[%s2797_s7 + $0x200] sm:$0xf] }
  0x7d   : > { %1495 = vmatpush.bf16.msra.mxu0 %v2153_v18  ;;  %v2530_v18 = vld [vmem:[%s2797_s7 + $0x184] sm:$0xf]  ;;  %v2541_v34 = vld [vmem:[%s2797_s7 + $0x1d8] sm:$0xf0] }
  0x7e   : > { %1513 = vmatpush.bf16.msra.mxu1 %v2249_v19  ;;  %v2090_v19 = vld [vmem:[%s2797_s7 + $0x18c] sm:$0xf0] }
  0x7f   : > { %1531 = vmatpush.bf16.msra.mxu2 %v2345_v20  ;;  %v2201_v20 = vor.u32 %v2557_v10, %v2198_v12  ;;  %v2547_v10 = vld [vmem:[%s2797_s7 + $0x208] sm:$0xf0] }
  0x80   : > { %1549 = vmatpush.bf16.msra.mxu3 %v2441_v24  ;;  %v2578_v24 = vld [vmem:[%s2797_s7 + $0x304] sm:$0xf]  ;;  %v2571_v12 = vld [vmem:[%s2797_s7 + $0x2c8] sm:$0xf0]  ;;  %v2157_v15 = vor.u32 %v2547_v10, %v2156_v9  ;;  %v1904_v10 = vld [vmem:[%s2797_s7 + $0x8] sm:$0xf] }
  0x81   : > { %1496 = vmatpush.bf16.msra.mxu0 %v2141_v31  ;;  %v2084_v31 = vld [vmem:[%s2797_s7 + $0x170] sm:$0xf] }
  0x82   : > { %1514 = vmatpush.bf16.msra.mxu1 %v2237_v32  ;;  %v2093_v32 = vor.u32 %v2530_v18, %v2090_v19  ;;  %v2048_v18 = vld [vmem:[%s2797_s7 + $0x128] sm:$0xf] }
  0x83   : > { %1532 = vmatpush.bf16.msra.mxu2 %v2333_v33  ;;  %v2529_v33 = vld [vmem:[%s2797_s7 + $0x178] sm:$0xf0] }
  0x84   : > { %1550 = vmatpush.bf16.msra.mxu3 %v2429_v37  ;;  %1434 = vmatmul.bf16.gmra.mxu0 %v3020_v51  ;;  %v2285_v37 = vor.u32 %v2578_v24, %v2282_v26  ;;  %v2085_v42 = vor.u32 %v2529_v33, %v2084_v31  ;;  %v2568_v24 = vld [vmem:[%s2797_s7 + $0x2b0] sm:$0xf0]  ;;  %v2132_v33 = vld [vmem:[%s2797_s7 + $0x1d0] sm:$0xf] }
  0x85   : > { %1497 = vmatpush.bf16.msra.mxu0 %v2129_v45  ;;  %1452 = vmatmul.bf16.gmra.mxu1 %v3025_v61  ;;  %v1976_v45 = vld [vmem:[%s2797_s7 + $0x98] sm:$0xf]  ;;  %v2241_v31 = vor.u32 %v2568_v24, %v2240_v23  ;;  %v2133_v39 = vor.u32 %v2541_v34, %v2132_v33  ;;  %v2468_v24 = vld [vmem:[%s2797_s7 + $0x470] sm:$0xf]  ;;  %v2622_v34 = vld [vmem:[%s2797_s7 + $0x460] sm:$0xf0] }
  0x86   : > { %1515 = vmatpush.bf16.msra.mxu1 %v2225_v46  ;;  %1470 = vmatmul.bf16.gmra.mxu2 %v2927_v52  ;;  %v2502_v46 = vld [vmem:[%s2797_s7 + $0xa0] sm:$0xf0]  ;;  %v2456_v33 = vld [vmem:[%s2797_s7 + $0x458] sm:$0xf] }
  0x87   : > { %1533 = vmatpush.bf16.msra.mxu2 %v2321_v47  ;;  %1488 = vmatmul.bf16.gmra.mxu3 %v2932_v57  ;;  %v2072_v47 = vld [vmem:[%s2797_s7 + $0x158] sm:$0xf]  ;;  %v1977_v56 = vor.u32 %v2502_v46, %v1976_v45  ;;  %v2538_v46 = vld [vmem:[%s2797_s7 + $0x1c0] sm:$0xf0] }
  0x88   : > { %1551 = vmatpush.bf16.msra.mxu3 %v2417_v53  ;;  %v2264_v53 = vld [vmem:[%s2797_s7 + $0x2d8] sm:$0xf]  ;;  %v2073_v60 = vor.u32 %v2526_v48, %v2072_v47  ;;  %v2562_v48 = vld [vmem:[%s2797_s7 + $0x280] sm:$0xf0] }
  0x89   : > { %1498 = vmatpush.bf16.msra.mxu0 %v2117_v5  ;;  %v2499_v5 = vld [vmem:[%s2797_s7 + $0x88] sm:$0xf0]  ;;  %v2120_v45 = vld [vmem:[%s2797_s7 + $0x1b8] sm:$0xf] }
  0x8a   : > { %1516 = vmatpush.bf16.msra.mxu1 %v2213_v6  ;;  %v2060_v6 = vld [vmem:[%s2797_s7 + $0x140] sm:$0xf]  ;;  %v1965_v13 = vor.u32 %v2499_v5, %v1964_v4  ;;  %v2216_v47 = vld [vmem:[%s2797_s7 + $0x278] sm:$0xf]  ;;  %v2511_v4 = vld [vmem:[%s2797_s7 + $0xe8] sm:$0xf0] }
  0x8b   : > { %1534 = vmatpush.bf16.msra.mxu2 %v2309_v7  ;;  %v2265_v7 = vor.u32 %v2574_v54, %v2264_v53  ;;  %v2061_v14 = vor.u32 %v2523_v8, %v2060_v6  ;;  %v2121_v53 = vor.u32 %v2538_v46, %v2120_v45  ;;  %v1916_v54 = vld [vmem:[%s2797_s7 + $0x20] sm:$0xf]  ;;  %v2535_v6 = vld [vmem:[%s2797_s7 + $0x1a8] sm:$0xf0]  ;;  %v2616_v45 = vld [vmem:[%s2797_s7 + $0x430] sm:$0xf0] }
  0x8c   : > { %1552 = vmatpush.bf16.msra.mxu3 %v2405_v11  ;;  %v2252_v11 = vld [vmem:[%s2797_s7 + $0x2c0] sm:$0xf]  ;;  %v2559_v8 = vld [vmem:[%s2797_s7 + $0x268] sm:$0xf0]  ;;  %v2589_v46 = vld [vmem:[%s2797_s7 + $0x358] sm:$0xf0] }
  0x8d   : > { %1499 = vmatpush.bf16.msra.mxu0 %v2105_v17  ;;  %v2496_v17 = vld [vmem:[%s2797_s7 + $0x70] sm:$0xf0]  ;;  %v2253_v19 = vor.u32 %v2571_v12, %v2252_v11  ;;  %v2108_v5 = vld [vmem:[%s2797_s7 + $0x1a0] sm:$0xf] }
  0x8e   : > { %1517 = vmatpush.bf16.msra.mxu1 %v2201_v20  ;;  %v2520_v20 = vld [vmem:[%s2797_s7 + $0x130] sm:$0xf0]  ;;  %v2109_v12 = vor.u32 %v2535_v6, %v2108_v5  ;;  %v2300_v5 = vld [vmem:[%s2797_s7 + $0x320] sm:$0xf]  ;;  %v2583_v6 = vld [vmem:[%s2797_s7 + $0x328] sm:$0xf0] }
  0x8f   : > { %1535 = vmatpush.bf16.msra.mxu2 %v2297_v21  ;;  %v2144_v21 = vld [vmem:[%s2797_s7 + $0x1e8] sm:$0xf]  ;;  %v2049_v26 = vor.u32 %v2520_v20, %v2048_v18  ;;  %v2532_v18 = vld [vmem:[%s2797_s7 + $0x190] sm:$0xf0] }
  0x90   : > { %1553 = vmatpush.bf16.msra.mxu3 %v2393_v25  ;;  %v1953_v25 = vor.u32 %v2496_v17, %v1952_v16  ;;  %v2145_v27 = vor.u32 %v2544_v22, %v2144_v21  ;;  %v2096_v17 = vld [vmem:[%s2797_s7 + $0x188] sm:$0xf]  ;;  %v2556_v20 = vld [vmem:[%s2797_s7 + $0x250] sm:$0xf0]  ;;  %v2372_v21 = vld [vmem:[%s2797_s7 + $0x3b0] sm:$0xf] }
  0x91   : > { %1500 = vmatpush.bf16.msra.mxu0 %v2093_v32  ;;  %v2517_v32 = vld [vmem:[%s2797_s7 + $0x118] sm:$0xf0] }
  0x92   : > { %1518 = vmatpush.bf16.msra.mxu1 %v2189_v36  ;;  %v2565_v36 = vld [vmem:[%s2797_s7 + $0x298] sm:$0xf0]  ;;  %v2037_v38 = vor.u32 %v2517_v32, %v2036_v30  ;;  %v2598_v32 = vld [vmem:[%s2797_s7 + $0x3a0] sm:$0xf0] }
  0x93   : > { %1536 = vmatpush.bf16.msra.mxu2 %v2285_v37  ;;  %v1941_v37 = vor.u32 %v2493_v29, %v1940_v28  ;;  %v2601_v22 = vld [vmem:[%s2797_s7 + $0x3b8] sm:$0xf0] }
  0x94   : > { %1554 = vmatpush.bf16.msra.mxu3 %v2381_v40  ;;  %1501 = vmatmul.bf16.vlgmr.msra.gmra.mxu0 %v2888_v0  ;;  %v1928_v40 = vld [vmem:[%s2797_s7 + $0x38] sm:$0xf]  ;;  %v2373_v29 = vor.u32 %v2601_v22, %v2372_v21 }
  0x95   : > { %1565 = vmatpush.bf16.msrb.mxu0 %v1989_v41  ;;  %1519 = vmatmul.bf16.vlgmr.msra.gmra.mxu1 %v2892_v3  ;;  %v2490_v41 = vld [vmem:[%s2797_s7 + $0x40] sm:$0xf0] }
  0x96   : > { %1583 = vmatpush.bf16.msrb.mxu1 %v2085_v42  ;;  %1537 = vmatmul.bf16.vlgmr.msra.gmra.mxu2 %v2979_v55  ;;  %v2024_v42 = vld [vmem:[%s2797_s7 + $0xf8] sm:$0xf]  ;;  %v1929_v49 = vor.u32 %v2490_v41, %v1928_v40  ;;  %v2619_v40 = vld [vmem:[%s2797_s7 + $0x448] sm:$0xf0] }
  0x97   : > { %1601 = vmatpush.bf16.msrb.mxu2 %v2181_v43  ;;  %1555 = vmatmul.bf16.vlgmr.msra.gmra.mxu3 %v2984_v2  ;;  %v2229_v43 = vor.u32 %v2565_v36, %v2228_v35  ;;  %v2457_v36 = vor.u32 %v2622_v34, %v2456_v33 }
  0x98   : > { %1619 = vmatpush.bf16.msrb.mxu3 %v2277_v44  ;;  %v2514_v44 = vld [vmem:[%s2797_s7 + $0x100] sm:$0xf0] }
  0x99   : > { %1566 = vmatpush.bf16.msrb.mxu0 %v1977_v56  ;;  %v2025_v50 = vor.u32 %v2514_v44, %v2024_v42  ;;  %v2487_v56 = vld [vmem:[%s2797_s7 + $0x28] sm:$0xf0]  ;;  %v2592_v44 = vld [vmem:[%s2797_s7 + $0x370] sm:$0xf0] }
  0x9a   : > { %1584 = vmatpush.bf16.msrb.mxu1 %v2073_v60  ;;  %v2012_v60 = vld [vmem:[%s2797_s7 + $0xe0] sm:$0xf]  ;;  %v1917_v9 = vor.u32 %v2487_v56, %v1916_v54  ;;  %v2586_v54 = vld [vmem:[%s2797_s7 + $0x340] sm:$0xf0]  ;;  %v2408_v56 = vld [vmem:[%s2797_s7 + $0x3f8] sm:$0xf] }
  0x9b   : > { %1602 = vmatpush.bf16.msrb.mxu2 %v2169_v1  ;;  %v2217_v1 = vor.u32 %v2562_v48, %v2216_v47  ;;  %v2013_v11 = vor.u32 %v2511_v4, %v2012_v60  ;;  %v2420_v47 = vld [vmem:[%s2797_s7 + $0x410] sm:$0xf]  ;;  %v2613_v48 = vld [vmem:[%s2797_s7 + $0x418] sm:$0xf0]  ;;  %v2610_v60 = vld [vmem:[%s2797_s7 + $0x400] sm:$0xf0] }
  0x9c   : > { %1620 = vmatpush.bf16.msrb.mxu3 %v2265_v7  ;;  %v2204_v7 = vld [vmem:[%s2797_s7 + $0x260] sm:$0xf]  ;;  %v2409_v4 = vor.u32 %v2610_v60, %v2408_v56 }
  0x9d   : > { %1567 = vmatpush.bf16.msrb.mxu0 %v1965_v13  ;;  %v2484_v13 = vld [vmem:[%s2797_s7 + $0x10] sm:$0xf0]  ;;  %v2205_v16 = vor.u32 %v2559_v8, %v2204_v7  ;;  %v2396_v7 = vld [vmem:[%s2797_s7 + $0x3e0] sm:$0xf]  ;;  %v2607_v8 = vld [vmem:[%s2797_s7 + $0x3e8] sm:$0xf0] }
  0x9e   : > { %1585 = vmatpush.bf16.msrb.mxu1 %v2061_v14  ;;  %v2000_v14 = vld [vmem:[%s2797_s7 + $0xc8] sm:$0xf]  ;;  %v1905_v23 = vor.u32 %v2484_v13, %v1904_v10  ;;  %v2397_v10 = vor.u32 %v2607_v8, %v2396_v7 }
  0x9f   : > { %1603 = vmatpush.bf16.msrb.mxu2 %v2157_v15  ;;  %v2508_v15 = vld [vmem:[%s2797_s7 + $0xd0] sm:$0xf0]  ;;  %v2384_v13 = vld [vmem:[%s2797_s7 + $0x3c8] sm:$0xf] }
  0xa0   : > { %1621 = vmatpush.bf16.msrb.mxu3 %v2253_v19  ;;  %v2192_v19 = vld [vmem:[%s2797_s7 + $0x248] sm:$0xf] }
  0xa1   : > { %1568 = vmatpush.bf16.msrb.mxu0 %v1953_v25  ;;  %v2625_v25 = vld [vmem:[%s2797_s7 + $0x478] sm:$0xf0]  ;;  %v2193_v28 = vor.u32 %v2556_v20, %v2192_v19 }
  0xa2   : > { %1586 = vmatpush.bf16.msrb.mxu1 %v2049_v26  ;;  %v2001_v26 = vor.u32 %v2508_v15, %v2000_v14  ;;  %v2469_v30 = vor.u32 %v2625_v25, %v2468_v24 }
  0xa3   : > { %1604 = vmatpush.bf16.msrb.mxu2 %v2145_v27  ;;  %v2097_v27 = vor.u32 %v2532_v18, %v2096_v17 }
  0xa4   : > { %1622 = vmatpush.bf16.msrb.mxu3 %v2241_v31  ;;  %1506 = vmatmul.bf16.gmra.mxu0 %v2934_v59  ;;  %v2360_v31 = vld [vmem:[%s2797_s7 + $0x398] sm:$0xf] }
  0xa5   : > { %1569 = vmatpush.bf16.msrb.mxu0 %v1941_v37  ;;  %1524 = vmatmul.bf16.gmra.mxu1 %v2938_v62  ;;  %v2361_v35 = vor.u32 %v2598_v32, %v2360_v31  ;;  %v2348_v37 = vld [vmem:[%s2797_s7 + $0x380] sm:$0xf]  ;;  %v320_v32 = vld [vmem:[#allocation2 + $0x30] sm:$0xff] }
  0xa6   : > { %1587 = vmatpush.bf16.msrb.mxu1 %v2037_v38  ;;  %1542 = vmatmul.bf16.gmra.mxu2 %v3020_v51  ;;  %v2595_v38 = vld [vmem:[%s2797_s7 + $0x388] sm:$0xf0] }
  0xa7   : > { %1605 = vmatpush.bf16.msrb.mxu2 %v2133_v39  ;;  %1560 = vmatmul.bf16.gmra.mxu3 %v3025_v61  ;;  %v2444_v39 = vld [vmem:[%s2797_s7 + $0x440] sm:$0xf]  ;;  %v2349_v41 = vor.u32 %v2595_v38, %v2348_v37 }
  0xa8   : > { %1623 = vmatpush.bf16.msrb.mxu3 %v2229_v43  ;;  %v2445_v42 = vor.u32 %v2619_v40, %v2444_v39  ;;  %v2336_v43 = vld [vmem:[%s2797_s7 + $0x368] sm:$0xf] }
  0xa9   : > { %1570 = vmatpush.bf16.msrb.mxu0 %v1929_v49 }
  0xaa   : > { %1588 = vmatpush.bf16.msrb.mxu1 %v2025_v50  ;;  %v2421_v50 = vor.u32 %v2613_v48, %v2420_v47 }
  0xab   : > { %1606 = vmatpush.bf16.msrb.mxu2 %v2121_v53  ;;  %v2312_v53 = vld [vmem:[%s2797_s7 + $0x338] sm:$0xf] }
  0xac   : > { %1624 = vmatpush.bf16.msrb.mxu3 %v2217_v1  ;;  %v2313_v1 = vor.u32 %v2586_v54, %v2312_v53 }
  0xad   : > { %1571 = vmatpush.bf16.msrb.mxu0 %v1917_v9  ;;  %v2301_v9 = vor.u32 %v2583_v6, %v2300_v5 }
  0xae   : > { %1589 = vmatpush.bf16.msrb.mxu1 %v2013_v11  ;;  %v2288_v11 = vld [vmem:[%s2797_s7 + $0x308] sm:$0xf] }
  0xaf   : > { %1607 = vmatpush.bf16.msrb.mxu2 %v2109_v12  ;;  %v2580_v12 = vld [vmem:[%s2797_s7 + $0x310] sm:$0xf0] }
  0xb0   : > { %1625 = vmatpush.bf16.msrb.mxu3 %v2205_v16  ;;  %v2289_v14 = vor.u32 %v2580_v12, %v2288_v11 }
  0xb1   : > { %1572 = vmatpush.bf16.msrb.mxu0 %v1905_v23 }
  0xb2   : > { %1590 = vmatpush.bf16.msrb.mxu1 %v2001_v26 }
  0xb3   : > { %1608 = vmatpush.bf16.msrb.mxu2 %v2097_v27 }
  0xb4   : > { %1626 = vmatpush.bf16.msrb.mxu3 %v2193_v28  ;;  %1573 = vmatmul.bf16.vlgmr.msrb.gmra.mxu0 %v2881_v58  ;;  %v2432_v58 = vld [vmem:[%s2797_s7 + $0x428] sm:$0xf] }
  0xb5   : > { %1637 = vmatpush.bf16.msra.mxu0 %v2373_v29  ;;  %1591 = vmatmul.bf16.vlgmr.msrb.gmra.mxu1 %v2886_v63  ;;  %v2337_v63 = vor.u32 %v2592_v44, %v2336_v43  ;;  %v323_v43 = vld [vmem:[#allocation2 + $0x10] sm:$0xff] }
  0xb6   : > { %1655 = vmatpush.bf16.msra.mxu1 %v2469_v30  ;;  %1609 = vmatmul.bf16.vlgmr.msrb.gmra.mxu2 %v2888_v0  ;;  %v2433_v0 = vor.u32 %v2616_v45, %v2432_v58 }
  0xb7   : > { %2626 = vmatpush.bf16.msra.mxu2 %v2373_v29  ;;  %1627 = vmatmul.bf16.vlgmr.msrb.gmra.mxu3 %v2892_v3  ;;  %v2324_v3 = vld [vmem:[%s2797_s7 + $0x350] sm:$0xf] }
  0xb8   : > { %2634 = vmatpush.bf16.msra.mxu3 %v2469_v30  ;;  %v2325_v49 = vor.u32 %v2589_v46, %v2324_v3 }
  0xb9   : > { %1638 = vmatpush.bf16.msra.mxu0 %v2361_v35 }
  0xba   : > { %1656 = vmatpush.bf16.msra.mxu1 %v2457_v36 }
  0xbb   : > { %2627 = vmatpush.bf16.msra.mxu2 %v2361_v35 }
  0xbc   : > { %2635 = vmatpush.bf16.msra.mxu3 %v2457_v36 }
  0xbd   : > { %1639 = vmatpush.bf16.msra.mxu0 %v2349_v41 }
  0xbe   : > { %1657 = vmatpush.bf16.msra.mxu1 %v2445_v42 }
  0xbf   : > { %2628 = vmatpush.bf16.msra.mxu2 %v2349_v41 }
  0xc0   : > { %2636 = vmatpush.bf16.msra.mxu3 %v2445_v42 }
  0xc1   : > { %1640 = vmatpush.bf16.msra.mxu0 %v2337_v63 }
  0xc2   : > { %1658 = vmatpush.bf16.msra.mxu1 %v2433_v0 }
  0xc3   : > { %2629 = vmatpush.bf16.msra.mxu2 %v2337_v63 }
  0xc4   : > { %2637 = vmatpush.bf16.msra.mxu3 %v2433_v0  ;;  %1578 = vmatmul.bf16.gmra.mxu0 %v2927_v52  ;;  %v2604_v52 = vld [vmem:[%s2797_s7 + $0x3d0] sm:$0xf0] }
  0xc5   : > { %1641 = vmatpush.bf16.msra.mxu0 %v2325_v49  ;;  %1596 = vmatmul.bf16.gmra.mxu1 %v2932_v57  ;;  %v2385_v15 = vor.u32 %v2604_v52, %v2384_v13 }
  0xc6   : > { %1659 = vmatpush.bf16.msra.mxu1 %v2421_v50  ;;  %1614 = vmatmul.bf16.gmra.mxu2 %v2934_v59 }
  0xc7   : > { %2630 = vmatpush.bf16.msra.mxu2 %v2325_v49  ;;  %1632 = vmatmul.bf16.gmra.mxu3 %v2938_v62  ;;  %v326_v49 = vld [vmem:[#allocation2 + $0x40] sm:$0xff] }
  0xc8   : > { %2638 = vmatpush.bf16.msra.mxu3 %v2421_v50 }
  0xc9   : > { %1642 = vmatpush.bf16.msra.mxu0 %v2313_v1 }
  0xca   : > { %1660 = vmatpush.bf16.msra.mxu1 %v2409_v4 }
  0xcb   : > { %2631 = vmatpush.bf16.msra.mxu2 %v2313_v1 }
  0xcc   : > { %2639 = vmatpush.bf16.msra.mxu3 %v2409_v4 }
  0xcd   : > { %1643 = vmatpush.bf16.msra.mxu0 %v2301_v9 }
  0xce   : > { %1661 = vmatpush.bf16.msra.mxu1 %v2397_v10 }
  0xcf   : > { %2632 = vmatpush.bf16.msra.mxu2 %v2301_v9 }
  0xd0   : > { %2640 = vmatpush.bf16.msra.mxu3 %v2397_v10 }
  0xd1   : > { %1644 = vmatpush.bf16.msra.mxu0 %v2289_v14  ;;  %v1358_v57 = vpop.f32.mrf.mxu0 }
  0xd2   : > { %1662 = vmatpush.bf16.msra.mxu1 %v2385_v15  ;;  %v1376_v59 = vpop.f32.mrf.mxu1 }
  0xd3   : > { %2633 = vmatpush.bf16.msra.mxu2 %v2289_v14  ;;  %v1377_v26 = vadd.f32 %v1376_v59, %v1358_v57 }
  0xd4   : > { %2641 = vmatpush.bf16.msra.mxu3 %v2385_v15  ;;  %1645 = vmatmul.bf16.vlgmr.msra.gmra.mxu0 %v2979_v55  ;;  %v321_v15 = vld [vmem:[#allocation2] sm:$0xff] }
  0xd5   : > { %1663 = vmatmul.bf16.vlgmr.msra.gmra.mxu1 %v2984_v2 }
  0xd6   : > { %1650 = vmatmul.bf16.vlgmr.msra.gmra.mxu2 %v3020_v51 }
  0xd7   : > { %1668 = vmatmul.bf16.vlgmr.msra.gmra.mxu3 %v3025_v61 }
  0xd9   : > { %v1394_v62 = vpop.f32.mrf.mxu2  ;;  %v1360_v17 = vpop.f32.mrf.mxu0 }
  0xda   : > { %v1412_v16 = vpop.f32.mrf.mxu3  ;;  %v1378_v18 = vpop.f32.mrf.mxu1  ;;  %v1395_v55 = vadd.f32 %v1394_v62, %v1377_v26 }
  0xdb   : > { %v1379_v30 = vadd.f32 %v1378_v18, %v1360_v17 }
  0xdc   : > { %v1413_v28 = vadd.f32 %v1412_v16, %v1395_v55 }
  0xe1   : > { %v1396_v19 = vpop.f32.mrf.mxu2  ;;  %v1363_v21 = vpop.f32.mrf.mxu0 }
  0xe2   : > { %v1414_v20 = vpop.f32.mrf.mxu3  ;;  %v1381_v22 = vpop.f32.mrf.mxu1  ;;  %v1397_v33 = vadd.f32 %v1396_v19, %v1379_v30  ;;  %v327_v30 = vld [vmem:[#allocation2 + $0x38] sm:$0xff] }
  0xe3   : > { %v1382_v40 = vadd.f32 %v1381_v22, %v1363_v21 }
  0xe4   : > { %v1415_v36 = vadd.f32 %v1414_v20, %v1397_v33 }
  0xe9   : > { %v1399_v23 = vpop.f32.mrf.mxu2  ;;  %v1365_v25 = vpop.f32.mrf.mxu0 }
  0xea   : > { %v1417_v24 = vpop.f32.mrf.mxu3  ;;  %v1383_v27 = vpop.f32.mrf.mxu1  ;;  %v1400_v44 = vadd.f32 %v1399_v23, %v1382_v40  ;;  %v324_v23 = vld [vmem:[#allocation2 + $0x20] sm:$0xff] }
  0xec   : > { %v1418_v63 = vadd.f32 %v1417_v24, %v1400_v44 }
  0xf1   : > { %v1401_v51 = vpop.f32.mrf.mxu2  ;;  %v1430_v2 = vpop.f32.mrf.mxu0 }
  0xf2   : > { %v1419_v29 = vpop.f32.mrf.mxu3  ;;  %v1431_v61 = vadd.f32 %v1430_v2, %v1413_v28  ;;  %v1448_v31 = vpop.f32.mrf.mxu1 }
  0xf4   : > { %v1449_v34 = vadd.f32 %v1448_v31, %v1431_v61 }
  0xf6   : > { %v1673_v35 = vadd.f32 %v1449_v34, %v320_v32 }
  0xf8   : > { %1682 = vst [vmem:[#allocation2 + $0x30] sm:$0xff] %v1673_v35 }
  0xf9   : > { %v1466_v37 = vpop.f32.mrf.mxu2  ;;  %v1432_v39 = vpop.f32.mrf.mxu0 }
  0xfa   : > { %v1484_v38 = vpop.f32.mrf.mxu3  ;;  %v1433_v41 = vadd.f32 %v1432_v39, %v1415_v36  ;;  %v1450_v42 = vpop.f32.mrf.mxu1 }
  0xfb   : > { %v1485_v5 = vadd.f32 %v1484_v38, %v1466_v37 }
  0xfc   : > { %v1451_v58 = vadd.f32 %v1450_v42, %v1433_v41 }
  0xfe   : > { %v1676_v45 = vadd.f32 %v1451_v58, %v323_v43 }
 0x100   : > { %1685 = vst [vmem:[#allocation2 + $0x10] sm:$0xff] %v1676_v45 }
 0x101   : > { %v1468_v0 = vpop.f32.mrf.mxu2  ;;  %v1435_v46 = vpop.f32.mrf.mxu0 }
 0x102   : > { %v1486_v3 = vpop.f32.mrf.mxu3  ;;  %v1436_v47 = vadd.f32 %v1435_v46, %v1418_v63  ;;  %v1453_v48 = vpop.f32.mrf.mxu1 }
 0x103   : > { %v1487_v12 = vadd.f32 %v1486_v3, %v1468_v0 }
 0x104   : > { %v1454_v50 = vadd.f32 %v1453_v48, %v1436_v47 }
 0x106   : > { %v1679_v53 = vadd.f32 %v1454_v50, %v326_v49 }
 0x108   : > { %1688 = vst [vmem:[#allocation2 + $0x40] sm:$0xff] %v1679_v53 }
 0x109   : > { %v1471_v54 = vpop.f32.mrf.mxu2  ;;  %v1437_v60 = vpop.f32.mrf.mxu0 }
 0x10a   : > { %v1489_v56 = vpop.f32.mrf.mxu3  ;;  %v1455_v1 = vpop.f32.mrf.mxu1 }
 0x10b   : > { %v1490_v19 = vadd.f32 %v1489_v56, %v1471_v54 }
 0x111   : > { %v1473_v4 = vpop.f32.mrf.mxu2  ;;  %v1502_v7 = vpop.f32.mrf.mxu0 }
 0x112   : > { %v1491_v6 = vpop.f32.mrf.mxu3  ;;  %v1520_v8 = vpop.f32.mrf.mxu1  ;;  %v1503_v9 = vadd.f32 %v1502_v7, %v1485_v5  ;;  %v322_v4 = vld [vmem:[#allocation2 + $0x18] sm:$0xff] }
 0x114   : > { %v1521_v10 = vadd.f32 %v1520_v8, %v1503_v9 }
 0x119   : > { %v1538_v11 = vpop.f32.mrf.mxu2  ;;  %v1504_v14 = vpop.f32.mrf.mxu0 }
 0x11a   : > { %v1539_v13 = vadd.f32 %v1538_v11, %v1521_v10  ;;  %v1556_v52 = vpop.f32.mrf.mxu3  ;;  %v1522_v57 = vpop.f32.mrf.mxu1  ;;  %v1505_v62 = vadd.f32 %v1504_v14, %v1487_v12 }
 0x11c   : > { %v1557_v59 = vadd.f32 %v1556_v52, %v1539_v13  ;;  %v1523_v17 = vadd.f32 %v1522_v57, %v1505_v62  ;;  %v328_v52 = vld [vmem:[#allocation2 + $0x8] sm:$0xff] }
 0x11d   : > { %v325_v57 = vld [vmem:[#allocation2 + $0x28] sm:$0xff] }
 0x11e   : > { %v1674_v16 = vadd.f32 %v1557_v59, %v321_v15 }
 0x120   : > { %1683 = vst [vmem:[#allocation2] sm:$0xff] %v1674_v16 }
 0x121   : > { %v1540_v18 = vpop.f32.mrf.mxu2  ;;  %v1507_v22 = vpop.f32.mrf.mxu0 }
 0x122   : > { %v1541_v20 = vadd.f32 %v1540_v18, %v1523_v17  ;;  %v1558_v21 = vpop.f32.mrf.mxu3  ;;  %v1525_v24 = vpop.f32.mrf.mxu1  ;;  %v1508_v26 = vadd.f32 %v1507_v22, %v1490_v19 }
 0x124   : > { %v1559_v25 = vadd.f32 %v1558_v21, %v1541_v20  ;;  %v1526_v55 = vadd.f32 %v1525_v24, %v1508_v26 }
 0x126   : > { %v1677_v27 = vadd.f32 %v1559_v25, %v324_v23 }
 0x128   : > { %1686 = vst [vmem:[#allocation2 + $0x20] sm:$0xff] %v1677_v27 }
 0x129   : > { %v1543_v28 = vpop.f32.mrf.mxu2  ;;  %v1509_v2 = vpop.f32.mrf.mxu0 }
 0x12a   : > { %v1544_v51 = vadd.f32 %v1543_v28, %v1526_v55  ;;  %v1561_v29 = vpop.f32.mrf.mxu3  ;;  %v1527_v61 = vpop.f32.mrf.mxu1 }
 0x12c   : > { %v1562_v31 = vadd.f32 %v1561_v29, %v1544_v51 }
 0x12e   : > { %v1680_v32 = vadd.f32 %v1562_v31, %v327_v30 }
 0x130   : > { %1689 = vst [vmem:[#allocation2 + $0x38] sm:$0xff] %v1680_v32 }
 0x131   : > { %v1545_v33 = vpop.f32.mrf.mxu2  ;;  %v1574_v35 = vpop.f32.mrf.mxu0 }
 0x132   : > { %v1563_v34 = vpop.f32.mrf.mxu3  ;;  %v1592_v36 = vpop.f32.mrf.mxu1 }
 0x133   : > { %v1593_v0 = vadd.f32 %v1592_v36, %v1574_v35 }
 0x139   : > { %v1610_v37 = vpop.f32.mrf.mxu2  ;;  %v1576_v39 = vpop.f32.mrf.mxu0 }
 0x13a   : > { %v1628_v38 = vpop.f32.mrf.mxu3  ;;  %v1594_v40 = vpop.f32.mrf.mxu1  ;;  %v1611_v46 = vadd.f32 %v1610_v37, %v1593_v0 }
 0x13b   : > { %v1595_v54 = vadd.f32 %v1594_v40, %v1576_v39 }
 0x13c   : > { %v1629_v47 = vadd.f32 %v1628_v38, %v1611_v46 }
 0x141   : > { %v1612_v41 = vpop.f32.mrf.mxu2  ;;  %v1579_v43 = vpop.f32.mrf.mxu0 }
 0x142   : > { %v1630_v42 = vpop.f32.mrf.mxu3  ;;  %v1597_v44 = vpop.f32.mrf.mxu1  ;;  %v1613_v5 = vadd.f32 %v1612_v41, %v1595_v54 }
 0x143   : > { %v1598_v49 = vadd.f32 %v1597_v44, %v1579_v43 }
 0x144   : > { %v1631_v9 = vadd.f32 %v1630_v42, %v1613_v5 }
 0x149   : > { %v1615_v58 = vpop.f32.mrf.mxu2  ;;  %v1581_v63 = vpop.f32.mrf.mxu0 }
 0x14a   : > { %v1633_v45 = vpop.f32.mrf.mxu3  ;;  %v1599_v3 = vpop.f32.mrf.mxu1  ;;  %v1616_v1 = vadd.f32 %v1615_v58, %v1598_v49 }
 0x14c   : > { %v1634_v8 = vadd.f32 %v1633_v45, %v1616_v1 }
 0x151   : > { %v1617_v48 = vpop.f32.mrf.mxu2  ;;  %v1646_v53 = vpop.f32.mrf.mxu0 }
 0x152   : > { %v1635_v50 = vpop.f32.mrf.mxu3  ;;  %v1647_v56 = vadd.f32 %v1646_v53, %v1629_v47  ;;  %v1664_v60 = vpop.f32.mrf.mxu1 }
 0x154   : > { %v1665_v6 = vadd.f32 %v1664_v60, %v1647_v56 }
 0x156   : > { %v1675_v7 = vadd.f32 %v1665_v6, %v322_v4 }
 0x158   : > { %1684 = vst [vmem:[#allocation2 + $0x18] sm:$0xff] %v1675_v7 }
 0x159   : > { %v1651_v10 = vpop.f32.mrf.mxu2  ;;  %v1648_v13 = vpop.f32.mrf.mxu0 }
 0x15a   : > { %v1652_v11 = vadd.f32 %v1651_v10, %v1634_v8  ;;  %v1669_v12 = vpop.f32.mrf.mxu3  ;;  %v1649_v14 = vadd.f32 %v1648_v13, %v1631_v9  ;;  %v1666_v59 = vpop.f32.mrf.mxu1 }
 0x15c   : > { %v1670_v15 = vadd.f32 %v1669_v12, %v1652_v11  ;;  %v1667_v62 = vadd.f32 %v1666_v59, %v1649_v14 }
 0x15e   : > { %v1681_v16 = vadd.f32 %v1670_v15, %v328_v52  ;;  %v1678_v17 = vadd.f32 %v1667_v62, %v325_v57  ;;  %1694 = sbr.rel (%p2470_p11) target bundleno = 371 (0x173), region = 63 }
 0x160   : > { %1690 = vst [vmem:[#allocation2 + $0x8] sm:$0xff] %v1681_v16 }
 0x161   : > { %1687 = vst [vmem:[#allocation2 + $0x28] sm:$0xff] %v1678_v17  ;;  %v1653_v18 = vpop.f32.mrf.mxu2 }
 0x162   : > { %v1671_v19 = vpop.f32.mrf.mxu3 }
 0x163   : > { %v1695_v20 = vld [vmem:[#allocation2 + $0x30] sm:$0xff]  ;;  %v1704_v21 = vld [vmem:[%s3213_s2] sm:$0x7]  ;;  %v1697_v25 = vld [vmem:[#allocation2 + $0x18] sm:$0xff] }
 0x164   : > { %v1696_v22 = vld [vmem:[#allocation2] sm:$0xff]  ;;  %v1706_v23 = vperm.slane %v1704_v21, 0  ;;  %v1707_v24 = vperm.slane %v1704_v21, 1  ;;  %v1708_v26 = vperm.slane %v1704_v21, 2  ;;  %v1698_v27 = vld [vmem:[#allocation2 + $0x10] sm:$0xff]  ;;  %v1702_v31 = vld [vmem:[#allocation2 + $0x38] sm:$0xff] }
 0x165   : > { %v1699_v55 = vld [vmem:[#allocation2 + $0x20] sm:$0xff] }
 0x166   : > { %v1701_v51 = vld [vmem:[#allocation2 + $0x40] sm:$0xff]  ;;  %v1712_v29 = vadd.f32 %v1706_v23, %v1695_v20  ;;  %v1713_v2 = vadd.f32 %v1707_v24, %v1696_v22  ;;  %v1714_v30 = vadd.f32 %v1708_v26, %v1697_v25  ;;  %v1715_v61 = vadd.f32 %v1706_v23, %v1698_v27 }
 0x167   : > { %v1716_v32 = vadd.f32 %v1707_v24, %v1699_v55  ;;  %v1703_v34 = vld [vmem:[#allocation2 + $0x8] sm:$0xff]  ;;  %v1718_v38 = vadd.f32 %v1706_v23, %v1701_v51  ;;  %v1719_v40 = vadd.f32 %v1707_v24, %v1702_v31 }
 0x168   : > { %v1700_v28 = vld [vmem:[#allocation2 + $0x28] sm:$0xff]  ;;  %v1721_v35 = vmax.f32 %v1712_v29, 0.0  ;;  %v1722_v36 = vmax.f32 %v1713_v2, 0.0  ;;  %v1723_v37 = vmax.f32 %v1714_v30, 0.0  ;;  %v1724_v39 = vmax.f32 %v1715_v61, 0.0 }
 0x169   : > { %v1717_v33 = vadd.f32 %v1708_v26, %v1700_v28  ;;  %v1725_v41 = vmax.f32 %v1716_v32, 0.0  ;;  %v1720_v42 = vadd.f32 %v1708_v26, %v1703_v34  ;;  %v1727_v44 = vmax.f32 %v1718_v38, 0.0 }
 0x16a   : > { %1730 = vst [vmem:[%s3214_s3] sm:$0xff] %v1721_v35  ;;  %v1728_v58 = vmax.f32 %v1719_v40, 0.0 }
 0x16b   : > { %1731 = vst [vmem:[%s3214_s3 + $0x8] sm:$0xff] %v1722_v36  ;;  %v1726_v43 = vmax.f32 %v1717_v33, 0.0  ;;  %v1729_v45 = vmax.f32 %v1720_v42, 0.0 }
 0x16c   : > { %1732 = vst [vmem:[%s3214_s3 + $0x10] sm:$0xff] %v1723_v37 }
 0x16d   : > { %1733 = vst [vmem:[%s3214_s3 + $0x18] sm:$0xff] %v1724_v39 }
 0x16e   : > { %1734 = vst [vmem:[%s3214_s3 + $0x20] sm:$0xff] %v1725_v41 }
 0x16f   : > { %1735 = vst [vmem:[%s3214_s3 + $0x28] sm:$0xff] %v1726_v43 }
 0x170   : > { %1736 = vst [vmem:[%s3214_s3 + $0x30] sm:$0xff] %v1727_v44 }
 0x171   : > { %1737 = vst [vmem:[%s3214_s3 + $0x38] sm:$0xff] %v1728_v58 }
 0x172   : > { %1738 = vst [vmem:[%s3214_s3 + $0x40] sm:$0xff] %v1729_v45 }
 0x173 PF: > { %s13_s16 = sadd.s32 1, %s2724_s16   ;;  %s3215_s12 = smov %s2712_s13 }
 0x174   : > { %p10_p12 = scmp.ge.s32.totalorder %s13_s16, 5   ;;  %s3216_s13 = smov %s2782_s20 }
 0x175   : > { %s3217_s14 = smov %s2720_s15  ;;  %s3218_s15 = smov %s3220_s17 }
 0x176   :  { %12 = sbr.rel (!%p10_p12) target bundleno = 3 (0x3), region = 104 }

// kernel: forward.11
= control target key start
LH: loop header
LB: loop body
LE: loop exit
PB: predicated region body
PF: predicated region fallthrough
CT: control target
= control target key end

     0   :  { %s1326_s12 = smov 0   ;;  %s1328_s13 = smov 0   ;;  %s1530_s0 = inlined_call_operand.vmem [shape: bf16[24,3456], index: 0, kind: input, shape index: {}]   ;;  %s1531_s1 = inlined_call_operand.vmem [shape: bf16[3456,256], index: 1, kind: input, shape index: {}]   ;;  %s1532_s2 = inlined_call_operand.vmem [shape: f32[1,256], index: 2, kind: input, shape index: {}]   ;;  %s1533_s3 = inlined_call_operand.vmem [shape: f32[24,256], index: 3, kind: output, shape index: {}]  }
   0x1   :  { %s1330_s14 = smov 0   ;;  %s1332_s15 = smov 0  }
   0x2   :  { %s1334_s16 = smov 0  }
   0x3 LB: > { %s25_s17 = sadd.s32 1, %s1299_s15  ;;  %p48_p1 = scmp.ne.s32.totalorder %s1291_s13, %s1287_s12  ;;  %s1303_s16 = sphi %s1334_s16, %s13_s16   ;;  %s1299_s15 = sphi %s1332_s15, %s1537_s15   ;;  %s1295_s14 = sphi %s1330_s14, %s1536_s14   ;;  %s1291_s13 = sphi %s1328_s13, %s1535_s13   ;;  %s1287_s12 = sphi %s1326_s12, %s1534_s12  }
   0x4   : > { %p26_p0 = scmp.ge.s32.totalorder %s25_s17, 9  ;;  %p49_p2 = scmp.eq.s32.totalorder %s1303_s16, 0 }
   0x5   : > { %s41_s19 = sadd.s32 1, %s1291_s13  ;;  %p932_p5 = scmp.ge.s32.totalorder %s1303_s16, 9 }
   0x6   : > { %s1539_s17 = smov (%p26_p0, %s25_s17), 0  ;;  %p50_p3 = por %p49_p2, %p48_p1 }
   0x7   : > { %s37_s18 = ssub.s32 %s1299_s15, %s1539_s17  ;;  %164 = sbr.rel (%p932_p5) target bundleno = 23 (0x17), region = 20 }
   0x8   : > { %p39_p4 = scmp.eq.s32.totalorder %s37_s18, 0 }
   0xa   : > { %s1361_s20 = scalar_select %p39_p4, %s1291_s13, %s41_s19  }
   0xc   : > { %167 = sbr.rel (!%p50_p3) target bundleno = 23 (0x17), region = 24  ;;  %s169_s21 = sand.u32 (%p50_p3), 1, %s1291_s13  }
   0xd   : > { %s1153_s22 = smul.u32 (%p50_p3), 12, %s1299_s15 }
   0xe   : > { %s1222_s23 = smul.u32 (%p50_p3), 36, %s169_s21 }
   0xf   : > { %s177_s26 = scalar_lea.vmem (%p50_p3), %s1530_s0, %s1153_s22 }
  0x10   : > { %v192_v0 = vld [vmem:[%s177_s26] sm:$0xff] (%p50_p3)  ;;  %v194_v1 = vld [vmem:[%s177_s26 + $0x6c] sm:$0xff] (%p50_p3)  ;;  %v196_v2 = vld [vmem:[%s177_s26 + $0xd8] sm:$0xff] (%p50_p3)  ;;  %s171_s27 = scalar_lea.vmem (%p50_p3), [#allocation3], %s1222_s23 }
  0x11   : > { %193 = vst [vmem:[%s171_s27] sm:$0xff] %v192_v0  ;;  %v934_v3 = vld [vmem:[%s177_s26 + $0x8] sm:$0xf]  ;;  %v936_v4 = vld [vmem:[%s177_s26 + $0x74] sm:$0xf]  ;;  %v938_v5 = vld [vmem:[%s177_s26 + $0xe0] sm:$0xf] }
  0x12   : > { %195 = vst [vmem:[%s171_s27 + $0xc] sm:$0xff] %v194_v1 }
  0x13   : > { %197 = vst [vmem:[%s171_s27 + $0x18] sm:$0xff] %v196_v2 }
  0x14   : > { %935 = vst [vmem:[%s171_s27 + $0x8] sm:$0xf] %v934_v3 }
  0x15   : > { %937 = vst [vmem:[%s171_s27 + $0x14] sm:$0xf] %v936_v4 }
  0x16   : > { %939 = vst [vmem:[%s171_s27 + $0x20] sm:$0xf] %v938_v5 }
  0x17 PF: > { %p940_p6 = scmp.ge.s32.totalorder %s1303_s16, 1  ;;  %p231_p7 = scmp.lt.s32.totalorder %s1303_s16, 10 }
  0x19   : > { %p232_p8 = pnand %p940_p6, %p231_p7 }
  0x1a   : > { %s238_s28 = sand.u32 (!%p232_p8), 1, %s1287_s12   ;;  %s282_s29 = smul.u32 (!%p232_p8), 48, %s1295_s14 }
  0x1b   : > { %235 = sbr.rel (%p232_p8) target bundleno = 266 (0x10a), region = 54  ;;  %p943_p10 = scmp.ne.s32.totalorder (!%p232_p8), %s1295_s14, 0 }
  0x1c   : > { %s1223_s30 = smul.u32 (!%p232_p8), 36, %s238_s28  ;;  %p284_p9 = scmp.lt.s32.totalorder (!%p232_p8), %s282_s29, 431 }
  0x1e   : > { %s1378_s8 = scalar_lea.vmem (!%p232_p8), [#allocation3], %s1223_s30 }
  0x20   : > { %s1541_s29 = smov (!%p284_p9, %s282_s29), 431  ;;  %314 = sbr.rel (%p943_p10) target bundleno = 44 (0x2c), region = 62 }
  0x21   : > { %s1154_s4 = sshll.u32 %s1541_s29, 3 }
  0x22   : > { %s1376_s7 = scalar_lea.vmem %s1531_s1, %s1154_s4 }
  0x25   : > { %v1305_v6 = vmov 0.0  }
  0x26   : > { %315 = vst [vmem:[#allocation2 + $0x28] sm:$0xff] %v1305_v6 }
  0x27   : > { %316 = vst [vmem:[#allocation2 + $0x10] sm:$0xff] %v1305_v6 }
  0x28   : > { %317 = vst [vmem:[#allocation2 + $0x8] sm:$0xff] %v1305_v6 }
  0x29   : > { %318 = vst [vmem:[#allocation2] sm:$0xff] %v1305_v6 }
  0x2a   : > { %319 = vst [vmem:[#allocation2 + $0x18] sm:$0xff] %v1305_v6 }
  0x2b   : > { %320 = vst [vmem:[#allocation2 + $0x20] sm:$0xff] %v1305_v6 }
  0x2c PF: > { %v1014_v7 = vld [vmem:[%s1376_s7 + $0x70] sm:$0xf]  ;;  %v1173_v8 = vld [vmem:[%s1376_s7 + $0x74] sm:$0xf0]  ;;  %v1172_v16 = vld [vmem:[%s1376_s7 + $0x74] sm:$0xf] }
  0x2d   : > { %v1078_v9 = vld [vmem:[%s1376_s7 + $0xf0] sm:$0xf]  ;;  %v1015_v10 = vor.u32 %v1173_v8, %v1014_v7  ;;  %v1189_v11 = vld [vmem:[%s1376_s7 + $0xf4] sm:$0xf0]  ;;  %v1016_v17 = vld [vmem:[%s1376_s7 + $0x78] sm:$0xf0] }
  0x2e   : > { %v1142_v12 = vld [vmem:[%s1376_s7 + $0x170] sm:$0xf]  ;;  %v1205_v13 = vld [vmem:[%s1376_s7 + $0x174] sm:$0xf0]  ;;  %v1079_v14 = vor.u32 %v1189_v11, %v1078_v9  ;;  %v1006_v18 = vld [vmem:[%s1376_s7 + $0x60] sm:$0xf]  ;;  %v1019_v19 = vor.u32 %v1172_v16, %v1016_v17 }
  0x2f   : > { %v1143_v15 = vor.u32 %v1205_v13, %v1142_v12  ;;  %648 = vmatpush.bf16.msra.mxu0 %v1015_v10  ;;  %v1171_v20 = vld [vmem:[%s1376_s7 + $0x64] sm:$0xf0]  ;;  %v1070_v21 = vld [vmem:[%s1376_s7 + $0xe0] sm:$0xf]  ;;  %v1170_v27 = vld [vmem:[%s1376_s7 + $0x64] sm:$0xf] }
  0x30   : > { %v1187_v22 = vld [vmem:[%s1376_s7 + $0xe4] sm:$0xf0]  ;;  %666 = vmatpush.bf16.msra.mxu1 %v1079_v14  ;;  %v1007_v23 = vor.u32 %v1171_v20, %v1006_v18  ;;  %v1134_v25 = vld [vmem:[%s1376_s7 + $0x160] sm:$0xf]  ;;  %702 = vmatpush.bf16.msra.mxu3 %v1019_v19  ;;  %v1008_v29 = vld [vmem:[%s1376_s7 + $0x68] sm:$0xf0] }
  0x31   : > { %684 = vmatpush.bf16.msra.mxu2 %v1143_v15  ;;  %v1071_v24 = vor.u32 %v1187_v22, %v1070_v21  ;;  %v1203_v26 = vld [vmem:[%s1376_s7 + $0x164] sm:$0xf0]  ;;  %v998_v30 = vld [vmem:[%s1376_s7 + $0x50] sm:$0xf]  ;;  %v1169_v31 = vld [vmem:[%s1376_s7 + $0x54] sm:$0xf0]  ;;  %v1011_v32 = vor.u32 %v1170_v27, %v1008_v29 }
  0x32   : > { %v1135_v28 = vor.u32 %v1203_v26, %v1134_v25  ;;  %v1062_v33 = vld [vmem:[%s1376_s7 + $0xd0] sm:$0xf]  ;;  %v1185_v34 = vld [vmem:[%s1376_s7 + $0xd4] sm:$0xf0]  ;;  %v999_v36 = vor.u32 %v1169_v31, %v998_v30  ;;  %v1168_v38 = vld [vmem:[%s1376_s7 + $0x54] sm:$0xf] }
  0x33   : > { %v1126_v35 = vld [vmem:[%s1376_s7 + $0x150] sm:$0xf]  ;;  %649 = vmatpush.bf16.msra.mxu0 %v1007_v23  ;;  %v1201_v37 = vld [vmem:[%s1376_s7 + $0x154] sm:$0xf0]  ;;  %v1000_v39 = vld [vmem:[%s1376_s7 + $0x58] sm:$0xf0]  ;;  %v1063_v40 = vor.u32 %v1185_v34, %v1062_v33 }
  0x34   : > { %667 = vmatpush.bf16.msra.mxu1 %v1071_v24  ;;  %v1127_v41 = vor.u32 %v1201_v37, %v1126_v35  ;;  %v990_v42 = vld [vmem:[%s1376_s7 + $0x40] sm:$0xf]  ;;  %v1167_v43 = vld [vmem:[%s1376_s7 + $0x44] sm:$0xf0]  ;;  %703 = vmatpush.bf16.msra.mxu3 %v1011_v32  ;;  %v1003_v45 = vor.u32 %v1168_v38, %v1000_v39  ;;  %v1166_v49 = vld [vmem:[%s1376_s7 + $0x44] sm:$0xf] }
  0x35   : > { %685 = vmatpush.bf16.msra.mxu2 %v1135_v28  ;;  %v1054_v44 = vld [vmem:[%s1376_s7 + $0xc0] sm:$0xf]  ;;  %v1183_v46 = vld [vmem:[%s1376_s7 + $0xc4] sm:$0xf0]  ;;  %v992_v50 = vld [vmem:[%s1376_s7 + $0x48] sm:$0xf0]  ;;  %v991_v51 = vor.u32 %v1167_v43, %v990_v42 }
  0x36   : > { %v1118_v47 = vld [vmem:[%s1376_s7 + $0x140] sm:$0xf]  ;;  %v1199_v48 = vld [vmem:[%s1376_s7 + $0x144] sm:$0xf0]  ;;  %v1055_v52 = vor.u32 %v1183_v46, %v1054_v44  ;;  %v982_v54 = vld [vmem:[%s1376_s7 + $0x30] sm:$0xf]  ;;  %v995_v57 = vor.u32 %v1166_v49, %v992_v50 }
  0x37   : > { %650 = vmatpush.bf16.msra.mxu0 %v999_v36  ;;  %v1119_v53 = vor.u32 %v1199_v48, %v1118_v47  ;;  %v1165_v55 = vld [vmem:[%s1376_s7 + $0x34] sm:$0xf0]  ;;  %v1046_v56 = vld [vmem:[%s1376_s7 + $0xb0] sm:$0xf]  ;;  %v1164_v61 = vld [vmem:[%s1376_s7 + $0x34] sm:$0xf] }
  0x38   : > { %668 = vmatpush.bf16.msra.mxu1 %v1063_v40  ;;  %704 = vmatpush.bf16.msra.mxu3 %v1003_v45  ;;  %v1181_v58 = vld [vmem:[%s1376_s7 + $0xb4] sm:$0xf0]  ;;  %v1110_v59 = vld [vmem:[%s1376_s7 + $0x130] sm:$0xf]  ;;  %v984_v62 = vld [vmem:[%s1376_s7 + $0x38] sm:$0xf0]  ;;  %v983_v63 = vor.u32 %v1165_v55, %v982_v54 }
  0x39   : > { %686 = vmatpush.bf16.msra.mxu2 %v1127_v41  ;;  %v1197_v60 = vld [vmem:[%s1376_s7 + $0x134] sm:$0xf0]  ;;  %v1047_v0 = vor.u32 %v1181_v58, %v1046_v56  ;;  %v974_v2 = vld [vmem:[%s1376_s7 + $0x20] sm:$0xf]  ;;  %v1163_v3 = vld [vmem:[%s1376_s7 + $0x24] sm:$0xf0]  ;;  %v987_v5 = vor.u32 %v1164_v61, %v984_v62 }
  0x3a   : > { %v1111_v1 = vor.u32 %v1197_v60, %v1110_v59  ;;  %v1038_v4 = vld [vmem:[%s1376_s7 + $0xa0] sm:$0xf]  ;;  %v1179_v6 = vld [vmem:[%s1376_s7 + $0xa4] sm:$0xf0]  ;;  %v1162_v9 = vld [vmem:[%s1376_s7 + $0x24] sm:$0xf]  ;;  %v975_v11 = vor.u32 %v1163_v3, %v974_v2 }
  0x3b   : > { %651 = vmatpush.bf16.msra.mxu0 %v991_v51  ;;  %v1102_v7 = vld [vmem:[%s1376_s7 + $0x120] sm:$0xf]  ;;  %v1195_v8 = vld [vmem:[%s1376_s7 + $0x124] sm:$0xf0]  ;;  %v976_v10 = vld [vmem:[%s1376_s7 + $0x28] sm:$0xf0]  ;;  %v1039_v12 = vor.u32 %v1179_v6, %v1038_v4 }
  0x3c   : > { %669 = vmatpush.bf16.msra.mxu1 %v1055_v52  ;;  %705 = vmatpush.bf16.msra.mxu3 %v995_v57  ;;  %v1103_v13 = vor.u32 %v1195_v8, %v1102_v7  ;;  %v966_v14 = vld [vmem:[%s1376_s7 + $0x10] sm:$0xf]  ;;  %v1161_v15 = vld [vmem:[%s1376_s7 + $0x14] sm:$0xf0]  ;;  %v979_v17 = vor.u32 %v1162_v9, %v976_v10  ;;  %v1160_v21 = vld [vmem:[%s1376_s7 + $0x14] sm:$0xf] }
  0x3d   : > { %687 = vmatpush.bf16.msra.mxu2 %v1119_v53  ;;  %v1030_v16 = vld [vmem:[%s1376_s7 + $0x90] sm:$0xf]  ;;  %v1177_v18 = vld [vmem:[%s1376_s7 + $0x94] sm:$0xf0]  ;;  %v968_v22 = vld [vmem:[%s1376_s7 + $0x18] sm:$0xf0]  ;;  %v967_v23 = vor.u32 %v1161_v15, %v966_v14 }
  0x3e   : > { %v1094_v19 = vld [vmem:[%s1376_s7 + $0x110] sm:$0xf]  ;;  %v1193_v20 = vld [vmem:[%s1376_s7 + $0x114] sm:$0xf0]  ;;  %v958_v24 = vld [vmem:[%s1376_s7] sm:$0xf]  ;;  %v1031_v25 = vor.u32 %v1177_v18, %v1030_v16  ;;  %v971_v30 = vor.u32 %v1160_v21, %v968_v22 }
  0x3f   : > { %652 = vmatpush.bf16.msra.mxu0 %v983_v63  ;;  %v1095_v26 = vor.u32 %v1193_v20, %v1094_v19  ;;  %v1159_v27 = vld [vmem:[%s1376_s7 + $0x4] sm:$0xf0]  ;;  %v1022_v28 = vld [vmem:[%s1376_s7 + $0x80] sm:$0xf]  ;;  %v1158_v33 = vld [vmem:[%s1376_s7 + $0x4] sm:$0xf] }
  0x40   : > { %670 = vmatpush.bf16.msra.mxu1 %v1047_v0  ;;  %706 = vmatpush.bf16.msra.mxu3 %v987_v5  ;;  %v1175_v29 = vld [vmem:[%s1376_s7 + $0x84] sm:$0xf0]  ;;  %v1086_v31 = vld [vmem:[%s1376_s7 + $0x100] sm:$0xf]  ;;  %v960_v34 = vld [vmem:[%s1376_s7 + $0x8] sm:$0xf0]  ;;  %v959_v37 = vor.u32 %v1159_v27, %v958_v24 }
  0x41   : > { %688 = vmatpush.bf16.msra.mxu2 %v1111_v1  ;;  %v1191_v32 = vld [vmem:[%s1376_s7 + $0x104] sm:$0xf0]  ;;  %v1188_v35 = vld [vmem:[%s1376_s7 + $0xf4] sm:$0xf]  ;;  %v1080_v36 = vld [vmem:[%s1376_s7 + $0xf8] sm:$0xf0]  ;;  %v1023_v41 = vor.u32 %v1175_v29, %v1022_v28  ;;  %v963_v46 = vor.u32 %v1158_v33, %v960_v34 }
  0x42   : > { %v946_v38 = vld [vmem:[%s1378_s8] sm:$0xf]  ;;  %v1156_v39 = vld [vmem:[%s1378_s8 + $0x8] sm:$0xf0]  ;;  %v1155_v40 = vld [vmem:[%s1378_s8 + $0x4] sm:$0xf]  ;;  %v1087_v42 = vor.u32 %v1191_v32, %v1086_v31  ;;  %v1083_v47 = vor.u32 %v1188_v35, %v1080_v36 }
  0x43   : > { %653 = vmatpush.bf16.msra.mxu0 %v975_v11  ;;  %v948_v43 = vld [vmem:[%s1378_s8 + $0xc] sm:$0xf0]  ;;  %v954_v44 = vld [vmem:[%s1378_s8 + $0x8] sm:$0xf]  ;;  %v1157_v45 = vld [vmem:[%s1378_s8 + $0x10] sm:$0xf0]  ;;  %v947_v50 = vor.u32 %v1156_v39, %v946_v38 }
  0x44   : > { %671 = vmatpush.bf16.msra.mxu1 %v1039_v12  ;;  %707 = vmatpush.bf16.msra.mxu3 %v979_v17  ;;  %v1204_v48 = vld [vmem:[%s1376_s7 + $0x174] sm:$0xf]  ;;  %v1144_v49 = vld [vmem:[%s1376_s7 + $0x178] sm:$0xf0]  ;;  %v1186_v51 = vld [vmem:[%s1376_s7 + $0xe4] sm:$0xf]  ;;  %v1457_v53 = vor.u32 %v1155_v40, %v948_v43  ;;  %v1459_v54 = vor.u32 %v1157_v45, %v954_v44 }
  0x45   : > { %689 = vmatpush.bf16.msra.mxu2 %v1103_v13  ;;  %v1072_v52 = vld [vmem:[%s1376_s7 + $0xe8] sm:$0xf0]  ;;  %v1147_v55 = vor.u32 %v1204_v48, %v1144_v49  ;;  %v1202_v57 = vld [vmem:[%s1376_s7 + $0x164] sm:$0xf]  ;;  %v1184_v59 = vld [vmem:[%s1376_s7 + $0xd4] sm:$0xf] }
  0x46   : > { %v1075_v56 = vor.u32 %v1186_v51, %v1072_v52  ;;  %v1136_v58 = vld [vmem:[%s1376_s7 + $0x168] sm:$0xf0]  ;;  %v1064_v60 = vld [vmem:[%s1376_s7 + $0xd8] sm:$0xf0]  ;;  %v1200_v63 = vld [vmem:[%s1376_s7 + $0x154] sm:$0xf] }
  0x47   : > { %654 = vmatpush.bf16.msra.mxu0 %v967_v23  ;;  %v1139_v61 = vor.u32 %v1202_v57, %v1136_v58  ;;  %v1067_v62 = vor.u32 %v1184_v59, %v1064_v60  ;;  %v1128_v0 = vld [vmem:[%s1376_s7 + $0x158] sm:$0xf0]  ;;  %v1182_v1 = vld [vmem:[%s1376_s7 + $0xc4] sm:$0xf]  ;;  %v1056_v2 = vld [vmem:[%s1376_s7 + $0xc8] sm:$0xf0] }
  0x48   : > { %672 = vmatpush.bf16.msra.mxu1 %v1031_v25  ;;  %708 = vmatpush.bf16.msra.mxu3 %v971_v30  ;;  %v331_v3 = vld [vmem:[%s1378_s8 + $0x18] sm:$0xff]  ;;  %v1131_v4 = vor.u32 %v1200_v63, %v1128_v0  ;;  %v332_v5 = vld [vmem:[%s1378_s8 + $0x20] sm:$0xf]  ;;  %v1059_v6 = vor.u32 %v1182_v1, %v1056_v2  ;;  %v1198_v7 = vld [vmem:[%s1376_s7 + $0x144] sm:$0xf]  ;;  %p1148_p11 = scmp.ne.s32.totalorder %s1295_s14, 8 }
  0x49   : > { %690 = vmatpush.bf16.msra.mxu2 %v1095_v26  ;;  %v1120_v8 = vld [vmem:[%s1376_s7 + $0x148] sm:$0xf0]  ;;  %v393_v9 = vunpack.c.l.b16 %v331_v3  ;;  %v1180_v10 = vld [vmem:[%s1376_s7 + $0xb4] sm:$0xf]  ;;  %v1048_v11 = vld [vmem:[%s1376_s7 + $0xb8] sm:$0xf0]  ;;  %v394_v12 = vunpack.c.h.b16 %v331_v3  ;;  %v395_v13 = vunpack.c.l.b16 %v332_v5 }
  0x4a   : > { %v1123_v14 = vor.u32 %v1198_v7, %v1120_v8  ;;  %v1051_v15 = vor.u32 %v1180_v10, %v1048_v11  ;;  %v1196_v16 = vld [vmem:[%s1376_s7 + $0x134] sm:$0xf]  ;;  %v1112_v17 = vld [vmem:[%s1376_s7 + $0x138] sm:$0xf0]  ;;  %v1178_v19 = vld [vmem:[%s1376_s7 + $0xa4] sm:$0xf] }
  0x4b   : > { %655 = vmatpush.bf16.msra.mxu0 %v959_v37  ;;  %v399_v18 = vpack.c.b16 %v393_v9, %v393_v9  ;;  %v1040_v20 = vld [vmem:[%s1376_s7 + $0xa8] sm:$0xf0]  ;;  %v400_v21 = vpack.c.b16 %v394_v12, %v394_v12  ;;  %v401_v22 = vpack.c.b16 %v395_v13, %v395_v13  ;;  %v1115_v23 = vor.u32 %v1196_v16, %v1112_v17  ;;  %v1194_v25 = vld [vmem:[%s1376_s7 + $0x124] sm:$0xf]  ;;  %v1176_v27 = vld [vmem:[%s1376_s7 + $0x94] sm:$0xf] }
  0x4c   : > { %673 = vmatpush.bf16.msra.mxu1 %v1023_v41  ;;  %709 = vmatpush.bf16.msra.mxu3 %v963_v46  ;;  %v1043_v24 = vor.u32 %v1178_v19, %v1040_v20  ;;  %v1104_v26 = vld [vmem:[%s1376_s7 + $0x128] sm:$0xf0]  ;;  %v1032_v28 = vld [vmem:[%s1376_s7 + $0x98] sm:$0xf0]  ;;  %v1192_v31 = vld [vmem:[%s1376_s7 + $0x114] sm:$0xf] }
  0x4d   : > { %691 = vmatpush.bf16.msra.mxu2 %v1087_v42  ;;  %v1107_v29 = vor.u32 %v1194_v25, %v1104_v26  ;;  %v1035_v30 = vor.u32 %v1176_v27, %v1032_v28  ;;  %v1096_v32 = vld [vmem:[%s1376_s7 + $0x118] sm:$0xf0]  ;;  %v1174_v33 = vld [vmem:[%s1376_s7 + $0x84] sm:$0xf]  ;;  %v1024_v34 = vld [vmem:[%s1376_s7 + $0x88] sm:$0xf0] }
  0x4e   : > { %656 = vmatmul.bf16.vlgmr.msra.gmra.mxu0 %v947_v50  ;;  %v1099_v35 = vor.u32 %v1192_v31, %v1096_v32  ;;  %v1027_v36 = vor.u32 %v1174_v33, %v1024_v34  ;;  %v1190_v37 = vld [vmem:[%s1376_s7 + $0x104] sm:$0xf]  ;;  %v1088_v38 = vld [vmem:[%s1376_s7 + $0x108] sm:$0xf0]  ;;  %v325_v59 = vld [vmem:[#allocation2 + $0x18] sm:$0xff] }
  0x4f   : > { %720 = vmatpush.bf16.msrb.mxu0 %v1083_v47  ;;  %674 = vmatmul.bf16.vlgmr.msra.gmra.mxu1 %v1457_v53  ;;  %v1091_v39 = vor.u32 %v1190_v37, %v1088_v38  ;;  %v321_v43 = vld [vmem:[#allocation2 + $0x28] sm:$0xff]  ;;  %v322_v7 = vld [vmem:[#allocation2 + $0x10] sm:$0xff]  ;;  %v324_v17 = vld [vmem:[#allocation2] sm:$0xff] }
  0x50   : > { %692 = vmatmul.bf16.vlgmr.msra.gmra.mxu2 %v1459_v54  ;;  %710 = vmatmul.bf16.vlgmr.msra.gmra.mxu3 %v947_v50  ;;  %v323_v51 = vld [vmem:[#allocation2 + $0x8] sm:$0xff] }
  0x51   : > { %1206 = vmatpush.bf16.msrb.mxu2 %v1083_v47  ;;  %738 = vmatpush.bf16.msrb.mxu1 %v1147_v55 }
  0x52   : > { %1214 = vmatpush.bf16.msrb.mxu3 %v1147_v55 }
  0x53   : > { %721 = vmatpush.bf16.msrb.mxu0 %v1075_v56 }
  0x55   : > { %1207 = vmatpush.bf16.msrb.mxu2 %v1075_v56  ;;  %739 = vmatpush.bf16.msrb.mxu1 %v1139_v61 }
  0x56   : > { %1215 = vmatpush.bf16.msrb.mxu3 %v1139_v61 }
  0x57   : > { %722 = vmatpush.bf16.msrb.mxu0 %v1067_v62 }
  0x59   : > { %1208 = vmatpush.bf16.msrb.mxu2 %v1067_v62  ;;  %740 = vmatpush.bf16.msrb.mxu1 %v1131_v4 }
  0x5a   : > { %1216 = vmatpush.bf16.msrb.mxu3 %v1131_v4 }
  0x5b   : > { %723 = vmatpush.bf16.msrb.mxu0 %v1059_v6 }
  0x5d   : > { %1209 = vmatpush.bf16.msrb.mxu2 %v1059_v6  ;;  %741 = vmatpush.bf16.msrb.mxu1 %v1123_v14 }
  0x5e   : > { %1217 = vmatpush.bf16.msrb.mxu3 %v1123_v14  ;;  %661 = vmatmul.bf16.gmra.mxu0 %v399_v18  ;;  %v326_v14 = vld [vmem:[#allocation2 + $0x20] sm:$0xff] }
  0x5f   : > { %724 = vmatpush.bf16.msrb.mxu0 %v1051_v15  ;;  %679 = vmatmul.bf16.gmra.mxu1 %v400_v21 }
  0x60   : > { %697 = vmatmul.bf16.gmra.mxu2 %v401_v22  ;;  %715 = vmatmul.bf16.gmra.mxu3 %v399_v18 }
  0x61   : > { %1210 = vmatpush.bf16.msrb.mxu2 %v1051_v15  ;;  %742 = vmatpush.bf16.msrb.mxu1 %v1115_v23 }
  0x62   : > { %1218 = vmatpush.bf16.msrb.mxu3 %v1115_v23 }
  0x63   : > { %725 = vmatpush.bf16.msrb.mxu0 %v1043_v24 }
  0x65   : > { %1211 = vmatpush.bf16.msrb.mxu2 %v1043_v24  ;;  %743 = vmatpush.bf16.msrb.mxu1 %v1107_v29 }
  0x66   : > { %1219 = vmatpush.bf16.msrb.mxu3 %v1107_v29 }
  0x67   : > { %726 = vmatpush.bf16.msrb.mxu0 %v1035_v30 }
  0x69   : > { %1212 = vmatpush.bf16.msrb.mxu2 %v1035_v30  ;;  %744 = vmatpush.bf16.msrb.mxu1 %v1099_v35 }
  0x6a   : > { %1220 = vmatpush.bf16.msrb.mxu3 %v1099_v35 }
  0x6b   : > { %727 = vmatpush.bf16.msrb.mxu0 %v1027_v36 }
  0x6d   : > { %1213 = vmatpush.bf16.msrb.mxu2 %v1027_v36  ;;  %745 = vmatpush.bf16.msrb.mxu1 %v1091_v39 }
  0x6e   : > { %1221 = vmatpush.bf16.msrb.mxu3 %v1091_v39  ;;  %728 = vmatmul.bf16.vlgmr.msrb.gmra.mxu0 %v1457_v53 }
  0x70   : > { %733 = vmatmul.bf16.vlgmr.msrb.gmra.mxu2 %v400_v21  ;;  %746 = vmatmul.bf16.vlgmr.msrb.gmra.mxu1 %v1459_v54 }
  0x71   : > { %751 = vmatmul.bf16.vlgmr.msrb.gmra.mxu3 %v401_v22 }
  0xcb   : > { %v657_v40 = vpop.f32.mrf.mxu0 }
  0xcc   : > { %v675_v41 = vpop.f32.mrf.mxu1 }
  0xcd   : > { %v676_v42 = vadd.f32 %v675_v41, %v657_v40 }
  0xd3   : > { %v693_v44 = vpop.f32.mrf.mxu2  ;;  %v711_v46 = vpop.f32.mrf.mxu3 }
  0xd4   : > { %v694_v45 = vadd.f32 %v693_v44, %v676_v42  ;;  %v659_v47 = vpop.f32.mrf.mxu0  ;;  %v677_v48 = vpop.f32.mrf.mxu1 }
  0xd5   : > { %v678_v50 = vadd.f32 %v677_v48, %v659_v47 }
  0xd6   : > { %v756_v49 = vadd.f32 %v694_v45, %v321_v43 }
  0xd8   : > { %762 = vst [vmem:[#allocation2 + $0x28] sm:$0xff] %v756_v49 }
  0xdb   : > { %v695_v52 = vpop.f32.mrf.mxu2  ;;  %v713_v53 = vpop.f32.mrf.mxu3 }
  0xdc   : > { %v696_v55 = vadd.f32 %v695_v52, %v678_v50  ;;  %v662_v56 = vpop.f32.mrf.mxu0  ;;  %v680_v57 = vpop.f32.mrf.mxu1 }
  0xdd   : > { %v681_v58 = vadd.f32 %v680_v57, %v662_v56 }
  0xde   : > { %v758_v54 = vadd.f32 %v696_v55, %v323_v51 }
  0xe0   : > { %764 = vst [vmem:[#allocation2 + $0x8] sm:$0xff] %v758_v54 }
  0xe3   : > { %v698_v60 = vpop.f32.mrf.mxu2  ;;  %v716_v62 = vpop.f32.mrf.mxu3 }
  0xe4   : > { %v699_v61 = vadd.f32 %v698_v60, %v681_v58  ;;  %v664_v63 = vpop.f32.mrf.mxu0  ;;  %v682_v0 = vpop.f32.mrf.mxu1 }
  0xe6   : > { %v760_v1 = vadd.f32 %v699_v61, %v325_v59 }
  0xe8   : > { %766 = vst [vmem:[#allocation2 + $0x18] sm:$0xff] %v760_v1 }
  0xeb   : > { %v700_v2 = vpop.f32.mrf.mxu2  ;;  %v718_v3 = vpop.f32.mrf.mxu3 }
  0xec   : > { %v729_v4 = vpop.f32.mrf.mxu0 }
  0xed   : > { %v730_v5 = vadd.f32 %v729_v4, %v711_v46  ;;  %v747_v6 = vpop.f32.mrf.mxu1 }
  0xef   : > { %v748_v8 = vadd.f32 %v747_v6, %v730_v5 }
  0xf1   : > { %v757_v9 = vadd.f32 %v748_v8, %v322_v7 }
  0xf3   : > { %763 = vst [vmem:[#allocation2 + $0x10] sm:$0xff] %v757_v9  ;;  %v734_v10 = vpop.f32.mrf.mxu2 }
  0xf4   : > { %v735_v11 = vadd.f32 %v734_v10, %v716_v62  ;;  %v752_v12 = vpop.f32.mrf.mxu3  ;;  %v731_v13 = vpop.f32.mrf.mxu0 }
  0xf5   : > { %v732_v15 = vadd.f32 %v731_v13, %v713_v53  ;;  %v749_v18 = vpop.f32.mrf.mxu1 }
  0xf6   : > { %v753_v16 = vadd.f32 %v752_v12, %v735_v11 }
  0xf7   : > { %v750_v19 = vadd.f32 %v749_v18, %v732_v15 }
  0xf8   : > { %v761_v20 = vadd.f32 %v753_v16, %v326_v14  ;;  %771 = sbr.rel (%p1148_p11) target bundleno = 266 (0x10a), region = 66 }
  0xf9   : > { %v759_v21 = vadd.f32 %v750_v19, %v324_v17 }
  0xfa   : > { %767 = vst [vmem:[#allocation2 + $0x20] sm:$0xff] %v761_v20 }
  0xfb   : > { %765 = vst [vmem:[#allocation2] sm:$0xff] %v759_v21  ;;  %v736_v22 = vpop.f32.mrf.mxu2 }
  0xfc   : > { %v754_v23 = vpop.f32.mrf.mxu3 }
  0xfd   : > { %v772_v24 = vld [vmem:[#allocation2 + $0x28] sm:$0xff]  ;;  %v778_v25 = vld [vmem:[%s1532_s2] sm:$0x3]  ;;  %v773_v26 = vld [vmem:[#allocation2 + $0x10] sm:$0xff] }
  0xfe   : > { %v780_v27 = vperm.slane %v778_v25, 0  ;;  %v781_v28 = vperm.slane %v778_v25, 1  ;;  %v774_v29 = vld [vmem:[#allocation2 + $0x8] sm:$0xff]  ;;  %v776_v31 = vld [vmem:[#allocation2 + $0x18] sm:$0xff] }
 0x100   : > { %v784_v33 = vadd.f32 %v780_v27, %v772_v24  ;;  %v785_v34 = vadd.f32 %v781_v28, %v773_v26  ;;  %v786_v35 = vadd.f32 %v780_v27, %v774_v29  ;;  %v788_v37 = vadd.f32 %v780_v27, %v776_v31 }
 0x101   : > { %v777_v32 = vld [vmem:[#allocation2 + $0x20] sm:$0xff] }
 0x102   : > { %v775_v30 = vld [vmem:[#allocation2] sm:$0xff]  ;;  %v789_v38 = vadd.f32 %v781_v28, %v777_v32  ;;  %v790_v39 = vmax.f32 %v784_v33, 0.0  ;;  %v791_v40 = vmax.f32 %v785_v34, 0.0  ;;  %v792_v41 = vmax.f32 %v786_v35, 0.0 }
 0x103   : > { %v787_v36 = vadd.f32 %v781_v28, %v775_v30  ;;  %v794_v43 = vmax.f32 %v788_v37, 0.0 }
 0x104   : > { %796 = vst [vmem:[%s1533_s3] sm:$0xff] %v790_v39  ;;  %v795_v44 = vmax.f32 %v789_v38, 0.0 }
 0x105   : > { %v793_v42 = vmax.f32 %v787_v36, 0.0  ;;  %797 = vst [vmem:[%s1533_s3 + $0x8] sm:$0xff] %v791_v40 }
 0x106   : > { %798 = vst [vmem:[%s1533_s3 + $0x10] sm:$0xff] %v792_v41 }
 0x107   : > { %799 = vst [vmem:[%s1533_s3 + $0x18] sm:$0xff] %v793_v42 }
 0x108   : > { %800 = vst [vmem:[%s1533_s3 + $0x20] sm:$0xff] %v794_v43 }
 0x109   : > { %801 = vst [vmem:[%s1533_s3 + $0x28] sm:$0xff] %v795_v44 }
 0x10a PF: > { %s13_s16 = sadd.s32 1, %s1303_s16   ;;  %s1534_s12 = smov %s1291_s13 }
 0x10b   : > { %p10_p12 = scmp.ge.s32.totalorder %s13_s16, 11   ;;  %s1535_s13 = smov %s1361_s20 }
 0x10c   : > { %s1536_s14 = smov %s1299_s15  ;;  %s1537_s15 = smov %s1539_s17 }
 0x10d   :  { %12 = sbr.rel (!%p10_p12) target bundleno = 3 (0x3), region = 113 }

// kernel: forward.12
= control target key start
LH: loop header
LB: loop body
LE: loop exit
PB: predicated region body
PF: predicated region fallthrough
CT: control target
= control target key end

     0   :  { %s1974_s12 = smov 0   ;;  %s1976_s13 = smov 0   ;;  %s2313_s0 = inlined_call_operand.vmem [shape: bf16[24,2304], index: 0, kind: input, shape index: {}]   ;;  %s2314_s1 = inlined_call_operand.vmem [shape: bf16[2304,256], index: 1, kind: input, shape index: {}]   ;;  %s2315_s2 = inlined_call_operand.vmem [shape: f32[1,256], index: 2, kind: input, shape index: {}]   ;;  %s2316_s3 = inlined_call_operand.vmem [shape: f32[24,256], index: 3, kind: output, shape index: {}]  }
   0x1   :  { %s1978_s14 = smov 0   ;;  %s1980_s15 = smov 0  }
   0x2   :  { %s1982_s16 = smov 0  }
   0x3 LB: > { %s25_s17 = sadd.s32 1, %s1947_s15  ;;  %p48_p1 = scmp.ne.s32.totalorder %s1939_s13, %s1935_s12  ;;  %s1951_s16 = sphi %s1982_s16, %s13_s16   ;;  %s1947_s15 = sphi %s1980_s15, %s2320_s15   ;;  %s1943_s14 = sphi %s1978_s14, %s2319_s14   ;;  %s1939_s13 = sphi %s1976_s13, %s2318_s13   ;;  %s1935_s12 = sphi %s1974_s12, %s2317_s12  }
   0x4   : > { %p26_p0 = scmp.ge.s32.totalorder %s25_s17, 3  ;;  %p49_p2 = scmp.eq.s32.totalorder %s1951_s16, 0 }
   0x5   : > { %s41_s19 = sadd.s32 1, %s1939_s13  ;;  %p1347_p5 = scmp.ge.s32.totalorder %s1951_s16, 3 }
   0x6   : > { %s2322_s17 = smov (%p26_p0, %s25_s17), 0  ;;  %p50_p3 = por %p49_p2, %p48_p1 }
   0x7   : > { %s37_s18 = ssub.s32 %s1947_s15, %s2322_s17  ;;  %164 = sbr.rel (%p1347_p5) target bundleno = 26 (0x1a), region = 20 }
   0x8   : > { %p39_p4 = scmp.eq.s32.totalorder %s37_s18, 0 }
   0xa   : > { %s2009_s20 = scalar_select %p39_p4, %s1939_s13, %s41_s19  }
   0xc   : > { %167 = sbr.rel (!%p50_p3) target bundleno = 26 (0x1a), region = 24  ;;  %s169_s21 = sand.u32 (%p50_p3), 1, %s1939_s13  }
   0xd   : > { %s1766_s22 = smul.u32 (%p50_p3), 24, %s1947_s15 }
   0xe   : > { %s1870_s23 = smul.u32 (%p50_p3), 72, %s169_s21 }
   0xf   : > { %s177_s26 = scalar_lea.vmem (%p50_p3), %s2313_s0, %s1766_s22 }
  0x10   : > { %v190_v0 = vld [vmem:[%s177_s26] sm:$0xff] (%p50_p3)  ;;  %v192_v1 = vld [vmem:[%s177_s26 + $0x8] sm:$0xff] (%p50_p3)  ;;  %v194_v2 = vld [vmem:[%s177_s26 + $0x10] sm:$0xff] (%p50_p3)  ;;  %s171_s27 = scalar_lea.vmem (%p50_p3), [#allocation3], %s1870_s23 }
  0x11   : > { %191 = vst [vmem:[%s171_s27] sm:$0xff] %v190_v0  ;;  %v196_v3 = vld [vmem:[%s177_s26 + $0x48] sm:$0xff]  ;;  %v198_v4 = vld [vmem:[%s177_s26 + $0x50] sm:$0xff]  ;;  %v200_v5 = vld [vmem:[%s177_s26 + $0x58] sm:$0xff] }
  0x12   : > { %193 = vst [vmem:[%s171_s27 + $0x8] sm:$0xff] %v192_v1  ;;  %v202_v6 = vld [vmem:[%s177_s26 + $0x90] sm:$0xff]  ;;  %v204_v7 = vld [vmem:[%s177_s26 + $0x98] sm:$0xff]  ;;  %v206_v8 = vld [vmem:[%s177_s26 + $0xa0] sm:$0xff] }
  0x13   : > { %195 = vst [vmem:[%s171_s27 + $0x10] sm:$0xff] %v194_v2 }
  0x14   : > { %197 = vst [vmem:[%s171_s27 + $0x18] sm:$0xff] %v196_v3 }
  0x15   : > { %199 = vst [vmem:[%s171_s27 + $0x20] sm:$0xff] %v198_v4 }
  0x16   : > { %201 = vst [vmem:[%s171_s27 + $0x28] sm:$0xff] %v200_v5 }
  0x17   : > { %203 = vst [vmem:[%s171_s27 + $0x30] sm:$0xff] %v202_v6 }
  0x18   : > { %205 = vst [vmem:[%s171_s27 + $0x38] sm:$0xff] %v204_v7 }
  0x19   : > { %207 = vst [vmem:[%s171_s27 + $0x40] sm:$0xff] %v206_v8 }
  0x1a PF: > { %p1349_p6 = scmp.ge.s32.totalorder %s1951_s16, 1  ;;  %p227_p7 = scmp.lt.s32.totalorder %s1951_s16, 4 }
  0x1c   : > { %p228_p8 = pnand %p1349_p6, %p227_p7 }
  0x1d   : > { %s234_s28 = sand.u32 (!%p228_p8), 1, %s1935_s12   ;;  %s278_s29 = smul.u32 (!%p228_p8), 96, %s1943_s14 }
  0x1e   : > { %231 = sbr.rel (%p228_p8) target bundleno = 317 (0x13d), region = 51  ;;  %p1352_p10 = scmp.ne.s32.totalorder (!%p228_p8), %s1943_s14, 0 }
  0x1f   : > { %s1871_s30 = smul.u32 (!%p228_p8), 72, %s234_s28  ;;  %p280_p9 = scmp.lt.s32.totalorder (!%p228_p8), %s278_s29, 287 }
  0x21   : > { %s2026_s8 = scalar_lea.vmem (!%p228_p8), [#allocation3], %s1871_s30 }
  0x23   : > { %s2324_s29 = smov (!%p280_p9, %s278_s29), 287  ;;  %310 = sbr.rel (%p1352_p10) target bundleno = 47 (0x2f), region = 59 }
  0x24   : > { %s1767_s4 = sshll.u32 %s2324_s29, 3 }
  0x25   : > { %s2024_s7 = scalar_lea.vmem %s2314_s1, %s1767_s4 }
  0x28   : > { %v1953_v9 = vmov 0.0  }
  0x29   : > { %311 = vst [vmem:[#allocation2 + $0x28] sm:$0xff] %v1953_v9 }
  0x2a   : > { %312 = vst [vmem:[#allocation2 + $0x10] sm:$0xff] %v1953_v9 }
  0x2b   : > { %313 = vst [vmem:[#allocation2 + $0x8] sm:$0xff] %v1953_v9 }
  0x2c   : > { %314 = vst [vmem:[#allocation2] sm:$0xff] %v1953_v9 }
  0x2d   : > { %315 = vst [vmem:[#allocation2 + $0x18] sm:$0xff] %v1953_v9 }
  0x2e   : > { %316 = vst [vmem:[#allocation2 + $0x20] sm:$0xff] %v1953_v9 }
  0x2f PF: > { %v1435_v10 = vld [vmem:[%s2024_s7 + $0x70] sm:$0xf]  ;;  %v1789_v11 = vld [vmem:[%s2024_s7 + $0x74] sm:$0xf0]  ;;  %v1427_v21 = vld [vmem:[%s2024_s7 + $0x60] sm:$0xf] }
  0x30   : > { %v1499_v12 = vld [vmem:[%s2024_s7 + $0xf0] sm:$0xf]  ;;  %v1436_v13 = vor.u32 %v1789_v11, %v1435_v10  ;;  %v1805_v14 = vld [vmem:[%s2024_s7 + $0xf4] sm:$0xf0]  ;;  %v1787_v23 = vld [vmem:[%s2024_s7 + $0x64] sm:$0xf0] }
  0x31   : > { %v1563_v15 = vld [vmem:[%s2024_s7 + $0x170] sm:$0xf]  ;;  %v1821_v16 = vld [vmem:[%s2024_s7 + $0x174] sm:$0xf0]  ;;  %v1500_v17 = vor.u32 %v1805_v14, %v1499_v12  ;;  %v1491_v24 = vld [vmem:[%s2024_s7 + $0xe0] sm:$0xf]  ;;  %v1428_v26 = vor.u32 %v1787_v23, %v1427_v21 }
  0x32   : > { %v1564_v18 = vor.u32 %v1821_v16, %v1563_v15  ;;  %v1627_v19 = vld [vmem:[%s2024_s7 + $0x1f0] sm:$0xf]  ;;  %v1837_v20 = vld [vmem:[%s2024_s7 + $0x1f4] sm:$0xf0]  ;;  %959 = vmatpush.bf16.msra.mxu0 %v1436_v13  ;;  %v1803_v25 = vld [vmem:[%s2024_s7 + $0xe4] sm:$0xf0] }
  0x33   : > { %v1628_v22 = vor.u32 %v1837_v20, %v1627_v19  ;;  %977 = vmatpush.bf16.msra.mxu1 %v1500_v17  ;;  %v1492_v27 = vor.u32 %v1803_v25, %v1491_v24  ;;  %v1555_v28 = vld [vmem:[%s2024_s7 + $0x160] sm:$0xf]  ;;  %v1819_v29 = vld [vmem:[%s2024_s7 + $0x164] sm:$0xf0]  ;;  %v1419_v33 = vld [vmem:[%s2024_s7 + $0x50] sm:$0xf] }
  0x34   : > { %995 = vmatpush.bf16.msra.mxu2 %v1564_v18  ;;  %v1619_v30 = vld [vmem:[%s2024_s7 + $0x1e0] sm:$0xf]  ;;  %v1556_v31 = vor.u32 %v1819_v29, %v1555_v28  ;;  %v1835_v32 = vld [vmem:[%s2024_s7 + $0x1e4] sm:$0xf0]  ;;  %v1785_v34 = vld [vmem:[%s2024_s7 + $0x54] sm:$0xf0] }
  0x35   : > { %1013 = vmatpush.bf16.msra.mxu3 %v1628_v22  ;;  %v1620_v35 = vor.u32 %v1835_v32, %v1619_v30  ;;  %v1483_v36 = vld [vmem:[%s2024_s7 + $0xd0] sm:$0xf]  ;;  %v1801_v37 = vld [vmem:[%s2024_s7 + $0xd4] sm:$0xf0]  ;;  %v1420_v39 = vor.u32 %v1785_v34, %v1419_v33  ;;  %v1411_v45 = vld [vmem:[%s2024_s7 + $0x40] sm:$0xf] }
  0x36   : > { %v1547_v38 = vld [vmem:[%s2024_s7 + $0x150] sm:$0xf]  ;;  %960 = vmatpush.bf16.msra.mxu0 %v1428_v26  ;;  %v1817_v40 = vld [vmem:[%s2024_s7 + $0x154] sm:$0xf0]  ;;  %v1484_v43 = vor.u32 %v1801_v37, %v1483_v36  ;;  %v1783_v46 = vld [vmem:[%s2024_s7 + $0x44] sm:$0xf0] }
  0x37   : > { %v1611_v41 = vld [vmem:[%s2024_s7 + $0x1d0] sm:$0xf]  ;;  %v1833_v42 = vld [vmem:[%s2024_s7 + $0x1d4] sm:$0xf0]  ;;  %978 = vmatpush.bf16.msra.mxu1 %v1492_v27  ;;  %v1548_v44 = vor.u32 %v1817_v40, %v1547_v38  ;;  %v1475_v47 = vld [vmem:[%s2024_s7 + $0xc0] sm:$0xf]  ;;  %v1412_v54 = vor.u32 %v1783_v46, %v1411_v45 }
  0x38   : > { %996 = vmatpush.bf16.msra.mxu2 %v1556_v31  ;;  %v1612_v48 = vor.u32 %v1833_v42, %v1611_v41  ;;  %v1799_v49 = vld [vmem:[%s2024_s7 + $0xc4] sm:$0xf0]  ;;  %v1539_v50 = vld [vmem:[%s2024_s7 + $0x140] sm:$0xf]  ;;  %v1403_v57 = vld [vmem:[%s2024_s7 + $0x30] sm:$0xf] }
  0x39   : > { %1014 = vmatpush.bf16.msra.mxu3 %v1620_v35  ;;  %v1815_v51 = vld [vmem:[%s2024_s7 + $0x144] sm:$0xf0]  ;;  %v1603_v52 = vld [vmem:[%s2024_s7 + $0x1c0] sm:$0xf]  ;;  %v1476_v55 = vor.u32 %v1799_v49, %v1475_v47  ;;  %v1781_v58 = vld [vmem:[%s2024_s7 + $0x34] sm:$0xf0] }
  0x3a   : > { %v1831_v53 = vld [vmem:[%s2024_s7 + $0x1c4] sm:$0xf0]  ;;  %961 = vmatpush.bf16.msra.mxu0 %v1420_v39  ;;  %v1540_v56 = vor.u32 %v1815_v51, %v1539_v50  ;;  %v1467_v59 = vld [vmem:[%s2024_s7 + $0xb0] sm:$0xf]  ;;  %v1797_v61 = vld [vmem:[%s2024_s7 + $0xb4] sm:$0xf0]  ;;  %v1404_v2 = vor.u32 %v1781_v58, %v1403_v57 }
  0x3b   : > { %979 = vmatpush.bf16.msra.mxu1 %v1484_v43  ;;  %v1604_v60 = vor.u32 %v1831_v53, %v1603_v52  ;;  %v1531_v62 = vld [vmem:[%s2024_s7 + $0x130] sm:$0xf]  ;;  %v1813_v63 = vld [vmem:[%s2024_s7 + $0x134] sm:$0xf0]  ;;  %v1468_v3 = vor.u32 %v1797_v61, %v1467_v59  ;;  %v1395_v5 = vld [vmem:[%s2024_s7 + $0x20] sm:$0xf] }
  0x3c   : > { %997 = vmatpush.bf16.msra.mxu2 %v1548_v44  ;;  %v1595_v0 = vld [vmem:[%s2024_s7 + $0x1b0] sm:$0xf]  ;;  %v1829_v1 = vld [vmem:[%s2024_s7 + $0x1b4] sm:$0xf0]  ;;  %v1532_v4 = vor.u32 %v1813_v63, %v1531_v62  ;;  %v1779_v6 = vld [vmem:[%s2024_s7 + $0x24] sm:$0xf0] }
  0x3d   : > { %1015 = vmatpush.bf16.msra.mxu3 %v1612_v48  ;;  %v1459_v7 = vld [vmem:[%s2024_s7 + $0xa0] sm:$0xf]  ;;  %v1596_v8 = vor.u32 %v1829_v1, %v1595_v0  ;;  %v1795_v9 = vld [vmem:[%s2024_s7 + $0xa4] sm:$0xf0]  ;;  %v1396_v14 = vor.u32 %v1779_v6, %v1395_v5  ;;  %v1387_v17 = vld [vmem:[%s2024_s7 + $0x10] sm:$0xf] }
  0x3e   : > { %962 = vmatpush.bf16.msra.mxu0 %v1412_v54  ;;  %v1523_v10 = vld [vmem:[%s2024_s7 + $0x120] sm:$0xf]  ;;  %v1811_v11 = vld [vmem:[%s2024_s7 + $0x124] sm:$0xf0]  ;;  %v1460_v15 = vor.u32 %v1795_v9, %v1459_v7  ;;  %v1777_v18 = vld [vmem:[%s2024_s7 + $0x14] sm:$0xf0] }
  0x3f   : > { %980 = vmatpush.bf16.msra.mxu1 %v1476_v55  ;;  %v1587_v12 = vld [vmem:[%s2024_s7 + $0x1a0] sm:$0xf]  ;;  %v1827_v13 = vld [vmem:[%s2024_s7 + $0x1a4] sm:$0xf0]  ;;  %v1524_v16 = vor.u32 %v1811_v11, %v1523_v10  ;;  %v1451_v19 = vld [vmem:[%s2024_s7 + $0x90] sm:$0xf]  ;;  %v1388_v27 = vor.u32 %v1777_v18, %v1387_v17 }
  0x40   : > { %998 = vmatpush.bf16.msra.mxu2 %v1540_v56  ;;  %v1588_v20 = vor.u32 %v1827_v13, %v1587_v12  ;;  %v1793_v21 = vld [vmem:[%s2024_s7 + $0x94] sm:$0xf0]  ;;  %v1515_v22 = vld [vmem:[%s2024_s7 + $0x110] sm:$0xf]  ;;  %v1379_v26 = vld [vmem:[%s2024_s7] sm:$0xf] }
  0x41   : > { %1016 = vmatpush.bf16.msra.mxu3 %v1604_v60  ;;  %v1809_v23 = vld [vmem:[%s2024_s7 + $0x114] sm:$0xf0]  ;;  %v1579_v24 = vld [vmem:[%s2024_s7 + $0x190] sm:$0xf]  ;;  %v1775_v28 = vld [vmem:[%s2024_s7 + $0x4] sm:$0xf0]  ;;  %v1452_v31 = vor.u32 %v1793_v21, %v1451_v19 }
  0x42   : > { %963 = vmatpush.bf16.msra.mxu0 %v1404_v2  ;;  %v1825_v25 = vld [vmem:[%s2024_s7 + $0x194] sm:$0xf0]  ;;  %v1443_v29 = vld [vmem:[%s2024_s7 + $0x80] sm:$0xf]  ;;  %v1791_v30 = vld [vmem:[%s2024_s7 + $0x84] sm:$0xf0]  ;;  %v1516_v32 = vor.u32 %v1809_v23, %v1515_v22  ;;  %v1380_v44 = vor.u32 %v1775_v28, %v1379_v26 }
  0x43   : > { %981 = vmatpush.bf16.msra.mxu1 %v1468_v3  ;;  %v1507_v33 = vld [vmem:[%s2024_s7 + $0x100] sm:$0xf]  ;;  %v1807_v34 = vld [vmem:[%s2024_s7 + $0x104] sm:$0xf0]  ;;  %v1580_v36 = vor.u32 %v1825_v25, %v1579_v24  ;;  %v1355_v38 = vld [vmem:[%s2026_s8] sm:$0xf]  ;;  %v1444_v48 = vor.u32 %v1791_v30, %v1443_v29 }
  0x44   : > { %999 = vmatpush.bf16.msra.mxu2 %v1532_v4  ;;  %v1571_v35 = vld [vmem:[%s2024_s7 + $0x180] sm:$0xf]  ;;  %v1823_v37 = vld [vmem:[%s2024_s7 + $0x184] sm:$0xf0]  ;;  %v1768_v40 = vld [vmem:[%s2026_s8 + $0x4] sm:$0xf]  ;;  %v1508_v49 = vor.u32 %v1807_v34, %v1507_v33 }
  0x45   : > { %1017 = vmatpush.bf16.msra.mxu3 %v1596_v8  ;;  %v1771_v39 = vld [vmem:[%s2026_s8 + $0x14] sm:$0xf0]  ;;  %v1357_v41 = vld [vmem:[%s2026_s8 + $0x18] sm:$0xf0]  ;;  %v1437_v43 = vld [vmem:[%s2024_s7 + $0x78] sm:$0xf0]  ;;  %v1572_v53 = vor.u32 %v1823_v37, %v1571_v35 }
  0x46   : > { %964 = vmatpush.bf16.msra.mxu0 %v1396_v14  ;;  %v1788_v42 = vld [vmem:[%s2024_s7 + $0x74] sm:$0xf]  ;;  %v1363_v45 = vld [vmem:[%s2026_s8 + $0x8] sm:$0xf]  ;;  %v1501_v47 = vld [vmem:[%s2024_s7 + $0xf8] sm:$0xf0]  ;;  %v2108_v58 = vor.u32 %v1771_v39, %v1355_v38  ;;  %v2113_v63 = vor.u32 %v1768_v40, %v1357_v41 }
  0x47   : > { %982 = vmatpush.bf16.msra.mxu1 %v1460_v15  ;;  %v1804_v46 = vld [vmem:[%s2024_s7 + $0xf4] sm:$0xf]  ;;  %v1772_v50 = vld [vmem:[%s2026_s8 + $0x1c] sm:$0xf0]  ;;  %v1769_v51 = vld [vmem:[%s2026_s8 + $0xc] sm:$0xf]  ;;  %v1440_v54 = vor.u32 %v1788_v42, %v1437_v43 }
  0x48   : > { %1000 = vmatpush.bf16.msra.mxu2 %v1524_v16  ;;  %v1365_v52 = vld [vmem:[%s2026_s8 + $0x20] sm:$0xf0]  ;;  %v1691_v55 = vld [vmem:[%s2024_s7 + $0x270] sm:$0xf]  ;;  %v1853_v56 = vld [vmem:[%s2024_s7 + $0x274] sm:$0xf0]  ;;  %v1504_v59 = vor.u32 %v1804_v46, %v1501_v47  ;;  %v2115_v0 = vor.u32 %v1772_v50, %v1363_v45 }
  0x49   : > { %1018 = vmatpush.bf16.msra.mxu3 %v1588_v20  ;;  %v1755_v57 = vld [vmem:[%s2024_s7 + $0x2f0] sm:$0xf]  ;;  %v1869_v60 = vld [vmem:[%s2024_s7 + $0x2f4] sm:$0xf0]  ;;  %v1786_v61 = vld [vmem:[%s2024_s7 + $0x64] sm:$0xf]  ;;  %v2119_v3 = vor.u32 %v1769_v51, %v1365_v52  ;;  %v1692_v4 = vor.u32 %v1853_v56, %v1691_v55 }
  0x4a   : > { %965 = vmatpush.bf16.msra.mxu0 %v1388_v27  ;;  %v1429_v62 = vld [vmem:[%s2024_s7 + $0x68] sm:$0xf0]  ;;  %v1802_v1 = vld [vmem:[%s2024_s7 + $0xe4] sm:$0xf]  ;;  %v1756_v5 = vor.u32 %v1869_v60, %v1755_v57  ;;  %v1683_v7 = vld [vmem:[%s2024_s7 + $0x260] sm:$0xf] }
  0x4b   : > { %983 = vmatpush.bf16.msra.mxu1 %v1452_v31  ;;  %v1493_v2 = vld [vmem:[%s2024_s7 + $0xe8] sm:$0xf0]  ;;  %v1432_v6 = vor.u32 %v1786_v61, %v1429_v62  ;;  %v1851_v8 = vld [vmem:[%s2024_s7 + $0x264] sm:$0xf0]  ;;  %v1747_v9 = vld [vmem:[%s2024_s7 + $0x2e0] sm:$0xf] }
  0x4c   : > { %1001 = vmatpush.bf16.msra.mxu2 %v1516_v32  ;;  %v1496_v10 = vor.u32 %v1802_v1, %v1493_v2  ;;  %v1867_v11 = vld [vmem:[%s2024_s7 + $0x2e4] sm:$0xf0]  ;;  %v1784_v12 = vld [vmem:[%s2024_s7 + $0x54] sm:$0xf]  ;;  %v1421_v13 = vld [vmem:[%s2024_s7 + $0x58] sm:$0xf0]  ;;  %v1684_v16 = vor.u32 %v1851_v8, %v1683_v7 }
  0x4d   : > { %1019 = vmatpush.bf16.msra.mxu3 %v1580_v36  ;;  %v1800_v14 = vld [vmem:[%s2024_s7 + $0xd4] sm:$0xf]  ;;  %v1485_v15 = vld [vmem:[%s2024_s7 + $0xd8] sm:$0xf0]  ;;  %v1748_v17 = vor.u32 %v1867_v11, %v1747_v9  ;;  %v1424_v18 = vor.u32 %v1784_v12, %v1421_v13  ;;  %v1675_v19 = vld [vmem:[%s2024_s7 + $0x250] sm:$0xf] }
  0x4e   : > { %966 = vmatpush.bf16.msra.mxu0 %v1380_v44  ;;  %v1849_v20 = vld [vmem:[%s2024_s7 + $0x254] sm:$0xf0]  ;;  %v1739_v21 = vld [vmem:[%s2024_s7 + $0x2d0] sm:$0xf]  ;;  %v1488_v22 = vor.u32 %v1800_v14, %v1485_v15  ;;  %v1782_v24 = vld [vmem:[%s2024_s7 + $0x44] sm:$0xf] }
  0x4f   : > { %984 = vmatpush.bf16.msra.mxu1 %v1444_v48  ;;  %v1865_v23 = vld [vmem:[%s2024_s7 + $0x2d4] sm:$0xf0]  ;;  %v1413_v25 = vld [vmem:[%s2024_s7 + $0x48] sm:$0xf0]  ;;  %v1798_v26 = vld [vmem:[%s2024_s7 + $0xc4] sm:$0xf]  ;;  %v1676_v29 = vor.u32 %v1849_v20, %v1675_v19 }
  0x50   : > { %1002 = vmatpush.bf16.msra.mxu2 %v1508_v49  ;;  %v1477_v27 = vld [vmem:[%s2024_s7 + $0xc8] sm:$0xf0]  ;;  %v1740_v31 = vor.u32 %v1865_v23, %v1739_v21  ;;  %v1416_v32 = vor.u32 %v1782_v24, %v1413_v25  ;;  %v1667_v33 = vld [vmem:[%s2024_s7 + $0x240] sm:$0xf]  ;;  %v1847_v34 = vld [vmem:[%s2024_s7 + $0x244] sm:$0xf0] }
  0x51   : > { %1020 = vmatpush.bf16.msra.mxu3 %v1572_v53  ;;  %967 = vmatmul.bf16.vlgmr.msra.gmra.mxu0 %v2108_v58  ;;  %v329_v28 = vld [vmem:[%s2026_s8 + $0x30] sm:$0xff]  ;;  %v330_v30 = vld [vmem:[%s2026_s8 + $0x38] sm:$0xff]  ;;  %v1480_v36 = vor.u32 %v1798_v26, %v1477_v27  ;;  %v1405_v40 = vld [vmem:[%s2024_s7 + $0x38] sm:$0xf0]  ;;  %v1668_v45 = vor.u32 %v1847_v34, %v1667_v33  ;;  %p1761_p11 = scmp.ne.s32.totalorder %s1943_s14, 2 }
  0x52   : > { %985 = vmatmul.bf16.vlgmr.msra.gmra.mxu1 %v2113_v63  ;;  %1031 = vmatpush.bf16.msrb.mxu0 %v1692_v4  ;;  %v1731_v35 = vld [vmem:[%s2024_s7 + $0x2c0] sm:$0xf]  ;;  %v1863_v37 = vld [vmem:[%s2024_s7 + $0x2c4] sm:$0xf0]  ;;  %v449_v38 = vunpack.c.l.b16 %v329_v28  ;;  %v1780_v39 = vld [vmem:[%s2024_s7 + $0x34] sm:$0xf]  ;;  %v450_v41 = vunpack.c.h.b16 %v329_v28  ;;  %v451_v42 = vunpack.c.l.b16 %v330_v30  ;;  %v452_v46 = vunpack.c.h.b16 %v330_v30 }
  0x53   : > { %1003 = vmatmul.bf16.vlgmr.msra.gmra.mxu2 %v2115_v0  ;;  %1049 = vmatpush.bf16.msrb.mxu1 %v1756_v5  ;;  %v1796_v43 = vld [vmem:[%s2024_s7 + $0xb4] sm:$0xf]  ;;  %v1469_v44 = vld [vmem:[%s2024_s7 + $0xb8] sm:$0xf0]  ;;  %v1732_v47 = vor.u32 %v1863_v37, %v1731_v35  ;;  %v1408_v48 = vor.u32 %v1780_v39, %v1405_v40  ;;  %v1659_v49 = vld [vmem:[%s2024_s7 + $0x230] sm:$0xf] }
  0x54   : > { %1067 = vmatpush.bf16.msrb.mxu2 %v1440_v54  ;;  %1021 = vmatmul.bf16.vlgmr.msra.gmra.mxu3 %v2119_v3  ;;  %v1845_v50 = vld [vmem:[%s2024_s7 + $0x234] sm:$0xf0]  ;;  %v1723_v51 = vld [vmem:[%s2024_s7 + $0x2b0] sm:$0xf]  ;;  %v2154_v52 = vpack.c.b16 %v449_v38, %v449_v38  ;;  %v1472_v53 = vor.u32 %v1796_v43, %v1469_v44  ;;  %v1778_v55 = vld [vmem:[%s2024_s7 + $0x24] sm:$0xf]  ;;  %v2159_v57 = vpack.c.b16 %v450_v41, %v450_v41 }
  0x55   : > { %1085 = vmatpush.bf16.msrb.mxu3 %v1504_v59  ;;  %v1861_v54 = vld [vmem:[%s2024_s7 + $0x2b4] sm:$0xf0]  ;;  %v1397_v56 = vld [vmem:[%s2024_s7 + $0x28] sm:$0xf0]  ;;  %v2161_v59 = vpack.c.b16 %v451_v42, %v451_v42  ;;  %v1794_v60 = vld [vmem:[%s2024_s7 + $0xa4] sm:$0xf]  ;;  %v2165_v62 = vpack.c.b16 %v452_v46, %v452_v46  ;;  %v1660_v1 = vor.u32 %v1845_v50, %v1659_v49 }
  0x56   : > { %1032 = vmatpush.bf16.msrb.mxu0 %v1684_v16  ;;  %v1461_v61 = vld [vmem:[%s2024_s7 + $0xa8] sm:$0xf0]  ;;  %v1724_v2 = vor.u32 %v1861_v54, %v1723_v51  ;;  %v1400_v4 = vor.u32 %v1778_v55, %v1397_v56  ;;  %v1651_v5 = vld [vmem:[%s2024_s7 + $0x220] sm:$0xf]  ;;  %v1859_v9 = vld [vmem:[%s2024_s7 + $0x2a4] sm:$0xf0] }
  0x57   : > { %1050 = vmatpush.bf16.msrb.mxu1 %v1748_v17  ;;  %v1715_v7 = vld [vmem:[%s2024_s7 + $0x2a0] sm:$0xf]  ;;  %v1464_v8 = vor.u32 %v1794_v60, %v1461_v61  ;;  %v1389_v11 = vld [vmem:[%s2024_s7 + $0x18] sm:$0xf0]  ;;  %v1792_v12 = vld [vmem:[%s2024_s7 + $0x94] sm:$0xf] }
  0x58   : > { %1068 = vmatpush.bf16.msrb.mxu2 %v1432_v6  ;;  %v1843_v6 = vld [vmem:[%s2024_s7 + $0x224] sm:$0xf0]  ;;  %v1453_v13 = vld [vmem:[%s2024_s7 + $0x98] sm:$0xf0]  ;;  %v1643_v15 = vld [vmem:[%s2024_s7 + $0x210] sm:$0xf]  ;;  %v1716_v16 = vor.u32 %v1859_v9, %v1715_v7 }
  0x59   : > { %1086 = vmatpush.bf16.msrb.mxu3 %v1496_v10  ;;  %v1776_v10 = vld [vmem:[%s2024_s7 + $0x14] sm:$0xf]  ;;  %v1652_v14 = vor.u32 %v1843_v6, %v1651_v5  ;;  %v1707_v19 = vld [vmem:[%s2024_s7 + $0x290] sm:$0xf]  ;;  %v1857_v20 = vld [vmem:[%s2024_s7 + $0x294] sm:$0xf0]  ;;  %v1456_v21 = vor.u32 %v1792_v12, %v1453_v13 }
  0x5a   : > { %1033 = vmatpush.bf16.msrb.mxu0 %v1676_v29  ;;  %v1392_v17 = vor.u32 %v1776_v10, %v1389_v11  ;;  %v1381_v23 = vld [vmem:[%s2024_s7 + $0x8] sm:$0xf0]  ;;  %v1790_v24 = vld [vmem:[%s2024_s7 + $0x84] sm:$0xf]  ;;  %v1852_v26 = vld [vmem:[%s2024_s7 + $0x274] sm:$0xf] }
  0x5b   : > { %1051 = vmatpush.bf16.msrb.mxu1 %v1740_v31  ;;  %v1445_v25 = vld [vmem:[%s2024_s7 + $0x88] sm:$0xf0]  ;;  %v1693_v27 = vld [vmem:[%s2024_s7 + $0x278] sm:$0xf0]  ;;  %v1635_v29 = vld [vmem:[%s2024_s7 + $0x200] sm:$0xf] }
  0x5c   : > { %1069 = vmatpush.bf16.msrb.mxu2 %v1424_v18  ;;  %v1841_v18 = vld [vmem:[%s2024_s7 + $0x214] sm:$0xf0]  ;;  %v1868_v30 = vld [vmem:[%s2024_s7 + $0x2f4] sm:$0xf]  ;;  %v1757_v31 = vld [vmem:[%s2024_s7 + $0x2f8] sm:$0xf0]  ;;  %v1448_v37 = vor.u32 %v1790_v24, %v1445_v25  ;;  %v1696_v38 = vor.u32 %v1852_v26, %v1693_v27 }
  0x5d   : > { %1087 = vmatpush.bf16.msrb.mxu3 %v1488_v22  ;;  %v1774_v22 = vld [vmem:[%s2024_s7 + $0x4] sm:$0xf]  ;;  %v1644_v28 = vor.u32 %v1841_v18, %v1643_v15  ;;  %v1839_v34 = vld [vmem:[%s2024_s7 + $0x204] sm:$0xf0]  ;;  %v1699_v35 = vld [vmem:[%s2024_s7 + $0x280] sm:$0xf]  ;;  %v1760_v42 = vor.u32 %v1868_v30, %v1757_v31 }
  0x5e   : > { %1034 = vmatpush.bf16.msrb.mxu0 %v1668_v45  ;;  %v1384_v33 = vor.u32 %v1774_v22, %v1381_v23  ;;  %v1820_v39 = vld [vmem:[%s2024_s7 + $0x174] sm:$0xf]  ;;  %v1565_v40 = vld [vmem:[%s2024_s7 + $0x178] sm:$0xf0]  ;;  %v1850_v44 = vld [vmem:[%s2024_s7 + $0x264] sm:$0xf]  ;;  %v1636_v46 = vor.u32 %v1839_v34, %v1635_v29 }
  0x5f   : > { %1052 = vmatpush.bf16.msrb.mxu1 %v1732_v47  ;;  %v1836_v41 = vld [vmem:[%s2024_s7 + $0x1f4] sm:$0xf]  ;;  %v1629_v43 = vld [vmem:[%s2024_s7 + $0x1f8] sm:$0xf0]  ;;  %v1685_v45 = vld [vmem:[%s2024_s7 + $0x268] sm:$0xf0] }
  0x60   : > { %1070 = vmatpush.bf16.msrb.mxu2 %v1416_v32  ;;  %v1708_v32 = vor.u32 %v1857_v20, %v1707_v19  ;;  %v1371_v47 = vld [vmem:[%s2026_s8 + $0x10] sm:$0xf]  ;;  %v1770_v49 = vld [vmem:[%s2026_s8 + $0x14] sm:$0xf]  ;;  %v1373_v51 = vld [vmem:[%s2026_s8 + $0x28] sm:$0xf0]  ;;  %v1632_v56 = vor.u32 %v1836_v41, %v1629_v43  ;;  %v1688_v60 = vor.u32 %v1850_v44, %v1685_v45 }
  0x61   : > { %1088 = vmatpush.bf16.msrb.mxu3 %v1480_v36  ;;  %972 = vmatmul.bf16.gmra.mxu0 %v2154_v52  ;;  %v1855_v36 = vld [vmem:[%s2024_s7 + $0x284] sm:$0xf0]  ;;  %v1866_v54 = vld [vmem:[%s2024_s7 + $0x2e4] sm:$0xf]  ;;  %v1749_v55 = vld [vmem:[%s2024_s7 + $0x2e8] sm:$0xf0] }
  0x62   : > { %990 = vmatmul.bf16.gmra.mxu1 %v2159_v57  ;;  %1035 = vmatpush.bf16.msrb.mxu0 %v1660_v1  ;;  %v1700_v50 = vor.u32 %v1855_v36, %v1699_v35  ;;  %v1818_v61 = vld [vmem:[%s2024_s7 + $0x164] sm:$0xf]  ;;  %v1557_v1 = vld [vmem:[%s2024_s7 + $0x168] sm:$0xf0]  ;;  %v1848_v6 = vld [vmem:[%s2024_s7 + $0x254] sm:$0xf]  ;;  %v1752_v9 = vor.u32 %v1866_v54, %v1749_v55 }
  0x63   : > { %1008 = vmatmul.bf16.gmra.mxu2 %v2161_v59  ;;  %1053 = vmatpush.bf16.msrb.mxu1 %v1724_v2  ;;  %v1834_v2 = vld [vmem:[%s2024_s7 + $0x1e4] sm:$0xf]  ;;  %v1621_v5 = vld [vmem:[%s2024_s7 + $0x1e8] sm:$0xf0]  ;;  %v1677_v7 = vld [vmem:[%s2024_s7 + $0x258] sm:$0xf0]  ;;  %v1560_v10 = vor.u32 %v1818_v61, %v1557_v1 }
  0x64   : > { %1071 = vmatpush.bf16.msrb.mxu2 %v1408_v48  ;;  %1026 = vmatmul.bf16.gmra.mxu3 %v2165_v62  ;;  %v1773_v48 = vld [vmem:[%s2026_s8 + $0x24] sm:$0xf0]  ;;  %v1864_v11 = vld [vmem:[%s2024_s7 + $0x2d4] sm:$0xf]  ;;  %v1741_v12 = vld [vmem:[%s2024_s7 + $0x2d8] sm:$0xf0]  ;;  %v1624_v13 = vor.u32 %v1834_v2, %v1621_v5 }
  0x65   : > { %1089 = vmatpush.bf16.msrb.mxu3 %v1472_v53  ;;  %v1568_v53 = vor.u32 %v1820_v39, %v1565_v40  ;;  %v1816_v15 = vld [vmem:[%s2024_s7 + $0x154] sm:$0xf]  ;;  %v1613_v18 = vld [vmem:[%s2024_s7 + $0x1d8] sm:$0xf0]  ;;  %v1846_v19 = vld [vmem:[%s2024_s7 + $0x244] sm:$0xf] }
  0x66   : > { %1036 = vmatpush.bf16.msrb.mxu0 %v1652_v14  ;;  %v1680_v14 = vor.u32 %v1848_v6, %v1677_v7  ;;  %v1669_v20 = vld [vmem:[%s2024_s7 + $0x248] sm:$0xf0]  ;;  %v1862_v23 = vld [vmem:[%s2024_s7 + $0x2c4] sm:$0xf]  ;;  %v1844_v29 = vld [vmem:[%s2024_s7 + $0x234] sm:$0xf] }
  0x67   : > { %1054 = vmatpush.bf16.msrb.mxu1 %v1716_v16  ;;  %v1549_v16 = vld [vmem:[%s2024_s7 + $0x158] sm:$0xf0]  ;;  %v1672_v25 = vor.u32 %v1846_v19, %v1669_v20  ;;  %v1814_v26 = vld [vmem:[%s2024_s7 + $0x144] sm:$0xf]  ;;  %v1541_v27 = vld [vmem:[%s2024_s7 + $0x148] sm:$0xf0] }
  0x68   : > { %1072 = vmatpush.bf16.msrb.mxu2 %v1400_v4  ;;  %v2210_v4 = vor.u32 %v1773_v48, %v1371_v47  ;;  %v1552_v22 = vor.u32 %v1816_v15, %v1549_v16  ;;  %v1661_v30 = vld [vmem:[%s2024_s7 + $0x238] sm:$0xf0]  ;;  %v1860_v34 = vld [vmem:[%s2024_s7 + $0x2b4] sm:$0xf]  ;;  %v1842_v43 = vld [vmem:[%s2024_s7 + $0x224] sm:$0xf] }
  0x69   : > { %1090 = vmatpush.bf16.msrb.mxu3 %v1464_v8  ;;  %v2215_v8 = vor.u32 %v1770_v49, %v1373_v51  ;;  %v331_v31 = vld [vmem:[%s2026_s8 + $0x40] sm:$0xff]  ;;  %v1653_v44 = vld [vmem:[%s2024_s7 + $0x228] sm:$0xf0]  ;;  %v1858_v48 = vld [vmem:[%s2024_s7 + $0x2a4] sm:$0xf] }
  0x6a   : > { %1037 = vmatpush.bf16.msrb.mxu0 %v1644_v28  ;;  %v1830_v28 = vld [vmem:[%s2024_s7 + $0x1c4] sm:$0xf]  ;;  %v1725_v35 = vld [vmem:[%s2024_s7 + $0x2b8] sm:$0xf0]  ;;  %v1828_v40 = vld [vmem:[%s2024_s7 + $0x1b4] sm:$0xf]  ;;  %v453_v41 = vunpack.c.l.b16 %v331_v31  ;;  %v454_v45 = vunpack.c.h.b16 %v331_v31  ;;  %v1656_v51 = vor.u32 %v1842_v43, %v1653_v44 }
  0x6b   : > { %1055 = vmatpush.bf16.msrb.mxu1 %v1708_v32  ;;  %v1533_v39 = vld [vmem:[%s2024_s7 + $0x138] sm:$0xf0]  ;;  %v1717_v49 = vld [vmem:[%s2024_s7 + $0x2a8] sm:$0xf0]  ;;  %v1826_v55 = vld [vmem:[%s2024_s7 + $0x1a4] sm:$0xf] }
  0x6c   : > { %1073 = vmatpush.bf16.msrb.mxu2 %v1392_v17  ;;  %v1832_v17 = vld [vmem:[%s2024_s7 + $0x1d4] sm:$0xf]  ;;  %v1525_v54 = vld [vmem:[%s2024_s7 + $0x128] sm:$0xf0]  ;;  %v1645_v1 = vld [vmem:[%s2024_s7 + $0x218] sm:$0xf0]  ;;  %v466_v2 = vpack.c.b16 %v454_v45, %v454_v45  ;;  %v1720_v5 = vor.u32 %v1858_v48, %v1717_v49 }
  0x6d   : > { %1091 = vmatpush.bf16.msrb.mxu3 %v1456_v21  ;;  %v1744_v21 = vor.u32 %v1864_v11, %v1741_v12  ;;  %v1616_v24 = vor.u32 %v1832_v17, %v1613_v18  ;;  %v1840_v61 = vld [vmem:[%s2024_s7 + $0x214] sm:$0xf]  ;;  %v1581_v15 = vld [vmem:[%s2024_s7 + $0x198] sm:$0xf0]  ;;  %v1838_v16 = vld [vmem:[%s2024_s7 + $0x204] sm:$0xf] }
  0x6e   : > { %1038 = vmatpush.bf16.msrb.mxu0 %v1636_v46  ;;  %v1728_v46 = vor.u32 %v1860_v34, %v1725_v35  ;;  %v1856_v7 = vld [vmem:[%s2024_s7 + $0x294] sm:$0xf]  ;;  %v1648_v11 = vor.u32 %v1840_v61, %v1645_v1  ;;  %v1637_v17 = vld [vmem:[%s2024_s7 + $0x208] sm:$0xf0]  ;;  %v1854_v20 = vld [vmem:[%s2024_s7 + $0x284] sm:$0xf] }
  0x6f   : > { %1056 = vmatpush.bf16.msrb.mxu1 %v1700_v50  ;;  %v1808_v12 = vld [vmem:[%s2024_s7 + $0x114] sm:$0xf]  ;;  %v317_v44 = vld [vmem:[#allocation2 + $0x28] sm:$0xff] }
  0x70   : > { %1074 = vmatpush.bf16.msrb.mxu2 %v1384_v33  ;;  %v1544_v33 = vor.u32 %v1814_v26, %v1541_v27 }
  0x71   : > { %1092 = vmatpush.bf16.msrb.mxu3 %v1448_v37  ;;  %1039 = vmatmul.bf16.vlgmr.msrb.gmra.mxu0 %v2210_v4  ;;  %v1664_v37 = vor.u32 %v1844_v29, %v1661_v30 }
  0x72   : > { %1103 = vmatpush.bf16.msra.mxu0 %v1568_v53  ;;  %1057 = vmatmul.bf16.vlgmr.msrb.gmra.mxu1 %v2215_v8  ;;  %v1810_v53 = vld [vmem:[%s2024_s7 + $0x124] sm:$0xf] }
  0x73   : > { %1121 = vmatpush.bf16.msra.mxu1 %v1632_v56  ;;  %1075 = vmatmul.bf16.vlgmr.msrb.gmra.mxu2 %v2108_v58  ;;  %v1733_v58 = vld [vmem:[%s2024_s7 + $0x2c8] sm:$0xf0]  ;;  %v465_v56 = vpack.c.b16 %v453_v41, %v453_v41  ;;  %v1528_v6 = vor.u32 %v1810_v53, %v1525_v54 }
  0x74   : > { %1139 = vmatpush.bf16.msra.mxu2 %v1696_v38  ;;  %1093 = vmatmul.bf16.vlgmr.msrb.gmra.mxu3 %v2113_v63  ;;  %v1605_v63 = vld [vmem:[%s2024_s7 + $0x1c8] sm:$0xf0]  ;;  %v1736_v32 = vor.u32 %v1862_v23, %v1733_v58  ;;  %v1812_v38 = vld [vmem:[%s2024_s7 + $0x134] sm:$0xf]  ;;  %v1806_v23 = vld [vmem:[%s2024_s7 + $0x104] sm:$0xf] }
  0x75   : > { %1157 = vmatpush.bf16.msra.mxu3 %v1760_v42  ;;  %v1608_v36 = vor.u32 %v1830_v28, %v1605_v63  ;;  %v1597_v42 = vld [vmem:[%s2024_s7 + $0x1b8] sm:$0xf0]  ;;  %v1536_v47 = vor.u32 %v1812_v38, %v1533_v39  ;;  %v1509_v58 = vld [vmem:[%s2024_s7 + $0x108] sm:$0xf0] }
  0x76   : > { %1104 = vmatpush.bf16.msra.mxu0 %v1560_v10  ;;  %v1600_v50 = vor.u32 %v1828_v40, %v1597_v42  ;;  %v1512_v27 = vor.u32 %v1806_v23, %v1509_v58 }
  0x77   : > { %1122 = vmatpush.bf16.msra.mxu1 %v1624_v13  ;;  %v1517_v13 = vld [vmem:[%s2024_s7 + $0x118] sm:$0xf0] }
  0x78   : > { %1140 = vmatpush.bf16.msra.mxu2 %v1688_v60  ;;  %v1589_v60 = vld [vmem:[%s2024_s7 + $0x1a8] sm:$0xf0]  ;;  %v1520_v19 = vor.u32 %v1808_v12, %v1517_v13 }
  0x79   : > { %1158 = vmatpush.bf16.msra.mxu3 %v1752_v9  ;;  %v1709_v9 = vld [vmem:[%s2024_s7 + $0x298] sm:$0xf0]  ;;  %v1592_v10 = vor.u32 %v1826_v55, %v1589_v60 }
  0x7a   : > { %1105 = vmatpush.bf16.msra.mxu0 %v1552_v22  ;;  %v1712_v18 = vor.u32 %v1856_v7, %v1709_v9  ;;  %v1640_v22 = vor.u32 %v1838_v16, %v1637_v17 }
  0x7b   : > { %1123 = vmatpush.bf16.msra.mxu1 %v1616_v24  ;;  %v1822_v24 = vld [vmem:[%s2024_s7 + $0x184] sm:$0xf] }
  0x7c   : > { %1141 = vmatpush.bf16.msra.mxu2 %v1680_v14  ;;  %v1824_v14 = vld [vmem:[%s2024_s7 + $0x194] sm:$0xf] }
  0x7d   : > { %1159 = vmatpush.bf16.msra.mxu3 %v1744_v21  ;;  %v1584_v21 = vor.u32 %v1824_v14, %v1581_v15 }
  0x7e   : > { %1106 = vmatpush.bf16.msra.mxu0 %v1544_v33 }
  0x7f   : > { %1124 = vmatpush.bf16.msra.mxu1 %v1608_v36 }
  0x80   : > { %1142 = vmatpush.bf16.msra.mxu2 %v1672_v25  ;;  %v1573_v25 = vld [vmem:[%s2024_s7 + $0x188] sm:$0xf0] }
  0x81   : > { %1160 = vmatpush.bf16.msra.mxu3 %v1736_v32  ;;  %1044 = vmatmul.bf16.gmra.mxu0 %v465_v56 }
  0x82   : > { %1107 = vmatpush.bf16.msra.mxu0 %v1536_v47  ;;  %1062 = vmatmul.bf16.gmra.mxu1 %v466_v2 }
  0x83   : > { %1125 = vmatpush.bf16.msra.mxu1 %v1600_v50  ;;  %1080 = vmatmul.bf16.gmra.mxu2 %v2154_v52  ;;  %v1701_v52 = vld [vmem:[%s2024_s7 + $0x288] sm:$0xf0] }
  0x84   : > { %1143 = vmatpush.bf16.msra.mxu2 %v1664_v37  ;;  %1098 = vmatmul.bf16.gmra.mxu3 %v2159_v57  ;;  %v1704_v26 = vor.u32 %v1854_v20, %v1701_v52  ;;  %v1576_v57 = vor.u32 %v1822_v24, %v1573_v25 }
  0x85   : > { %1161 = vmatpush.bf16.msra.mxu3 %v1728_v46 }
  0x86   : > { %1108 = vmatpush.bf16.msra.mxu0 %v1528_v6 }
  0x87   : > { %1126 = vmatpush.bf16.msra.mxu1 %v1592_v10 }
  0x88   : > { %1144 = vmatpush.bf16.msra.mxu2 %v1656_v51 }
  0x89   : > { %1162 = vmatpush.bf16.msra.mxu3 %v1720_v5 }
  0x8a   : > { %1109 = vmatpush.bf16.msra.mxu0 %v1520_v19 }
  0x8b   : > { %1127 = vmatpush.bf16.msra.mxu1 %v1584_v21 }
  0x8c   : > { %1145 = vmatpush.bf16.msra.mxu2 %v1648_v11  ;;  %v321_v11 = vld [vmem:[#allocation2 + $0x18] sm:$0xff] }
  0x8d   : > { %1163 = vmatpush.bf16.msra.mxu3 %v1712_v18 }
  0x8e   : > { %1110 = vmatpush.bf16.msra.mxu0 %v1512_v27  ;;  %v318_v27 = vld [vmem:[#allocation2 + $0x10] sm:$0xff] }
  0x8f   : > { %1128 = vmatpush.bf16.msra.mxu1 %v1576_v57 }
  0x90   : > { %1146 = vmatpush.bf16.msra.mxu2 %v1640_v22 }
  0x91   : > { %1164 = vmatpush.bf16.msra.mxu3 %v1704_v26  ;;  %1111 = vmatmul.bf16.vlgmr.msra.gmra.mxu0 %v2115_v0 }
  0x92   : > { %1129 = vmatmul.bf16.vlgmr.msra.gmra.mxu1 %v2119_v3 }
  0x93   : > { %1147 = vmatmul.bf16.vlgmr.msra.gmra.mxu2 %v2210_v4 }
  0x94   : > { %1165 = vmatmul.bf16.vlgmr.msra.gmra.mxu3 %v2215_v8 }
  0xa1   : > { %1116 = vmatmul.bf16.gmra.mxu0 %v2161_v59 }
  0xa2   : > { %1134 = vmatmul.bf16.gmra.mxu1 %v2165_v62 }
  0xa3   : > { %1152 = vmatmul.bf16.gmra.mxu2 %v465_v56  ;;  %v319_v56 = vld [vmem:[#allocation2 + $0x8] sm:$0xff] }
  0xa4   : > { %1170 = vmatmul.bf16.gmra.mxu3 %v466_v2 }
  0xce   : > { %v968_v28 = vpop.f32.mrf.mxu0 }
  0xcf   : > { %v986_v63 = vpop.f32.mrf.mxu1 }
  0xd0   : > { %v987_v3 = vadd.f32 %v986_v63, %v968_v28 }
  0xd6   : > { %v1004_v29 = vpop.f32.mrf.mxu2  ;;  %v970_v31 = vpop.f32.mrf.mxu0 }
  0xd7   : > { %v1022_v30 = vpop.f32.mrf.mxu3  ;;  %v988_v32 = vpop.f32.mrf.mxu1  ;;  %v1005_v59 = vadd.f32 %v1004_v29, %v987_v3 }
  0xd8   : > { %v989_v41 = vadd.f32 %v988_v32, %v970_v31 }
  0xd9   : > { %v1023_v39 = vadd.f32 %v1022_v30, %v1005_v59 }
  0xde   : > { %v1006_v33 = vpop.f32.mrf.mxu2  ;;  %v973_v34 = vpop.f32.mrf.mxu0 }
  0xdf   : > { %v1024_v0 = vpop.f32.mrf.mxu3  ;;  %v991_v4 = vpop.f32.mrf.mxu1  ;;  %v1007_v45 = vadd.f32 %v1006_v33, %v989_v41 }
  0xe0   : > { %v992_v50 = vadd.f32 %v991_v4, %v973_v34  ;;  %v320_v4 = vld [vmem:[#allocation2] sm:$0xff] }
  0xe1   : > { %v1025_v49 = vadd.f32 %v1024_v0, %v1007_v45 }
  0xe6   : > { %v1009_v35 = vpop.f32.mrf.mxu2  ;;  %v975_v8 = vpop.f32.mrf.mxu0 }
  0xe7   : > { %v1027_v36 = vpop.f32.mrf.mxu3  ;;  %v993_v37 = vpop.f32.mrf.mxu1  ;;  %v1010_v60 = vadd.f32 %v1009_v35, %v992_v50 }
  0xe9   : > { %v1028_v5 = vadd.f32 %v1027_v36, %v1010_v60 }
  0xee   : > { %v1011_v38 = vpop.f32.mrf.mxu2  ;;  %v1040_v40 = vpop.f32.mrf.mxu0 }
  0xef   : > { %v1029_v62 = vpop.f32.mrf.mxu3  ;;  %v1041_v42 = vadd.f32 %v1040_v40, %v1023_v39  ;;  %v1058_v43 = vpop.f32.mrf.mxu1  ;;  %v322_v40 = vld [vmem:[#allocation2 + $0x20] sm:$0xff] }
  0xf1   : > { %v1059_v46 = vadd.f32 %v1058_v43, %v1041_v42 }
  0xf3   : > { %v1175_v47 = vadd.f32 %v1059_v46, %v317_v44 }
  0xf5   : > { %1181 = vst [vmem:[#allocation2 + $0x28] sm:$0xff] %v1175_v47 }
  0xf6   : > { %v1076_v48 = vpop.f32.mrf.mxu2  ;;  %v1042_v53 = vpop.f32.mrf.mxu0 }
  0xf7   : > { %v1094_v51 = vpop.f32.mrf.mxu3  ;;  %v1043_v54 = vadd.f32 %v1042_v53, %v1025_v49  ;;  %v1060_v55 = vpop.f32.mrf.mxu1 }
  0xf8   : > { %v1095_v19 = vadd.f32 %v1094_v51, %v1076_v48 }
  0xf9   : > { %v1061_v61 = vadd.f32 %v1060_v55, %v1043_v54 }
  0xfb   : > { %v1177_v1 = vadd.f32 %v1061_v61, %v319_v56 }
  0xfd   : > { %1183 = vst [vmem:[#allocation2 + $0x8] sm:$0xff] %v1177_v1 }
  0xfe   : > { %v1078_v2 = vpop.f32.mrf.mxu2  ;;  %v1045_v7 = vpop.f32.mrf.mxu0 }
  0xff   : > { %v1096_v6 = vpop.f32.mrf.mxu3  ;;  %v1046_v9 = vadd.f32 %v1045_v7, %v1028_v5  ;;  %v1063_v10 = vpop.f32.mrf.mxu1 }
 0x100   : > { %v1097_v24 = vadd.f32 %v1096_v6, %v1078_v2 }
 0x101   : > { %v1064_v12 = vadd.f32 %v1063_v10, %v1046_v9 }
 0x103   : > { %v1179_v13 = vadd.f32 %v1064_v12, %v321_v11 }
 0x105   : > { %1185 = vst [vmem:[#allocation2 + $0x18] sm:$0xff] %v1179_v13 }
 0x106   : > { %v1081_v14 = vpop.f32.mrf.mxu2  ;;  %v1047_v16 = vpop.f32.mrf.mxu0 }
 0x107   : > { %v1099_v15 = vpop.f32.mrf.mxu3  ;;  %v1065_v17 = vpop.f32.mrf.mxu1 }
 0x108   : > { %v1100_v33 = vadd.f32 %v1099_v15, %v1081_v14 }
 0x10e   : > { %v1083_v18 = vpop.f32.mrf.mxu2  ;;  %v1112_v21 = vpop.f32.mrf.mxu0 }
 0x10f   : > { %v1101_v20 = vpop.f32.mrf.mxu3  ;;  %v1113_v22 = vadd.f32 %v1112_v21, %v1095_v19  ;;  %v1130_v52 = vpop.f32.mrf.mxu1 }
 0x111   : > { %v1131_v23 = vadd.f32 %v1130_v52, %v1113_v22 }
 0x116   : > { %v1148_v58 = vpop.f32.mrf.mxu2  ;;  %v1114_v57 = vpop.f32.mrf.mxu0 }
 0x117   : > { %v1149_v25 = vadd.f32 %v1148_v58, %v1131_v23  ;;  %v1166_v26 = vpop.f32.mrf.mxu3  ;;  %v1115_v63 = vadd.f32 %v1114_v57, %v1097_v24  ;;  %v1132_v29 = vpop.f32.mrf.mxu1 }
 0x119   : > { %v1167_v28 = vadd.f32 %v1166_v26, %v1149_v25  ;;  %v1133_v31 = vadd.f32 %v1132_v29, %v1115_v63 }
 0x11b   : > { %v1176_v30 = vadd.f32 %v1167_v28, %v318_v27 }
 0x11d   : > { %1182 = vst [vmem:[#allocation2 + $0x10] sm:$0xff] %v1176_v30 }
 0x11e   : > { %v1150_v32 = vpop.f32.mrf.mxu2  ;;  %v1117_v35 = vpop.f32.mrf.mxu0 }
 0x11f   : > { %v1151_v0 = vadd.f32 %v1150_v32, %v1133_v31  ;;  %v1168_v34 = vpop.f32.mrf.mxu3  ;;  %v1118_v36 = vadd.f32 %v1117_v35, %v1100_v33  ;;  %v1135_v8 = vpop.f32.mrf.mxu1 }
 0x121   : > { %v1169_v3 = vadd.f32 %v1168_v34, %v1151_v0  ;;  %v1136_v59 = vadd.f32 %v1135_v8, %v1118_v36 }
 0x123   : > { %v1178_v37 = vadd.f32 %v1169_v3, %v320_v4 }
 0x125   : > { %1184 = vst [vmem:[#allocation2] sm:$0xff] %v1178_v37 }
 0x126   : > { %v1153_v38 = vpop.f32.mrf.mxu2  ;;  %v1119_v41 = vpop.f32.mrf.mxu0 }
 0x127   : > { %v1154_v39 = vadd.f32 %v1153_v38, %v1136_v59  ;;  %v1171_v62 = vpop.f32.mrf.mxu3  ;;  %v1137_v43 = vpop.f32.mrf.mxu1 }
 0x129   : > { %v1172_v42 = vadd.f32 %v1171_v62, %v1154_v39 }
 0x12b   : > { %v1180_v44 = vadd.f32 %v1172_v42, %v322_v40  ;;  %1190 = sbr.rel (%p1761_p11) target bundleno = 317 (0x13d), region = 63 }
 0x12d   : > { %1186 = vst [vmem:[#allocation2 + $0x20] sm:$0xff] %v1180_v44 }
 0x12e   : > { %v1155_v45 = vpop.f32.mrf.mxu2 }
 0x12f   : > { %v1173_v46 = vpop.f32.mrf.mxu3 }
 0x130   : > { %v1191_v47 = vld [vmem:[#allocation2 + $0x28] sm:$0xff]  ;;  %v1197_v48 = vld [vmem:[%s2315_s2] sm:$0x3]  ;;  %v1192_v49 = vld [vmem:[#allocation2 + $0x10] sm:$0xff] }
 0x131   : > { %v1199_v50 = vperm.slane %v1197_v48, 0  ;;  %v1200_v51 = vperm.slane %v1197_v48, 1  ;;  %v1193_v53 = vld [vmem:[#allocation2 + $0x8] sm:$0xff]  ;;  %v1194_v54 = vld [vmem:[#allocation2] sm:$0xff]  ;;  %v1195_v55 = vld [vmem:[#allocation2 + $0x18] sm:$0xff] }
 0x133   : > { %v1203_v60 = vadd.f32 %v1199_v50, %v1191_v47  ;;  %v1204_v61 = vadd.f32 %v1200_v51, %v1192_v49  ;;  %v1205_v1 = vadd.f32 %v1199_v50, %v1193_v53  ;;  %v1206_v2 = vadd.f32 %v1200_v51, %v1194_v54 }
 0x134   : > { %v1196_v56 = vld [vmem:[#allocation2 + $0x20] sm:$0xff]  ;;  %v1207_v5 = vadd.f32 %v1199_v50, %v1195_v55 }
 0x135   : > { %v1208_v6 = vadd.f32 %v1200_v51, %v1196_v56  ;;  %v1209_v7 = vmax.f32 %v1203_v60, 0.0  ;;  %v1210_v9 = vmax.f32 %v1204_v61, 0.0  ;;  %v1211_v10 = vmax.f32 %v1205_v1, 0.0 }
 0x136   : > { %v1212_v11 = vmax.f32 %v1206_v2, 0.0  ;;  %v1213_v12 = vmax.f32 %v1207_v5, 0.0 }
 0x137   : > { %1215 = vst [vmem:[%s2316_s3] sm:$0xff] %v1209_v7  ;;  %v1214_v13 = vmax.f32 %v1208_v6, 0.0 }
 0x138   : > { %1216 = vst [vmem:[%s2316_s3 + $0x8] sm:$0xff] %v1210_v9 }
 0x139   : > { %1217 = vst [vmem:[%s2316_s3 + $0x10] sm:$0xff] %v1211_v10 }
 0x13a   : > { %1218 = vst [vmem:[%s2316_s3 + $0x18] sm:$0xff] %v1212_v11 }
 0x13b   : > { %1219 = vst [vmem:[%s2316_s3 + $0x20] sm:$0xff] %v1213_v12 }
 0x13c   : > { %1220 = vst [vmem:[%s2316_s3 + $0x28] sm:$0xff] %v1214_v13 }
 0x13d PF: > { %s13_s16 = sadd.s32 1, %s1951_s16   ;;  %s2317_s12 = smov %s1939_s13 }
 0x13e   : > { %p10_p12 = scmp.ge.s32.totalorder %s13_s16, 5   ;;  %s2318_s13 = smov %s2009_s20 }
 0x13f   : > { %s2319_s14 = smov %s1947_s15  ;;  %s2320_s15 = smov %s2322_s17 }
 0x140   :  { %12 = sbr.rel (!%p10_p12) target bundleno = 3 (0x3), region = 104 }

// kernel: forward.13
= control target key start
LH: loop header
LB: loop body
LE: loop exit
PB: predicated region body
PF: predicated region fallthrough
CT: control target
= control target key end

     0   :  { %8 = vsyncpa [#allocation4], 0  ;;  %s4661_s0 = inlined_call_operand.vmem [shape: bf16[8,9216], index: 0, kind: input, shape index: {}]   ;;  %s4662_s1 = inlined_call_operand.hbm [shape: bf16[9216,4096], index: 1, kind: input, shape index: {}]   ;;  %s4663_s2 = inlined_call_operand.vmem [shape: f32[1,4096], index: 2, kind: input, shape index: {}]   ;;  %s4664_s3 = inlined_call_operand.vmem [shape: f32[8,4096], index: 3, kind: output, shape index: {}]  }
   0x1   :  { %10 = vsyncpa [#allocation4 + $0x1], 0  ;;  %s3945_s12 = smov 0   ;;  %s3947_s13 = smov 0  }
   0x2   :  { %s3949_s14 = smov 0   ;;  %s3951_s15 = smov 0  }
   0x3   :  { %s3953_s16 = smov 0   ;;  %s3955_s17 = smov 0  }
   0x4   :  { %s3957_s18 = smov 0   ;;  %s3959_s19 = smov 0  }
   0x5 LB: > { %s2447_s20 = sadd.s32 4294967295, %s3919_s19   ;;  %s28_s21 = sadd.s32 1, %s3911_s17  ;;  %s3919_s19 = sphi %s3959_s19, %s16_s19   ;;  %s3915_s18 = sphi %s3957_s18, %s4676_s18   ;;  %s3911_s17 = sphi %s3955_s17, %s4675_s17   ;;  %s3907_s16 = sphi %s3953_s16, %s4674_s16   ;;  %s3903_s15 = sphi %s3951_s15, %s4673_s15   ;;  %s3899_s14 = sphi %s3949_s14, %s4672_s14   ;;  %s3895_s13 = sphi %s3947_s13, %s4671_s13   ;;  %s3891_s12 = sphi %s3945_s12, %s4670_s12  }
   0x6   : > { %p29_p0 = scmp.ge.s32.totalorder %s28_s21, 9  ;;  %s31_s22 = sadd.s32 1, %s3915_s18 }
   0x7   : > { %s72_s23 = sadd.s32 1, %s3899_s14  ;;  %p79_p1 = scmp.ne.s32.totalorder %s3899_s14, %s3895_s13 }
   0x8   : > { %s4678_s21 = smov (%p29_p0, %s28_s21), 0  ;;  %s4680_s22 = smov (!%p29_p0, %s31_s22), %s3915_s18 }
   0x9   : > { %s67_s24 = ssub.s32 %s3911_s17, %s4678_s21  ;;  %p80_p2 = scmp.eq.s32.totalorder %s3919_s19, 0 }
   0xa   : > { %p33_p3 = scmp.ge.s32.totalorder %s4680_s22, 8  ;;  %p85_p4 = scmp.ne.s32.totalorder %s3895_s13, %s3891_s12 }
   0xb   : > { %p3996_p5 = por %p80_p2, %p79_p1  ;;  %p86_p6 = scmp.eq.s32.totalorder %s2447_s20, 0 }
   0xc   : > { %s4682_s22 = smov (%p33_p3, %s4680_s22), 0  ;;  %p3754_p8 = scmp.lt.s32.totalorder %s3919_s19, 72 }
   0xd   : > { %4667 = sst [smem:[#allocation6_spill]] %s4682_s22  ;;  %p4002_p7 = por %p86_p6, %p85_p4 }
   0xe   : > { %s68_s27 = ssub.s32 %s3915_s18, %s4682_s22  ;;  %s176_s29 = sand.u32 1, %s3899_s14  }
   0xf   : > { %s69_s28 = sor.u32 %s68_s27, %s67_s24  ;;  %s2451_s30 = sshll.u32 %s176_s29, 11 }
  0x10   : > { %p70_p9 = scmp.eq.s32.totalorder %s69_s28, 0  ;;  %s2453_s4 = sshll.u32 %s3915_s18, 2 }
  0x11   : > { %s3491_s6 = sshll.u32 %s3911_s17, 12  ;;  %s180_s8 = scalar_lea.vmem [#allocation3], %s2451_s30 }
  0x12   : > { %s4012_s5 = scalar_select %p70_p9, %s3899_s14, %s72_s23  }
  0x13   : > { %s186_s7 = sadd.s32 %s3491_s6, %s2453_s4  ;;  %s191_s9 = sshll.u32 %s180_s8, 4  ;;  %s192_s9 = int_to_ptr.vmem [resolvable:$true] %s191_s9 }
  0x14   : > { %s2455_s10 = sshll.u32 %s186_s7, 2  ;;  %p3751_p10 = pnand %p3754_p8, %p3996_p5 }
  0x15   : > { %s188_s20 = scalar_lea.hbm %s4662_s1, %s2455_s10  ;;  %s177_s27 = scalar_lea.sflag [#allocation4], %s176_s29 }
  0x16   : > { %s189_s24 = sshll.u32 %s188_s20, 4  ;;  %s3921_s23 = smov 2048   ;;  %s190_s24 = int_to_ptr.hbm [resolvable:$true] %s189_s24 }
  0x17   : > { %s3922_s28 = smov 256   ;;  %s3923_s22 = smov 16  }
  0x18   : > { %3753 = dma.hbm_to_vmem [thread:$0]  (!%p3751_p10), %s190_s24, 32768, %s192_s9, %s177_s27, %s3921_s23, %s3922_s28, %s3923_s22  }
  0x19   : > { %p2456_p11 = scmp.ge.s32.totalorder %s3919_s19, 1  ;;  %p207_p12 = scmp.lt.s32.totalorder %s3919_s19, 73 }
  0x1b   : > { %p208_p13 = pnand %p2456_p11, %p207_p12 }
  0x1c   : > { %s213_s30 = sand.u32 (!%p208_p13), 1, %s3895_s13  }
  0x1d   : > { %211 = sbr.rel (%p208_p13) target bundleno = 464 (0x1d0), region = 32  ;;  %s2457_s4 = sshll.u32 (!%p208_p13), %s213_s30, 11 }
  0x1e   : > { %s214_s6 = scalar_lea.sflag (!%p208_p13), [#allocation4], %s213_s30  ;;  %s4025_s7 = scalar_lea.vmem (!%p208_p13), [#allocation3], %s2457_s4 }
  0x22   : > { %3886 = dma.done.wait (%p4002_p7), %s214_s6, 32768  }
  0x23   : > { %3888 = vsyncadd (%p4002_p7), %s214_s6, 4294934528  ;;  %s2458_s25 = sshll.u32 %s3903_s15, 3  ;;  %s2460_s22 = sshll.u32 %s3907_s16, 2 }
  0x24   : > { %p261_p0 = scmp.lt.s32.totalorder %s2458_s25, 71  ;;  %p271_p1 = scmp.lt.s32.totalorder %s2460_s22, 31 }
  0x25   : > { %p2463_p2 = scmp.ne.s32.totalorder %s3903_s15, 0 }
  0x26   : > { %s4684_s25 = smov (!%p261_p0, %s2458_s25), 71  ;;  %s4686_s22 = smov (!%p271_p1, %s2460_s22), 31 }
  0x27   : > { %s2459_s29 = sshll.u32 %s4684_s25, 2  ;;  %s273_s12 = scalar_lea.vmem %s4663_s2, %s4686_s22 }
  0x28   : > { %s4038_s10 = scalar_lea.vmem %s4661_s0, %s2459_s29  ;;  %s2462_s20 = sshll.u32 %s4686_s22, 3 }
  0x29   : > { %s4048_s27 = scalar_lea.vmem %s4664_s3, %s2462_s20  ;;  %288 = sbr.rel (%p2463_p2) target bundleno = 51 (0x33), region = 40 }
  0x2e   : > { %v3924_v0 = vmov 0.0  }
  0x2f   : > { %289 = vst [vmem:[#allocation2 + $0x10] sm:$0xff] %v3924_v0 }
  0x30   : > { %290 = vst [vmem:[#allocation2] sm:$0xff] %v3924_v0 }
  0x31   : > { %291 = vst [vmem:[#allocation2 + $0x18] sm:$0xff] %v3924_v0 }
  0x32   : > { %292 = vst [vmem:[#allocation2 + $0x8] sm:$0xff] %v3924_v0 }
  0x33 PF: > { %v2578_v1 = vld [vmem:[%s4025_s7 + $0xe0] sm:$0xf]  ;;  %v3522_v2 = vld [vmem:[%s4025_s7 + $0xec] sm:$0xf0]  ;;  %p3488_p3 = scmp.ne.s32.totalorder %s3903_s15, 8 }
  0x34   : > { %v2706_v3 = vld [vmem:[%s4025_s7 + $0x1e0] sm:$0xf]  ;;  %v2579_v4 = vor.u32 %v3522_v2, %v2578_v1  ;;  %v3554_v5 = vld [vmem:[%s4025_s7 + $0x1ec] sm:$0xf0] }
  0x35   : > { %v2834_v6 = vld [vmem:[%s4025_s7 + $0x2e0] sm:$0xf]  ;;  %v3586_v7 = vld [vmem:[%s4025_s7 + $0x2ec] sm:$0xf0]  ;;  %v2707_v8 = vor.u32 %v3554_v5, %v2706_v3 }
  0x36   : > { %v2835_v9 = vor.u32 %v3586_v7, %v2834_v6  ;;  %v2962_v10 = vld [vmem:[%s4025_s7 + $0x3e0] sm:$0xf]  ;;  %v3618_v11 = vld [vmem:[%s4025_s7 + $0x3ec] sm:$0xf0]  ;;  %1865 = vmatpush.bf16.msra.mxu0 %v2579_v4 }
  0x37   : > { %v2562_v12 = vld [vmem:[%s4025_s7 + $0xc0] sm:$0xf]  ;;  %v2963_v13 = vor.u32 %v3618_v11, %v2962_v10  ;;  %v3518_v14 = vld [vmem:[%s4025_s7 + $0xcc] sm:$0xf0]  ;;  %1878 = vmatpush.bf16.msra.mxu1 %v2707_v8 }
  0x38   : > { %v2690_v15 = vld [vmem:[%s4025_s7 + $0x1c0] sm:$0xf]  ;;  %v3550_v16 = vld [vmem:[%s4025_s7 + $0x1cc] sm:$0xf0]  ;;  %1891 = vmatpush.bf16.msra.mxu2 %v2835_v9  ;;  %v2563_v17 = vor.u32 %v3518_v14, %v2562_v12 }
  0x39   : > { %v2691_v18 = vor.u32 %v3550_v16, %v2690_v15  ;;  %v2818_v19 = vld [vmem:[%s4025_s7 + $0x2c0] sm:$0xf]  ;;  %v3582_v20 = vld [vmem:[%s4025_s7 + $0x2cc] sm:$0xf0]  ;;  %1904 = vmatpush.bf16.msra.mxu3 %v2963_v13 }
  0x3a   : > { %v2946_v21 = vld [vmem:[%s4025_s7 + $0x3c0] sm:$0xf]  ;;  %v2819_v22 = vor.u32 %v3582_v20, %v2818_v19  ;;  %v3614_v23 = vld [vmem:[%s4025_s7 + $0x3cc] sm:$0xf0]  ;;  %1866 = vmatpush.bf16.msra.mxu0 %v2563_v17 }
  0x3b   : > { %v2546_v24 = vld [vmem:[%s4025_s7 + $0xa0] sm:$0xf]  ;;  %v3514_v25 = vld [vmem:[%s4025_s7 + $0xac] sm:$0xf0]  ;;  %v2947_v26 = vor.u32 %v3614_v23, %v2946_v21  ;;  %1879 = vmatpush.bf16.msra.mxu1 %v2691_v18 }
  0x3c   : > { %v2674_v27 = vld [vmem:[%s4025_s7 + $0x1a0] sm:$0xf]  ;;  %v3546_v28 = vld [vmem:[%s4025_s7 + $0x1ac] sm:$0xf0]  ;;  %v2547_v30 = vor.u32 %v3514_v25, %v2546_v24  ;;  %1892 = vmatpush.bf16.msra.mxu2 %v2819_v22 }
  0x3d   : > { %v2802_v29 = vld [vmem:[%s4025_s7 + $0x2a0] sm:$0xf]  ;;  %v3578_v31 = vld [vmem:[%s4025_s7 + $0x2ac] sm:$0xf0]  ;;  %v2675_v34 = vor.u32 %v3546_v28, %v2674_v27  ;;  %1905 = vmatpush.bf16.msra.mxu3 %v2947_v26 }
  0x3e   : > { %v2930_v32 = vld [vmem:[%s4025_s7 + $0x3a0] sm:$0xf]  ;;  %v3610_v33 = vld [vmem:[%s4025_s7 + $0x3ac] sm:$0xf0]  ;;  %v2803_v35 = vor.u32 %v3578_v31, %v2802_v29  ;;  %1867 = vmatpush.bf16.msra.mxu0 %v2547_v30 }
  0x3f   : > { %v2530_v36 = vld [vmem:[%s4025_s7 + $0x80] sm:$0xf]  ;;  %v3510_v37 = vld [vmem:[%s4025_s7 + $0x8c] sm:$0xf0]  ;;  %v2931_v39 = vor.u32 %v3610_v33, %v2930_v32  ;;  %1880 = vmatpush.bf16.msra.mxu1 %v2675_v34 }
  0x40   : > { %v2658_v38 = vld [vmem:[%s4025_s7 + $0x180] sm:$0xf]  ;;  %v3542_v40 = vld [vmem:[%s4025_s7 + $0x18c] sm:$0xf0]  ;;  %v2531_v45 = vor.u32 %v3510_v37, %v2530_v36  ;;  %1893 = vmatpush.bf16.msra.mxu2 %v2803_v35 }
  0x41   : > { %v2786_v41 = vld [vmem:[%s4025_s7 + $0x280] sm:$0xf]  ;;  %v3574_v42 = vld [vmem:[%s4025_s7 + $0x28c] sm:$0xf0]  ;;  %v2659_v46 = vor.u32 %v3542_v40, %v2658_v38  ;;  %1906 = vmatpush.bf16.msra.mxu3 %v2931_v39 }
  0x42   : > { %v2914_v43 = vld [vmem:[%s4025_s7 + $0x380] sm:$0xf]  ;;  %v3606_v44 = vld [vmem:[%s4025_s7 + $0x38c] sm:$0xf0]  ;;  %v2787_v47 = vor.u32 %v3574_v42, %v2786_v41  ;;  %1868 = vmatpush.bf16.msra.mxu0 %v2531_v45 }
  0x43   : > { %v2514_v48 = vld [vmem:[%s4025_s7 + $0x60] sm:$0xf]  ;;  %v3506_v49 = vld [vmem:[%s4025_s7 + $0x6c] sm:$0xf0]  ;;  %v2915_v51 = vor.u32 %v3606_v44, %v2914_v43  ;;  %1881 = vmatpush.bf16.msra.mxu1 %v2659_v46 }
  0x44   : > { %v2642_v50 = vld [vmem:[%s4025_s7 + $0x160] sm:$0xf]  ;;  %v3538_v52 = vld [vmem:[%s4025_s7 + $0x16c] sm:$0xf0]  ;;  %v2515_v57 = vor.u32 %v3506_v49, %v2514_v48  ;;  %1894 = vmatpush.bf16.msra.mxu2 %v2787_v47 }
  0x45   : > { %v2770_v53 = vld [vmem:[%s4025_s7 + $0x260] sm:$0xf]  ;;  %v3570_v54 = vld [vmem:[%s4025_s7 + $0x26c] sm:$0xf0]  ;;  %v2643_v58 = vor.u32 %v3538_v52, %v2642_v50  ;;  %1907 = vmatpush.bf16.msra.mxu3 %v2915_v51 }
  0x46   : > { %v2898_v55 = vld [vmem:[%s4025_s7 + $0x360] sm:$0xf]  ;;  %v3602_v56 = vld [vmem:[%s4025_s7 + $0x36c] sm:$0xf0]  ;;  %v2771_v59 = vor.u32 %v3570_v54, %v2770_v53  ;;  %1869 = vmatpush.bf16.msra.mxu0 %v2515_v57 }
  0x47   : > { %v2498_v60 = vld [vmem:[%s4025_s7 + $0x40] sm:$0xf]  ;;  %v3502_v61 = vld [vmem:[%s4025_s7 + $0x4c] sm:$0xf0]  ;;  %v2899_v63 = vor.u32 %v3602_v56, %v2898_v55  ;;  %1882 = vmatpush.bf16.msra.mxu1 %v2643_v58 }
  0x48   : > { %v2626_v62 = vld [vmem:[%s4025_s7 + $0x140] sm:$0xf]  ;;  %v3534_v0 = vld [vmem:[%s4025_s7 + $0x14c] sm:$0xf0]  ;;  %v2499_v5 = vor.u32 %v3502_v61, %v2498_v60  ;;  %1895 = vmatpush.bf16.msra.mxu2 %v2771_v59  ;;  %v298_v59 = vld [vmem:[%s4038_s10 + $0x8] sm:$0xff] }
  0x49   : > { %v2754_v1 = vld [vmem:[%s4025_s7 + $0x240] sm:$0xf]  ;;  %v3566_v2 = vld [vmem:[%s4025_s7 + $0x24c] sm:$0xf0]  ;;  %v2627_v6 = vor.u32 %v3534_v0, %v2626_v62  ;;  %1908 = vmatpush.bf16.msra.mxu3 %v2899_v63  ;;  %v563_v0 = vunpack.c.l.b16 %v298_v59 }
  0x4a   : > { %v2882_v3 = vld [vmem:[%s4025_s7 + $0x340] sm:$0xf]  ;;  %v3598_v4 = vld [vmem:[%s4025_s7 + $0x34c] sm:$0xf0]  ;;  %v2755_v7 = vor.u32 %v3566_v2, %v2754_v1  ;;  %1870 = vmatpush.bf16.msra.mxu0 %v2499_v5  ;;  %v564_v1 = vunpack.c.h.b16 %v298_v59 }
  0x4b   : > { %v2482_v8 = vld [vmem:[%s4025_s7 + $0x20] sm:$0xf]  ;;  %v3498_v9 = vld [vmem:[%s4025_s7 + $0x2c] sm:$0xf0]  ;;  %v2883_v11 = vor.u32 %v3598_v4, %v2882_v3  ;;  %1883 = vmatpush.bf16.msra.mxu1 %v2627_v6  ;;  %v4140_v5 = vpack.c.b16 %v563_v0, %v563_v0 }
  0x4c   : > { %v2610_v10 = vld [vmem:[%s4025_s7 + $0x120] sm:$0xf]  ;;  %v3530_v12 = vld [vmem:[%s4025_s7 + $0x12c] sm:$0xf0]  ;;  %v2483_v17 = vor.u32 %v3498_v9, %v2482_v8  ;;  %1896 = vmatpush.bf16.msra.mxu2 %v2755_v7  ;;  %v4143_v7 = vpack.c.b16 %v564_v1, %v564_v1 }
  0x4d   : > { %v2738_v13 = vld [vmem:[%s4025_s7 + $0x220] sm:$0xf]  ;;  %v3562_v14 = vld [vmem:[%s4025_s7 + $0x22c] sm:$0xf0]  ;;  %v2611_v20 = vor.u32 %v3530_v12, %v2610_v10  ;;  %1909 = vmatpush.bf16.msra.mxu3 %v2883_v11 }
  0x4e   : > { %v2866_v15 = vld [vmem:[%s4025_s7 + $0x320] sm:$0xf]  ;;  %v3594_v16 = vld [vmem:[%s4025_s7 + $0x32c] sm:$0xf0]  ;;  %v2739_v21 = vor.u32 %v3562_v14, %v2738_v13  ;;  %1871 = vmatpush.bf16.msra.mxu0 %v2483_v17 }
  0x4f   : > { %v2466_v18 = vld [vmem:[%s4025_s7] sm:$0xf]  ;;  %v3494_v19 = vld [vmem:[%s4025_s7 + $0xc] sm:$0xf0]  ;;  %v2867_v25 = vor.u32 %v3594_v16, %v2866_v15  ;;  %1884 = vmatpush.bf16.msra.mxu1 %v2611_v20 }
  0x50   : > { %v2594_v22 = vld [vmem:[%s4025_s7 + $0x100] sm:$0xf]  ;;  %v3526_v23 = vld [vmem:[%s4025_s7 + $0x10c] sm:$0xf0]  ;;  %v2467_v32 = vor.u32 %v3494_v19, %v2466_v18  ;;  %1897 = vmatpush.bf16.msra.mxu2 %v2739_v21 }
  0x51   : > { %v2722_v24 = vld [vmem:[%s4025_s7 + $0x200] sm:$0xf]  ;;  %v3558_v26 = vld [vmem:[%s4025_s7 + $0x20c] sm:$0xf0]  ;;  %v2595_v36 = vor.u32 %v3526_v23, %v2594_v22  ;;  %1910 = vmatpush.bf16.msra.mxu3 %v2867_v25 }
  0x52   : > { %v2850_v27 = vld [vmem:[%s4025_s7 + $0x300] sm:$0xf]  ;;  %v3590_v28 = vld [vmem:[%s4025_s7 + $0x30c] sm:$0xf0]  ;;  %v2723_v37 = vor.u32 %v3558_v26, %v2722_v24  ;;  %1872 = vmatpush.bf16.msra.mxu0 %v2467_v32 }
  0x53   : > { %v3090_v29 = vld [vmem:[%s4025_s7 + $0x4e0] sm:$0xf]  ;;  %v3650_v30 = vld [vmem:[%s4025_s7 + $0x4ec] sm:$0xf0]  ;;  %v2851_v40 = vor.u32 %v3590_v28, %v2850_v27  ;;  %1885 = vmatpush.bf16.msra.mxu1 %v2595_v36 }
  0x54   : > { %v3218_v31 = vld [vmem:[%s4025_s7 + $0x5e0] sm:$0xf]  ;;  %v3682_v33 = vld [vmem:[%s4025_s7 + $0x5ec] sm:$0xf0]  ;;  %v3091_v41 = vor.u32 %v3650_v30, %v3090_v29  ;;  %1898 = vmatpush.bf16.msra.mxu2 %v2723_v37 }
  0x55   : > { %v3346_v34 = vld [vmem:[%s4025_s7 + $0x6e0] sm:$0xf]  ;;  %v3714_v35 = vld [vmem:[%s4025_s7 + $0x6ec] sm:$0xf0]  ;;  %v3219_v42 = vor.u32 %v3682_v33, %v3218_v31  ;;  %1911 = vmatpush.bf16.msra.mxu3 %v2851_v40 }
  0x56   : > { %v3474_v38 = vld [vmem:[%s4025_s7 + $0x7e0] sm:$0xf]  ;;  %v3746_v39 = vld [vmem:[%s4025_s7 + $0x7ec] sm:$0xf0]  ;;  %v3347_v43 = vor.u32 %v3714_v35, %v3346_v34  ;;  %1917 = vmatpush.bf16.msrb.mxu0 %v3091_v41 }
  0x57   : > { %v3074_v44 = vld [vmem:[%s4025_s7 + $0x4c0] sm:$0xf]  ;;  %v3646_v45 = vld [vmem:[%s4025_s7 + $0x4cc] sm:$0xf0]  ;;  %v3475_v47 = vor.u32 %v3746_v39, %v3474_v38  ;;  %1930 = vmatpush.bf16.msrb.mxu1 %v3219_v42  ;;  %1899 = vmatmul.bf16.vlgmr.msra.gmra.mxu2 %v4140_v5 }
  0x58   : > { %v3202_v46 = vld [vmem:[%s4025_s7 + $0x5c0] sm:$0xf]  ;;  %v3678_v48 = vld [vmem:[%s4025_s7 + $0x5cc] sm:$0xf0]  ;;  %v3075_v53 = vor.u32 %v3646_v45, %v3074_v44  ;;  %1943 = vmatpush.bf16.msrb.mxu2 %v3347_v43  ;;  %1912 = vmatmul.bf16.vlgmr.msra.gmra.mxu3 %v4143_v7 }
  0x59   : > { %v3330_v49 = vld [vmem:[%s4025_s7 + $0x6c0] sm:$0xf]  ;;  %v3710_v50 = vld [vmem:[%s4025_s7 + $0x6cc] sm:$0xf0]  ;;  %v3203_v55 = vor.u32 %v3678_v48, %v3202_v46  ;;  %1956 = vmatpush.bf16.msrb.mxu3 %v3475_v47 }
  0x5a   : > { %v3458_v51 = vld [vmem:[%s4025_s7 + $0x7c0] sm:$0xf]  ;;  %v3742_v52 = vld [vmem:[%s4025_s7 + $0x7cc] sm:$0xf0]  ;;  %v3331_v56 = vor.u32 %v3710_v50, %v3330_v49  ;;  %1918 = vmatpush.bf16.msrb.mxu0 %v3075_v53 }
  0x5b   : > { %v3058_v54 = vld [vmem:[%s4025_s7 + $0x4a0] sm:$0xf]  ;;  %v3642_v57 = vld [vmem:[%s4025_s7 + $0x4ac] sm:$0xf0]  ;;  %v3459_v60 = vor.u32 %v3742_v52, %v3458_v51  ;;  %1931 = vmatpush.bf16.msrb.mxu1 %v3203_v55 }
  0x5c   : > { %v3186_v58 = vld [vmem:[%s4025_s7 + $0x5a0] sm:$0xf]  ;;  %v3674_v61 = vld [vmem:[%s4025_s7 + $0x5ac] sm:$0xf0]  ;;  %v3059_v4 = vor.u32 %v3642_v57, %v3058_v54  ;;  %1944 = vmatpush.bf16.msrb.mxu2 %v3331_v56 }
  0x5d   : > { %v3314_v62 = vld [vmem:[%s4025_s7 + $0x6a0] sm:$0xf]  ;;  %v3706_v63 = vld [vmem:[%s4025_s7 + $0x6ac] sm:$0xf0]  ;;  %v3187_v8 = vor.u32 %v3674_v61, %v3186_v58  ;;  %1957 = vmatpush.bf16.msrb.mxu3 %v3459_v60 }
  0x5e   : > { %v3442_v2 = vld [vmem:[%s4025_s7 + $0x7a0] sm:$0xf]  ;;  %v3738_v3 = vld [vmem:[%s4025_s7 + $0x7ac] sm:$0xf0]  ;;  %v3315_v9 = vor.u32 %v3706_v63, %v3314_v62  ;;  %1919 = vmatpush.bf16.msrb.mxu0 %v3059_v4  ;;  %v300_v4 = vld [vmem:[%s4038_s10 + $0x18] sm:$0xff] }
  0x5f   : > { %v297_v6 = vld [vmem:[%s4038_s10] sm:$0xff]  ;;  %v3638_v11 = vld [vmem:[%s4025_s7 + $0x48c] sm:$0xf0]  ;;  %v3443_v15 = vor.u32 %v3738_v3, %v3442_v2  ;;  %1932 = vmatpush.bf16.msrb.mxu1 %v3187_v8 }
  0x60   : > { %v3042_v10 = vld [vmem:[%s4025_s7 + $0x480] sm:$0xf]  ;;  %v561_v13 = vunpack.c.l.b16 %v297_v6  ;;  %v562_v14 = vunpack.c.h.b16 %v297_v6  ;;  %v3670_v16 = vld [vmem:[%s4025_s7 + $0x58c] sm:$0xf0]  ;;  %1945 = vmatpush.bf16.msrb.mxu2 %v3315_v9 }
  0x61   : > { %v3170_v12 = vld [vmem:[%s4025_s7 + $0x580] sm:$0xf]  ;;  %v3702_v18 = vld [vmem:[%s4025_s7 + $0x68c] sm:$0xf0]  ;;  %v3043_v23 = vor.u32 %v3638_v11, %v3042_v10  ;;  %1958 = vmatpush.bf16.msrb.mxu3 %v3443_v15  ;;  %v3520_v11 = vld [vmem:[%s4025_s7 + $0xe4] sm:$0xf] }
  0x62   : > { %v3298_v17 = vld [vmem:[%s4025_s7 + $0x680] sm:$0xf]  ;;  %v3734_v20 = vld [vmem:[%s4025_s7 + $0x78c] sm:$0xf0]  ;;  %v4154_v21 = vpack.c.b16 %v561_v13, %v561_v13  ;;  %v4157_v22 = vpack.c.b16 %v562_v14, %v562_v14  ;;  %v3171_v24 = vor.u32 %v3670_v16, %v3170_v12  ;;  %v2580_v12 = vld [vmem:[%s4025_s7 + $0xf0] sm:$0xf0] }
  0x63   : > { %v3426_v19 = vld [vmem:[%s4025_s7 + $0x780] sm:$0xf]  ;;  %v3299_v25 = vor.u32 %v3702_v18, %v3298_v17  ;;  %v3634_v27 = vld [vmem:[%s4025_s7 + $0x46c] sm:$0xf0]  ;;  %1920 = vmatpush.bf16.msrb.mxu0 %v3043_v23  ;;  %v3552_v13 = vld [vmem:[%s4025_s7 + $0x1e4] sm:$0xf]  ;;  %v567_v18 = vunpack.c.l.b16 %v300_v4 }
  0x64   : > { %v3026_v26 = vld [vmem:[%s4025_s7 + $0x460] sm:$0xf]  ;;  %v3427_v29 = vor.u32 %v3734_v20, %v3426_v19  ;;  %v3666_v30 = vld [vmem:[%s4025_s7 + $0x56c] sm:$0xf0]  ;;  %1873 = vmatmul.bf16.vlgmr.msra.gmra.mxu0 %v4154_v21  ;;  %1886 = vmatmul.bf16.vlgmr.msra.gmra.mxu1 %v4157_v22  ;;  %v2708_v15 = vld [vmem:[%s4025_s7 + $0x1f0] sm:$0xf0] }
  0x65   : > { %v3154_v28 = vld [vmem:[%s4025_s7 + $0x560] sm:$0xf]  ;;  %v3698_v32 = vld [vmem:[%s4025_s7 + $0x66c] sm:$0xf0]  ;;  %v3027_v35 = vor.u32 %v3634_v27, %v3026_v26  ;;  %1933 = vmatpush.bf16.msrb.mxu1 %v3171_v24  ;;  %1946 = vmatpush.bf16.msrb.mxu2 %v3299_v25  ;;  %v3584_v16 = vld [vmem:[%s4025_s7 + $0x2e4] sm:$0xf]  ;;  %v568_v26 = vunpack.c.h.b16 %v300_v4 }
  0x66   : > { %v3282_v31 = vld [vmem:[%s4025_s7 + $0x660] sm:$0xf]  ;;  %v3730_v34 = vld [vmem:[%s4025_s7 + $0x76c] sm:$0xf0]  ;;  %v3155_v36 = vor.u32 %v3666_v30, %v3154_v28  ;;  %1959 = vmatpush.bf16.msrb.mxu3 %v3427_v29  ;;  %v2836_v17 = vld [vmem:[%s4025_s7 + $0x2f0] sm:$0xf0]  ;;  %v2583_v28 = vor.u32 %v3520_v11, %v2580_v12  ;;  %v2711_v30 = vor.u32 %v3552_v13, %v2708_v15 }
  0x67   : > { %v3410_v33 = vld [vmem:[%s4025_s7 + $0x760] sm:$0xf]  ;;  %v3283_v37 = vor.u32 %v3698_v32, %v3282_v31  ;;  %v3630_v39 = vld [vmem:[%s4025_s7 + $0x44c] sm:$0xf0]  ;;  %1921 = vmatpush.bf16.msrb.mxu0 %v3027_v35  ;;  %v3616_v23 = vld [vmem:[%s4025_s7 + $0x3e4] sm:$0xf]  ;;  %v2839_v31 = vor.u32 %v3584_v16, %v2836_v17 }
  0x68   : > { %v3010_v38 = vld [vmem:[%s4025_s7 + $0x440] sm:$0xf]  ;;  %v3411_v41 = vor.u32 %v3730_v34, %v3410_v33  ;;  %v3662_v42 = vld [vmem:[%s4025_s7 + $0x54c] sm:$0xf0]  ;;  %v2964_v24 = vld [vmem:[%s4025_s7 + $0x3f0] sm:$0xf0] }
  0x69   : > { %v3138_v40 = vld [vmem:[%s4025_s7 + $0x540] sm:$0xf]  ;;  %v3694_v44 = vld [vmem:[%s4025_s7 + $0x64c] sm:$0xf0]  ;;  %v3011_v47 = vor.u32 %v3630_v39, %v3010_v38  ;;  %1934 = vmatpush.bf16.msrb.mxu1 %v3155_v36  ;;  %1947 = vmatpush.bf16.msrb.mxu2 %v3283_v37  ;;  %v3516_v32 = vld [vmem:[%s4025_s7 + $0xc4] sm:$0xf]  ;;  %v2967_v35 = vor.u32 %v3616_v23, %v2964_v24  ;;  %v4209_v39 = vpack.c.b16 %v567_v18, %v567_v18 }
  0x6a   : > { %v3266_v43 = vld [vmem:[%s4025_s7 + $0x640] sm:$0xf]  ;;  %v3726_v46 = vld [vmem:[%s4025_s7 + $0x74c] sm:$0xf0]  ;;  %v3139_v48 = vor.u32 %v3662_v42, %v3138_v40  ;;  %1960 = vmatpush.bf16.msrb.mxu3 %v3411_v41  ;;  %v2564_v33 = vld [vmem:[%s4025_s7 + $0xd0] sm:$0xf0] }
  0x6b   : > { %v3394_v45 = vld [vmem:[%s4025_s7 + $0x740] sm:$0xf]  ;;  %v3267_v49 = vor.u32 %v3694_v44, %v3266_v43  ;;  %v3626_v51 = vld [vmem:[%s4025_s7 + $0x42c] sm:$0xf0]  ;;  %1922 = vmatpush.bf16.msrb.mxu0 %v3011_v47  ;;  %v3548_v34 = vld [vmem:[%s4025_s7 + $0x1c4] sm:$0xf]  ;;  %v4215_v43 = vpack.c.b16 %v568_v26, %v568_v26  ;;  %v2567_v44 = vor.u32 %v3516_v32, %v2564_v33 }
  0x6c   : > { %v2994_v50 = vld [vmem:[%s4025_s7 + $0x420] sm:$0xf]  ;;  %v3395_v53 = vor.u32 %v3726_v46, %v3394_v45  ;;  %v3658_v54 = vld [vmem:[%s4025_s7 + $0x52c] sm:$0xf0]  ;;  %v2692_v36 = vld [vmem:[%s4025_s7 + $0x1d0] sm:$0xf0] }
  0x6d   : > { %v3122_v52 = vld [vmem:[%s4025_s7 + $0x520] sm:$0xf]  ;;  %v3690_v56 = vld [vmem:[%s4025_s7 + $0x62c] sm:$0xf0]  ;;  %v2995_v60 = vor.u32 %v3626_v51, %v2994_v50  ;;  %1935 = vmatpush.bf16.msrb.mxu1 %v3139_v48  ;;  %1948 = vmatpush.bf16.msrb.mxu2 %v3267_v49  ;;  %v3580_v37 = vld [vmem:[%s4025_s7 + $0x2c4] sm:$0xf]  ;;  %v2695_v46 = vor.u32 %v3548_v34, %v2692_v36 }
  0x6e   : > { %v3250_v55 = vld [vmem:[%s4025_s7 + $0x620] sm:$0xf]  ;;  %v3722_v58 = vld [vmem:[%s4025_s7 + $0x72c] sm:$0xf0]  ;;  %v3123_v0 = vor.u32 %v3658_v54, %v3122_v52  ;;  %1961 = vmatpush.bf16.msrb.mxu3 %v3395_v53  ;;  %v2820_v38 = vld [vmem:[%s4025_s7 + $0x2d0] sm:$0xf0] }
  0x6f   : > { %v3378_v57 = vld [vmem:[%s4025_s7 + $0x720] sm:$0xf]  ;;  %v3622_v61 = vld [vmem:[%s4025_s7 + $0x40c] sm:$0xf0]  ;;  %v3251_v1 = vor.u32 %v3690_v56, %v3250_v55  ;;  %1923 = vmatpush.bf16.msrb.mxu0 %v2995_v60  ;;  %v3612_v40 = vld [vmem:[%s4025_s7 + $0x3c4] sm:$0xf]  ;;  %v2823_v47 = vor.u32 %v3580_v37, %v2820_v38 }
  0x70   : > { %v2978_v59 = vld [vmem:[%s4025_s7 + $0x400] sm:$0xf]  ;;  %v3654_v63 = vld [vmem:[%s4025_s7 + $0x50c] sm:$0xf0]  ;;  %v3379_v6 = vor.u32 %v3722_v58, %v3378_v57  ;;  %v2948_v41 = vld [vmem:[%s4025_s7 + $0x3d0] sm:$0xf0] }
  0x71   : > { %v3106_v62 = vld [vmem:[%s4025_s7 + $0x500] sm:$0xf]  ;;  %v3686_v3 = vld [vmem:[%s4025_s7 + $0x60c] sm:$0xf0]  ;;  %v2979_v14 = vor.u32 %v3622_v61, %v2978_v59  ;;  %1936 = vmatpush.bf16.msrb.mxu1 %v3123_v0  ;;  %1949 = vmatpush.bf16.msrb.mxu2 %v3251_v1  ;;  %v3512_v48 = vld [vmem:[%s4025_s7 + $0xa4] sm:$0xf]  ;;  %v2951_v51 = vor.u32 %v3612_v40, %v2948_v41 }
  0x72   : > { %v3234_v2 = vld [vmem:[%s4025_s7 + $0x600] sm:$0xf]  ;;  %v3718_v9 = vld [vmem:[%s4025_s7 + $0x70c] sm:$0xf0]  ;;  %v3107_v19 = vor.u32 %v3654_v63, %v3106_v62  ;;  %1962 = vmatpush.bf16.msrb.mxu3 %v3379_v6  ;;  %v2548_v49 = vld [vmem:[%s4025_s7 + $0xb0] sm:$0xf0] }
  0x73   : > { %v3362_v8 = vld [vmem:[%s4025_s7 + $0x700] sm:$0xf]  ;;  %v299_v10 = vld [vmem:[%s4038_s10 + $0x10] sm:$0xff]  ;;  %v3235_v20 = vor.u32 %v3686_v3, %v3234_v2  ;;  %1924 = vmatpush.bf16.msrb.mxu0 %v2979_v14  ;;  %v3544_v50 = vld [vmem:[%s4025_s7 + $0x1a4] sm:$0xf]  ;;  %v2551_v57 = vor.u32 %v3512_v48, %v2548_v49 }
  0x74   : > { %v565_v25 = vunpack.c.l.b16 %v299_v10  ;;  %v3363_v27 = vor.u32 %v3718_v9, %v3362_v8  ;;  %v566_v29 = vunpack.c.h.b16 %v299_v10  ;;  %v2676_v52 = vld [vmem:[%s4025_s7 + $0x1b0] sm:$0xf0]  ;;  %v3576_v53 = vld [vmem:[%s4025_s7 + $0x2a4] sm:$0xf] }
  0x75   : > { %1937 = vmatpush.bf16.msrb.mxu1 %v3107_v19  ;;  %1950 = vmatpush.bf16.msrb.mxu2 %v3235_v20  ;;  %v2804_v54 = vld [vmem:[%s4025_s7 + $0x2b0] sm:$0xf0]  ;;  %v3608_v55 = vld [vmem:[%s4025_s7 + $0x3a4] sm:$0xf]  ;;  %v2679_v58 = vor.u32 %v3544_v50, %v2676_v52 }
  0x76   : > { %v4213_v42 = vpack.c.b16 %v565_v25, %v565_v25  ;;  %1963 = vmatpush.bf16.msrb.mxu3 %v3363_v27  ;;  %v4217_v45 = vpack.c.b16 %v566_v29, %v566_v29  ;;  %v2932_v56 = vld [vmem:[%s4025_s7 + $0x3b0] sm:$0xf0]  ;;  %v2807_v59 = vor.u32 %v3576_v53, %v2804_v54  ;;  %v3508_v60 = vld [vmem:[%s4025_s7 + $0x84] sm:$0xf] }
  0x77   : > { %1969 = vmatpush.bf16.msra.mxu0 %v2583_v28  ;;  %v2532_v61 = vld [vmem:[%s4025_s7 + $0x90] sm:$0xf0]  ;;  %v3540_v62 = vld [vmem:[%s4025_s7 + $0x184] sm:$0xf]  ;;  %v2935_v63 = vor.u32 %v3608_v55, %v2932_v56 }
  0x78   : > { %1951 = vmatmul.bf16.vlgmr.msrb.gmra.mxu2 %v4209_v39  ;;  %1925 = vmatmul.bf16.vlgmr.msrb.gmra.mxu0 %v4213_v42  ;;  %v2660_v0 = vld [vmem:[%s4025_s7 + $0x190] sm:$0xf0]  ;;  %v3572_v1 = vld [vmem:[%s4025_s7 + $0x284] sm:$0xf]  ;;  %v2535_v6 = vor.u32 %v3508_v60, %v2532_v61 }
  0x79   : > { %1982 = vmatpush.bf16.msra.mxu1 %v2711_v30  ;;  %1995 = vmatpush.bf16.msra.mxu2 %v2839_v31  ;;  %v2788_v2 = vld [vmem:[%s4025_s7 + $0x290] sm:$0xf0]  ;;  %v3604_v3 = vld [vmem:[%s4025_s7 + $0x384] sm:$0xf]  ;;  %v2663_v8 = vor.u32 %v3540_v62, %v2660_v0 }
  0x7a   : > { %2008 = vmatpush.bf16.msra.mxu3 %v2967_v35  ;;  %1938 = vmatmul.bf16.vlgmr.msrb.gmra.mxu1 %v4217_v45  ;;  %v2916_v4 = vld [vmem:[%s4025_s7 + $0x390] sm:$0xf0]  ;;  %v2791_v9 = vor.u32 %v3572_v1, %v2788_v2  ;;  %v3504_v10 = vld [vmem:[%s4025_s7 + $0x64] sm:$0xf] }
  0x7b   : > { %1964 = vmatmul.bf16.vlgmr.msrb.gmra.mxu3 %v4215_v43  ;;  %1970 = vmatpush.bf16.msra.mxu0 %v2567_v44  ;;  %v2516_v11 = vld [vmem:[%s4025_s7 + $0x70] sm:$0xf0]  ;;  %v3536_v12 = vld [vmem:[%s4025_s7 + $0x164] sm:$0xf]  ;;  %v2919_v13 = vor.u32 %v3604_v3, %v2916_v4 }
  0x7c   : > { %v2644_v14 = vld [vmem:[%s4025_s7 + $0x170] sm:$0xf0]  ;;  %v3568_v15 = vld [vmem:[%s4025_s7 + $0x264] sm:$0xf]  ;;  %v2519_v19 = vor.u32 %v3504_v10, %v2516_v11 }
  0x7d   : > { %1983 = vmatpush.bf16.msra.mxu1 %v2695_v46  ;;  %1996 = vmatpush.bf16.msra.mxu2 %v2823_v47  ;;  %v2772_v16 = vld [vmem:[%s4025_s7 + $0x270] sm:$0xf0]  ;;  %v3600_v17 = vld [vmem:[%s4025_s7 + $0x364] sm:$0xf]  ;;  %v2647_v20 = vor.u32 %v3536_v12, %v2644_v14 }
  0x7e   : > { %2009 = vmatpush.bf16.msra.mxu3 %v2951_v51  ;;  %v2900_v18 = vld [vmem:[%s4025_s7 + $0x370] sm:$0xf0]  ;;  %v2775_v23 = vor.u32 %v3568_v15, %v2772_v16  ;;  %v3500_v24 = vld [vmem:[%s4025_s7 + $0x44] sm:$0xf] }
  0x7f   : > { %1971 = vmatpush.bf16.msra.mxu0 %v2551_v57  ;;  %v2500_v25 = vld [vmem:[%s4025_s7 + $0x50] sm:$0xf0]  ;;  %v3532_v26 = vld [vmem:[%s4025_s7 + $0x144] sm:$0xf]  ;;  %v2903_v27 = vor.u32 %v3600_v17, %v2900_v18 }
  0x80   : > { %v2628_v28 = vld [vmem:[%s4025_s7 + $0x150] sm:$0xf0]  ;;  %v3564_v29 = vld [vmem:[%s4025_s7 + $0x244] sm:$0xf]  ;;  %v2503_v33 = vor.u32 %v3500_v24, %v2500_v25 }
  0x81   : > { %1984 = vmatpush.bf16.msra.mxu1 %v2679_v58  ;;  %1997 = vmatpush.bf16.msra.mxu2 %v2807_v59  ;;  %v2756_v30 = vld [vmem:[%s4025_s7 + $0x250] sm:$0xf0]  ;;  %v3596_v31 = vld [vmem:[%s4025_s7 + $0x344] sm:$0xf]  ;;  %v2631_v34 = vor.u32 %v3532_v26, %v2628_v28 }
  0x82   : > { %2010 = vmatpush.bf16.msra.mxu3 %v2935_v63  ;;  %v2884_v32 = vld [vmem:[%s4025_s7 + $0x350] sm:$0xf0]  ;;  %v2759_v35 = vor.u32 %v3564_v29, %v2756_v30  ;;  %v3496_v36 = vld [vmem:[%s4025_s7 + $0x24] sm:$0xf] }
  0x83   : > { %1972 = vmatpush.bf16.msra.mxu0 %v2535_v6  ;;  %v2484_v37 = vld [vmem:[%s4025_s7 + $0x30] sm:$0xf0]  ;;  %v3528_v38 = vld [vmem:[%s4025_s7 + $0x124] sm:$0xf]  ;;  %v2887_v40 = vor.u32 %v3596_v31, %v2884_v32 }
  0x84   : > { %v2612_v41 = vld [vmem:[%s4025_s7 + $0x130] sm:$0xf0]  ;;  %v3560_v44 = vld [vmem:[%s4025_s7 + $0x224] sm:$0xf]  ;;  %v2487_v49 = vor.u32 %v3496_v36, %v2484_v37 }
  0x85   : > { %1985 = vmatpush.bf16.msra.mxu1 %v2663_v8  ;;  %1998 = vmatpush.bf16.msra.mxu2 %v2791_v9  ;;  %v2740_v46 = vld [vmem:[%s4025_s7 + $0x230] sm:$0xf0]  ;;  %v3592_v47 = vld [vmem:[%s4025_s7 + $0x324] sm:$0xf]  ;;  %v2615_v52 = vor.u32 %v3528_v38, %v2612_v41 }
  0x86   : > { %2011 = vmatpush.bf16.msra.mxu3 %v2919_v13  ;;  %v2868_v48 = vld [vmem:[%s4025_s7 + $0x330] sm:$0xf0]  ;;  %v3492_v50 = vld [vmem:[%s4025_s7 + $0x4] sm:$0xf]  ;;  %v2743_v53 = vor.u32 %v3560_v44, %v2740_v46 }
  0x87   : > { %1973 = vmatpush.bf16.msra.mxu0 %v2519_v19  ;;  %v2468_v51 = vld [vmem:[%s4025_s7 + $0x10] sm:$0xf0]  ;;  %v3524_v54 = vld [vmem:[%s4025_s7 + $0x104] sm:$0xf]  ;;  %v2871_v57 = vor.u32 %v3592_v47, %v2868_v48 }
  0x88   : > { %v2596_v55 = vld [vmem:[%s4025_s7 + $0x110] sm:$0xf0]  ;;  %v3556_v56 = vld [vmem:[%s4025_s7 + $0x204] sm:$0xf]  ;;  %v2471_v0 = vor.u32 %v3492_v50, %v2468_v51 }
  0x89   : > { %1986 = vmatpush.bf16.msra.mxu1 %v2647_v20  ;;  %1999 = vmatpush.bf16.msra.mxu2 %v2775_v23  ;;  %v2724_v58 = vld [vmem:[%s4025_s7 + $0x210] sm:$0xf0]  ;;  %v3588_v59 = vld [vmem:[%s4025_s7 + $0x304] sm:$0xf]  ;;  %v2599_v4 = vor.u32 %v3524_v54, %v2596_v55 }
  0x8a   : > { %2012 = vmatpush.bf16.msra.mxu3 %v2903_v27  ;;  %v2852_v60 = vld [vmem:[%s4025_s7 + $0x310] sm:$0xf0]  ;;  %v3648_v61 = vld [vmem:[%s4025_s7 + $0x4e4] sm:$0xf]  ;;  %v2727_v6 = vor.u32 %v3556_v56, %v2724_v58 }
  0x8b   : > { %1974 = vmatpush.bf16.msra.mxu0 %v2503_v33  ;;  %v3092_v62 = vld [vmem:[%s4025_s7 + $0x4f0] sm:$0xf0]  ;;  %v3680_v63 = vld [vmem:[%s4025_s7 + $0x5e4] sm:$0xf]  ;;  %v2855_v10 = vor.u32 %v3588_v59, %v2852_v60 }
  0x8c   : > { %v3220_v1 = vld [vmem:[%s4025_s7 + $0x5f0] sm:$0xf0]  ;;  %v3712_v2 = vld [vmem:[%s4025_s7 + $0x6e4] sm:$0xf]  ;;  %v3095_v11 = vor.u32 %v3648_v61, %v3092_v62 }
  0x8d   : > { %1987 = vmatpush.bf16.msra.mxu1 %v2631_v34  ;;  %2000 = vmatpush.bf16.msra.mxu2 %v2759_v35  ;;  %v3348_v3 = vld [vmem:[%s4025_s7 + $0x6f0] sm:$0xf0]  ;;  %v3744_v8 = vld [vmem:[%s4025_s7 + $0x7e4] sm:$0xf]  ;;  %v3223_v12 = vor.u32 %v3680_v63, %v3220_v1 }
  0x8e   : > { %2013 = vmatpush.bf16.msra.mxu3 %v2887_v40  ;;  %v3476_v9 = vld [vmem:[%s4025_s7 + $0x7f0] sm:$0xf0]  ;;  %v3351_v13 = vor.u32 %v3712_v2, %v3348_v3  ;;  %v3644_v14 = vld [vmem:[%s4025_s7 + $0x4c4] sm:$0xf] }
  0x8f   : > { %1975 = vmatpush.bf16.msra.mxu0 %v2487_v49  ;;  %v3076_v15 = vld [vmem:[%s4025_s7 + $0x4d0] sm:$0xf0]  ;;  %v3676_v16 = vld [vmem:[%s4025_s7 + $0x5c4] sm:$0xf]  ;;  %v3479_v17 = vor.u32 %v3744_v8, %v3476_v9 }
  0x90   : > { %v3204_v18 = vld [vmem:[%s4025_s7 + $0x5d0] sm:$0xf0]  ;;  %v3708_v19 = vld [vmem:[%s4025_s7 + $0x6c4] sm:$0xf]  ;;  %v3079_v25 = vor.u32 %v3644_v14, %v3076_v15 }
  0x91   : > { %1988 = vmatpush.bf16.msra.mxu1 %v2615_v52  ;;  %2001 = vmatpush.bf16.msra.mxu2 %v2743_v53  ;;  %v3332_v20 = vld [vmem:[%s4025_s7 + $0x6d0] sm:$0xf0]  ;;  %v3740_v23 = vld [vmem:[%s4025_s7 + $0x7c4] sm:$0xf]  ;;  %v3207_v26 = vor.u32 %v3676_v16, %v3204_v18 }
  0x92   : > { %2014 = vmatpush.bf16.msra.mxu3 %v2871_v57  ;;  %v3460_v24 = vld [vmem:[%s4025_s7 + $0x7d0] sm:$0xf0]  ;;  %v3335_v27 = vor.u32 %v3708_v19, %v3332_v20  ;;  %v3640_v28 = vld [vmem:[%s4025_s7 + $0x4a4] sm:$0xf] }
  0x93   : > { %1976 = vmatpush.bf16.msra.mxu0 %v2471_v0  ;;  %v3060_v29 = vld [vmem:[%s4025_s7 + $0x4b0] sm:$0xf0]  ;;  %v3672_v30 = vld [vmem:[%s4025_s7 + $0x5a4] sm:$0xf]  ;;  %v3463_v31 = vor.u32 %v3740_v23, %v3460_v24 }
  0x94   : > { %v3188_v32 = vld [vmem:[%s4025_s7 + $0x5b0] sm:$0xf0]  ;;  %v3704_v33 = vld [vmem:[%s4025_s7 + $0x6a4] sm:$0xf]  ;;  %v3063_v37 = vor.u32 %v3640_v28, %v3060_v29 }
  0x95   : > { %1989 = vmatpush.bf16.msra.mxu1 %v2599_v4  ;;  %2002 = vmatpush.bf16.msra.mxu2 %v2727_v6  ;;  %v3316_v34 = vld [vmem:[%s4025_s7 + $0x6b0] sm:$0xf0]  ;;  %v3736_v35 = vld [vmem:[%s4025_s7 + $0x7a4] sm:$0xf]  ;;  %v3191_v38 = vor.u32 %v3672_v30, %v3188_v32 }
  0x96   : > { %2015 = vmatpush.bf16.msra.mxu3 %v2855_v10  ;;  %v3444_v36 = vld [vmem:[%s4025_s7 + $0x7b0] sm:$0xf0]  ;;  %1977 = vmatmul.bf16.vlgmr.msra.gmra.mxu0 %v4154_v21  ;;  %v3319_v40 = vor.u32 %v3704_v33, %v3316_v34  ;;  %v3636_v41 = vld [vmem:[%s4025_s7 + $0x484] sm:$0xf] }
  0x97   : > { %2021 = vmatpush.bf16.msrb.mxu0 %v3095_v11  ;;  %v3044_v44 = vld [vmem:[%s4025_s7 + $0x490] sm:$0xf0]  ;;  %v3668_v46 = vld [vmem:[%s4025_s7 + $0x584] sm:$0xf]  ;;  %v3447_v47 = vor.u32 %v3736_v35, %v3444_v36 }
  0x98   : > { %2003 = vmatmul.bf16.vlgmr.msra.gmra.mxu2 %v4140_v5  ;;  %1990 = vmatmul.bf16.vlgmr.msra.gmra.mxu1 %v4157_v22  ;;  %v3172_v48 = vld [vmem:[%s4025_s7 + $0x590] sm:$0xf0]  ;;  %v3700_v49 = vld [vmem:[%s4025_s7 + $0x684] sm:$0xf]  ;;  %v3047_v53 = vor.u32 %v3636_v41, %v3044_v44  ;;  %v2586_v44 = vld [vmem:[%s4025_s7 + $0xe8] sm:$0xf] }
  0x99   : > { %2034 = vmatpush.bf16.msrb.mxu1 %v3223_v12  ;;  %2047 = vmatpush.bf16.msrb.mxu2 %v3351_v13  ;;  %v3300_v50 = vld [vmem:[%s4025_s7 + $0x690] sm:$0xf0]  ;;  %v3732_v51 = vld [vmem:[%s4025_s7 + $0x784] sm:$0xf]  ;;  %v3175_v54 = vor.u32 %v3668_v46, %v3172_v48  ;;  %v3523_v46 = vld [vmem:[%s4025_s7 + $0xf4] sm:$0xf0] }
  0x9a   : > { %2060 = vmatpush.bf16.msrb.mxu3 %v3479_v17  ;;  %v3428_v52 = vld [vmem:[%s4025_s7 + $0x790] sm:$0xf0]  ;;  %v3303_v55 = vor.u32 %v3700_v49, %v3300_v50  ;;  %v3632_v56 = vld [vmem:[%s4025_s7 + $0x464] sm:$0xf]  ;;  %v3555_v49 = vld [vmem:[%s4025_s7 + $0x1f4] sm:$0xf0] }
  0x9b   : > { %2016 = vmatmul.bf16.vlgmr.msra.gmra.mxu3 %v4143_v7  ;;  %2022 = vmatpush.bf16.msrb.mxu0 %v3079_v25  ;;  %v3028_v57 = vld [vmem:[%s4025_s7 + $0x470] sm:$0xf0]  ;;  %v3664_v58 = vld [vmem:[%s4025_s7 + $0x564] sm:$0xf]  ;;  %v3431_v59 = vor.u32 %v3732_v51, %v3428_v52  ;;  %v2842_v50 = vld [vmem:[%s4025_s7 + $0x2e8] sm:$0xf] }
  0x9c   : > { %v3156_v60 = vld [vmem:[%s4025_s7 + $0x570] sm:$0xf0]  ;;  %v3696_v61 = vld [vmem:[%s4025_s7 + $0x664] sm:$0xf]  ;;  %v3031_v1 = vor.u32 %v3632_v56, %v3028_v57  ;;  %v3587_v51 = vld [vmem:[%s4025_s7 + $0x2f4] sm:$0xf0]  ;;  %v2587_v57 = vor.u32 %v3523_v46, %v2586_v44 }
  0x9d   : > { %2035 = vmatpush.bf16.msrb.mxu1 %v3207_v26  ;;  %2048 = vmatpush.bf16.msrb.mxu2 %v3335_v27  ;;  %v3284_v62 = vld [vmem:[%s4025_s7 + $0x670] sm:$0xf0]  ;;  %v3728_v63 = vld [vmem:[%s4025_s7 + $0x764] sm:$0xf]  ;;  %v3159_v2 = vor.u32 %v3664_v58, %v3156_v60  ;;  %v2570_v60 = vld [vmem:[%s4025_s7 + $0xc8] sm:$0xf] }
  0x9e   : > { %2061 = vmatpush.bf16.msrb.mxu3 %v3463_v31  ;;  %v3412_v0 = vld [vmem:[%s4025_s7 + $0x770] sm:$0xf0]  ;;  %v3287_v3 = vor.u32 %v3696_v61, %v3284_v62  ;;  %v3628_v4 = vld [vmem:[%s4025_s7 + $0x444] sm:$0xf]  ;;  %v3519_v61 = vld [vmem:[%s4025_s7 + $0xd4] sm:$0xf0] }
  0x9f   : > { %2023 = vmatpush.bf16.msrb.mxu0 %v3063_v37  ;;  %v3012_v6 = vld [vmem:[%s4025_s7 + $0x450] sm:$0xf0]  ;;  %v3660_v8 = vld [vmem:[%s4025_s7 + $0x544] sm:$0xf]  ;;  %v3415_v9 = vor.u32 %v3728_v63, %v3412_v0  ;;  %v2698_v62 = vld [vmem:[%s4025_s7 + $0x1c8] sm:$0xf] }
  0xa0   : > { %v3140_v10 = vld [vmem:[%s4025_s7 + $0x550] sm:$0xf0]  ;;  %v3692_v11 = vld [vmem:[%s4025_s7 + $0x644] sm:$0xf]  ;;  %v3015_v15 = vor.u32 %v3628_v4, %v3012_v6  ;;  %v3551_v0 = vld [vmem:[%s4025_s7 + $0x1d4] sm:$0xf0]  ;;  %v2571_v6 = vor.u32 %v3519_v61, %v2570_v60 }
  0xa1   : > { %2036 = vmatpush.bf16.msrb.mxu1 %v3191_v38  ;;  %2049 = vmatpush.bf16.msrb.mxu2 %v3319_v40  ;;  %v3268_v12 = vld [vmem:[%s4025_s7 + $0x650] sm:$0xf0]  ;;  %v3724_v13 = vld [vmem:[%s4025_s7 + $0x744] sm:$0xf]  ;;  %v3143_v16 = vor.u32 %v3660_v8, %v3140_v10  ;;  %v3615_v4 = vld [vmem:[%s4025_s7 + $0x3d4] sm:$0xf0]  ;;  %v2699_v8 = vor.u32 %v3551_v0, %v2698_v62 }
  0xa2   : > { %2062 = vmatpush.bf16.msrb.mxu3 %v3447_v47  ;;  %v3396_v14 = vld [vmem:[%s4025_s7 + $0x750] sm:$0xf0]  ;;  %v3271_v17 = vor.u32 %v3692_v11, %v3268_v12  ;;  %v3624_v18 = vld [vmem:[%s4025_s7 + $0x424] sm:$0xf]  ;;  %v2714_v47 = vld [vmem:[%s4025_s7 + $0x1e8] sm:$0xf] }
  0xa3   : > { %2024 = vmatpush.bf16.msrb.mxu0 %v3047_v53  ;;  %v2996_v19 = vld [vmem:[%s4025_s7 + $0x430] sm:$0xf0]  ;;  %v3656_v20 = vld [vmem:[%s4025_s7 + $0x524] sm:$0xf]  ;;  %v3399_v23 = vor.u32 %v3724_v13, %v3396_v14  ;;  %v2715_v58 = vor.u32 %v3555_v49, %v2714_v47  ;;  %v2554_v10 = vld [vmem:[%s4025_s7 + $0xa8] sm:$0xf] }
  0xa4   : > { %v3124_v24 = vld [vmem:[%s4025_s7 + $0x530] sm:$0xf0]  ;;  %v3688_v25 = vld [vmem:[%s4025_s7 + $0x624] sm:$0xf]  ;;  %v2999_v29 = vor.u32 %v3624_v18, %v2996_v19  ;;  %v3515_v11 = vld [vmem:[%s4025_s7 + $0xb4] sm:$0xf0] }
  0xa5   : > { %2037 = vmatpush.bf16.msrb.mxu1 %v3175_v54  ;;  %2050 = vmatpush.bf16.msrb.mxu2 %v3303_v55  ;;  %v3252_v26 = vld [vmem:[%s4025_s7 + $0x630] sm:$0xf0]  ;;  %v3720_v27 = vld [vmem:[%s4025_s7 + $0x724] sm:$0xf]  ;;  %v3127_v32 = vor.u32 %v3656_v20, %v3124_v24  ;;  %v2970_v54 = vld [vmem:[%s4025_s7 + $0x3e8] sm:$0xf]  ;;  %v2555_v19 = vor.u32 %v3515_v11, %v2554_v10 }
  0xa6   : > { %2063 = vmatpush.bf16.msrb.mxu3 %v3431_v59  ;;  %v3380_v28 = vld [vmem:[%s4025_s7 + $0x730] sm:$0xf0]  ;;  %v3620_v30 = vld [vmem:[%s4025_s7 + $0x404] sm:$0xf]  ;;  %v3255_v33 = vor.u32 %v3688_v25, %v3252_v26  ;;  %v3619_v55 = vld [vmem:[%s4025_s7 + $0x3f4] sm:$0xf0]  ;;  %v2843_v59 = vor.u32 %v3587_v51, %v2842_v50 }
  0xa7   : > { %2025 = vmatpush.bf16.msrb.mxu0 %v3031_v1  ;;  %v2980_v31 = vld [vmem:[%s4025_s7 + $0x410] sm:$0xf0]  ;;  %v3652_v34 = vld [vmem:[%s4025_s7 + $0x504] sm:$0xf]  ;;  %v3383_v37 = vor.u32 %v3720_v27, %v3380_v28  ;;  %v2971_v63 = vor.u32 %v3619_v55, %v2970_v54  ;;  %v2826_v1 = vld [vmem:[%s4025_s7 + $0x2c8] sm:$0xf] }
  0xa8   : > { %v3108_v35 = vld [vmem:[%s4025_s7 + $0x510] sm:$0xf0]  ;;  %v3684_v36 = vld [vmem:[%s4025_s7 + $0x604] sm:$0xf]  ;;  %v2983_v48 = vor.u32 %v3620_v30, %v2980_v31  ;;  %v2682_v12 = vld [vmem:[%s4025_s7 + $0x1a8] sm:$0xf] }
  0xa9   : > { %2038 = vmatpush.bf16.msrb.mxu1 %v3159_v2  ;;  %2051 = vmatpush.bf16.msrb.mxu2 %v3287_v3  ;;  %v3236_v38 = vld [vmem:[%s4025_s7 + $0x610] sm:$0xf0]  ;;  %v3716_v40 = vld [vmem:[%s4025_s7 + $0x704] sm:$0xf]  ;;  %v3111_v52 = vor.u32 %v3652_v34, %v3108_v35  ;;  %v3583_v2 = vld [vmem:[%s4025_s7 + $0x2d4] sm:$0xf0] }
  0xaa   : > { %2064 = vmatpush.bf16.msrb.mxu3 %v3415_v9  ;;  %v3364_v41 = vld [vmem:[%s4025_s7 + $0x710] sm:$0xf0]  ;;  %v3239_v53 = vor.u32 %v3684_v36, %v3236_v38  ;;  %v2954_v3 = vld [vmem:[%s4025_s7 + $0x3c8] sm:$0xf]  ;;  %v2827_v9 = vor.u32 %v3583_v2, %v2826_v1  ;;  %v3547_v14 = vld [vmem:[%s4025_s7 + $0x1b4] sm:$0xf0] }
  0xab   : > { %2026 = vmatpush.bf16.msrb.mxu0 %v3015_v15  ;;  %v3367_v56 = vor.u32 %v3716_v40, %v3364_v41  ;;  %v2955_v13 = vor.u32 %v3615_v4, %v2954_v3  ;;  %v2810_v15 = vld [vmem:[%s4025_s7 + $0x2a8] sm:$0xf]  ;;  %v3611_v18 = vld [vmem:[%s4025_s7 + $0x3b4] sm:$0xf0]  ;;  %v2683_v20 = vor.u32 %v3547_v14, %v2682_v12 }
  0xac   : > { %v2538_v24 = vld [vmem:[%s4025_s7 + $0x88] sm:$0xf]  ;;  %v3511_v25 = vld [vmem:[%s4025_s7 + $0x94] sm:$0xf0] }
  0xad   : > { %2039 = vmatpush.bf16.msrb.mxu1 %v3143_v16  ;;  %2052 = vmatpush.bf16.msrb.mxu2 %v3271_v17  ;;  %v3579_v16 = vld [vmem:[%s4025_s7 + $0x2b4] sm:$0xf0]  ;;  %v2938_v17 = vld [vmem:[%s4025_s7 + $0x3a8] sm:$0xf] }
  0xae   : > { %2065 = vmatpush.bf16.msrb.mxu3 %v3399_v23  ;;  %v2811_v23 = vor.u32 %v3579_v16, %v2810_v15  ;;  %v2666_v26 = vld [vmem:[%s4025_s7 + $0x188] sm:$0xf]  ;;  %v2939_v27 = vor.u32 %v3611_v18, %v2938_v17  ;;  %v3543_v28 = vld [vmem:[%s4025_s7 + $0x194] sm:$0xf0] }
  0xaf   : > { %2027 = vmatpush.bf16.msrb.mxu0 %v2999_v29  ;;  %v2794_v29 = vld [vmem:[%s4025_s7 + $0x288] sm:$0xf]  ;;  %v3575_v30 = vld [vmem:[%s4025_s7 + $0x294] sm:$0xf0]  ;;  %v2667_v34 = vor.u32 %v3543_v28, %v2666_v26 }
  0xb0   : > { %v2922_v31 = vld [vmem:[%s4025_s7 + $0x388] sm:$0xf]  ;;  %v2795_v35 = vor.u32 %v3575_v30, %v2794_v29  ;;  %v3539_v41 = vld [vmem:[%s4025_s7 + $0x174] sm:$0xf0] }
  0xb1   : > { %2040 = vmatpush.bf16.msrb.mxu1 %v3127_v32  ;;  %2053 = vmatpush.bf16.msrb.mxu2 %v3255_v33  ;;  %v3607_v32 = vld [vmem:[%s4025_s7 + $0x394] sm:$0xf0]  ;;  %v2539_v33 = vor.u32 %v3511_v25, %v2538_v24  ;;  %v2522_v36 = vld [vmem:[%s4025_s7 + $0x68] sm:$0xf] }
  0xb2   : > { %2066 = vmatpush.bf16.msrb.mxu3 %v3383_v37  ;;  %v3507_v37 = vld [vmem:[%s4025_s7 + $0x74] sm:$0xf0]  ;;  %v2650_v38 = vld [vmem:[%s4025_s7 + $0x168] sm:$0xf]  ;;  %v2923_v40 = vor.u32 %v3607_v32, %v2922_v31 }
  0xb3   : > { %2028 = vmatpush.bf16.msrb.mxu0 %v2983_v48  ;;  %v2778_v44 = vld [vmem:[%s4025_s7 + $0x268] sm:$0xf]  ;;  %v3571_v46 = vld [vmem:[%s4025_s7 + $0x274] sm:$0xf0]  ;;  %v2523_v49 = vor.u32 %v3507_v37, %v2522_v36  ;;  %v2651_v50 = vor.u32 %v3539_v41, %v2650_v38 }
  0xb4   : > { %v2906_v47 = vld [vmem:[%s4025_s7 + $0x368] sm:$0xf]  ;;  %v3603_v48 = vld [vmem:[%s4025_s7 + $0x374] sm:$0xf0]  ;;  %v2779_v51 = vor.u32 %v3571_v46, %v2778_v44 }
  0xb5   : > { %2041 = vmatpush.bf16.msrb.mxu1 %v3111_v52  ;;  %2054 = vmatpush.bf16.msrb.mxu2 %v3239_v53  ;;  %v2506_v52 = vld [vmem:[%s4025_s7 + $0x48] sm:$0xf]  ;;  %v3503_v53 = vld [vmem:[%s4025_s7 + $0x54] sm:$0xf0]  ;;  %v2907_v55 = vor.u32 %v3603_v48, %v2906_v47 }
  0xb6   : > { %2067 = vmatpush.bf16.msrb.mxu3 %v3367_v56  ;;  %2029 = vmatmul.bf16.vlgmr.msrb.gmra.mxu0 %v4213_v42  ;;  %v2634_v54 = vld [vmem:[%s4025_s7 + $0x148] sm:$0xf]  ;;  %v3535_v56 = vld [vmem:[%s4025_s7 + $0x154] sm:$0xf0]  ;;  %v2507_v61 = vor.u32 %v3503_v53, %v2506_v52 }
  0xb7   : > { %2073 = vmatpush.bf16.msra.mxu0 %v2587_v57  ;;  %v2762_v57 = vld [vmem:[%s4025_s7 + $0x248] sm:$0xf]  ;;  %v3599_v60 = vld [vmem:[%s4025_s7 + $0x354] sm:$0xf0]  ;;  %v2635_v62 = vor.u32 %v3535_v56, %v2634_v54 }
  0xb8   : > { %2055 = vmatmul.bf16.vlgmr.msrb.gmra.mxu2 %v4209_v39  ;;  %2042 = vmatmul.bf16.vlgmr.msrb.gmra.mxu1 %v4217_v45  ;;  %v2490_v0 = vld [vmem:[%s4025_s7 + $0x28] sm:$0xf]  ;;  %v3499_v1 = vld [vmem:[%s4025_s7 + $0x34] sm:$0xf0] }
  0xb9   : > { %2086 = vmatpush.bf16.msra.mxu1 %v2715_v58  ;;  %2099 = vmatpush.bf16.msra.mxu2 %v2843_v59  ;;  %v3567_v58 = vld [vmem:[%s4025_s7 + $0x254] sm:$0xf0]  ;;  %v2890_v59 = vld [vmem:[%s4025_s7 + $0x348] sm:$0xf]  ;;  %v2491_v11 = vor.u32 %v3499_v1, %v2490_v0 }
  0xba   : > { %2112 = vmatpush.bf16.msra.mxu3 %v2971_v63  ;;  %v2763_v63 = vor.u32 %v3567_v58, %v2762_v57  ;;  %v2618_v2 = vld [vmem:[%s4025_s7 + $0x128] sm:$0xf]  ;;  %v2891_v3 = vor.u32 %v3599_v60, %v2890_v59  ;;  %v3531_v4 = vld [vmem:[%s4025_s7 + $0x134] sm:$0xf0] }
  0xbb   : > { %2068 = vmatmul.bf16.vlgmr.msrb.gmra.mxu3 %v4215_v43  ;;  %2074 = vmatpush.bf16.msra.mxu0 %v2571_v6  ;;  %v2746_v6 = vld [vmem:[%s4025_s7 + $0x228] sm:$0xf]  ;;  %v3595_v10 = vld [vmem:[%s4025_s7 + $0x334] sm:$0xf0]  ;;  %v2619_v14 = vor.u32 %v3531_v4, %v2618_v2 }
  0xbc   : > { %v2474_v12 = vld [vmem:[%s4025_s7 + $0x8] sm:$0xf]  ;;  %v3527_v17 = vld [vmem:[%s4025_s7 + $0x114] sm:$0xf0] }
  0xbd   : > { %2087 = vmatpush.bf16.msra.mxu1 %v2699_v8  ;;  %2100 = vmatpush.bf16.msra.mxu2 %v2827_v9  ;;  %v3563_v8 = vld [vmem:[%s4025_s7 + $0x234] sm:$0xf0]  ;;  %v2874_v9 = vld [vmem:[%s4025_s7 + $0x328] sm:$0xf] }
  0xbe   : > { %2113 = vmatpush.bf16.msra.mxu3 %v2955_v13  ;;  %v3495_v13 = vld [vmem:[%s4025_s7 + $0x14] sm:$0xf0]  ;;  %v2747_v15 = vor.u32 %v3563_v8, %v2746_v6  ;;  %v2602_v16 = vld [vmem:[%s4025_s7 + $0x108] sm:$0xf] }
  0xbf   : > { %2075 = vmatpush.bf16.msra.mxu0 %v2555_v19  ;;  %v2730_v18 = vld [vmem:[%s4025_s7 + $0x208] sm:$0xf]  ;;  %v2875_v19 = vor.u32 %v3595_v10, %v2874_v9  ;;  %v3591_v24 = vld [vmem:[%s4025_s7 + $0x314] sm:$0xf0]  ;;  %v2475_v28 = vor.u32 %v3495_v13, %v2474_v12  ;;  %v2603_v32 = vor.u32 %v3527_v17, %v2602_v16 }
  0xc0   : > { %v3098_v25 = vld [vmem:[%s4025_s7 + $0x4e8] sm:$0xf]  ;;  %v3651_v26 = vld [vmem:[%s4025_s7 + $0x4f4] sm:$0xf0] }
  0xc1   : > { %2088 = vmatpush.bf16.msra.mxu1 %v2683_v20  ;;  %2101 = vmatpush.bf16.msra.mxu2 %v2811_v23  ;;  %v3559_v20 = vld [vmem:[%s4025_s7 + $0x214] sm:$0xf0]  ;;  %v2858_v23 = vld [vmem:[%s4025_s7 + $0x308] sm:$0xf]  ;;  %v3099_v37 = vor.u32 %v3651_v26, %v3098_v25 }
  0xc2   : > { %2114 = vmatpush.bf16.msra.mxu3 %v2939_v27  ;;  %v3226_v27 = vld [vmem:[%s4025_s7 + $0x5e8] sm:$0xf]  ;;  %v3683_v29 = vld [vmem:[%s4025_s7 + $0x5f4] sm:$0xf0]  ;;  %v2859_v36 = vor.u32 %v3591_v24, %v2858_v23 }
  0xc3   : > { %2076 = vmatpush.bf16.msra.mxu0 %v2539_v33  ;;  %v3354_v30 = vld [vmem:[%s4025_s7 + $0x6e8] sm:$0xf]  ;;  %v3715_v31 = vld [vmem:[%s4025_s7 + $0x6f4] sm:$0xf0]  ;;  %v2731_v33 = vor.u32 %v3559_v20, %v2730_v18  ;;  %v3227_v38 = vor.u32 %v3683_v29, %v3226_v27 }
  0xc4   : > { %v3082_v41 = vld [vmem:[%s4025_s7 + $0x4c8] sm:$0xf]  ;;  %v3647_v44 = vld [vmem:[%s4025_s7 + $0x4d4] sm:$0xf0] }
  0xc5   : > { %2089 = vmatpush.bf16.msra.mxu1 %v2667_v34  ;;  %2102 = vmatpush.bf16.msra.mxu2 %v2795_v35  ;;  %v3482_v34 = vld [vmem:[%s4025_s7 + $0x7e8] sm:$0xf]  ;;  %v3747_v35 = vld [vmem:[%s4025_s7 + $0x7f4] sm:$0xf0]  ;;  %v3083_v53 = vor.u32 %v3647_v44, %v3082_v41 }
  0xc6   : > { %2115 = vmatpush.bf16.msra.mxu3 %v2923_v40  ;;  %v3355_v40 = vor.u32 %v3715_v31, %v3354_v30  ;;  %v3210_v46 = vld [vmem:[%s4025_s7 + $0x5c8] sm:$0xf]  ;;  %v3483_v47 = vor.u32 %v3747_v35, %v3482_v34  ;;  %v3679_v48 = vld [vmem:[%s4025_s7 + $0x5d4] sm:$0xf0] }
  0xc7   : > { %2077 = vmatpush.bf16.msra.mxu0 %v2523_v49  ;;  %v3338_v49 = vld [vmem:[%s4025_s7 + $0x6c8] sm:$0xf]  ;;  %v3743_v52 = vld [vmem:[%s4025_s7 + $0x7d4] sm:$0xf0]  ;;  %v3211_v54 = vor.u32 %v3679_v48, %v3210_v46 }
  0xc8   : > { %v3066_v56 = vld [vmem:[%s4025_s7 + $0x4a8] sm:$0xf]  ;;  %v3643_v57 = vld [vmem:[%s4025_s7 + $0x4b4] sm:$0xf0] }
  0xc9   : > { %2090 = vmatpush.bf16.msra.mxu1 %v2651_v50  ;;  %2103 = vmatpush.bf16.msra.mxu2 %v2779_v51  ;;  %v3711_v50 = vld [vmem:[%s4025_s7 + $0x6d4] sm:$0xf0]  ;;  %v3466_v51 = vld [vmem:[%s4025_s7 + $0x7c8] sm:$0xf]  ;;  %v3067_v1 = vor.u32 %v3643_v57, %v3066_v56 }
  0xca   : > { %2116 = vmatpush.bf16.msra.mxu3 %v2907_v55  ;;  %v3339_v55 = vor.u32 %v3711_v50, %v3338_v49  ;;  %v3194_v58 = vld [vmem:[%s4025_s7 + $0x5a8] sm:$0xf]  ;;  %v3467_v59 = vor.u32 %v3743_v52, %v3466_v51  ;;  %v3675_v60 = vld [vmem:[%s4025_s7 + $0x5b4] sm:$0xf0] }
  0xcb   : > { %2078 = vmatpush.bf16.msra.mxu0 %v2507_v61  ;;  %v3322_v61 = vld [vmem:[%s4025_s7 + $0x6a8] sm:$0xf]  ;;  %v3739_v0 = vld [vmem:[%s4025_s7 + $0x7b4] sm:$0xf0]  ;;  %v3195_v2 = vor.u32 %v3675_v60, %v3194_v58 }
  0xcc   : > { %v3050_v4 = vld [vmem:[%s4025_s7 + $0x488] sm:$0xf]  ;;  %v3639_v6 = vld [vmem:[%s4025_s7 + $0x494] sm:$0xf0] }
  0xcd   : > { %2091 = vmatpush.bf16.msra.mxu1 %v2635_v62  ;;  %2104 = vmatpush.bf16.msra.mxu2 %v2763_v63  ;;  %v3707_v62 = vld [vmem:[%s4025_s7 + $0x6b4] sm:$0xf0]  ;;  %v3450_v63 = vld [vmem:[%s4025_s7 + $0x7a8] sm:$0xf] }
  0xce   : > { %2117 = vmatpush.bf16.msra.mxu3 %v2891_v3  ;;  %v3323_v3 = vor.u32 %v3707_v62, %v3322_v61  ;;  %v3178_v8 = vld [vmem:[%s4025_s7 + $0x588] sm:$0xf]  ;;  %v3451_v9 = vor.u32 %v3739_v0, %v3450_v63  ;;  %v3671_v10 = vld [vmem:[%s4025_s7 + $0x594] sm:$0xf0] }
  0xcf   : > { %2079 = vmatpush.bf16.msra.mxu0 %v2491_v11  ;;  %v3306_v11 = vld [vmem:[%s4025_s7 + $0x688] sm:$0xf]  ;;  %v3703_v12 = vld [vmem:[%s4025_s7 + $0x694] sm:$0xf0]  ;;  %v3179_v16 = vor.u32 %v3671_v10, %v3178_v8 }
  0xd0   : > { %v3434_v13 = vld [vmem:[%s4025_s7 + $0x788] sm:$0xf]  ;;  %v3307_v17 = vor.u32 %v3703_v12, %v3306_v11  ;;  %v3667_v24 = vld [vmem:[%s4025_s7 + $0x574] sm:$0xf0]  ;;  %v3521_v11 = vld [vmem:[%s4025_s7 + $0xec] sm:$0xf] }
  0xd1   : > { %2092 = vmatpush.bf16.msra.mxu1 %v2619_v14  ;;  %2105 = vmatpush.bf16.msra.mxu2 %v2747_v15  ;;  %v3735_v14 = vld [vmem:[%s4025_s7 + $0x794] sm:$0xf0]  ;;  %v3051_v15 = vor.u32 %v3639_v6, %v3050_v4  ;;  %v3034_v18 = vld [vmem:[%s4025_s7 + $0x468] sm:$0xf]  ;;  %v2588_v12 = vld [vmem:[%s4025_s7 + $0xf8] sm:$0xf0] }
  0xd2   : > { %2118 = vmatpush.bf16.msra.mxu3 %v2875_v19  ;;  %v3635_v19 = vld [vmem:[%s4025_s7 + $0x474] sm:$0xf0]  ;;  %v3162_v20 = vld [vmem:[%s4025_s7 + $0x568] sm:$0xf]  ;;  %v3435_v23 = vor.u32 %v3735_v14, %v3434_v13  ;;  %v3553_v13 = vld [vmem:[%s4025_s7 + $0x1ec] sm:$0xf] }
  0xd3   : > { %2080 = vmatpush.bf16.msra.mxu0 %v2475_v28  ;;  %v3290_v25 = vld [vmem:[%s4025_s7 + $0x668] sm:$0xf]  ;;  %v3699_v26 = vld [vmem:[%s4025_s7 + $0x674] sm:$0xf0]  ;;  %v3035_v29 = vor.u32 %v3635_v19, %v3034_v18  ;;  %v3163_v30 = vor.u32 %v3667_v24, %v3162_v20  ;;  %v2844_v18 = vld [vmem:[%s4025_s7 + $0x2f8] sm:$0xf0] }
  0xd4   : > { %v3418_v27 = vld [vmem:[%s4025_s7 + $0x768] sm:$0xf]  ;;  %v3731_v28 = vld [vmem:[%s4025_s7 + $0x774] sm:$0xf0]  ;;  %v3291_v31 = vor.u32 %v3699_v26, %v3290_v25  ;;  %v3617_v24 = vld [vmem:[%s4025_s7 + $0x3ec] sm:$0xf] }
  0xd5   : > { %2093 = vmatpush.bf16.msra.mxu1 %v2603_v32  ;;  %2106 = vmatpush.bf16.msra.mxu2 %v2731_v33  ;;  %v3018_v32 = vld [vmem:[%s4025_s7 + $0x448] sm:$0xf]  ;;  %v3631_v33 = vld [vmem:[%s4025_s7 + $0x454] sm:$0xf0]  ;;  %v3419_v35 = vor.u32 %v3731_v28, %v3418_v27  ;;  %v2972_v25 = vld [vmem:[%s4025_s7 + $0x3f8] sm:$0xf0]  ;;  %v2591_v28 = vor.u32 %v3521_v11, %v2588_v12 }
  0xd6   : > { %2119 = vmatpush.bf16.msra.mxu3 %v2859_v36  ;;  %2081 = vmatmul.bf16.vlgmr.msra.gmra.mxu0 %v4154_v21  ;;  %v3146_v34 = vld [vmem:[%s4025_s7 + $0x548] sm:$0xf]  ;;  %v3663_v36 = vld [vmem:[%s4025_s7 + $0x554] sm:$0xf0]  ;;  %v3019_v46 = vor.u32 %v3631_v33, %v3018_v32  ;;  %v3517_v33 = vld [vmem:[%s4025_s7 + $0xcc] sm:$0xf] }
  0xd7   : > { %2125 = vmatpush.bf16.msrb.mxu0 %v3099_v37  ;;  %v3274_v37 = vld [vmem:[%s4025_s7 + $0x648] sm:$0xf]  ;;  %v3727_v41 = vld [vmem:[%s4025_s7 + $0x754] sm:$0xf0]  ;;  %v3147_v48 = vor.u32 %v3663_v36, %v3146_v34  ;;  %v2572_v34 = vld [vmem:[%s4025_s7 + $0xd8] sm:$0xf0]  ;;  %v2975_v36 = vor.u32 %v3617_v24, %v2972_v25 }
  0xd8   : > { %2107 = vmatmul.bf16.vlgmr.msra.gmra.mxu2 %v4140_v5  ;;  %2094 = vmatmul.bf16.vlgmr.msra.gmra.mxu1 %v4157_v22  ;;  %v3002_v50 = vld [vmem:[%s4025_s7 + $0x428] sm:$0xf]  ;;  %v3627_v51 = vld [vmem:[%s4025_s7 + $0x434] sm:$0xf0]  ;;  %v2780_v24 = vld [vmem:[%s4025_s7 + $0x278] sm:$0xf0] }
  0xd9   : > { %2138 = vmatpush.bf16.msrb.mxu1 %v3227_v38  ;;  %2151 = vmatpush.bf16.msrb.mxu2 %v3355_v40  ;;  %v3695_v38 = vld [vmem:[%s4025_s7 + $0x654] sm:$0xf0]  ;;  %v3402_v40 = vld [vmem:[%s4025_s7 + $0x748] sm:$0xf]  ;;  %v3003_v61 = vor.u32 %v3627_v51, %v3002_v50  ;;  %v3513_v50 = vld [vmem:[%s4025_s7 + $0xac] sm:$0xf] }
  0xda   : > { %2164 = vmatpush.bf16.msrb.mxu3 %v3483_v47  ;;  %v3275_v49 = vor.u32 %v3695_v38, %v3274_v37  ;;  %v3130_v52 = vld [vmem:[%s4025_s7 + $0x528] sm:$0xf]  ;;  %v3691_v57 = vld [vmem:[%s4025_s7 + $0x634] sm:$0xf0]  ;;  %v2700_v37 = vld [vmem:[%s4025_s7 + $0x1d8] sm:$0xf0] }
  0xdb   : > { %2120 = vmatmul.bf16.vlgmr.msra.gmra.mxu3 %v4143_v7  ;;  %2126 = vmatpush.bf16.msrb.mxu0 %v3083_v53  ;;  %v4462_v53 = vpop.f32.mrf.mxu2  ;;  %v3258_v56 = vld [vmem:[%s4025_s7 + $0x628] sm:$0xf]  ;;  %v4467_v58 = vpop.f32.mrf.mxu3  ;;  %v3723_v60 = vld [vmem:[%s4025_s7 + $0x734] sm:$0xf0]  ;;  %v3581_v38 = vld [vmem:[%s4025_s7 + $0x2cc] sm:$0xf] }
  0xdc   : > { %v2986_v62 = vld [vmem:[%s4025_s7 + $0x408] sm:$0xf]  ;;  %v3623_v63 = vld [vmem:[%s4025_s7 + $0x414] sm:$0xf0]  ;;  %v2556_v51 = vld [vmem:[%s4025_s7 + $0xb8] sm:$0xf0] }
  0xdd   : > { %2139 = vmatpush.bf16.msrb.mxu1 %v3211_v54  ;;  %2152 = vmatpush.bf16.msrb.mxu2 %v3339_v55  ;;  %v3403_v54 = vor.u32 %v3727_v41, %v3402_v40  ;;  %v3659_v55 = vld [vmem:[%s4025_s7 + $0x534] sm:$0xf0]  ;;  %v3242_v4 = vld [vmem:[%s4025_s7 + $0x608] sm:$0xf]  ;;  %v2828_v40 = vld [vmem:[%s4025_s7 + $0x2d8] sm:$0xf0] }
  0xde   : > { %2165 = vmatpush.bf16.msrb.mxu3 %v3467_v59  ;;  %v3386_v59 = vld [vmem:[%s4025_s7 + $0x728] sm:$0xf]  ;;  %v3131_v0 = vor.u32 %v3659_v55, %v3130_v52  ;;  %v3687_v8 = vld [vmem:[%s4025_s7 + $0x614] sm:$0xf0]  ;;  %v3613_v41 = vld [vmem:[%s4025_s7 + $0x3cc] sm:$0xf] }
  0xdf   : > { %2127 = vmatpush.bf16.msrb.mxu0 %v3067_v1  ;;  %v3259_v1 = vor.u32 %v3691_v57, %v3258_v56  ;;  %v3387_v6 = vor.u32 %v3723_v60, %v3386_v59  ;;  %v3719_v10 = vld [vmem:[%s4025_s7 + $0x714] sm:$0xf0]  ;;  %v3545_v52 = vld [vmem:[%s4025_s7 + $0x1ac] sm:$0xf]  ;;  %v2684_v55 = vld [vmem:[%s4025_s7 + $0x1b8] sm:$0xf0]  ;;  %v2559_v60 = vor.u32 %v3513_v50, %v2556_v51 }
  0xe0   : > { %v3577_v56 = vld [vmem:[%s4025_s7 + $0x2ac] sm:$0xf]  ;;  %v2812_v57 = vld [vmem:[%s4025_s7 + $0x2b8] sm:$0xf0] }
  0xe1   : > { %2140 = vmatpush.bf16.msrb.mxu1 %v3195_v2  ;;  %2153 = vmatpush.bf16.msrb.mxu2 %v3323_v3  ;;  %v1874_v44 = vpop.f32.mrf.mxu0  ;;  %v1887_v47 = vpop.f32.mrf.mxu1  ;;  %v3114_v2 = vld [vmem:[%s4025_s7 + $0x508] sm:$0xf]  ;;  %v3655_v3 = vld [vmem:[%s4025_s7 + $0x514] sm:$0xf0]  ;;  %v3609_v59 = vld [vmem:[%s4025_s7 + $0x3ac] sm:$0xf] }
  0xe2   : > { %2166 = vmatpush.bf16.msrb.mxu3 %v3451_v9  ;;  %v3370_v9 = vld [vmem:[%s4025_s7 + $0x708] sm:$0xf]  ;;  %v3115_v20 = vor.u32 %v3655_v3, %v3114_v2  ;;  %v1888_v32 = vadd.f32 %v1887_v47, %v1874_v44  ;;  %v2575_v44 = vor.u32 %v3517_v33, %v2572_v34  ;;  %v3541_v2 = vld [vmem:[%s4025_s7 + $0x18c] sm:$0xf] }
  0xe3   : > { %2128 = vmatpush.bf16.msrb.mxu0 %v3051_v15  ;;  %v2987_v15 = vor.u32 %v3623_v63, %v2986_v62  ;;  %v1902_v26 = vpop.f32.mrf.mxu2  ;;  %v3371_v27 = vor.u32 %v3719_v10, %v3370_v9  ;;  %v2687_v62 = vor.u32 %v3545_v52, %v2684_v55  ;;  %v2815_v63 = vor.u32 %v3577_v56, %v2812_v57  ;;  %v3605_v9 = vld [vmem:[%s4025_s7 + $0x38c] sm:$0xf]  ;;  %v2924_v10 = vld [vmem:[%s4025_s7 + $0x398] sm:$0xf0] }
  0xe4   : > { %v3601_v25 = vld [vmem:[%s4025_s7 + $0x36c] sm:$0xf]  ;;  %v2908_v26 = vld [vmem:[%s4025_s7 + $0x378] sm:$0xf0] }
  0xe5   : > { %2141 = vmatpush.bf16.msrb.mxu1 %v3179_v16  ;;  %2154 = vmatpush.bf16.msrb.mxu2 %v3307_v17  ;;  %v2716_v16 = vld [vmem:[%s4025_s7 + $0x1f8] sm:$0xf0]  ;;  %v3585_v17 = vld [vmem:[%s4025_s7 + $0x2ec] sm:$0xf] }
  0xe6   : > { %2167 = vmatpush.bf16.msrb.mxu3 %v3435_v23  ;;  %v3243_v23 = vor.u32 %v3687_v8, %v3242_v4  ;;  %v2668_v4 = vld [vmem:[%s4025_s7 + $0x198] sm:$0xf0]  ;;  %v3533_v33 = vld [vmem:[%s4025_s7 + $0x14c] sm:$0xf] }
  0xe7   : > { %2129 = vmatpush.bf16.msrb.mxu0 %v3035_v29  ;;  %v1915_v29 = vpop.f32.mrf.mxu3  ;;  %v2796_v8 = vld [vmem:[%s4025_s7 + $0x298] sm:$0xf0]  ;;  %v2671_v12 = vor.u32 %v3541_v2, %v2668_v4  ;;  %v3529_v56 = vld [vmem:[%s4025_s7 + $0x12c] sm:$0xf] }
  0xe8   : > { %v2492_v55 = vld [vmem:[%s4025_s7 + $0x38] sm:$0xf0]  ;;  %v3493_v2 = vld [vmem:[%s4025_s7 + $0xc] sm:$0xf] }
  0xe9   : > { %2142 = vmatpush.bf16.msrb.mxu1 %v3163_v30  ;;  %2155 = vmatpush.bf16.msrb.mxu2 %v3291_v31  ;;  %v1876_v14 = vpop.f32.mrf.mxu0  ;;  %v1889_v19 = vpop.f32.mrf.mxu1  ;;  %v2719_v30 = vor.u32 %v3553_v13, %v2716_v16  ;;  %v2847_v31 = vor.u32 %v3585_v17, %v2844_v18  ;;  %v3537_v16 = vld [vmem:[%s4025_s7 + $0x16c] sm:$0xf] }
  0xea   : > { %2168 = vmatpush.bf16.msrb.mxu3 %v3419_v35  ;;  %v3549_v35 = vld [vmem:[%s4025_s7 + $0x1cc] sm:$0xf]  ;;  %v2927_v19 = vor.u32 %v3605_v9, %v2924_v10  ;;  %v2604_v9 = vld [vmem:[%s4025_s7 + $0x118] sm:$0xf0] }
  0xeb   : > { %2130 = vmatpush.bf16.msrb.mxu0 %v3019_v46  ;;  %v2956_v46 = vld [vmem:[%s4025_s7 + $0x3d8] sm:$0xf0]  ;;  %v2703_v47 = vor.u32 %v3549_v35, %v2700_v37  ;;  %v3505_v14 = vld [vmem:[%s4025_s7 + $0x6c] sm:$0xf]  ;;  %v2911_v35 = vor.u32 %v3601_v25, %v2908_v26 }
  0xec   : > { %v3565_v37 = vld [vmem:[%s4025_s7 + $0x24c] sm:$0xf] }
  0xed   : > { %2143 = vmatpush.bf16.msrb.mxu1 %v3147_v48  ;;  %2156 = vmatpush.bf16.msrb.mxu2 %v3275_v49  ;;  %v2831_v48 = vor.u32 %v3581_v38, %v2828_v40  ;;  %v1901_v49 = vadd.f32 %v4462_v53, %v1888_v32  ;;  %v2940_v53 = vld [vmem:[%s4025_s7 + $0x3b8] sm:$0xf0]  ;;  %v3557_v10 = vld [vmem:[%s4025_s7 + $0x20c] sm:$0xf] }
  0xee   : > { %2169 = vmatpush.bf16.msrb.mxu3 %v3403_v54  ;;  %v2959_v54 = vor.u32 %v3613_v41, %v2956_v46  ;;  %v2943_v3 = vor.u32 %v3609_v59, %v2940_v53  ;;  %v2508_v32 = vld [vmem:[%s4025_s7 + $0x58] sm:$0xf0]  ;;  %v3597_v46 = vld [vmem:[%s4025_s7 + $0x34c] sm:$0xf] }
  0xef   : > { %2131 = vmatpush.bf16.msrb.mxu0 %v3003_v61  ;;  %v1914_v61 = vadd.f32 %v4467_v58, %v1901_v49  ;;  %v2764_v38 = vld [vmem:[%s4025_s7 + $0x258] sm:$0xf0] }
  0xf0   : > { %v2767_v52 = vor.u32 %v3565_v37, %v2764_v38  ;;  %v3212_v37 = vld [vmem:[%s4025_s7 + $0x5d8] sm:$0xf0]  ;;  %v3709_v38 = vld [vmem:[%s4025_s7 + $0x6cc] sm:$0xf] }
  0xf1   : > { %2144 = vmatpush.bf16.msrb.mxu1 %v3131_v0  ;;  %2157 = vmatpush.bf16.msrb.mxu2 %v3259_v1  ;;  %v3509_v0 = vld [vmem:[%s4025_s7 + $0x8c] sm:$0xf]  ;;  %v2540_v1 = vld [vmem:[%s4025_s7 + $0x98] sm:$0xf0] }
  0xf2   : > { %2170 = vmatpush.bf16.msrb.mxu3 %v3387_v6  ;;  %v3573_v6 = vld [vmem:[%s4025_s7 + $0x28c] sm:$0xf]  ;;  %v2543_v58 = vor.u32 %v3509_v0, %v2540_v1  ;;  %v2876_v0 = vld [vmem:[%s4025_s7 + $0x338] sm:$0xf0] }
  0xf3   : > { %2132 = vmatpush.bf16.msrb.mxu0 %v2987_v15  ;;  %v2799_v13 = vor.u32 %v3573_v6, %v2796_v8  ;;  %v2524_v15 = vld [vmem:[%s4025_s7 + $0x78] sm:$0xf0]  ;;  %v3525_v8 = vld [vmem:[%s4025_s7 + $0x10c] sm:$0xf] }
  0xf4   : > { %v2607_v25 = vor.u32 %v3525_v8, %v2604_v9  ;;  %v3633_v9 = vld [vmem:[%s4025_s7 + $0x46c] sm:$0xf] }
  0xf5   : > { %2145 = vmatpush.bf16.msrb.mxu1 %v3115_v20  ;;  %2158 = vmatpush.bf16.msrb.mxu2 %v3243_v23  ;;  %v1926_v11 = vpop.f32.mrf.mxu0  ;;  %v2652_v20 = vld [vmem:[%s4025_s7 + $0x178] sm:$0xf0]  ;;  %v3569_v23 = vld [vmem:[%s4025_s7 + $0x26c] sm:$0xf] }
  0xf6   : > { %2171 = vmatpush.bf16.msrb.mxu3 %v3371_v27  ;;  %2133 = vmatmul.bf16.vlgmr.msrb.gmra.mxu0 %v4213_v42  ;;  %v1927_v17 = vadd.f32 %v1926_v11, %v1914_v61  ;;  %v2655_v29 = vor.u32 %v3537_v16, %v2652_v20  ;;  %v3561_v61 = vld [vmem:[%s4025_s7 + $0x22c] sm:$0xf]  ;;  %v3228_v20 = vld [vmem:[%s4025_s7 + $0x5f8] sm:$0xf0] }
  0xf7   : > { %2177 = vmatpush.bf16.msra.mxu0 %v2591_v28  ;;  %v1939_v18 = vpop.f32.mrf.mxu1  ;;  %v2527_v28 = vor.u32 %v3505_v14, %v2524_v15  ;;  %v2860_v14 = vld [vmem:[%s4025_s7 + $0x318] sm:$0xf0]  ;;  %v3649_v16 = vld [vmem:[%s4025_s7 + $0x4ec] sm:$0xf] }
  0xf8   : > { %2159 = vmatmul.bf16.vlgmr.msrb.gmra.mxu2 %v4209_v39  ;;  %2146 = vmatmul.bf16.vlgmr.msrb.gmra.mxu1 %v4217_v45  ;;  %v1940_v27 = vadd.f32 %v1939_v18, %v1927_v17  ;;  %v3100_v17 = vld [vmem:[%s4025_s7 + $0x4f8] sm:$0xf0]  ;;  %v3681_v18 = vld [vmem:[%s4025_s7 + $0x5ec] sm:$0xf] }
  0xf9   : > { %2190 = vmatpush.bf16.msra.mxu1 %v2719_v30  ;;  %2203 = vmatpush.bf16.msra.mxu2 %v2847_v31  ;;  %v2783_v30 = vor.u32 %v3569_v23, %v2780_v24  ;;  %v3501_v31 = vld [vmem:[%s4025_s7 + $0x4c] sm:$0xf]  ;;  %v3356_v24 = vld [vmem:[%s4025_s7 + $0x6f8] sm:$0xf0] }
  0xfa   : > { %2216 = vmatpush.bf16.msra.mxu3 %v2975_v36  ;;  %v2636_v36 = vld [vmem:[%s4025_s7 + $0x158] sm:$0xf0]  ;;  %v3713_v23 = vld [vmem:[%s4025_s7 + $0x6ec] sm:$0xf] }
  0xfb   : > { %2172 = vmatmul.bf16.vlgmr.msrb.gmra.mxu3 %v4215_v43  ;;  %2178 = vmatpush.bf16.msra.mxu0 %v2575_v44  ;;  %v1952_v34 = vpop.f32.mrf.mxu2  ;;  %v2892_v44 = vld [vmem:[%s4025_s7 + $0x358] sm:$0xf0]  ;;  %v2639_v51 = vor.u32 %v3533_v33, %v2636_v36  ;;  %v3645_v33 = vld [vmem:[%s4025_s7 + $0x4cc] sm:$0xf] }
  0xfc   : > { %v1953_v40 = vadd.f32 %v1952_v34, %v1940_v27  ;;  %v2895_v59 = vor.u32 %v3597_v46, %v2892_v44  ;;  %v3745_v27 = vld [vmem:[%s4025_s7 + $0x7ec] sm:$0xf]  ;;  %v3084_v34 = vld [vmem:[%s4025_s7 + $0x4d8] sm:$0xf0] }
  0xfd   : > { %2191 = vmatpush.bf16.msra.mxu1 %v2703_v47  ;;  %2204 = vmatpush.bf16.msra.mxu2 %v2831_v48  ;;  %v293_v47 = vld [vmem:[#allocation2 + $0x10] sm:$0xff]  ;;  %v2511_v48 = vor.u32 %v3501_v31, %v2508_v32  ;;  %v1928_v50 = vpop.f32.mrf.mxu0  ;;  %v3231_v31 = vor.u32 %v3681_v18, %v3228_v20  ;;  %v3359_v32 = vor.u32 %v3713_v23, %v3356_v24  ;;  %v3468_v46 = vld [vmem:[%s4025_s7 + $0x7d8] sm:$0xf0]  ;;  %v3629_v23 = vld [vmem:[%s4025_s7 + $0x44c] sm:$0xf] }
  0xfe   : > { %2217 = vmatpush.bf16.msra.mxu3 %v2959_v54  ;;  %v1965_v41 = vpop.f32.mrf.mxu3  ;;  %v3497_v54 = vld [vmem:[%s4025_s7 + $0x2c] sm:$0xf]  ;;  %v3087_v44 = vor.u32 %v3645_v33, %v3084_v34  ;;  %v3068_v50 = vld [vmem:[%s4025_s7 + $0x4b8] sm:$0xf0] }
  0xff   : > { %2179 = vmatpush.bf16.msra.mxu0 %v2559_v60  ;;  %v1966_v49 = vadd.f32 %v1965_v41, %v1953_v40  ;;  %v1941_v57 = vpop.f32.mrf.mxu1  ;;  %v2620_v60 = vld [vmem:[%s4025_s7 + $0x138] sm:$0xf0]  ;;  %v2495_v1 = vor.u32 %v3497_v54, %v2492_v55  ;;  %v3741_v41 = vld [vmem:[%s4025_s7 + $0x7cc] sm:$0xf] }
 0x100   : > { %v2623_v4 = vor.u32 %v3529_v56, %v2620_v60  ;;  %v3340_v40 = vld [vmem:[%s4025_s7 + $0x6d8] sm:$0xf0]  ;;  %v3705_v55 = vld [vmem:[%s4025_s7 + $0x6ac] sm:$0xf] }
 0x101   : > { %2192 = vmatpush.bf16.msra.mxu1 %v2687_v62  ;;  %2205 = vmatpush.bf16.msra.mxu2 %v2815_v63  ;;  %v2281_v53 = vadd.f32 %v1966_v49, %v293_v47  ;;  %v2748_v62 = vld [vmem:[%s4025_s7 + $0x238] sm:$0xf0]  ;;  %v3593_v63 = vld [vmem:[%s4025_s7 + $0x32c] sm:$0xf] }
 0x102   : > { %2218 = vmatpush.bf16.msra.mxu3 %v2943_v3  ;;  %v2476_v3 = vld [vmem:[%s4025_s7 + $0x18] sm:$0xf0]  ;;  %v2751_v6 = vor.u32 %v3561_v61, %v2748_v62  ;;  %v2879_v11 = vor.u32 %v3593_v63, %v2876_v0  ;;  %v3641_v49 = vld [vmem:[%s4025_s7 + $0x4ac] sm:$0xf] }
 0x103   : > { %2180 = vmatpush.bf16.msra.mxu0 %v2543_v58  ;;  %2285 = vst [vmem:[#allocation2 + $0x10] sm:$0xff] %v2281_v53  ;;  %v1954_v58 = vpop.f32.mrf.mxu2  ;;  %v3196_v54 = vld [vmem:[%s4025_s7 + $0x5b8] sm:$0xf0]  ;;  %v3737_v57 = vld [vmem:[%s4025_s7 + $0x7ac] sm:$0xf]  ;;  %v3071_v53 = vor.u32 %v3641_v49, %v3068_v50 }
 0x104   : > { %v3324_v56 = vld [vmem:[%s4025_s7 + $0x6b8] sm:$0xf0]  ;;  %v3637_v61 = vld [vmem:[%s4025_s7 + $0x48c] sm:$0xf] }
 0x105   : > { %2193 = vmatpush.bf16.msra.mxu1 %v2671_v12  ;;  %2206 = vmatpush.bf16.msra.mxu2 %v2799_v13  ;;  %v2732_v12 = vld [vmem:[%s4025_s7 + $0x218] sm:$0xf0]  ;;  %v3589_v13 = vld [vmem:[%s4025_s7 + $0x30c] sm:$0xf]  ;;  %v3327_v60 = vor.u32 %v3705_v55, %v3324_v56 }
 0x106   : > { %2219 = vmatpush.bf16.msra.mxu3 %v2927_v19  ;;  %v1967_v15 = vpop.f32.mrf.mxu3  ;;  %v2479_v19 = vor.u32 %v3493_v2, %v2476_v3  ;;  %v2735_v26 = vor.u32 %v3557_v10, %v2732_v12  ;;  %v3052_v62 = vld [vmem:[%s4025_s7 + $0x498] sm:$0xf0]  ;;  %v3733_v2 = vld [vmem:[%s4025_s7 + $0x78c] sm:$0xf] }
 0x107   : > { %2181 = vmatpush.bf16.msra.mxu0 %v2527_v28  ;;  %v3484_v28 = vld [vmem:[%s4025_s7 + $0x7f8] sm:$0xf0]  ;;  %v3665_v58 = vld [vmem:[%s4025_s7 + $0x56c] sm:$0xf] }
 0x108   : > { %v3487_v36 = vor.u32 %v3745_v27, %v3484_v28  ;;  %v3180_v0 = vld [vmem:[%s4025_s7 + $0x598] sm:$0xf0]  ;;  %v3721_v50 = vld [vmem:[%s4025_s7 + $0x72c] sm:$0xf] }
 0x109   : > { %2194 = vmatpush.bf16.msra.mxu1 %v2655_v29  ;;  %2207 = vmatpush.bf16.msra.mxu2 %v2783_v30  ;;  %v2863_v29 = vor.u32 %v3589_v13, %v2860_v14  ;;  %v3103_v30 = vor.u32 %v3649_v16, %v3100_v17  ;;  %v3436_v3 = vld [vmem:[%s4025_s7 + $0x798] sm:$0xf0]  ;;  %v3697_v14 = vld [vmem:[%s4025_s7 + $0x66c] sm:$0xf] }
 0x10a   : > { %2220 = vmatpush.bf16.msra.mxu3 %v2911_v35  ;;  %v3677_v35 = vld [vmem:[%s4025_s7 + $0x5cc] sm:$0xf]  ;;  %v3036_v10 = vld [vmem:[%s4025_s7 + $0x478] sm:$0xf0]  ;;  %v3439_v12 = vor.u32 %v3733_v2, %v3436_v3 }
 0x10b   : > { %2182 = vmatpush.bf16.msra.mxu0 %v2511_v48  ;;  %v3215_v47 = vor.u32 %v3677_v35, %v3212_v37  ;;  %v3343_v48 = vor.u32 %v3709_v38, %v3340_v40  ;;  %v3164_v13 = vld [vmem:[%s4025_s7 + $0x578] sm:$0xf0]  ;;  %v3729_v16 = vld [vmem:[%s4025_s7 + $0x76c] sm:$0xf]  ;;  %v3039_v18 = vor.u32 %v3633_v9, %v3036_v10 }
 0x10c   : > { %v3292_v15 = vld [vmem:[%s4025_s7 + $0x678] sm:$0xf0]  ;;  %v3625_v38 = vld [vmem:[%s4025_s7 + $0x42c] sm:$0xf] }
 0x10d   : > { %2195 = vmatpush.bf16.msra.mxu1 %v2639_v51  ;;  %2208 = vmatpush.bf16.msra.mxu2 %v2767_v52  ;;  %v3673_v51 = vld [vmem:[%s4025_s7 + $0x5ac] sm:$0xf]  ;;  %v3471_v52 = vor.u32 %v3741_v41, %v3468_v46  ;;  %v3420_v17 = vld [vmem:[%s4025_s7 + $0x778] sm:$0xf0]  ;;  %v3295_v20 = vor.u32 %v3697_v14, %v3292_v15  ;;  %v294_v14 = vld [vmem:[#allocation2] sm:$0xff] }
 0x10e   : > { %2221 = vmatpush.bf16.msra.mxu3 %v2895_v59  ;;  %v3452_v59 = vld [vmem:[%s4025_s7 + $0x7b8] sm:$0xf0]  ;;  %v3423_v27 = vor.u32 %v3729_v16, %v3420_v17  ;;  %v3657_v41 = vld [vmem:[%s4025_s7 + $0x52c] sm:$0xf] }
 0x10f   : > { %2183 = vmatpush.bf16.msra.mxu0 %v2495_v1  ;;  %v3455_v63 = vor.u32 %v3737_v57, %v3452_v59  ;;  %v3308_v1 = vld [vmem:[%s4025_s7 + $0x698] sm:$0xf0]  ;;  %v3621_v56 = vld [vmem:[%s4025_s7 + $0x40c] sm:$0xf] }
 0x110   : > { %v3020_v24 = vld [vmem:[%s4025_s7 + $0x458] sm:$0xf0]  ;;  %v3653_v59 = vld [vmem:[%s4025_s7 + $0x50c] sm:$0xf] }
 0x111   : > { %2196 = vmatpush.bf16.msra.mxu1 %v2623_v4  ;;  %2209 = vmatpush.bf16.msra.mxu2 %v2751_v6  ;;  %v3148_v28 = vld [vmem:[%s4025_s7 + $0x558] sm:$0xf0]  ;;  %v3023_v34 = vor.u32 %v3629_v23, %v3020_v24 }
 0x112   : > { %2222 = vmatpush.bf16.msra.mxu3 %v2879_v11  ;;  %v3404_v33 = vld [vmem:[%s4025_s7 + $0x758] sm:$0xf0] }
 0x113   : > { %2184 = vmatpush.bf16.msra.mxu0 %v2479_v19  ;;  %v4585_v4 = vpop.f32.mrf.mxu0  ;;  %v3167_v19 = vor.u32 %v3665_v58, %v3164_v13  ;;  %v3004_v40 = vld [vmem:[%s4025_s7 + $0x438] sm:$0xf0] }
 0x114   : > { %v3260_v49 = vld [vmem:[%s4025_s7 + $0x638] sm:$0xf0] }
 0x115   : > { %2197 = vmatpush.bf16.msra.mxu1 %v2607_v25  ;;  %2210 = vmatpush.bf16.msra.mxu2 %v2735_v26  ;;  %v4590_v11 = vpop.f32.mrf.mxu1  ;;  %v3661_v25 = vld [vmem:[%s4025_s7 + $0x54c] sm:$0xf]  ;;  %v2988_v57 = vld [vmem:[%s4025_s7 + $0x418] sm:$0xf0] }
 0x116   : > { %2223 = vmatpush.bf16.msra.mxu3 %v2863_v29  ;;  %2185 = vmatmul.bf16.vlgmr.msra.gmra.mxu0 %v4154_v21  ;;  %v3701_v21 = vld [vmem:[%s4025_s7 + $0x68c] sm:$0xf] }
 0x117   : > { %2229 = vmatpush.bf16.msrb.mxu0 %v3103_v30  ;;  %v3311_v8 = vor.u32 %v3701_v21, %v3308_v1  ;;  %v3693_v29 = vld [vmem:[%s4025_s7 + $0x64c] sm:$0xf]  ;;  %v3276_v30 = vld [vmem:[%s4025_s7 + $0x658] sm:$0xf0]  ;;  %v2991_v21 = vor.u32 %v3621_v56, %v2988_v57 }
 0x118   : > { %2211 = vmatmul.bf16.vlgmr.msra.gmra.mxu2 %v4140_v5  ;;  %2198 = vmatmul.bf16.vlgmr.msra.gmra.mxu1 %v4157_v22  ;;  %v3199_v5 = vor.u32 %v3673_v51, %v3196_v54  ;;  %v3055_v22 = vor.u32 %v3637_v61, %v3052_v62  ;;  %v3279_v37 = vor.u32 %v3693_v29, %v3276_v30  ;;  %v3388_v51 = vld [vmem:[%s4025_s7 + $0x738] sm:$0xf0]  ;;  %v3685_v61 = vld [vmem:[%s4025_s7 + $0x60c] sm:$0xf] }
 0x119   : > { %2242 = vmatpush.bf16.msrb.mxu1 %v3231_v31  ;;  %2255 = vmatpush.bf16.msrb.mxu2 %v3359_v32  ;;  %v3725_v32 = vld [vmem:[%s4025_s7 + $0x74c] sm:$0xf]  ;;  %v3244_v62 = vld [vmem:[%s4025_s7 + $0x618] sm:$0xf0] }
 0x11a   : > { %2268 = vmatpush.bf16.msrb.mxu3 %v3487_v36  ;;  %v3151_v36 = vor.u32 %v3661_v25, %v3148_v28  ;;  %v3247_v2 = vor.u32 %v3685_v61, %v3244_v62 }
 0x11b   : > { %2224 = vmatmul.bf16.vlgmr.msra.gmra.mxu3 %v4143_v7  ;;  %2230 = vmatpush.bf16.msrb.mxu0 %v3087_v44  ;;  %v3669_v7 = vld [vmem:[%s4025_s7 + $0x58c] sm:$0xf]  ;;  %v2004_v26 = vpop.f32.mrf.mxu2  ;;  %v1980_v35 = vpop.f32.mrf.mxu0  ;;  %v3407_v44 = vor.u32 %v3725_v32, %v3404_v33 }
 0x11c   : > { %v3183_v6 = vor.u32 %v3669_v7, %v3180_v0  ;;  %v3372_v0 = vld [vmem:[%s4025_s7 + $0x718] sm:$0xf0] }
 0x11d   : > { %2243 = vmatpush.bf16.msrb.mxu1 %v3215_v47  ;;  %2256 = vmatpush.bf16.msrb.mxu2 %v3343_v48  ;;  %v1993_v46 = vpop.f32.mrf.mxu1  ;;  %v3132_v47 = vld [vmem:[%s4025_s7 + $0x538] sm:$0xf0]  ;;  %v3689_v48 = vld [vmem:[%s4025_s7 + $0x62c] sm:$0xf] }
 0x11e   : > { %2269 = vmatpush.bf16.msrb.mxu3 %v3471_v52  ;;  %v2017_v31 = vpop.f32.mrf.mxu3  ;;  %v3007_v52 = vor.u32 %v3625_v38, %v3004_v40  ;;  %v3135_v54 = vor.u32 %v3657_v41, %v3132_v47  ;;  %v3263_v55 = vor.u32 %v3689_v48, %v3260_v49 }
 0x11f   : > { %2231 = vmatpush.bf16.msrb.mxu0 %v3071_v53 }
 0x121   : > { %2244 = vmatpush.bf16.msrb.mxu1 %v3199_v5  ;;  %2257 = vmatpush.bf16.msrb.mxu2 %v3327_v60  ;;  %v3391_v5 = vor.u32 %v3721_v50, %v3388_v51  ;;  %v3116_v60 = vld [vmem:[%s4025_s7 + $0x518] sm:$0xf0] }
 0x122   : > { %2270 = vmatpush.bf16.msrb.mxu3 %v3455_v63  ;;  %v3717_v63 = vld [vmem:[%s4025_s7 + $0x70c] sm:$0xf]  ;;  %v3119_v1 = vor.u32 %v3653_v59, %v3116_v60 }
 0x123   : > { %2232 = vmatpush.bf16.msrb.mxu0 %v3055_v22  ;;  %v2006_v53 = vpop.f32.mrf.mxu2  ;;  %v3375_v3 = vor.u32 %v3717_v63, %v3372_v0  ;;  %v1992_v22 = vadd.f32 %v4590_v11, %v4585_v4 }
 0x125   : > { %2245 = vmatpush.bf16.msrb.mxu1 %v3183_v6  ;;  %2258 = vmatpush.bf16.msrb.mxu2 %v3311_v8  ;;  %v2005_v6 = vadd.f32 %v2004_v26, %v1992_v22 }
 0x126   : > { %2271 = vmatpush.bf16.msrb.mxu3 %v3439_v12  ;;  %v2019_v7 = vpop.f32.mrf.mxu3 }
 0x127   : > { %2233 = vmatpush.bf16.msrb.mxu0 %v3039_v18  ;;  %v2018_v8 = vadd.f32 %v2017_v31, %v2005_v6 }
 0x129   : > { %2246 = vmatpush.bf16.msrb.mxu1 %v3167_v19  ;;  %2259 = vmatpush.bf16.msrb.mxu2 %v3295_v20 }
 0x12a   : > { %2272 = vmatpush.bf16.msrb.mxu3 %v3423_v27 }
 0x12b   : > { %2234 = vmatpush.bf16.msrb.mxu0 %v3023_v34 }
 0x12d   : > { %2247 = vmatpush.bf16.msrb.mxu1 %v3151_v36  ;;  %2260 = vmatpush.bf16.msrb.mxu2 %v3279_v37  ;;  %v295_v37 = vld [vmem:[#allocation2 + $0x18] sm:$0xff] }
 0x12e   : > { %2273 = vmatpush.bf16.msrb.mxu3 %v3407_v44 }
 0x12f   : > { %2235 = vmatpush.bf16.msrb.mxu0 %v3007_v52 }
 0x131   : > { %2248 = vmatpush.bf16.msrb.mxu1 %v3135_v54  ;;  %2261 = vmatpush.bf16.msrb.mxu2 %v3263_v55 }
 0x132   : > { %2274 = vmatpush.bf16.msrb.mxu3 %v3391_v5 }
 0x133   : > { %2236 = vmatpush.bf16.msrb.mxu0 %v2991_v21  ;;  %v2030_v9 = vpop.f32.mrf.mxu0 }
 0x134   : > { %v2031_v10 = vadd.f32 %v2030_v9, %v2018_v8 }
 0x135   : > { %2249 = vmatpush.bf16.msrb.mxu1 %v3119_v1  ;;  %2262 = vmatpush.bf16.msrb.mxu2 %v3247_v2  ;;  %v2043_v58 = vpop.f32.mrf.mxu1  ;;  %v296_v1 = vld [vmem:[#allocation2 + $0x8] sm:$0xff] }
 0x136   : > { %2275 = vmatpush.bf16.msrb.mxu3 %v3375_v3  ;;  %2237 = vmatmul.bf16.vlgmr.msrb.gmra.mxu0 %v4213_v42  ;;  %v2044_v12 = vadd.f32 %v2043_v58, %v2031_v10 }
 0x138   : > { %2250 = vmatmul.bf16.vlgmr.msrb.gmra.mxu1 %v4217_v45  ;;  %2263 = vmatmul.bf16.vlgmr.msrb.gmra.mxu2 %v4209_v39 }
 0x139   : > { %2276 = vmatmul.bf16.vlgmr.msrb.gmra.mxu3 %v4215_v43 }
 0x13b   : > { %v2056_v13 = vpop.f32.mrf.mxu2  ;;  %v2032_v16 = vpop.f32.mrf.mxu0 }
 0x13c   : > { %v2057_v4 = vadd.f32 %v2056_v13, %v2044_v12 }
 0x13d   : > { %v2045_v17 = vpop.f32.mrf.mxu1 }
 0x13e   : > { %v2069_v11 = vpop.f32.mrf.mxu3 }
 0x13f   : > { %v2070_v15 = vadd.f32 %v2069_v11, %v2057_v4 }
 0x141   : > { %v2282_v42 = vadd.f32 %v2070_v15, %v294_v14 }
 0x143   : > { %2286 = vst [vmem:[#allocation2] sm:$0xff] %v2282_v42  ;;  %v2058_v18 = vpop.f32.mrf.mxu2 }
 0x146   : > { %v2071_v45 = vpop.f32.mrf.mxu3 }
 0x153   : > { %v2082_v19 = vpop.f32.mrf.mxu0 }
 0x155   : > { %v2095_v39 = vpop.f32.mrf.mxu1 }
 0x156   : > { %v2096_v27 = vadd.f32 %v2095_v39, %v2082_v19 }
 0x15b   : > { %v2108_v20 = vpop.f32.mrf.mxu2  ;;  %v2084_v23 = vpop.f32.mrf.mxu0 }
 0x15c   : > { %v2109_v28 = vadd.f32 %v2108_v20, %v2096_v27 }
 0x15d   : > { %v2097_v24 = vpop.f32.mrf.mxu1 }
 0x15e   : > { %v2121_v43 = vpop.f32.mrf.mxu3 }
 0x15f   : > { %v2122_v29 = vadd.f32 %v2121_v43, %v2109_v28 }
 0x163   : > { %v2110_v25 = vpop.f32.mrf.mxu2 }
 0x166   : > { %v2123_v26 = vpop.f32.mrf.mxu3 }
 0x173   : > { %v2134_v30 = vpop.f32.mrf.mxu0 }
 0x174   : > { %v2135_v31 = vadd.f32 %v2134_v30, %v2122_v29 }
 0x175   : > { %v2147_v32 = vpop.f32.mrf.mxu1 }
 0x176   : > { %v2148_v33 = vadd.f32 %v2147_v32, %v2135_v31 }
 0x17b   : > { %v2160_v34 = vpop.f32.mrf.mxu2  ;;  %v2136_v40 = vpop.f32.mrf.mxu0 }
 0x17c   : > { %v2161_v35 = vadd.f32 %v2160_v34, %v2148_v33 }
 0x17d   : > { %v2149_v41 = vpop.f32.mrf.mxu1 }
 0x17e   : > { %v2173_v36 = vpop.f32.mrf.mxu3 }
 0x17f   : > { %v2174_v38 = vadd.f32 %v2173_v36, %v2161_v35 }
 0x181   : > { %v2283_v46 = vadd.f32 %v2174_v38, %v295_v37 }
 0x183   : > { %2287 = vst [vmem:[#allocation2 + $0x18] sm:$0xff] %v2283_v46  ;;  %v2162_v44 = vpop.f32.mrf.mxu2 }
 0x186   : > { %v2175_v47 = vpop.f32.mrf.mxu3 }
 0x193   : > { %v2186_v48 = vpop.f32.mrf.mxu0 }
 0x195   : > { %v2199_v49 = vpop.f32.mrf.mxu1 }
 0x196   : > { %v2200_v57 = vadd.f32 %v2199_v49, %v2186_v48 }
 0x19b   : > { %v2212_v50 = vpop.f32.mrf.mxu2  ;;  %v2188_v52 = vpop.f32.mrf.mxu0 }
 0x19c   : > { %v2213_v59 = vadd.f32 %v2212_v50, %v2200_v57 }
 0x19d   : > { %v2201_v54 = vpop.f32.mrf.mxu1 }
 0x19e   : > { %v2225_v51 = vpop.f32.mrf.mxu3 }
 0x19f   : > { %v2226_v53 = vadd.f32 %v2225_v51, %v2213_v59 }
 0x1a3   : > { %v2214_v55 = vpop.f32.mrf.mxu2 }
 0x1a6   : > { %v2227_v56 = vpop.f32.mrf.mxu3 }
 0x1b3   : > { %v2238_v5 = vpop.f32.mrf.mxu0 }
 0x1b4   : > { %v2239_v61 = vadd.f32 %v2238_v5, %v2226_v53 }
 0x1b5   : > { %v2251_v60 = vpop.f32.mrf.mxu1 }
 0x1b6   : > { %v2252_v62 = vadd.f32 %v2251_v60, %v2239_v61 }
 0x1bb   : > { %v2264_v7 = vpop.f32.mrf.mxu2  ;;  %v2240_v21 = vpop.f32.mrf.mxu0 }
 0x1bc   : > { %v2265_v63 = vadd.f32 %v2264_v7, %v2252_v62  ;;  %v2277_v0 = vpop.f32.mrf.mxu3 }
 0x1bd   : > { %v2253_v2 = vpop.f32.mrf.mxu1 }
 0x1be   : > { %v2278_v3 = vadd.f32 %v2277_v0, %v2265_v63 }
 0x1c0   : > { %v2284_v22 = vadd.f32 %v2278_v3, %v296_v1  ;;  %2292 = sbr.rel (%p3488_p3) target bundleno = 464 (0x1d0), region = 44 }
 0x1c2   : > { %2288 = vst [vmem:[#allocation2 + $0x8] sm:$0xff] %v2284_v22 }
 0x1c3   : > { %v2266_v6 = vpop.f32.mrf.mxu2 }
 0x1c4   : > { %v2279_v8 = vpop.f32.mrf.mxu3 }
 0x1c5   : > { %v2293_v9 = vld [vmem:[#allocation2 + $0x10] sm:$0xff]  ;;  %v2297_v10 = vld [vmem:[%s273_s12] sm:$0xf]  ;;  %v2295_v4 = vld [vmem:[#allocation2 + $0x18] sm:$0xff] }
 0x1c6   : > { %v2294_v58 = vld [vmem:[#allocation2] sm:$0xff]  ;;  %v2299_v12 = vperm.slane %v2297_v10, 0  ;;  %v2300_v13 = vperm.slane %v2297_v10, 1  ;;  %v2301_v11 = vperm.slane %v2297_v10, 2  ;;  %v2302_v15 = vperm.slane %v2297_v10, 3 }
 0x1c8   : > { %v2307_v16 = vadd.f32 %v2299_v12, %v2293_v9  ;;  %v2308_v17 = vadd.f32 %v2300_v13, %v2294_v58  ;;  %v2309_v42 = vadd.f32 %v2301_v11, %v2295_v4 }
 0x1c9   : > { %v2296_v14 = vld [vmem:[#allocation2 + $0x8] sm:$0xff] }
 0x1ca   : > { %v2310_v18 = vadd.f32 %v2302_v15, %v2296_v14  ;;  %v2311_v45 = vmax.f32 %v2307_v16, 0.0  ;;  %v2312_v19 = vmax.f32 %v2308_v17, 0.0  ;;  %v2313_v39 = vmax.f32 %v2309_v42, 0.0 }
 0x1cc   : > { %v2314_v20 = vmax.f32 %v2310_v18, 0.0  ;;  %2315 = vst [vmem:[%s4048_s27] sm:$0xff] %v2311_v45 }
 0x1cd   : > { %2316 = vst [vmem:[%s4048_s27 + $0x8] sm:$0xff] %v2312_v19 }
 0x1ce   : > { %2317 = vst [vmem:[%s4048_s27 + $0x10] sm:$0xff] %v2313_v39 }
 0x1cf   : > { %2318 = vst [vmem:[%s4048_s27 + $0x18] sm:$0xff] %v2314_v20 }
 0x1d0 PF: > { %s16_s19 = sadd.s32 1, %s3919_s19   ;;  %s4669_s30 = sld [smem:[#allocation6_spill]] }
 0x1d1   : > { %p13_p4 = scmp.ge.s32.totalorder %s16_s19, 74   ;;  %s4670_s12 = smov %s3895_s13 }
 0x1d2   : > { %s4671_s13 = smov %s3899_s14  ;;  %s4672_s14 = smov %s4012_s5 }
 0x1d3   : > { %s4673_s15 = smov %s3911_s17  ;;  %s4674_s16 = smov %s3915_s18 }
 0x1d4   : > { %s4675_s17 = smov %s4678_s21  ;;  %15 = sbr.rel (!%p13_p4) target bundleno = 5 (0x5), region = 86 }
 0x1d6   : > { %s4676_s18 = smov %s4669_s30 }
 0x1d9   :  { %2349 = vsyncpa [#allocation4], 1 }
 0x1da   :  { %2351 = vsyncpa [#allocation4 + $0x1], 1 }

// kernel: forward.14
= control target key start
LH: loop header
LB: loop body
LE: loop exit
PB: predicated region body
PF: predicated region fallthrough
CT: control target
= control target key end

     0   :  { %8 = vsyncpa [#allocation4], 0  ;;  %s4661_s0 = inlined_call_operand.vmem [shape: bf16[8,4096], index: 0, kind: input, shape index: {}]   ;;  %s4662_s1 = inlined_call_operand.hbm [shape: bf16[4096,4096], index: 1, kind: input, shape index: {}]   ;;  %s4663_s2 = inlined_call_operand.vmem [shape: f32[1,4096], index: 2, kind: input, shape index: {}]   ;;  %s4664_s3 = inlined_call_operand.vmem [shape: f32[8,4096], index: 3, kind: output, shape index: {}]  }
   0x1   :  { %10 = vsyncpa [#allocation4 + $0x1], 0  ;;  %s3945_s12 = smov 0   ;;  %s3947_s13 = smov 0  }
   0x2   :  { %s3949_s14 = smov 0   ;;  %s3951_s15 = smov 0  }
   0x3   :  { %s3953_s16 = smov 0   ;;  %s3955_s17 = smov 0  }
   0x4   :  { %s3957_s18 = smov 0   ;;  %s3959_s19 = smov 0  }
   0x5 LB: > { %s2447_s20 = sadd.s32 4294967295, %s3919_s19   ;;  %s28_s21 = sadd.s32 1, %s3911_s17  ;;  %s3919_s19 = sphi %s3959_s19, %s16_s19   ;;  %s3915_s18 = sphi %s3957_s18, %s4676_s18   ;;  %s3911_s17 = sphi %s3955_s17, %s4675_s17   ;;  %s3907_s16 = sphi %s3953_s16, %s4674_s16   ;;  %s3903_s15 = sphi %s3951_s15, %s4673_s15   ;;  %s3899_s14 = sphi %s3949_s14, %s4672_s14   ;;  %s3895_s13 = sphi %s3947_s13, %s4671_s13   ;;  %s3891_s12 = sphi %s3945_s12, %s4670_s12  }
   0x6   : > { %p29_p0 = scmp.ge.s32.totalorder %s28_s21, 4  ;;  %s31_s22 = sadd.s32 1, %s3915_s18 }
   0x7   : > { %s72_s23 = sadd.s32 1, %s3899_s14  ;;  %p79_p1 = scmp.ne.s32.totalorder %s3899_s14, %s3895_s13 }
   0x8   : > { %s4678_s21 = smov (%p29_p0, %s28_s21), 0  ;;  %s4680_s22 = smov (!%p29_p0, %s31_s22), %s3915_s18 }
   0x9   : > { %s67_s24 = ssub.s32 %s3911_s17, %s4678_s21  ;;  %p80_p2 = scmp.eq.s32.totalorder %s3919_s19, 0 }
   0xa   : > { %p33_p3 = scmp.ge.s32.totalorder %s4680_s22, 8  ;;  %p85_p4 = scmp.ne.s32.totalorder %s3895_s13, %s3891_s12 }
   0xb   : > { %p3996_p5 = por %p80_p2, %p79_p1  ;;  %p86_p6 = scmp.eq.s32.totalorder %s2447_s20, 0 }
   0xc   : > { %s4682_s22 = smov (%p33_p3, %s4680_s22), 0  ;;  %p3754_p8 = scmp.lt.s32.totalorder %s3919_s19, 32 }
   0xd   : > { %4667 = sst [smem:[#allocation6_spill]] %s4682_s22  ;;  %p4002_p7 = por %p86_p6, %p85_p4 }
   0xe   : > { %s68_s27 = ssub.s32 %s3915_s18, %s4682_s22  ;;  %s176_s29 = sand.u32 1, %s3899_s14  }
   0xf   : > { %s69_s28 = sor.u32 %s68_s27, %s67_s24  ;;  %s2451_s30 = sshll.u32 %s176_s29, 11 }
  0x10   : > { %p70_p9 = scmp.eq.s32.totalorder %s69_s28, 0  ;;  %s2453_s4 = sshll.u32 %s3915_s18, 2 }
  0x11   : > { %s3491_s6 = sshll.u32 %s3911_s17, 12  ;;  %s180_s8 = scalar_lea.vmem [#allocation3], %s2451_s30 }
  0x12   : > { %s4012_s5 = scalar_select %p70_p9, %s3899_s14, %s72_s23  }
  0x13   : > { %s186_s7 = sadd.s32 %s3491_s6, %s2453_s4  ;;  %s191_s9 = sshll.u32 %s180_s8, 4  ;;  %s192_s9 = int_to_ptr.vmem [resolvable:$true] %s191_s9 }
  0x14   : > { %s2455_s10 = sshll.u32 %s186_s7, 2  ;;  %p3751_p10 = pnand %p3754_p8, %p3996_p5 }
  0x15   : > { %s188_s20 = scalar_lea.hbm %s4662_s1, %s2455_s10  ;;  %s177_s27 = scalar_lea.sflag [#allocation4], %s176_s29 }
  0x16   : > { %s189_s24 = sshll.u32 %s188_s20, 4  ;;  %s3921_s23 = smov 2048   ;;  %s190_s24 = int_to_ptr.hbm [resolvable:$true] %s189_s24 }
  0x17   : > { %s3922_s28 = smov 256   ;;  %s3923_s22 = smov 16  }
  0x18   : > { %3753 = dma.hbm_to_vmem [thread:$0]  (!%p3751_p10), %s190_s24, 32768, %s192_s9, %s177_s27, %s3921_s23, %s3922_s28, %s3923_s22  }
  0x19   : > { %p2456_p11 = scmp.ge.s32.totalorder %s3919_s19, 1  ;;  %p207_p12 = scmp.lt.s32.totalorder %s3919_s19, 33 }
  0x1b   : > { %p208_p13 = pnand %p2456_p11, %p207_p12 }
  0x1c   : > { %s213_s30 = sand.u32 (!%p208_p13), 1, %s3895_s13  }
  0x1d   : > { %211 = sbr.rel (%p208_p13) target bundleno = 464 (0x1d0), region = 32  ;;  %s2457_s4 = sshll.u32 (!%p208_p13), %s213_s30, 11 }
  0x1e   : > { %s214_s6 = scalar_lea.sflag (!%p208_p13), [#allocation4], %s213_s30  ;;  %s4025_s7 = scalar_lea.vmem (!%p208_p13), [#allocation3], %s2457_s4 }
  0x22   : > { %3886 = dma.done.wait (%p4002_p7), %s214_s6, 32768  }
  0x23   : > { %3888 = vsyncadd (%p4002_p7), %s214_s6, 4294934528  ;;  %s2458_s25 = sshll.u32 %s3903_s15, 3  ;;  %s2460_s22 = sshll.u32 %s3907_s16, 2 }
  0x24   : > { %p261_p0 = scmp.lt.s32.totalorder %s2458_s25, 31  ;;  %p271_p1 = scmp.lt.s32.totalorder %s2460_s22, 31 }
  0x25   : > { %p2463_p2 = scmp.ne.s32.totalorder %s3903_s15, 0 }
  0x26   : > { %s4684_s25 = smov (!%p261_p0, %s2458_s25), 31  ;;  %s4686_s22 = smov (!%p271_p1, %s2460_s22), 31 }
  0x27   : > { %s2459_s29 = sshll.u32 %s4684_s25, 2  ;;  %s273_s12 = scalar_lea.vmem %s4663_s2, %s4686_s22 }
  0x28   : > { %s4038_s10 = scalar_lea.vmem %s4661_s0, %s2459_s29  ;;  %s2462_s20 = sshll.u32 %s4686_s22, 3 }
  0x29   : > { %s4048_s27 = scalar_lea.vmem %s4664_s3, %s2462_s20  ;;  %288 = sbr.rel (%p2463_p2) target bundleno = 51 (0x33), region = 40 }
  0x2e   : > { %v3924_v0 = vmov 0.0  }
  0x2f   : > { %289 = vst [vmem:[#allocation2 + $0x10] sm:$0xff] %v3924_v0 }
  0x30   : > { %290 = vst [vmem:[#allocation2] sm:$0xff] %v3924_v0 }
  0x31   : > { %291 = vst [vmem:[#allocation2 + $0x18] sm:$0xff] %v3924_v0 }
  0x32   : > { %292 = vst [vmem:[#allocation2 + $0x8] sm:$0xff] %v3924_v0 }
  0x33 PF: > { %v2578_v1 = vld [vmem:[%s4025_s7 + $0xe0] sm:$0xf]  ;;  %v3522_v2 = vld [vmem:[%s4025_s7 + $0xec] sm:$0xf0]  ;;  %p3488_p3 = scmp.ne.s32.totalorder %s3903_s15, 3 }
  0x34   : > { %v2706_v3 = vld [vmem:[%s4025_s7 + $0x1e0] sm:$0xf]  ;;  %v2579_v4 = vor.u32 %v3522_v2, %v2578_v1  ;;  %v3554_v5 = vld [vmem:[%s4025_s7 + $0x1ec] sm:$0xf0] }
  0x35   : > { %v2834_v6 = vld [vmem:[%s4025_s7 + $0x2e0] sm:$0xf]  ;;  %v3586_v7 = vld [vmem:[%s4025_s7 + $0x2ec] sm:$0xf0]  ;;  %v2707_v8 = vor.u32 %v3554_v5, %v2706_v3 }
  0x36   : > { %v2835_v9 = vor.u32 %v3586_v7, %v2834_v6  ;;  %v2962_v10 = vld [vmem:[%s4025_s7 + $0x3e0] sm:$0xf]  ;;  %v3618_v11 = vld [vmem:[%s4025_s7 + $0x3ec] sm:$0xf0]  ;;  %1865 = vmatpush.bf16.msra.mxu0 %v2579_v4 }
  0x37   : > { %v2562_v12 = vld [vmem:[%s4025_s7 + $0xc0] sm:$0xf]  ;;  %v2963_v13 = vor.u32 %v3618_v11, %v2962_v10  ;;  %v3518_v14 = vld [vmem:[%s4025_s7 + $0xcc] sm:$0xf0]  ;;  %1878 = vmatpush.bf16.msra.mxu1 %v2707_v8 }
  0x38   : > { %v2690_v15 = vld [vmem:[%s4025_s7 + $0x1c0] sm:$0xf]  ;;  %v3550_v16 = vld [vmem:[%s4025_s7 + $0x1cc] sm:$0xf0]  ;;  %1891 = vmatpush.bf16.msra.mxu2 %v2835_v9  ;;  %v2563_v17 = vor.u32 %v3518_v14, %v2562_v12 }
  0x39   : > { %v2691_v18 = vor.u32 %v3550_v16, %v2690_v15  ;;  %v2818_v19 = vld [vmem:[%s4025_s7 + $0x2c0] sm:$0xf]  ;;  %v3582_v20 = vld [vmem:[%s4025_s7 + $0x2cc] sm:$0xf0]  ;;  %1904 = vmatpush.bf16.msra.mxu3 %v2963_v13 }
  0x3a   : > { %v2946_v21 = vld [vmem:[%s4025_s7 + $0x3c0] sm:$0xf]  ;;  %v2819_v22 = vor.u32 %v3582_v20, %v2818_v19  ;;  %v3614_v23 = vld [vmem:[%s4025_s7 + $0x3cc] sm:$0xf0]  ;;  %1866 = vmatpush.bf16.msra.mxu0 %v2563_v17 }
  0x3b   : > { %v2546_v24 = vld [vmem:[%s4025_s7 + $0xa0] sm:$0xf]  ;;  %v3514_v25 = vld [vmem:[%s4025_s7 + $0xac] sm:$0xf0]  ;;  %v2947_v26 = vor.u32 %v3614_v23, %v2946_v21  ;;  %1879 = vmatpush.bf16.msra.mxu1 %v2691_v18 }
  0x3c   : > { %v2674_v27 = vld [vmem:[%s4025_s7 + $0x1a0] sm:$0xf]  ;;  %v3546_v28 = vld [vmem:[%s4025_s7 + $0x1ac] sm:$0xf0]  ;;  %v2547_v30 = vor.u32 %v3514_v25, %v2546_v24  ;;  %1892 = vmatpush.bf16.msra.mxu2 %v2819_v22 }
  0x3d   : > { %v2802_v29 = vld [vmem:[%s4025_s7 + $0x2a0] sm:$0xf]  ;;  %v3578_v31 = vld [vmem:[%s4025_s7 + $0x2ac] sm:$0xf0]  ;;  %v2675_v34 = vor.u32 %v3546_v28, %v2674_v27  ;;  %1905 = vmatpush.bf16.msra.mxu3 %v2947_v26 }
  0x3e   : > { %v2930_v32 = vld [vmem:[%s4025_s7 + $0x3a0] sm:$0xf]  ;;  %v3610_v33 = vld [vmem:[%s4025_s7 + $0x3ac] sm:$0xf0]  ;;  %v2803_v35 = vor.u32 %v3578_v31, %v2802_v29  ;;  %1867 = vmatpush.bf16.msra.mxu0 %v2547_v30 }
  0x3f   : > { %v2530_v36 = vld [vmem:[%s4025_s7 + $0x80] sm:$0xf]  ;;  %v3510_v37 = vld [vmem:[%s4025_s7 + $0x8c] sm:$0xf0]  ;;  %v2931_v39 = vor.u32 %v3610_v33, %v2930_v32  ;;  %1880 = vmatpush.bf16.msra.mxu1 %v2675_v34 }
  0x40   : > { %v2658_v38 = vld [vmem:[%s4025_s7 + $0x180] sm:$0xf]  ;;  %v3542_v40 = vld [vmem:[%s4025_s7 + $0x18c] sm:$0xf0]  ;;  %v2531_v45 = vor.u32 %v3510_v37, %v2530_v36  ;;  %1893 = vmatpush.bf16.msra.mxu2 %v2803_v35 }
  0x41   : > { %v2786_v41 = vld [vmem:[%s4025_s7 + $0x280] sm:$0xf]  ;;  %v3574_v42 = vld [vmem:[%s4025_s7 + $0x28c] sm:$0xf0]  ;;  %v2659_v46 = vor.u32 %v3542_v40, %v2658_v38  ;;  %1906 = vmatpush.bf16.msra.mxu3 %v2931_v39 }
  0x42   : > { %v2914_v43 = vld [vmem:[%s4025_s7 + $0x380] sm:$0xf]  ;;  %v3606_v44 = vld [vmem:[%s4025_s7 + $0x38c] sm:$0xf0]  ;;  %v2787_v47 = vor.u32 %v3574_v42, %v2786_v41  ;;  %1868 = vmatpush.bf16.msra.mxu0 %v2531_v45 }
  0x43   : > { %v2514_v48 = vld [vmem:[%s4025_s7 + $0x60] sm:$0xf]  ;;  %v3506_v49 = vld [vmem:[%s4025_s7 + $0x6c] sm:$0xf0]  ;;  %v2915_v51 = vor.u32 %v3606_v44, %v2914_v43  ;;  %1881 = vmatpush.bf16.msra.mxu1 %v2659_v46 }
  0x44   : > { %v2642_v50 = vld [vmem:[%s4025_s7 + $0x160] sm:$0xf]  ;;  %v3538_v52 = vld [vmem:[%s4025_s7 + $0x16c] sm:$0xf0]  ;;  %v2515_v57 = vor.u32 %v3506_v49, %v2514_v48  ;;  %1894 = vmatpush.bf16.msra.mxu2 %v2787_v47 }
  0x45   : > { %v2770_v53 = vld [vmem:[%s4025_s7 + $0x260] sm:$0xf]  ;;  %v3570_v54 = vld [vmem:[%s4025_s7 + $0x26c] sm:$0xf0]  ;;  %v2643_v58 = vor.u32 %v3538_v52, %v2642_v50  ;;  %1907 = vmatpush.bf16.msra.mxu3 %v2915_v51 }
  0x46   : > { %v2898_v55 = vld [vmem:[%s4025_s7 + $0x360] sm:$0xf]  ;;  %v3602_v56 = vld [vmem:[%s4025_s7 + $0x36c] sm:$0xf0]  ;;  %v2771_v59 = vor.u32 %v3570_v54, %v2770_v53  ;;  %1869 = vmatpush.bf16.msra.mxu0 %v2515_v57 }
  0x47   : > { %v2498_v60 = vld [vmem:[%s4025_s7 + $0x40] sm:$0xf]  ;;  %v3502_v61 = vld [vmem:[%s4025_s7 + $0x4c] sm:$0xf0]  ;;  %v2899_v63 = vor.u32 %v3602_v56, %v2898_v55  ;;  %1882 = vmatpush.bf16.msra.mxu1 %v2643_v58 }
  0x48   : > { %v2626_v62 = vld [vmem:[%s4025_s7 + $0x140] sm:$0xf]  ;;  %v3534_v0 = vld [vmem:[%s4025_s7 + $0x14c] sm:$0xf0]  ;;  %v2499_v5 = vor.u32 %v3502_v61, %v2498_v60  ;;  %1895 = vmatpush.bf16.msra.mxu2 %v2771_v59  ;;  %v298_v59 = vld [vmem:[%s4038_s10 + $0x8] sm:$0xff] }
  0x49   : > { %v2754_v1 = vld [vmem:[%s4025_s7 + $0x240] sm:$0xf]  ;;  %v3566_v2 = vld [vmem:[%s4025_s7 + $0x24c] sm:$0xf0]  ;;  %v2627_v6 = vor.u32 %v3534_v0, %v2626_v62  ;;  %1908 = vmatpush.bf16.msra.mxu3 %v2899_v63  ;;  %v563_v0 = vunpack.c.l.b16 %v298_v59 }
  0x4a   : > { %v2882_v3 = vld [vmem:[%s4025_s7 + $0x340] sm:$0xf]  ;;  %v3598_v4 = vld [vmem:[%s4025_s7 + $0x34c] sm:$0xf0]  ;;  %v2755_v7 = vor.u32 %v3566_v2, %v2754_v1  ;;  %1870 = vmatpush.bf16.msra.mxu0 %v2499_v5  ;;  %v564_v1 = vunpack.c.h.b16 %v298_v59 }
  0x4b   : > { %v2482_v8 = vld [vmem:[%s4025_s7 + $0x20] sm:$0xf]  ;;  %v3498_v9 = vld [vmem:[%s4025_s7 + $0x2c] sm:$0xf0]  ;;  %v2883_v11 = vor.u32 %v3598_v4, %v2882_v3  ;;  %1883 = vmatpush.bf16.msra.mxu1 %v2627_v6  ;;  %v4140_v5 = vpack.c.b16 %v563_v0, %v563_v0 }
  0x4c   : > { %v2610_v10 = vld [vmem:[%s4025_s7 + $0x120] sm:$0xf]  ;;  %v3530_v12 = vld [vmem:[%s4025_s7 + $0x12c] sm:$0xf0]  ;;  %v2483_v17 = vor.u32 %v3498_v9, %v2482_v8  ;;  %1896 = vmatpush.bf16.msra.mxu2 %v2755_v7  ;;  %v4143_v7 = vpack.c.b16 %v564_v1, %v564_v1 }
  0x4d   : > { %v2738_v13 = vld [vmem:[%s4025_s7 + $0x220] sm:$0xf]  ;;  %v3562_v14 = vld [vmem:[%s4025_s7 + $0x22c] sm:$0xf0]  ;;  %v2611_v20 = vor.u32 %v3530_v12, %v2610_v10  ;;  %1909 = vmatpush.bf16.msra.mxu3 %v2883_v11 }
  0x4e   : > { %v2866_v15 = vld [vmem:[%s4025_s7 + $0x320] sm:$0xf]  ;;  %v3594_v16 = vld [vmem:[%s4025_s7 + $0x32c] sm:$0xf0]  ;;  %v2739_v21 = vor.u32 %v3562_v14, %v2738_v13  ;;  %1871 = vmatpush.bf16.msra.mxu0 %v2483_v17 }
  0x4f   : > { %v2466_v18 = vld [vmem:[%s4025_s7] sm:$0xf]  ;;  %v3494_v19 = vld [vmem:[%s4025_s7 + $0xc] sm:$0xf0]  ;;  %v2867_v25 = vor.u32 %v3594_v16, %v2866_v15  ;;  %1884 = vmatpush.bf16.msra.mxu1 %v2611_v20 }
  0x50   : > { %v2594_v22 = vld [vmem:[%s4025_s7 + $0x100] sm:$0xf]  ;;  %v3526_v23 = vld [vmem:[%s4025_s7 + $0x10c] sm:$0xf0]  ;;  %v2467_v32 = vor.u32 %v3494_v19, %v2466_v18  ;;  %1897 = vmatpush.bf16.msra.mxu2 %v2739_v21 }
  0x51   : > { %v2722_v24 = vld [vmem:[%s4025_s7 + $0x200] sm:$0xf]  ;;  %v3558_v26 = vld [vmem:[%s4025_s7 + $0x20c] sm:$0xf0]  ;;  %v2595_v36 = vor.u32 %v3526_v23, %v2594_v22  ;;  %1910 = vmatpush.bf16.msra.mxu3 %v2867_v25 }
  0x52   : > { %v2850_v27 = vld [vmem:[%s4025_s7 + $0x300] sm:$0xf]  ;;  %v3590_v28 = vld [vmem:[%s4025_s7 + $0x30c] sm:$0xf0]  ;;  %v2723_v37 = vor.u32 %v3558_v26, %v2722_v24  ;;  %1872 = vmatpush.bf16.msra.mxu0 %v2467_v32 }
  0x53   : > { %v3090_v29 = vld [vmem:[%s4025_s7 + $0x4e0] sm:$0xf]  ;;  %v3650_v30 = vld [vmem:[%s4025_s7 + $0x4ec] sm:$0xf0]  ;;  %v2851_v40 = vor.u32 %v3590_v28, %v2850_v27  ;;  %1885 = vmatpush.bf16.msra.mxu1 %v2595_v36 }
  0x54   : > { %v3218_v31 = vld [vmem:[%s4025_s7 + $0x5e0] sm:$0xf]  ;;  %v3682_v33 = vld [vmem:[%s4025_s7 + $0x5ec] sm:$0xf0]  ;;  %v3091_v41 = vor.u32 %v3650_v30, %v3090_v29  ;;  %1898 = vmatpush.bf16.msra.mxu2 %v2723_v37 }
  0x55   : > { %v3346_v34 = vld [vmem:[%s4025_s7 + $0x6e0] sm:$0xf]  ;;  %v3714_v35 = vld [vmem:[%s4025_s7 + $0x6ec] sm:$0xf0]  ;;  %v3219_v42 = vor.u32 %v3682_v33, %v3218_v31  ;;  %1911 = vmatpush.bf16.msra.mxu3 %v2851_v40 }
  0x56   : > { %v3474_v38 = vld [vmem:[%s4025_s7 + $0x7e0] sm:$0xf]  ;;  %v3746_v39 = vld [vmem:[%s4025_s7 + $0x7ec] sm:$0xf0]  ;;  %v3347_v43 = vor.u32 %v3714_v35, %v3346_v34  ;;  %1917 = vmatpush.bf16.msrb.mxu0 %v3091_v41 }
  0x57   : > { %v3074_v44 = vld [vmem:[%s4025_s7 + $0x4c0] sm:$0xf]  ;;  %v3646_v45 = vld [vmem:[%s4025_s7 + $0x4cc] sm:$0xf0]  ;;  %v3475_v47 = vor.u32 %v3746_v39, %v3474_v38  ;;  %1930 = vmatpush.bf16.msrb.mxu1 %v3219_v42  ;;  %1899 = vmatmul.bf16.vlgmr.msra.gmra.mxu2 %v4140_v5 }
  0x58   : > { %v3202_v46 = vld [vmem:[%s4025_s7 + $0x5c0] sm:$0xf]  ;;  %v3678_v48 = vld [vmem:[%s4025_s7 + $0x5cc] sm:$0xf0]  ;;  %v3075_v53 = vor.u32 %v3646_v45, %v3074_v44  ;;  %1943 = vmatpush.bf16.msrb.mxu2 %v3347_v43  ;;  %1912 = vmatmul.bf16.vlgmr.msra.gmra.mxu3 %v4143_v7 }
  0x59   : > { %v3330_v49 = vld [vmem:[%s4025_s7 + $0x6c0] sm:$0xf]  ;;  %v3710_v50 = vld [vmem:[%s4025_s7 + $0x6cc] sm:$0xf0]  ;;  %v3203_v55 = vor.u32 %v3678_v48, %v3202_v46  ;;  %1956 = vmatpush.bf16.msrb.mxu3 %v3475_v47 }
  0x5a   : > { %v3458_v51 = vld [vmem:[%s4025_s7 + $0x7c0] sm:$0xf]  ;;  %v3742_v52 = vld [vmem:[%s4025_s7 + $0x7cc] sm:$0xf0]  ;;  %v3331_v56 = vor.u32 %v3710_v50, %v3330_v49  ;;  %1918 = vmatpush.bf16.msrb.mxu0 %v3075_v53 }
  0x5b   : > { %v3058_v54 = vld [vmem:[%s4025_s7 + $0x4a0] sm:$0xf]  ;;  %v3642_v57 = vld [vmem:[%s4025_s7 + $0x4ac] sm:$0xf0]  ;;  %v3459_v60 = vor.u32 %v3742_v52, %v3458_v51  ;;  %1931 = vmatpush.bf16.msrb.mxu1 %v3203_v55 }
  0x5c   : > { %v3186_v58 = vld [vmem:[%s4025_s7 + $0x5a0] sm:$0xf]  ;;  %v3674_v61 = vld [vmem:[%s4025_s7 + $0x5ac] sm:$0xf0]  ;;  %v3059_v4 = vor.u32 %v3642_v57, %v3058_v54  ;;  %1944 = vmatpush.bf16.msrb.mxu2 %v3331_v56 }
  0x5d   : > { %v3314_v62 = vld [vmem:[%s4025_s7 + $0x6a0] sm:$0xf]  ;;  %v3706_v63 = vld [vmem:[%s4025_s7 + $0x6ac] sm:$0xf0]  ;;  %v3187_v8 = vor.u32 %v3674_v61, %v3186_v58  ;;  %1957 = vmatpush.bf16.msrb.mxu3 %v3459_v60 }
  0x5e   : > { %v3442_v2 = vld [vmem:[%s4025_s7 + $0x7a0] sm:$0xf]  ;;  %v3738_v3 = vld [vmem:[%s4025_s7 + $0x7ac] sm:$0xf0]  ;;  %v3315_v9 = vor.u32 %v3706_v63, %v3314_v62  ;;  %1919 = vmatpush.bf16.msrb.mxu0 %v3059_v4  ;;  %v300_v4 = vld [vmem:[%s4038_s10 + $0x18] sm:$0xff] }
  0x5f   : > { %v297_v6 = vld [vmem:[%s4038_s10] sm:$0xff]  ;;  %v3638_v11 = vld [vmem:[%s4025_s7 + $0x48c] sm:$0xf0]  ;;  %v3443_v15 = vor.u32 %v3738_v3, %v3442_v2  ;;  %1932 = vmatpush.bf16.msrb.mxu1 %v3187_v8 }
  0x60   : > { %v3042_v10 = vld [vmem:[%s4025_s7 + $0x480] sm:$0xf]  ;;  %v561_v13 = vunpack.c.l.b16 %v297_v6  ;;  %v562_v14 = vunpack.c.h.b16 %v297_v6  ;;  %v3670_v16 = vld [vmem:[%s4025_s7 + $0x58c] sm:$0xf0]  ;;  %1945 = vmatpush.bf16.msrb.mxu2 %v3315_v9 }
  0x61   : > { %v3170_v12 = vld [vmem:[%s4025_s7 + $0x580] sm:$0xf]  ;;  %v3702_v18 = vld [vmem:[%s4025_s7 + $0x68c] sm:$0xf0]  ;;  %v3043_v23 = vor.u32 %v3638_v11, %v3042_v10  ;;  %1958 = vmatpush.bf16.msrb.mxu3 %v3443_v15  ;;  %v3520_v11 = vld [vmem:[%s4025_s7 + $0xe4] sm:$0xf] }
  0x62   : > { %v3298_v17 = vld [vmem:[%s4025_s7 + $0x680] sm:$0xf]  ;;  %v3734_v20 = vld [vmem:[%s4025_s7 + $0x78c] sm:$0xf0]  ;;  %v4154_v21 = vpack.c.b16 %v561_v13, %v561_v13  ;;  %v4157_v22 = vpack.c.b16 %v562_v14, %v562_v14  ;;  %v3171_v24 = vor.u32 %v3670_v16, %v3170_v12  ;;  %v2580_v12 = vld [vmem:[%s4025_s7 + $0xf0] sm:$0xf0] }
  0x63   : > { %v3426_v19 = vld [vmem:[%s4025_s7 + $0x780] sm:$0xf]  ;;  %v3299_v25 = vor.u32 %v3702_v18, %v3298_v17  ;;  %v3634_v27 = vld [vmem:[%s4025_s7 + $0x46c] sm:$0xf0]  ;;  %1920 = vmatpush.bf16.msrb.mxu0 %v3043_v23  ;;  %v3552_v13 = vld [vmem:[%s4025_s7 + $0x1e4] sm:$0xf]  ;;  %v567_v18 = vunpack.c.l.b16 %v300_v4 }
  0x64   : > { %v3026_v26 = vld [vmem:[%s4025_s7 + $0x460] sm:$0xf]  ;;  %v3427_v29 = vor.u32 %v3734_v20, %v3426_v19  ;;  %v3666_v30 = vld [vmem:[%s4025_s7 + $0x56c] sm:$0xf0]  ;;  %1873 = vmatmul.bf16.vlgmr.msra.gmra.mxu0 %v4154_v21  ;;  %1886 = vmatmul.bf16.vlgmr.msra.gmra.mxu1 %v4157_v22  ;;  %v2708_v15 = vld [vmem:[%s4025_s7 + $0x1f0] sm:$0xf0] }
  0x65   : > { %v3154_v28 = vld [vmem:[%s4025_s7 + $0x560] sm:$0xf]  ;;  %v3698_v32 = vld [vmem:[%s4025_s7 + $0x66c] sm:$0xf0]  ;;  %v3027_v35 = vor.u32 %v3634_v27, %v3026_v26  ;;  %1933 = vmatpush.bf16.msrb.mxu1 %v3171_v24  ;;  %1946 = vmatpush.bf16.msrb.mxu2 %v3299_v25  ;;  %v3584_v16 = vld [vmem:[%s4025_s7 + $0x2e4] sm:$0xf]  ;;  %v568_v26 = vunpack.c.h.b16 %v300_v4 }
  0x66   : > { %v3282_v31 = vld [vmem:[%s4025_s7 + $0x660] sm:$0xf]  ;;  %v3730_v34 = vld [vmem:[%s4025_s7 + $0x76c] sm:$0xf0]  ;;  %v3155_v36 = vor.u32 %v3666_v30, %v3154_v28  ;;  %1959 = vmatpush.bf16.msrb.mxu3 %v3427_v29  ;;  %v2836_v17 = vld [vmem:[%s4025_s7 + $0x2f0] sm:$0xf0]  ;;  %v2583_v28 = vor.u32 %v3520_v11, %v2580_v12  ;;  %v2711_v30 = vor.u32 %v3552_v13, %v2708_v15 }
  0x67   : > { %v3410_v33 = vld [vmem:[%s4025_s7 + $0x760] sm:$0xf]  ;;  %v3283_v37 = vor.u32 %v3698_v32, %v3282_v31  ;;  %v3630_v39 = vld [vmem:[%s4025_s7 + $0x44c] sm:$0xf0]  ;;  %1921 = vmatpush.bf16.msrb.mxu0 %v3027_v35  ;;  %v3616_v23 = vld [vmem:[%s4025_s7 + $0x3e4] sm:$0xf]  ;;  %v2839_v31 = vor.u32 %v3584_v16, %v2836_v17 }
  0x68   : > { %v3010_v38 = vld [vmem:[%s4025_s7 + $0x440] sm:$0xf]  ;;  %v3411_v41 = vor.u32 %v3730_v34, %v3410_v33  ;;  %v3662_v42 = vld [vmem:[%s4025_s7 + $0x54c] sm:$0xf0]  ;;  %v2964_v24 = vld [vmem:[%s4025_s7 + $0x3f0] sm:$0xf0] }
  0x69   : > { %v3138_v40 = vld [vmem:[%s4025_s7 + $0x540] sm:$0xf]  ;;  %v3694_v44 = vld [vmem:[%s4025_s7 + $0x64c] sm:$0xf0]  ;;  %v3011_v47 = vor.u32 %v3630_v39, %v3010_v38  ;;  %1934 = vmatpush.bf16.msrb.mxu1 %v3155_v36  ;;  %1947 = vmatpush.bf16.msrb.mxu2 %v3283_v37  ;;  %v3516_v32 = vld [vmem:[%s4025_s7 + $0xc4] sm:$0xf]  ;;  %v2967_v35 = vor.u32 %v3616_v23, %v2964_v24  ;;  %v4209_v39 = vpack.c.b16 %v567_v18, %v567_v18 }
  0x6a   : > { %v3266_v43 = vld [vmem:[%s4025_s7 + $0x640] sm:$0xf]  ;;  %v3726_v46 = vld [vmem:[%s4025_s7 + $0x74c] sm:$0xf0]  ;;  %v3139_v48 = vor.u32 %v3662_v42, %v3138_v40  ;;  %1960 = vmatpush.bf16.msrb.mxu3 %v3411_v41  ;;  %v2564_v33 = vld [vmem:[%s4025_s7 + $0xd0] sm:$0xf0] }
  0x6b   : > { %v3394_v45 = vld [vmem:[%s4025_s7 + $0x740] sm:$0xf]  ;;  %v3267_v49 = vor.u32 %v3694_v44, %v3266_v43  ;;  %v3626_v51 = vld [vmem:[%s4025_s7 + $0x42c] sm:$0xf0]  ;;  %1922 = vmatpush.bf16.msrb.mxu0 %v3011_v47  ;;  %v3548_v34 = vld [vmem:[%s4025_s7 + $0x1c4] sm:$0xf]  ;;  %v4215_v43 = vpack.c.b16 %v568_v26, %v568_v26  ;;  %v2567_v44 = vor.u32 %v3516_v32, %v2564_v33 }
  0x6c   : > { %v2994_v50 = vld [vmem:[%s4025_s7 + $0x420] sm:$0xf]  ;;  %v3395_v53 = vor.u32 %v3726_v46, %v3394_v45  ;;  %v3658_v54 = vld [vmem:[%s4025_s7 + $0x52c] sm:$0xf0]  ;;  %v2692_v36 = vld [vmem:[%s4025_s7 + $0x1d0] sm:$0xf0] }
  0x6d   : > { %v3122_v52 = vld [vmem:[%s4025_s7 + $0x520] sm:$0xf]  ;;  %v3690_v56 = vld [vmem:[%s4025_s7 + $0x62c] sm:$0xf0]  ;;  %v2995_v60 = vor.u32 %v3626_v51, %v2994_v50  ;;  %1935 = vmatpush.bf16.msrb.mxu1 %v3139_v48  ;;  %1948 = vmatpush.bf16.msrb.mxu2 %v3267_v49  ;;  %v3580_v37 = vld [vmem:[%s4025_s7 + $0x2c4] sm:$0xf]  ;;  %v2695_v46 = vor.u32 %v3548_v34, %v2692_v36 }
  0x6e   : > { %v3250_v55 = vld [vmem:[%s4025_s7 + $0x620] sm:$0xf]  ;;  %v3722_v58 = vld [vmem:[%s4025_s7 + $0x72c] sm:$0xf0]  ;;  %v3123_v0 = vor.u32 %v3658_v54, %v3122_v52  ;;  %1961 = vmatpush.bf16.msrb.mxu3 %v3395_v53  ;;  %v2820_v38 = vld [vmem:[%s4025_s7 + $0x2d0] sm:$0xf0] }
  0x6f   : > { %v3378_v57 = vld [vmem:[%s4025_s7 + $0x720] sm:$0xf]  ;;  %v3622_v61 = vld [vmem:[%s4025_s7 + $0x40c] sm:$0xf0]  ;;  %v3251_v1 = vor.u32 %v3690_v56, %v3250_v55  ;;  %1923 = vmatpush.bf16.msrb.mxu0 %v2995_v60  ;;  %v3612_v40 = vld [vmem:[%s4025_s7 + $0x3c4] sm:$0xf]  ;;  %v2823_v47 = vor.u32 %v3580_v37, %v2820_v38 }
  0x70   : > { %v2978_v59 = vld [vmem:[%s4025_s7 + $0x400] sm:$0xf]  ;;  %v3654_v63 = vld [vmem:[%s4025_s7 + $0x50c] sm:$0xf0]  ;;  %v3379_v6 = vor.u32 %v3722_v58, %v3378_v57  ;;  %v2948_v41 = vld [vmem:[%s4025_s7 + $0x3d0] sm:$0xf0] }
  0x71   : > { %v3106_v62 = vld [vmem:[%s4025_s7 + $0x500] sm:$0xf]  ;;  %v3686_v3 = vld [vmem:[%s4025_s7 + $0x60c] sm:$0xf0]  ;;  %v2979_v14 = vor.u32 %v3622_v61, %v2978_v59  ;;  %1936 = vmatpush.bf16.msrb.mxu1 %v3123_v0  ;;  %1949 = vmatpush.bf16.msrb.mxu2 %v3251_v1  ;;  %v3512_v48 = vld [vmem:[%s4025_s7 + $0xa4] sm:$0xf]  ;;  %v2951_v51 = vor.u32 %v3612_v40, %v2948_v41 }
  0x72   : > { %v3234_v2 = vld [vmem:[%s4025_s7 + $0x600] sm:$0xf]  ;;  %v3718_v9 = vld [vmem:[%s4025_s7 + $0x70c] sm:$0xf0]  ;;  %v3107_v19 = vor.u32 %v3654_v63, %v3106_v62  ;;  %1962 = vmatpush.bf16.msrb.mxu3 %v3379_v6  ;;  %v2548_v49 = vld [vmem:[%s4025_s7 + $0xb0] sm:$0xf0] }
  0x73   : > { %v3362_v8 = vld [vmem:[%s4025_s7 + $0x700] sm:$0xf]  ;;  %v299_v10 = vld [vmem:[%s4038_s10 + $0x10] sm:$0xff]  ;;  %v3235_v20 = vor.u32 %v3686_v3, %v3234_v2  ;;  %1924 = vmatpush.bf16.msrb.mxu0 %v2979_v14  ;;  %v3544_v50 = vld [vmem:[%s4025_s7 + $0x1a4] sm:$0xf]  ;;  %v2551_v57 = vor.u32 %v3512_v48, %v2548_v49 }
  0x74   : > { %v565_v25 = vunpack.c.l.b16 %v299_v10  ;;  %v3363_v27 = vor.u32 %v3718_v9, %v3362_v8  ;;  %v566_v29 = vunpack.c.h.b16 %v299_v10  ;;  %v2676_v52 = vld [vmem:[%s4025_s7 + $0x1b0] sm:$0xf0]  ;;  %v3576_v53 = vld [vmem:[%s4025_s7 + $0x2a4] sm:$0xf] }
  0x75   : > { %1937 = vmatpush.bf16.msrb.mxu1 %v3107_v19  ;;  %1950 = vmatpush.bf16.msrb.mxu2 %v3235_v20  ;;  %v2804_v54 = vld [vmem:[%s4025_s7 + $0x2b0] sm:$0xf0]  ;;  %v3608_v55 = vld [vmem:[%s4025_s7 + $0x3a4] sm:$0xf]  ;;  %v2679_v58 = vor.u32 %v3544_v50, %v2676_v52 }
  0x76   : > { %v4213_v42 = vpack.c.b16 %v565_v25, %v565_v25  ;;  %1963 = vmatpush.bf16.msrb.mxu3 %v3363_v27  ;;  %v4217_v45 = vpack.c.b16 %v566_v29, %v566_v29  ;;  %v2932_v56 = vld [vmem:[%s4025_s7 + $0x3b0] sm:$0xf0]  ;;  %v2807_v59 = vor.u32 %v3576_v53, %v2804_v54  ;;  %v3508_v60 = vld [vmem:[%s4025_s7 + $0x84] sm:$0xf] }
  0x77   : > { %1969 = vmatpush.bf16.msra.mxu0 %v2583_v28  ;;  %v2532_v61 = vld [vmem:[%s4025_s7 + $0x90] sm:$0xf0]  ;;  %v3540_v62 = vld [vmem:[%s4025_s7 + $0x184] sm:$0xf]  ;;  %v2935_v63 = vor.u32 %v3608_v55, %v2932_v56 }
  0x78   : > { %1951 = vmatmul.bf16.vlgmr.msrb.gmra.mxu2 %v4209_v39  ;;  %1925 = vmatmul.bf16.vlgmr.msrb.gmra.mxu0 %v4213_v42  ;;  %v2660_v0 = vld [vmem:[%s4025_s7 + $0x190] sm:$0xf0]  ;;  %v3572_v1 = vld [vmem:[%s4025_s7 + $0x284] sm:$0xf]  ;;  %v2535_v6 = vor.u32 %v3508_v60, %v2532_v61 }
  0x79   : > { %1982 = vmatpush.bf16.msra.mxu1 %v2711_v30  ;;  %1995 = vmatpush.bf16.msra.mxu2 %v2839_v31  ;;  %v2788_v2 = vld [vmem:[%s4025_s7 + $0x290] sm:$0xf0]  ;;  %v3604_v3 = vld [vmem:[%s4025_s7 + $0x384] sm:$0xf]  ;;  %v2663_v8 = vor.u32 %v3540_v62, %v2660_v0 }
  0x7a   : > { %2008 = vmatpush.bf16.msra.mxu3 %v2967_v35  ;;  %1938 = vmatmul.bf16.vlgmr.msrb.gmra.mxu1 %v4217_v45  ;;  %v2916_v4 = vld [vmem:[%s4025_s7 + $0x390] sm:$0xf0]  ;;  %v2791_v9 = vor.u32 %v3572_v1, %v2788_v2  ;;  %v3504_v10 = vld [vmem:[%s4025_s7 + $0x64] sm:$0xf] }
  0x7b   : > { %1964 = vmatmul.bf16.vlgmr.msrb.gmra.mxu3 %v4215_v43  ;;  %1970 = vmatpush.bf16.msra.mxu0 %v2567_v44  ;;  %v2516_v11 = vld [vmem:[%s4025_s7 + $0x70] sm:$0xf0]  ;;  %v3536_v12 = vld [vmem:[%s4025_s7 + $0x164] sm:$0xf]  ;;  %v2919_v13 = vor.u32 %v3604_v3, %v2916_v4 }
  0x7c   : > { %v2644_v14 = vld [vmem:[%s4025_s7 + $0x170] sm:$0xf0]  ;;  %v3568_v15 = vld [vmem:[%s4025_s7 + $0x264] sm:$0xf]  ;;  %v2519_v19 = vor.u32 %v3504_v10, %v2516_v11 }
  0x7d   : > { %1983 = vmatpush.bf16.msra.mxu1 %v2695_v46  ;;  %1996 = vmatpush.bf16.msra.mxu2 %v2823_v47  ;;  %v2772_v16 = vld [vmem:[%s4025_s7 + $0x270] sm:$0xf0]  ;;  %v3600_v17 = vld [vmem:[%s4025_s7 + $0x364] sm:$0xf]  ;;  %v2647_v20 = vor.u32 %v3536_v12, %v2644_v14 }
  0x7e   : > { %2009 = vmatpush.bf16.msra.mxu3 %v2951_v51  ;;  %v2900_v18 = vld [vmem:[%s4025_s7 + $0x370] sm:$0xf0]  ;;  %v2775_v23 = vor.u32 %v3568_v15, %v2772_v16  ;;  %v3500_v24 = vld [vmem:[%s4025_s7 + $0x44] sm:$0xf] }
  0x7f   : > { %1971 = vmatpush.bf16.msra.mxu0 %v2551_v57  ;;  %v2500_v25 = vld [vmem:[%s4025_s7 + $0x50] sm:$0xf0]  ;;  %v3532_v26 = vld [vmem:[%s4025_s7 + $0x144] sm:$0xf]  ;;  %v2903_v27 = vor.u32 %v3600_v17, %v2900_v18 }
  0x80   : > { %v2628_v28 = vld [vmem:[%s4025_s7 + $0x150] sm:$0xf0]  ;;  %v3564_v29 = vld [vmem:[%s4025_s7 + $0x244] sm:$0xf]  ;;  %v2503_v33 = vor.u32 %v3500_v24, %v2500_v25 }
  0x81   : > { %1984 = vmatpush.bf16.msra.mxu1 %v2679_v58  ;;  %1997 = vmatpush.bf16.msra.mxu2 %v2807_v59  ;;  %v2756_v30 = vld [vmem:[%s4025_s7 + $0x250] sm:$0xf0]  ;;  %v3596_v31 = vld [vmem:[%s4025_s7 + $0x344] sm:$0xf]  ;;  %v2631_v34 = vor.u32 %v3532_v26, %v2628_v28 }
  0x82   : > { %2010 = vmatpush.bf16.msra.mxu3 %v2935_v63  ;;  %v2884_v32 = vld [vmem:[%s4025_s7 + $0x350] sm:$0xf0]  ;;  %v2759_v35 = vor.u32 %v3564_v29, %v2756_v30  ;;  %v3496_v36 = vld [vmem:[%s4025_s7 + $0x24] sm:$0xf] }
  0x83   : > { %1972 = vmatpush.bf16.msra.mxu0 %v2535_v6  ;;  %v2484_v37 = vld [vmem:[%s4025_s7 + $0x30] sm:$0xf0]  ;;  %v3528_v38 = vld [vmem:[%s4025_s7 + $0x124] sm:$0xf]  ;;  %v2887_v40 = vor.u32 %v3596_v31, %v2884_v32 }
  0x84   : > { %v2612_v41 = vld [vmem:[%s4025_s7 + $0x130] sm:$0xf0]  ;;  %v3560_v44 = vld [vmem:[%s4025_s7 + $0x224] sm:$0xf]  ;;  %v2487_v49 = vor.u32 %v3496_v36, %v2484_v37 }
  0x85   : > { %1985 = vmatpush.bf16.msra.mxu1 %v2663_v8  ;;  %1998 = vmatpush.bf16.msra.mxu2 %v2791_v9  ;;  %v2740_v46 = vld [vmem:[%s4025_s7 + $0x230] sm:$0xf0]  ;;  %v3592_v47 = vld [vmem:[%s4025_s7 + $0x324] sm:$0xf]  ;;  %v2615_v52 = vor.u32 %v3528_v38, %v2612_v41 }
  0x86   : > { %2011 = vmatpush.bf16.msra.mxu3 %v2919_v13  ;;  %v2868_v48 = vld [vmem:[%s4025_s7 + $0x330] sm:$0xf0]  ;;  %v3492_v50 = vld [vmem:[%s4025_s7 + $0x4] sm:$0xf]  ;;  %v2743_v53 = vor.u32 %v3560_v44, %v2740_v46 }
  0x87   : > { %1973 = vmatpush.bf16.msra.mxu0 %v2519_v19  ;;  %v2468_v51 = vld [vmem:[%s4025_s7 + $0x10] sm:$0xf0]  ;;  %v3524_v54 = vld [vmem:[%s4025_s7 + $0x104] sm:$0xf]  ;;  %v2871_v57 = vor.u32 %v3592_v47, %v2868_v48 }
  0x88   : > { %v2596_v55 = vld [vmem:[%s4025_s7 + $0x110] sm:$0xf0]  ;;  %v3556_v56 = vld [vmem:[%s4025_s7 + $0x204] sm:$0xf]  ;;  %v2471_v0 = vor.u32 %v3492_v50, %v2468_v51 }
  0x89   : > { %1986 = vmatpush.bf16.msra.mxu1 %v2647_v20  ;;  %1999 = vmatpush.bf16.msra.mxu2 %v2775_v23  ;;  %v2724_v58 = vld [vmem:[%s4025_s7 + $0x210] sm:$0xf0]  ;;  %v3588_v59 = vld [vmem:[%s4025_s7 + $0x304] sm:$0xf]  ;;  %v2599_v4 = vor.u32 %v3524_v54, %v2596_v55 }
  0x8a   : > { %2012 = vmatpush.bf16.msra.mxu3 %v2903_v27  ;;  %v2852_v60 = vld [vmem:[%s4025_s7 + $0x310] sm:$0xf0]  ;;  %v3648_v61 = vld [vmem:[%s4025_s7 + $0x4e4] sm:$0xf]  ;;  %v2727_v6 = vor.u32 %v3556_v56, %v2724_v58 }
  0x8b   : > { %1974 = vmatpush.bf16.msra.mxu0 %v2503_v33  ;;  %v3092_v62 = vld [vmem:[%s4025_s7 + $0x4f0] sm:$0xf0]  ;;  %v3680_v63 = vld [vmem:[%s4025_s7 + $0x5e4] sm:$0xf]  ;;  %v2855_v10 = vor.u32 %v3588_v59, %v2852_v60 }
  0x8c   : > { %v3220_v1 = vld [vmem:[%s4025_s7 + $0x5f0] sm:$0xf0]  ;;  %v3712_v2 = vld [vmem:[%s4025_s7 + $0x6e4] sm:$0xf]  ;;  %v3095_v11 = vor.u32 %v3648_v61, %v3092_v62 }
  0x8d   : > { %1987 = vmatpush.bf16.msra.mxu1 %v2631_v34  ;;  %2000 = vmatpush.bf16.msra.mxu2 %v2759_v35  ;;  %v3348_v3 = vld [vmem:[%s4025_s7 + $0x6f0] sm:$0xf0]  ;;  %v3744_v8 = vld [vmem:[%s4025_s7 + $0x7e4] sm:$0xf]  ;;  %v3223_v12 = vor.u32 %v3680_v63, %v3220_v1 }
  0x8e   : > { %2013 = vmatpush.bf16.msra.mxu3 %v2887_v40  ;;  %v3476_v9 = vld [vmem:[%s4025_s7 + $0x7f0] sm:$0xf0]  ;;  %v3351_v13 = vor.u32 %v3712_v2, %v3348_v3  ;;  %v3644_v14 = vld [vmem:[%s4025_s7 + $0x4c4] sm:$0xf] }
  0x8f   : > { %1975 = vmatpush.bf16.msra.mxu0 %v2487_v49  ;;  %v3076_v15 = vld [vmem:[%s4025_s7 + $0x4d0] sm:$0xf0]  ;;  %v3676_v16 = vld [vmem:[%s4025_s7 + $0x5c4] sm:$0xf]  ;;  %v3479_v17 = vor.u32 %v3744_v8, %v3476_v9 }
  0x90   : > { %v3204_v18 = vld [vmem:[%s4025_s7 + $0x5d0] sm:$0xf0]  ;;  %v3708_v19 = vld [vmem:[%s4025_s7 + $0x6c4] sm:$0xf]  ;;  %v3079_v25 = vor.u32 %v3644_v14, %v3076_v15 }
  0x91   : > { %1988 = vmatpush.bf16.msra.mxu1 %v2615_v52  ;;  %2001 = vmatpush.bf16.msra.mxu2 %v2743_v53  ;;  %v3332_v20 = vld [vmem:[%s4025_s7 + $0x6d0] sm:$0xf0]  ;;  %v3740_v23 = vld [vmem:[%s4025_s7 + $0x7c4] sm:$0xf]  ;;  %v3207_v26 = vor.u32 %v3676_v16, %v3204_v18 }
  0x92   : > { %2014 = vmatpush.bf16.msra.mxu3 %v2871_v57  ;;  %v3460_v24 = vld [vmem:[%s4025_s7 + $0x7d0] sm:$0xf0]  ;;  %v3335_v27 = vor.u32 %v3708_v19, %v3332_v20  ;;  %v3640_v28 = vld [vmem:[%s4025_s7 + $0x4a4] sm:$0xf] }
  0x93   : > { %1976 = vmatpush.bf16.msra.mxu0 %v2471_v0  ;;  %v3060_v29 = vld [vmem:[%s4025_s7 + $0x4b0] sm:$0xf0]  ;;  %v3672_v30 = vld [vmem:[%s4025_s7 + $0x5a4] sm:$0xf]  ;;  %v3463_v31 = vor.u32 %v3740_v23, %v3460_v24 }
  0x94   : > { %v3188_v32 = vld [vmem:[%s4025_s7 + $0x5b0] sm:$0xf0]  ;;  %v3704_v33 = vld [vmem:[%s4025_s7 + $0x6a4] sm:$0xf]  ;;  %v3063_v37 = vor.u32 %v3640_v28, %v3060_v29 }
  0x95   : > { %1989 = vmatpush.bf16.msra.mxu1 %v2599_v4  ;;  %2002 = vmatpush.bf16.msra.mxu2 %v2727_v6  ;;  %v3316_v34 = vld [vmem:[%s4025_s7 + $0x6b0] sm:$0xf0]  ;;  %v3736_v35 = vld [vmem:[%s4025_s7 + $0x7a4] sm:$0xf]  ;;  %v3191_v38 = vor.u32 %v3672_v30, %v3188_v32 }
  0x96   : > { %2015 = vmatpush.bf16.msra.mxu3 %v2855_v10  ;;  %v3444_v36 = vld [vmem:[%s4025_s7 + $0x7b0] sm:$0xf0]  ;;  %1977 = vmatmul.bf16.vlgmr.msra.gmra.mxu0 %v4154_v21  ;;  %v3319_v40 = vor.u32 %v3704_v33, %v3316_v34  ;;  %v3636_v41 = vld [vmem:[%s4025_s7 + $0x484] sm:$0xf] }
  0x97   : > { %2021 = vmatpush.bf16.msrb.mxu0 %v3095_v11  ;;  %v3044_v44 = vld [vmem:[%s4025_s7 + $0x490] sm:$0xf0]  ;;  %v3668_v46 = vld [vmem:[%s4025_s7 + $0x584] sm:$0xf]  ;;  %v3447_v47 = vor.u32 %v3736_v35, %v3444_v36 }
  0x98   : > { %2003 = vmatmul.bf16.vlgmr.msra.gmra.mxu2 %v4140_v5  ;;  %1990 = vmatmul.bf16.vlgmr.msra.gmra.mxu1 %v4157_v22  ;;  %v3172_v48 = vld [vmem:[%s4025_s7 + $0x590] sm:$0xf0]  ;;  %v3700_v49 = vld [vmem:[%s4025_s7 + $0x684] sm:$0xf]  ;;  %v3047_v53 = vor.u32 %v3636_v41, %v3044_v44  ;;  %v2586_v44 = vld [vmem:[%s4025_s7 + $0xe8] sm:$0xf] }
  0x99   : > { %2034 = vmatpush.bf16.msrb.mxu1 %v3223_v12  ;;  %2047 = vmatpush.bf16.msrb.mxu2 %v3351_v13  ;;  %v3300_v50 = vld [vmem:[%s4025_s7 + $0x690] sm:$0xf0]  ;;  %v3732_v51 = vld [vmem:[%s4025_s7 + $0x784] sm:$0xf]  ;;  %v3175_v54 = vor.u32 %v3668_v46, %v3172_v48  ;;  %v3523_v46 = vld [vmem:[%s4025_s7 + $0xf4] sm:$0xf0] }
  0x9a   : > { %2060 = vmatpush.bf16.msrb.mxu3 %v3479_v17  ;;  %v3428_v52 = vld [vmem:[%s4025_s7 + $0x790] sm:$0xf0]  ;;  %v3303_v55 = vor.u32 %v3700_v49, %v3300_v50  ;;  %v3632_v56 = vld [vmem:[%s4025_s7 + $0x464] sm:$0xf]  ;;  %v3555_v49 = vld [vmem:[%s4025_s7 + $0x1f4] sm:$0xf0] }
  0x9b   : > { %2016 = vmatmul.bf16.vlgmr.msra.gmra.mxu3 %v4143_v7  ;;  %2022 = vmatpush.bf16.msrb.mxu0 %v3079_v25  ;;  %v3028_v57 = vld [vmem:[%s4025_s7 + $0x470] sm:$0xf0]  ;;  %v3664_v58 = vld [vmem:[%s4025_s7 + $0x564] sm:$0xf]  ;;  %v3431_v59 = vor.u32 %v3732_v51, %v3428_v52  ;;  %v2842_v50 = vld [vmem:[%s4025_s7 + $0x2e8] sm:$0xf] }
  0x9c   : > { %v3156_v60 = vld [vmem:[%s4025_s7 + $0x570] sm:$0xf0]  ;;  %v3696_v61 = vld [vmem:[%s4025_s7 + $0x664] sm:$0xf]  ;;  %v3031_v1 = vor.u32 %v3632_v56, %v3028_v57  ;;  %v3587_v51 = vld [vmem:[%s4025_s7 + $0x2f4] sm:$0xf0]  ;;  %v2587_v57 = vor.u32 %v3523_v46, %v2586_v44 }
  0x9d   : > { %2035 = vmatpush.bf16.msrb.mxu1 %v3207_v26  ;;  %2048 = vmatpush.bf16.msrb.mxu2 %v3335_v27  ;;  %v3284_v62 = vld [vmem:[%s4025_s7 + $0x670] sm:$0xf0]  ;;  %v3728_v63 = vld [vmem:[%s4025_s7 + $0x764] sm:$0xf]  ;;  %v3159_v2 = vor.u32 %v3664_v58, %v3156_v60  ;;  %v2570_v60 = vld [vmem:[%s4025_s7 + $0xc8] sm:$0xf] }
  0x9e   : > { %2061 = vmatpush.bf16.msrb.mxu3 %v3463_v31  ;;  %v3412_v0 = vld [vmem:[%s4025_s7 + $0x770] sm:$0xf0]  ;;  %v3287_v3 = vor.u32 %v3696_v61, %v3284_v62  ;;  %v3628_v4 = vld [vmem:[%s4025_s7 + $0x444] sm:$0xf]  ;;  %v3519_v61 = vld [vmem:[%s4025_s7 + $0xd4] sm:$0xf0] }
  0x9f   : > { %2023 = vmatpush.bf16.msrb.mxu0 %v3063_v37  ;;  %v3012_v6 = vld [vmem:[%s4025_s7 + $0x450] sm:$0xf0]  ;;  %v3660_v8 = vld [vmem:[%s4025_s7 + $0x544] sm:$0xf]  ;;  %v3415_v9 = vor.u32 %v3728_v63, %v3412_v0  ;;  %v2698_v62 = vld [vmem:[%s4025_s7 + $0x1c8] sm:$0xf] }
  0xa0   : > { %v3140_v10 = vld [vmem:[%s4025_s7 + $0x550] sm:$0xf0]  ;;  %v3692_v11 = vld [vmem:[%s4025_s7 + $0x644] sm:$0xf]  ;;  %v3015_v15 = vor.u32 %v3628_v4, %v3012_v6  ;;  %v3551_v0 = vld [vmem:[%s4025_s7 + $0x1d4] sm:$0xf0]  ;;  %v2571_v6 = vor.u32 %v3519_v61, %v2570_v60 }
  0xa1   : > { %2036 = vmatpush.bf16.msrb.mxu1 %v3191_v38  ;;  %2049 = vmatpush.bf16.msrb.mxu2 %v3319_v40  ;;  %v3268_v12 = vld [vmem:[%s4025_s7 + $0x650] sm:$0xf0]  ;;  %v3724_v13 = vld [vmem:[%s4025_s7 + $0x744] sm:$0xf]  ;;  %v3143_v16 = vor.u32 %v3660_v8, %v3140_v10  ;;  %v3615_v4 = vld [vmem:[%s4025_s7 + $0x3d4] sm:$0xf0]  ;;  %v2699_v8 = vor.u32 %v3551_v0, %v2698_v62 }
  0xa2   : > { %2062 = vmatpush.bf16.msrb.mxu3 %v3447_v47  ;;  %v3396_v14 = vld [vmem:[%s4025_s7 + $0x750] sm:$0xf0]  ;;  %v3271_v17 = vor.u32 %v3692_v11, %v3268_v12  ;;  %v3624_v18 = vld [vmem:[%s4025_s7 + $0x424] sm:$0xf]  ;;  %v2714_v47 = vld [vmem:[%s4025_s7 + $0x1e8] sm:$0xf] }
  0xa3   : > { %2024 = vmatpush.bf16.msrb.mxu0 %v3047_v53  ;;  %v2996_v19 = vld [vmem:[%s4025_s7 + $0x430] sm:$0xf0]  ;;  %v3656_v20 = vld [vmem:[%s4025_s7 + $0x524] sm:$0xf]  ;;  %v3399_v23 = vor.u32 %v3724_v13, %v3396_v14  ;;  %v2715_v58 = vor.u32 %v3555_v49, %v2714_v47  ;;  %v2554_v10 = vld [vmem:[%s4025_s7 + $0xa8] sm:$0xf] }
  0xa4   : > { %v3124_v24 = vld [vmem:[%s4025_s7 + $0x530] sm:$0xf0]  ;;  %v3688_v25 = vld [vmem:[%s4025_s7 + $0x624] sm:$0xf]  ;;  %v2999_v29 = vor.u32 %v3624_v18, %v2996_v19  ;;  %v3515_v11 = vld [vmem:[%s4025_s7 + $0xb4] sm:$0xf0] }
  0xa5   : > { %2037 = vmatpush.bf16.msrb.mxu1 %v3175_v54  ;;  %2050 = vmatpush.bf16.msrb.mxu2 %v3303_v55  ;;  %v3252_v26 = vld [vmem:[%s4025_s7 + $0x630] sm:$0xf0]  ;;  %v3720_v27 = vld [vmem:[%s4025_s7 + $0x724] sm:$0xf]  ;;  %v3127_v32 = vor.u32 %v3656_v20, %v3124_v24  ;;  %v2970_v54 = vld [vmem:[%s4025_s7 + $0x3e8] sm:$0xf]  ;;  %v2555_v19 = vor.u32 %v3515_v11, %v2554_v10 }
  0xa6   : > { %2063 = vmatpush.bf16.msrb.mxu3 %v3431_v59  ;;  %v3380_v28 = vld [vmem:[%s4025_s7 + $0x730] sm:$0xf0]  ;;  %v3620_v30 = vld [vmem:[%s4025_s7 + $0x404] sm:$0xf]  ;;  %v3255_v33 = vor.u32 %v3688_v25, %v3252_v26  ;;  %v3619_v55 = vld [vmem:[%s4025_s7 + $0x3f4] sm:$0xf0]  ;;  %v2843_v59 = vor.u32 %v3587_v51, %v2842_v50 }
  0xa7   : > { %2025 = vmatpush.bf16.msrb.mxu0 %v3031_v1  ;;  %v2980_v31 = vld [vmem:[%s4025_s7 + $0x410] sm:$0xf0]  ;;  %v3652_v34 = vld [vmem:[%s4025_s7 + $0x504] sm:$0xf]  ;;  %v3383_v37 = vor.u32 %v3720_v27, %v3380_v28  ;;  %v2971_v63 = vor.u32 %v3619_v55, %v2970_v54  ;;  %v2826_v1 = vld [vmem:[%s4025_s7 + $0x2c8] sm:$0xf] }
  0xa8   : > { %v3108_v35 = vld [vmem:[%s4025_s7 + $0x510] sm:$0xf0]  ;;  %v3684_v36 = vld [vmem:[%s4025_s7 + $0x604] sm:$0xf]  ;;  %v2983_v48 = vor.u32 %v3620_v30, %v2980_v31  ;;  %v2682_v12 = vld [vmem:[%s4025_s7 + $0x1a8] sm:$0xf] }
  0xa9   : > { %2038 = vmatpush.bf16.msrb.mxu1 %v3159_v2  ;;  %2051 = vmatpush.bf16.msrb.mxu2 %v3287_v3  ;;  %v3236_v38 = vld [vmem:[%s4025_s7 + $0x610] sm:$0xf0]  ;;  %v3716_v40 = vld [vmem:[%s4025_s7 + $0x704] sm:$0xf]  ;;  %v3111_v52 = vor.u32 %v3652_v34, %v3108_v35  ;;  %v3583_v2 = vld [vmem:[%s4025_s7 + $0x2d4] sm:$0xf0] }
  0xaa   : > { %2064 = vmatpush.bf16.msrb.mxu3 %v3415_v9  ;;  %v3364_v41 = vld [vmem:[%s4025_s7 + $0x710] sm:$0xf0]  ;;  %v3239_v53 = vor.u32 %v3684_v36, %v3236_v38  ;;  %v2954_v3 = vld [vmem:[%s4025_s7 + $0x3c8] sm:$0xf]  ;;  %v2827_v9 = vor.u32 %v3583_v2, %v2826_v1  ;;  %v3547_v14 = vld [vmem:[%s4025_s7 + $0x1b4] sm:$0xf0] }
  0xab   : > { %2026 = vmatpush.bf16.msrb.mxu0 %v3015_v15  ;;  %v3367_v56 = vor.u32 %v3716_v40, %v3364_v41  ;;  %v2955_v13 = vor.u32 %v3615_v4, %v2954_v3  ;;  %v2810_v15 = vld [vmem:[%s4025_s7 + $0x2a8] sm:$0xf]  ;;  %v3611_v18 = vld [vmem:[%s4025_s7 + $0x3b4] sm:$0xf0]  ;;  %v2683_v20 = vor.u32 %v3547_v14, %v2682_v12 }
  0xac   : > { %v2538_v24 = vld [vmem:[%s4025_s7 + $0x88] sm:$0xf]  ;;  %v3511_v25 = vld [vmem:[%s4025_s7 + $0x94] sm:$0xf0] }
  0xad   : > { %2039 = vmatpush.bf16.msrb.mxu1 %v3143_v16  ;;  %2052 = vmatpush.bf16.msrb.mxu2 %v3271_v17  ;;  %v3579_v16 = vld [vmem:[%s4025_s7 + $0x2b4] sm:$0xf0]  ;;  %v2938_v17 = vld [vmem:[%s4025_s7 + $0x3a8] sm:$0xf] }
  0xae   : > { %2065 = vmatpush.bf16.msrb.mxu3 %v3399_v23  ;;  %v2811_v23 = vor.u32 %v3579_v16, %v2810_v15  ;;  %v2666_v26 = vld [vmem:[%s4025_s7 + $0x188] sm:$0xf]  ;;  %v2939_v27 = vor.u32 %v3611_v18, %v2938_v17  ;;  %v3543_v28 = vld [vmem:[%s4025_s7 + $0x194] sm:$0xf0] }
  0xaf   : > { %2027 = vmatpush.bf16.msrb.mxu0 %v2999_v29  ;;  %v2794_v29 = vld [vmem:[%s4025_s7 + $0x288] sm:$0xf]  ;;  %v3575_v30 = vld [vmem:[%s4025_s7 + $0x294] sm:$0xf0]  ;;  %v2667_v34 = vor.u32 %v3543_v28, %v2666_v26 }
  0xb0   : > { %v2922_v31 = vld [vmem:[%s4025_s7 + $0x388] sm:$0xf]  ;;  %v2795_v35 = vor.u32 %v3575_v30, %v2794_v29  ;;  %v3539_v41 = vld [vmem:[%s4025_s7 + $0x174] sm:$0xf0] }
  0xb1   : > { %2040 = vmatpush.bf16.msrb.mxu1 %v3127_v32  ;;  %2053 = vmatpush.bf16.msrb.mxu2 %v3255_v33  ;;  %v3607_v32 = vld [vmem:[%s4025_s7 + $0x394] sm:$0xf0]  ;;  %v2539_v33 = vor.u32 %v3511_v25, %v2538_v24  ;;  %v2522_v36 = vld [vmem:[%s4025_s7 + $0x68] sm:$0xf] }
  0xb2   : > { %2066 = vmatpush.bf16.msrb.mxu3 %v3383_v37  ;;  %v3507_v37 = vld [vmem:[%s4025_s7 + $0x74] sm:$0xf0]  ;;  %v2650_v38 = vld [vmem:[%s4025_s7 + $0x168] sm:$0xf]  ;;  %v2923_v40 = vor.u32 %v3607_v32, %v2922_v31 }
  0xb3   : > { %2028 = vmatpush.bf16.msrb.mxu0 %v2983_v48  ;;  %v2778_v44 = vld [vmem:[%s4025_s7 + $0x268] sm:$0xf]  ;;  %v3571_v46 = vld [vmem:[%s4025_s7 + $0x274] sm:$0xf0]  ;;  %v2523_v49 = vor.u32 %v3507_v37, %v2522_v36  ;;  %v2651_v50 = vor.u32 %v3539_v41, %v2650_v38 }
  0xb4   : > { %v2906_v47 = vld [vmem:[%s4025_s7 + $0x368] sm:$0xf]  ;;  %v3603_v48 = vld [vmem:[%s4025_s7 + $0x374] sm:$0xf0]  ;;  %v2779_v51 = vor.u32 %v3571_v46, %v2778_v44 }
  0xb5   : > { %2041 = vmatpush.bf16.msrb.mxu1 %v3111_v52  ;;  %2054 = vmatpush.bf16.msrb.mxu2 %v3239_v53  ;;  %v2506_v52 = vld [vmem:[%s4025_s7 + $0x48] sm:$0xf]  ;;  %v3503_v53 = vld [vmem:[%s4025_s7 + $0x54] sm:$0xf0]  ;;  %v2907_v55 = vor.u32 %v3603_v48, %v2906_v47 }
  0xb6   : > { %2067 = vmatpush.bf16.msrb.mxu3 %v3367_v56  ;;  %2029 = vmatmul.bf16.vlgmr.msrb.gmra.mxu0 %v4213_v42  ;;  %v2634_v54 = vld [vmem:[%s4025_s7 + $0x148] sm:$0xf]  ;;  %v3535_v56 = vld [vmem:[%s4025_s7 + $0x154] sm:$0xf0]  ;;  %v2507_v61 = vor.u32 %v3503_v53, %v2506_v52 }
  0xb7   : > { %2073 = vmatpush.bf16.msra.mxu0 %v2587_v57  ;;  %v2762_v57 = vld [vmem:[%s4025_s7 + $0x248] sm:$0xf]  ;;  %v3599_v60 = vld [vmem:[%s4025_s7 + $0x354] sm:$0xf0]  ;;  %v2635_v62 = vor.u32 %v3535_v56, %v2634_v54 }
  0xb8   : > { %2055 = vmatmul.bf16.vlgmr.msrb.gmra.mxu2 %v4209_v39  ;;  %2042 = vmatmul.bf16.vlgmr.msrb.gmra.mxu1 %v4217_v45  ;;  %v2490_v0 = vld [vmem:[%s4025_s7 + $0x28] sm:$0xf]  ;;  %v3499_v1 = vld [vmem:[%s4025_s7 + $0x34] sm:$0xf0] }
  0xb9   : > { %2086 = vmatpush.bf16.msra.mxu1 %v2715_v58  ;;  %2099 = vmatpush.bf16.msra.mxu2 %v2843_v59  ;;  %v3567_v58 = vld [vmem:[%s4025_s7 + $0x254] sm:$0xf0]  ;;  %v2890_v59 = vld [vmem:[%s4025_s7 + $0x348] sm:$0xf]  ;;  %v2491_v11 = vor.u32 %v3499_v1, %v2490_v0 }
  0xba   : > { %2112 = vmatpush.bf16.msra.mxu3 %v2971_v63  ;;  %v2763_v63 = vor.u32 %v3567_v58, %v2762_v57  ;;  %v2618_v2 = vld [vmem:[%s4025_s7 + $0x128] sm:$0xf]  ;;  %v2891_v3 = vor.u32 %v3599_v60, %v2890_v59  ;;  %v3531_v4 = vld [vmem:[%s4025_s7 + $0x134] sm:$0xf0] }
  0xbb   : > { %2068 = vmatmul.bf16.vlgmr.msrb.gmra.mxu3 %v4215_v43  ;;  %2074 = vmatpush.bf16.msra.mxu0 %v2571_v6  ;;  %v2746_v6 = vld [vmem:[%s4025_s7 + $0x228] sm:$0xf]  ;;  %v3595_v10 = vld [vmem:[%s4025_s7 + $0x334] sm:$0xf0]  ;;  %v2619_v14 = vor.u32 %v3531_v4, %v2618_v2 }
  0xbc   : > { %v2474_v12 = vld [vmem:[%s4025_s7 + $0x8] sm:$0xf]  ;;  %v3527_v17 = vld [vmem:[%s4025_s7 + $0x114] sm:$0xf0] }
  0xbd   : > { %2087 = vmatpush.bf16.msra.mxu1 %v2699_v8  ;;  %2100 = vmatpush.bf16.msra.mxu2 %v2827_v9  ;;  %v3563_v8 = vld [vmem:[%s4025_s7 + $0x234] sm:$0xf0]  ;;  %v2874_v9 = vld [vmem:[%s4025_s7 + $0x328] sm:$0xf] }
  0xbe   : > { %2113 = vmatpush.bf16.msra.mxu3 %v2955_v13  ;;  %v3495_v13 = vld [vmem:[%s4025_s7 + $0x14] sm:$0xf0]  ;;  %v2747_v15 = vor.u32 %v3563_v8, %v2746_v6  ;;  %v2602_v16 = vld [vmem:[%s4025_s7 + $0x108] sm:$0xf] }
  0xbf   : > { %2075 = vmatpush.bf16.msra.mxu0 %v2555_v19  ;;  %v2730_v18 = vld [vmem:[%s4025_s7 + $0x208] sm:$0xf]  ;;  %v2875_v19 = vor.u32 %v3595_v10, %v2874_v9  ;;  %v3591_v24 = vld [vmem:[%s4025_s7 + $0x314] sm:$0xf0]  ;;  %v2475_v28 = vor.u32 %v3495_v13, %v2474_v12  ;;  %v2603_v32 = vor.u32 %v3527_v17, %v2602_v16 }
  0xc0   : > { %v3098_v25 = vld [vmem:[%s4025_s7 + $0x4e8] sm:$0xf]  ;;  %v3651_v26 = vld [vmem:[%s4025_s7 + $0x4f4] sm:$0xf0] }
  0xc1   : > { %2088 = vmatpush.bf16.msra.mxu1 %v2683_v20  ;;  %2101 = vmatpush.bf16.msra.mxu2 %v2811_v23  ;;  %v3559_v20 = vld [vmem:[%s4025_s7 + $0x214] sm:$0xf0]  ;;  %v2858_v23 = vld [vmem:[%s4025_s7 + $0x308] sm:$0xf]  ;;  %v3099_v37 = vor.u32 %v3651_v26, %v3098_v25 }
  0xc2   : > { %2114 = vmatpush.bf16.msra.mxu3 %v2939_v27  ;;  %v3226_v27 = vld [vmem:[%s4025_s7 + $0x5e8] sm:$0xf]  ;;  %v3683_v29 = vld [vmem:[%s4025_s7 + $0x5f4] sm:$0xf0]  ;;  %v2859_v36 = vor.u32 %v3591_v24, %v2858_v23 }
  0xc3   : > { %2076 = vmatpush.bf16.msra.mxu0 %v2539_v33  ;;  %v3354_v30 = vld [vmem:[%s4025_s7 + $0x6e8] sm:$0xf]  ;;  %v3715_v31 = vld [vmem:[%s4025_s7 + $0x6f4] sm:$0xf0]  ;;  %v2731_v33 = vor.u32 %v3559_v20, %v2730_v18  ;;  %v3227_v38 = vor.u32 %v3683_v29, %v3226_v27 }
  0xc4   : > { %v3082_v41 = vld [vmem:[%s4025_s7 + $0x4c8] sm:$0xf]  ;;  %v3647_v44 = vld [vmem:[%s4025_s7 + $0x4d4] sm:$0xf0] }
  0xc5   : > { %2089 = vmatpush.bf16.msra.mxu1 %v2667_v34  ;;  %2102 = vmatpush.bf16.msra.mxu2 %v2795_v35  ;;  %v3482_v34 = vld [vmem:[%s4025_s7 + $0x7e8] sm:$0xf]  ;;  %v3747_v35 = vld [vmem:[%s4025_s7 + $0x7f4] sm:$0xf0]  ;;  %v3083_v53 = vor.u32 %v3647_v44, %v3082_v41 }
  0xc6   : > { %2115 = vmatpush.bf16.msra.mxu3 %v2923_v40  ;;  %v3355_v40 = vor.u32 %v3715_v31, %v3354_v30  ;;  %v3210_v46 = vld [vmem:[%s4025_s7 + $0x5c8] sm:$0xf]  ;;  %v3483_v47 = vor.u32 %v3747_v35, %v3482_v34  ;;  %v3679_v48 = vld [vmem:[%s4025_s7 + $0x5d4] sm:$0xf0] }
  0xc7   : > { %2077 = vmatpush.bf16.msra.mxu0 %v2523_v49  ;;  %v3338_v49 = vld [vmem:[%s4025_s7 + $0x6c8] sm:$0xf]  ;;  %v3743_v52 = vld [vmem:[%s4025_s7 + $0x7d4] sm:$0xf0]  ;;  %v3211_v54 = vor.u32 %v3679_v48, %v3210_v46 }
  0xc8   : > { %v3066_v56 = vld [vmem:[%s4025_s7 + $0x4a8] sm:$0xf]  ;;  %v3643_v57 = vld [vmem:[%s4025_s7 + $0x4b4] sm:$0xf0] }
  0xc9   : > { %2090 = vmatpush.bf16.msra.mxu1 %v2651_v50  ;;  %2103 = vmatpush.bf16.msra.mxu2 %v2779_v51  ;;  %v3711_v50 = vld [vmem:[%s4025_s7 + $0x6d4] sm:$0xf0]  ;;  %v3466_v51 = vld [vmem:[%s4025_s7 + $0x7c8] sm:$0xf]  ;;  %v3067_v1 = vor.u32 %v3643_v57, %v3066_v56 }
  0xca   : > { %2116 = vmatpush.bf16.msra.mxu3 %v2907_v55  ;;  %v3339_v55 = vor.u32 %v3711_v50, %v3338_v49  ;;  %v3194_v58 = vld [vmem:[%s4025_s7 + $0x5a8] sm:$0xf]  ;;  %v3467_v59 = vor.u32 %v3743_v52, %v3466_v51  ;;  %v3675_v60 = vld [vmem:[%s4025_s7 + $0x5b4] sm:$0xf0] }
  0xcb   : > { %2078 = vmatpush.bf16.msra.mxu0 %v2507_v61  ;;  %v3322_v61 = vld [vmem:[%s4025_s7 + $0x6a8] sm:$0xf]  ;;  %v3739_v0 = vld [vmem:[%s4025_s7 + $0x7b4] sm:$0xf0]  ;;  %v3195_v2 = vor.u32 %v3675_v60, %v3194_v58 }
  0xcc   : > { %v3050_v4 = vld [vmem:[%s4025_s7 + $0x488] sm:$0xf]  ;;  %v3639_v6 = vld [vmem:[%s4025_s7 + $0x494] sm:$0xf0] }
  0xcd   : > { %2091 = vmatpush.bf16.msra.mxu1 %v2635_v62  ;;  %2104 = vmatpush.bf16.msra.mxu2 %v2763_v63  ;;  %v3707_v62 = vld [vmem:[%s4025_s7 + $0x6b4] sm:$0xf0]  ;;  %v3450_v63 = vld [vmem:[%s4025_s7 + $0x7a8] sm:$0xf] }
  0xce   : > { %2117 = vmatpush.bf16.msra.mxu3 %v2891_v3  ;;  %v3323_v3 = vor.u32 %v3707_v62, %v3322_v61  ;;  %v3178_v8 = vld [vmem:[%s4025_s7 + $0x588] sm:$0xf]  ;;  %v3451_v9 = vor.u32 %v3739_v0, %v3450_v63  ;;  %v3671_v10 = vld [vmem:[%s4025_s7 + $0x594] sm:$0xf0] }
  0xcf   : > { %2079 = vmatpush.bf16.msra.mxu0 %v2491_v11  ;;  %v3306_v11 = vld [vmem:[%s4025_s7 + $0x688] sm:$0xf]  ;;  %v3703_v12 = vld [vmem:[%s4025_s7 + $0x694] sm:$0xf0]  ;;  %v3179_v16 = vor.u32 %v3671_v10, %v3178_v8 }
  0xd0   : > { %v3434_v13 = vld [vmem:[%s4025_s7 + $0x788] sm:$0xf]  ;;  %v3307_v17 = vor.u32 %v3703_v12, %v3306_v11  ;;  %v3667_v24 = vld [vmem:[%s4025_s7 + $0x574] sm:$0xf0]  ;;  %v3521_v11 = vld [vmem:[%s4025_s7 + $0xec] sm:$0xf] }
  0xd1   : > { %2092 = vmatpush.bf16.msra.mxu1 %v2619_v14  ;;  %2105 = vmatpush.bf16.msra.mxu2 %v2747_v15  ;;  %v3735_v14 = vld [vmem:[%s4025_s7 + $0x794] sm:$0xf0]  ;;  %v3051_v15 = vor.u32 %v3639_v6, %v3050_v4  ;;  %v3034_v18 = vld [vmem:[%s4025_s7 + $0x468] sm:$0xf]  ;;  %v2588_v12 = vld [vmem:[%s4025_s7 + $0xf8] sm:$0xf0] }
  0xd2   : > { %2118 = vmatpush.bf16.msra.mxu3 %v2875_v19  ;;  %v3635_v19 = vld [vmem:[%s4025_s7 + $0x474] sm:$0xf0]  ;;  %v3162_v20 = vld [vmem:[%s4025_s7 + $0x568] sm:$0xf]  ;;  %v3435_v23 = vor.u32 %v3735_v14, %v3434_v13  ;;  %v3553_v13 = vld [vmem:[%s4025_s7 + $0x1ec] sm:$0xf] }
  0xd3   : > { %2080 = vmatpush.bf16.msra.mxu0 %v2475_v28  ;;  %v3290_v25 = vld [vmem:[%s4025_s7 + $0x668] sm:$0xf]  ;;  %v3699_v26 = vld [vmem:[%s4025_s7 + $0x674] sm:$0xf0]  ;;  %v3035_v29 = vor.u32 %v3635_v19, %v3034_v18  ;;  %v3163_v30 = vor.u32 %v3667_v24, %v3162_v20  ;;  %v2844_v18 = vld [vmem:[%s4025_s7 + $0x2f8] sm:$0xf0] }
  0xd4   : > { %v3418_v27 = vld [vmem:[%s4025_s7 + $0x768] sm:$0xf]  ;;  %v3731_v28 = vld [vmem:[%s4025_s7 + $0x774] sm:$0xf0]  ;;  %v3291_v31 = vor.u32 %v3699_v26, %v3290_v25  ;;  %v3617_v24 = vld [vmem:[%s4025_s7 + $0x3ec] sm:$0xf] }
  0xd5   : > { %2093 = vmatpush.bf16.msra.mxu1 %v2603_v32  ;;  %2106 = vmatpush.bf16.msra.mxu2 %v2731_v33  ;;  %v3018_v32 = vld [vmem:[%s4025_s7 + $0x448] sm:$0xf]  ;;  %v3631_v33 = vld [vmem:[%s4025_s7 + $0x454] sm:$0xf0]  ;;  %v3419_v35 = vor.u32 %v3731_v28, %v3418_v27  ;;  %v2972_v25 = vld [vmem:[%s4025_s7 + $0x3f8] sm:$0xf0]  ;;  %v2591_v28 = vor.u32 %v3521_v11, %v2588_v12 }
  0xd6   : > { %2119 = vmatpush.bf16.msra.mxu3 %v2859_v36  ;;  %2081 = vmatmul.bf16.vlgmr.msra.gmra.mxu0 %v4154_v21  ;;  %v3146_v34 = vld [vmem:[%s4025_s7 + $0x548] sm:$0xf]  ;;  %v3663_v36 = vld [vmem:[%s4025_s7 + $0x554] sm:$0xf0]  ;;  %v3019_v46 = vor.u32 %v3631_v33, %v3018_v32  ;;  %v3517_v33 = vld [vmem:[%s4025_s7 + $0xcc] sm:$0xf] }
  0xd7   : > { %2125 = vmatpush.bf16.msrb.mxu0 %v3099_v37  ;;  %v3274_v37 = vld [vmem:[%s4025_s7 + $0x648] sm:$0xf]  ;;  %v3727_v41 = vld [vmem:[%s4025_s7 + $0x754] sm:$0xf0]  ;;  %v3147_v48 = vor.u32 %v3663_v36, %v3146_v34  ;;  %v2572_v34 = vld [vmem:[%s4025_s7 + $0xd8] sm:$0xf0]  ;;  %v2975_v36 = vor.u32 %v3617_v24, %v2972_v25 }
  0xd8   : > { %2107 = vmatmul.bf16.vlgmr.msra.gmra.mxu2 %v4140_v5  ;;  %2094 = vmatmul.bf16.vlgmr.msra.gmra.mxu1 %v4157_v22  ;;  %v3002_v50 = vld [vmem:[%s4025_s7 + $0x428] sm:$0xf]  ;;  %v3627_v51 = vld [vmem:[%s4025_s7 + $0x434] sm:$0xf0]  ;;  %v2780_v24 = vld [vmem:[%s4025_s7 + $0x278] sm:$0xf0] }
  0xd9   : > { %2138 = vmatpush.bf16.msrb.mxu1 %v3227_v38  ;;  %2151 = vmatpush.bf16.msrb.mxu2 %v3355_v40  ;;  %v3695_v38 = vld [vmem:[%s4025_s7 + $0x654] sm:$0xf0]  ;;  %v3402_v40 = vld [vmem:[%s4025_s7 + $0x748] sm:$0xf]  ;;  %v3003_v61 = vor.u32 %v3627_v51, %v3002_v50  ;;  %v3513_v50 = vld [vmem:[%s4025_s7 + $0xac] sm:$0xf] }
  0xda   : > { %2164 = vmatpush.bf16.msrb.mxu3 %v3483_v47  ;;  %v3275_v49 = vor.u32 %v3695_v38, %v3274_v37  ;;  %v3130_v52 = vld [vmem:[%s4025_s7 + $0x528] sm:$0xf]  ;;  %v3691_v57 = vld [vmem:[%s4025_s7 + $0x634] sm:$0xf0]  ;;  %v2700_v37 = vld [vmem:[%s4025_s7 + $0x1d8] sm:$0xf0] }
  0xdb   : > { %2120 = vmatmul.bf16.vlgmr.msra.gmra.mxu3 %v4143_v7  ;;  %2126 = vmatpush.bf16.msrb.mxu0 %v3083_v53  ;;  %v4462_v53 = vpop.f32.mrf.mxu2  ;;  %v3258_v56 = vld [vmem:[%s4025_s7 + $0x628] sm:$0xf]  ;;  %v4467_v58 = vpop.f32.mrf.mxu3  ;;  %v3723_v60 = vld [vmem:[%s4025_s7 + $0x734] sm:$0xf0]  ;;  %v3581_v38 = vld [vmem:[%s4025_s7 + $0x2cc] sm:$0xf] }
  0xdc   : > { %v2986_v62 = vld [vmem:[%s4025_s7 + $0x408] sm:$0xf]  ;;  %v3623_v63 = vld [vmem:[%s4025_s7 + $0x414] sm:$0xf0]  ;;  %v2556_v51 = vld [vmem:[%s4025_s7 + $0xb8] sm:$0xf0] }
  0xdd   : > { %2139 = vmatpush.bf16.msrb.mxu1 %v3211_v54  ;;  %2152 = vmatpush.bf16.msrb.mxu2 %v3339_v55  ;;  %v3403_v54 = vor.u32 %v3727_v41, %v3402_v40  ;;  %v3659_v55 = vld [vmem:[%s4025_s7 + $0x534] sm:$0xf0]  ;;  %v3242_v4 = vld [vmem:[%s4025_s7 + $0x608] sm:$0xf]  ;;  %v2828_v40 = vld [vmem:[%s4025_s7 + $0x2d8] sm:$0xf0] }
  0xde   : > { %2165 = vmatpush.bf16.msrb.mxu3 %v3467_v59  ;;  %v3386_v59 = vld [vmem:[%s4025_s7 + $0x728] sm:$0xf]  ;;  %v3131_v0 = vor.u32 %v3659_v55, %v3130_v52  ;;  %v3687_v8 = vld [vmem:[%s4025_s7 + $0x614] sm:$0xf0]  ;;  %v3613_v41 = vld [vmem:[%s4025_s7 + $0x3cc] sm:$0xf] }
  0xdf   : > { %2127 = vmatpush.bf16.msrb.mxu0 %v3067_v1  ;;  %v3259_v1 = vor.u32 %v3691_v57, %v3258_v56  ;;  %v3387_v6 = vor.u32 %v3723_v60, %v3386_v59  ;;  %v3719_v10 = vld [vmem:[%s4025_s7 + $0x714] sm:$0xf0]  ;;  %v3545_v52 = vld [vmem:[%s4025_s7 + $0x1ac] sm:$0xf]  ;;  %v2684_v55 = vld [vmem:[%s4025_s7 + $0x1b8] sm:$0xf0]  ;;  %v2559_v60 = vor.u32 %v3513_v50, %v2556_v51 }
  0xe0   : > { %v3577_v56 = vld [vmem:[%s4025_s7 + $0x2ac] sm:$0xf]  ;;  %v2812_v57 = vld [vmem:[%s4025_s7 + $0x2b8] sm:$0xf0] }
  0xe1   : > { %2140 = vmatpush.bf16.msrb.mxu1 %v3195_v2  ;;  %2153 = vmatpush.bf16.msrb.mxu2 %v3323_v3  ;;  %v1874_v44 = vpop.f32.mrf.mxu0  ;;  %v1887_v47 = vpop.f32.mrf.mxu1  ;;  %v3114_v2 = vld [vmem:[%s4025_s7 + $0x508] sm:$0xf]  ;;  %v3655_v3 = vld [vmem:[%s4025_s7 + $0x514] sm:$0xf0]  ;;  %v3609_v59 = vld [vmem:[%s4025_s7 + $0x3ac] sm:$0xf] }
  0xe2   : > { %2166 = vmatpush.bf16.msrb.mxu3 %v3451_v9  ;;  %v3370_v9 = vld [vmem:[%s4025_s7 + $0x708] sm:$0xf]  ;;  %v3115_v20 = vor.u32 %v3655_v3, %v3114_v2  ;;  %v1888_v32 = vadd.f32 %v1887_v47, %v1874_v44  ;;  %v2575_v44 = vor.u32 %v3517_v33, %v2572_v34  ;;  %v3541_v2 = vld [vmem:[%s4025_s7 + $0x18c] sm:$0xf] }
  0xe3   : > { %2128 = vmatpush.bf16.msrb.mxu0 %v3051_v15  ;;  %v2987_v15 = vor.u32 %v3623_v63, %v2986_v62  ;;  %v1902_v26 = vpop.f32.mrf.mxu2  ;;  %v3371_v27 = vor.u32 %v3719_v10, %v3370_v9  ;;  %v2687_v62 = vor.u32 %v3545_v52, %v2684_v55  ;;  %v2815_v63 = vor.u32 %v3577_v56, %v2812_v57  ;;  %v3605_v9 = vld [vmem:[%s4025_s7 + $0x38c] sm:$0xf]  ;;  %v2924_v10 = vld [vmem:[%s4025_s7 + $0x398] sm:$0xf0] }
  0xe4   : > { %v3601_v25 = vld [vmem:[%s4025_s7 + $0x36c] sm:$0xf]  ;;  %v2908_v26 = vld [vmem:[%s4025_s7 + $0x378] sm:$0xf0] }
  0xe5   : > { %2141 = vmatpush.bf16.msrb.mxu1 %v3179_v16  ;;  %2154 = vmatpush.bf16.msrb.mxu2 %v3307_v17  ;;  %v2716_v16 = vld [vmem:[%s4025_s7 + $0x1f8] sm:$0xf0]  ;;  %v3585_v17 = vld [vmem:[%s4025_s7 + $0x2ec] sm:$0xf] }
  0xe6   : > { %2167 = vmatpush.bf16.msrb.mxu3 %v3435_v23  ;;  %v3243_v23 = vor.u32 %v3687_v8, %v3242_v4  ;;  %v2668_v4 = vld [vmem:[%s4025_s7 + $0x198] sm:$0xf0]  ;;  %v3533_v33 = vld [vmem:[%s4025_s7 + $0x14c] sm:$0xf] }
  0xe7   : > { %2129 = vmatpush.bf16.msrb.mxu0 %v3035_v29  ;;  %v1915_v29 = vpop.f32.mrf.mxu3  ;;  %v2796_v8 = vld [vmem:[%s4025_s7 + $0x298] sm:$0xf0]  ;;  %v2671_v12 = vor.u32 %v3541_v2, %v2668_v4  ;;  %v3529_v56 = vld [vmem:[%s4025_s7 + $0x12c] sm:$0xf] }
  0xe8   : > { %v2492_v55 = vld [vmem:[%s4025_s7 + $0x38] sm:$0xf0]  ;;  %v3493_v2 = vld [vmem:[%s4025_s7 + $0xc] sm:$0xf] }
  0xe9   : > { %2142 = vmatpush.bf16.msrb.mxu1 %v3163_v30  ;;  %2155 = vmatpush.bf16.msrb.mxu2 %v3291_v31  ;;  %v1876_v14 = vpop.f32.mrf.mxu0  ;;  %v1889_v19 = vpop.f32.mrf.mxu1  ;;  %v2719_v30 = vor.u32 %v3553_v13, %v2716_v16  ;;  %v2847_v31 = vor.u32 %v3585_v17, %v2844_v18  ;;  %v3537_v16 = vld [vmem:[%s4025_s7 + $0x16c] sm:$0xf] }
  0xea   : > { %2168 = vmatpush.bf16.msrb.mxu3 %v3419_v35  ;;  %v3549_v35 = vld [vmem:[%s4025_s7 + $0x1cc] sm:$0xf]  ;;  %v2927_v19 = vor.u32 %v3605_v9, %v2924_v10  ;;  %v2604_v9 = vld [vmem:[%s4025_s7 + $0x118] sm:$0xf0] }
  0xeb   : > { %2130 = vmatpush.bf16.msrb.mxu0 %v3019_v46  ;;  %v2956_v46 = vld [vmem:[%s4025_s7 + $0x3d8] sm:$0xf0]  ;;  %v2703_v47 = vor.u32 %v3549_v35, %v2700_v37  ;;  %v3505_v14 = vld [vmem:[%s4025_s7 + $0x6c] sm:$0xf]  ;;  %v2911_v35 = vor.u32 %v3601_v25, %v2908_v26 }
  0xec   : > { %v3565_v37 = vld [vmem:[%s4025_s7 + $0x24c] sm:$0xf] }
  0xed   : > { %2143 = vmatpush.bf16.msrb.mxu1 %v3147_v48  ;;  %2156 = vmatpush.bf16.msrb.mxu2 %v3275_v49  ;;  %v2831_v48 = vor.u32 %v3581_v38, %v2828_v40  ;;  %v1901_v49 = vadd.f32 %v4462_v53, %v1888_v32  ;;  %v2940_v53 = vld [vmem:[%s4025_s7 + $0x3b8] sm:$0xf0]  ;;  %v3557_v10 = vld [vmem:[%s4025_s7 + $0x20c] sm:$0xf] }
  0xee   : > { %2169 = vmatpush.bf16.msrb.mxu3 %v3403_v54  ;;  %v2959_v54 = vor.u32 %v3613_v41, %v2956_v46  ;;  %v2943_v3 = vor.u32 %v3609_v59, %v2940_v53  ;;  %v2508_v32 = vld [vmem:[%s4025_s7 + $0x58] sm:$0xf0]  ;;  %v3597_v46 = vld [vmem:[%s4025_s7 + $0x34c] sm:$0xf] }
  0xef   : > { %2131 = vmatpush.bf16.msrb.mxu0 %v3003_v61  ;;  %v1914_v61 = vadd.f32 %v4467_v58, %v1901_v49  ;;  %v2764_v38 = vld [vmem:[%s4025_s7 + $0x258] sm:$0xf0] }
  0xf0   : > { %v2767_v52 = vor.u32 %v3565_v37, %v2764_v38  ;;  %v3212_v37 = vld [vmem:[%s4025_s7 + $0x5d8] sm:$0xf0]  ;;  %v3709_v38 = vld [vmem:[%s4025_s7 + $0x6cc] sm:$0xf] }
  0xf1   : > { %2144 = vmatpush.bf16.msrb.mxu1 %v3131_v0  ;;  %2157 = vmatpush.bf16.msrb.mxu2 %v3259_v1  ;;  %v3509_v0 = vld [vmem:[%s4025_s7 + $0x8c] sm:$0xf]  ;;  %v2540_v1 = vld [vmem:[%s4025_s7 + $0x98] sm:$0xf0] }
  0xf2   : > { %2170 = vmatpush.bf16.msrb.mxu3 %v3387_v6  ;;  %v3573_v6 = vld [vmem:[%s4025_s7 + $0x28c] sm:$0xf]  ;;  %v2543_v58 = vor.u32 %v3509_v0, %v2540_v1  ;;  %v2876_v0 = vld [vmem:[%s4025_s7 + $0x338] sm:$0xf0] }
  0xf3   : > { %2132 = vmatpush.bf16.msrb.mxu0 %v2987_v15  ;;  %v2799_v13 = vor.u32 %v3573_v6, %v2796_v8  ;;  %v2524_v15 = vld [vmem:[%s4025_s7 + $0x78] sm:$0xf0]  ;;  %v3525_v8 = vld [vmem:[%s4025_s7 + $0x10c] sm:$0xf] }
  0xf4   : > { %v2607_v25 = vor.u32 %v3525_v8, %v2604_v9  ;;  %v3633_v9 = vld [vmem:[%s4025_s7 + $0x46c] sm:$0xf] }
  0xf5   : > { %2145 = vmatpush.bf16.msrb.mxu1 %v3115_v20  ;;  %2158 = vmatpush.bf16.msrb.mxu2 %v3243_v23  ;;  %v1926_v11 = vpop.f32.mrf.mxu0  ;;  %v2652_v20 = vld [vmem:[%s4025_s7 + $0x178] sm:$0xf0]  ;;  %v3569_v23 = vld [vmem:[%s4025_s7 + $0x26c] sm:$0xf] }
  0xf6   : > { %2171 = vmatpush.bf16.msrb.mxu3 %v3371_v27  ;;  %2133 = vmatmul.bf16.vlgmr.msrb.gmra.mxu0 %v4213_v42  ;;  %v1927_v17 = vadd.f32 %v1926_v11, %v1914_v61  ;;  %v2655_v29 = vor.u32 %v3537_v16, %v2652_v20  ;;  %v3561_v61 = vld [vmem:[%s4025_s7 + $0x22c] sm:$0xf]  ;;  %v3228_v20 = vld [vmem:[%s4025_s7 + $0x5f8] sm:$0xf0] }
  0xf7   : > { %2177 = vmatpush.bf16.msra.mxu0 %v2591_v28  ;;  %v1939_v18 = vpop.f32.mrf.mxu1  ;;  %v2527_v28 = vor.u32 %v3505_v14, %v2524_v15  ;;  %v2860_v14 = vld [vmem:[%s4025_s7 + $0x318] sm:$0xf0]  ;;  %v3649_v16 = vld [vmem:[%s4025_s7 + $0x4ec] sm:$0xf] }
  0xf8   : > { %2159 = vmatmul.bf16.vlgmr.msrb.gmra.mxu2 %v4209_v39  ;;  %2146 = vmatmul.bf16.vlgmr.msrb.gmra.mxu1 %v4217_v45  ;;  %v1940_v27 = vadd.f32 %v1939_v18, %v1927_v17  ;;  %v3100_v17 = vld [vmem:[%s4025_s7 + $0x4f8] sm:$0xf0]  ;;  %v3681_v18 = vld [vmem:[%s4025_s7 + $0x5ec] sm:$0xf] }
  0xf9   : > { %2190 = vmatpush.bf16.msra.mxu1 %v2719_v30  ;;  %2203 = vmatpush.bf16.msra.mxu2 %v2847_v31  ;;  %v2783_v30 = vor.u32 %v3569_v23, %v2780_v24  ;;  %v3501_v31 = vld [vmem:[%s4025_s7 + $0x4c] sm:$0xf]  ;;  %v3356_v24 = vld [vmem:[%s4025_s7 + $0x6f8] sm:$0xf0] }
  0xfa   : > { %2216 = vmatpush.bf16.msra.mxu3 %v2975_v36  ;;  %v2636_v36 = vld [vmem:[%s4025_s7 + $0x158] sm:$0xf0]  ;;  %v3713_v23 = vld [vmem:[%s4025_s7 + $0x6ec] sm:$0xf] }
  0xfb   : > { %2172 = vmatmul.bf16.vlgmr.msrb.gmra.mxu3 %v4215_v43  ;;  %2178 = vmatpush.bf16.msra.mxu0 %v2575_v44  ;;  %v1952_v34 = vpop.f32.mrf.mxu2  ;;  %v2892_v44 = vld [vmem:[%s4025_s7 + $0x358] sm:$0xf0]  ;;  %v2639_v51 = vor.u32 %v3533_v33, %v2636_v36  ;;  %v3645_v33 = vld [vmem:[%s4025_s7 + $0x4cc] sm:$0xf] }
  0xfc   : > { %v1953_v40 = vadd.f32 %v1952_v34, %v1940_v27  ;;  %v2895_v59 = vor.u32 %v3597_v46, %v2892_v44  ;;  %v3745_v27 = vld [vmem:[%s4025_s7 + $0x7ec] sm:$0xf]  ;;  %v3084_v34 = vld [vmem:[%s4025_s7 + $0x4d8] sm:$0xf0] }
  0xfd   : > { %2191 = vmatpush.bf16.msra.mxu1 %v2703_v47  ;;  %2204 = vmatpush.bf16.msra.mxu2 %v2831_v48  ;;  %v293_v47 = vld [vmem:[#allocation2 + $0x10] sm:$0xff]  ;;  %v2511_v48 = vor.u32 %v3501_v31, %v2508_v32  ;;  %v1928_v50 = vpop.f32.mrf.mxu0  ;;  %v3231_v31 = vor.u32 %v3681_v18, %v3228_v20  ;;  %v3359_v32 = vor.u32 %v3713_v23, %v3356_v24  ;;  %v3468_v46 = vld [vmem:[%s4025_s7 + $0x7d8] sm:$0xf0]  ;;  %v3629_v23 = vld [vmem:[%s4025_s7 + $0x44c] sm:$0xf] }
  0xfe   : > { %2217 = vmatpush.bf16.msra.mxu3 %v2959_v54  ;;  %v1965_v41 = vpop.f32.mrf.mxu3  ;;  %v3497_v54 = vld [vmem:[%s4025_s7 + $0x2c] sm:$0xf]  ;;  %v3087_v44 = vor.u32 %v3645_v33, %v3084_v34  ;;  %v3068_v50 = vld [vmem:[%s4025_s7 + $0x4b8] sm:$0xf0] }
  0xff   : > { %2179 = vmatpush.bf16.msra.mxu0 %v2559_v60  ;;  %v1966_v49 = vadd.f32 %v1965_v41, %v1953_v40  ;;  %v1941_v57 = vpop.f32.mrf.mxu1  ;;  %v2620_v60 = vld [vmem:[%s4025_s7 + $0x138] sm:$0xf0]  ;;  %v2495_v1 = vor.u32 %v3497_v54, %v2492_v55  ;;  %v3741_v41 = vld [vmem:[%s4025_s7 + $0x7cc] sm:$0xf] }
 0x100   : > { %v2623_v4 = vor.u32 %v3529_v56, %v2620_v60  ;;  %v3340_v40 = vld [vmem:[%s4025_s7 + $0x6d8] sm:$0xf0]  ;;  %v3705_v55 = vld [vmem:[%s4025_s7 + $0x6ac] sm:$0xf] }
 0x101   : > { %2192 = vmatpush.bf16.msra.mxu1 %v2687_v62  ;;  %2205 = vmatpush.bf16.msra.mxu2 %v2815_v63  ;;  %v2281_v53 = vadd.f32 %v1966_v49, %v293_v47  ;;  %v2748_v62 = vld [vmem:[%s4025_s7 + $0x238] sm:$0xf0]  ;;  %v3593_v63 = vld [vmem:[%s4025_s7 + $0x32c] sm:$0xf] }
 0x102   : > { %2218 = vmatpush.bf16.msra.mxu3 %v2943_v3  ;;  %v2476_v3 = vld [vmem:[%s4025_s7 + $0x18] sm:$0xf0]  ;;  %v2751_v6 = vor.u32 %v3561_v61, %v2748_v62  ;;  %v2879_v11 = vor.u32 %v3593_v63, %v2876_v0  ;;  %v3641_v49 = vld [vmem:[%s4025_s7 + $0x4ac] sm:$0xf] }
 0x103   : > { %2180 = vmatpush.bf16.msra.mxu0 %v2543_v58  ;;  %2285 = vst [vmem:[#allocation2 + $0x10] sm:$0xff] %v2281_v53  ;;  %v1954_v58 = vpop.f32.mrf.mxu2  ;;  %v3196_v54 = vld [vmem:[%s4025_s7 + $0x5b8] sm:$0xf0]  ;;  %v3737_v57 = vld [vmem:[%s4025_s7 + $0x7ac] sm:$0xf]  ;;  %v3071_v53 = vor.u32 %v3641_v49, %v3068_v50 }
 0x104   : > { %v3324_v56 = vld [vmem:[%s4025_s7 + $0x6b8] sm:$0xf0]  ;;  %v3637_v61 = vld [vmem:[%s4025_s7 + $0x48c] sm:$0xf] }
 0x105   : > { %2193 = vmatpush.bf16.msra.mxu1 %v2671_v12  ;;  %2206 = vmatpush.bf16.msra.mxu2 %v2799_v13  ;;  %v2732_v12 = vld [vmem:[%s4025_s7 + $0x218] sm:$0xf0]  ;;  %v3589_v13 = vld [vmem:[%s4025_s7 + $0x30c] sm:$0xf]  ;;  %v3327_v60 = vor.u32 %v3705_v55, %v3324_v56 }
 0x106   : > { %2219 = vmatpush.bf16.msra.mxu3 %v2927_v19  ;;  %v1967_v15 = vpop.f32.mrf.mxu3  ;;  %v2479_v19 = vor.u32 %v3493_v2, %v2476_v3  ;;  %v2735_v26 = vor.u32 %v3557_v10, %v2732_v12  ;;  %v3052_v62 = vld [vmem:[%s4025_s7 + $0x498] sm:$0xf0]  ;;  %v3733_v2 = vld [vmem:[%s4025_s7 + $0x78c] sm:$0xf] }
 0x107   : > { %2181 = vmatpush.bf16.msra.mxu0 %v2527_v28  ;;  %v3484_v28 = vld [vmem:[%s4025_s7 + $0x7f8] sm:$0xf0]  ;;  %v3665_v58 = vld [vmem:[%s4025_s7 + $0x56c] sm:$0xf] }
 0x108   : > { %v3487_v36 = vor.u32 %v3745_v27, %v3484_v28  ;;  %v3180_v0 = vld [vmem:[%s4025_s7 + $0x598] sm:$0xf0]  ;;  %v3721_v50 = vld [vmem:[%s4025_s7 + $0x72c] sm:$0xf] }
 0x109   : > { %2194 = vmatpush.bf16.msra.mxu1 %v2655_v29  ;;  %2207 = vmatpush.bf16.msra.mxu2 %v2783_v30  ;;  %v2863_v29 = vor.u32 %v3589_v13, %v2860_v14  ;;  %v3103_v30 = vor.u32 %v3649_v16, %v3100_v17  ;;  %v3436_v3 = vld [vmem:[%s4025_s7 + $0x798] sm:$0xf0]  ;;  %v3697_v14 = vld [vmem:[%s4025_s7 + $0x66c] sm:$0xf] }
 0x10a   : > { %2220 = vmatpush.bf16.msra.mxu3 %v2911_v35  ;;  %v3677_v35 = vld [vmem:[%s4025_s7 + $0x5cc] sm:$0xf]  ;;  %v3036_v10 = vld [vmem:[%s4025_s7 + $0x478] sm:$0xf0]  ;;  %v3439_v12 = vor.u32 %v3733_v2, %v3436_v3 }
 0x10b   : > { %2182 = vmatpush.bf16.msra.mxu0 %v2511_v48  ;;  %v3215_v47 = vor.u32 %v3677_v35, %v3212_v37  ;;  %v3343_v48 = vor.u32 %v3709_v38, %v3340_v40  ;;  %v3164_v13 = vld [vmem:[%s4025_s7 + $0x578] sm:$0xf0]  ;;  %v3729_v16 = vld [vmem:[%s4025_s7 + $0x76c] sm:$0xf]  ;;  %v3039_v18 = vor.u32 %v3633_v9, %v3036_v10 }
 0x10c   : > { %v3292_v15 = vld [vmem:[%s4025_s7 + $0x678] sm:$0xf0]  ;;  %v3625_v38 = vld [vmem:[%s4025_s7 + $0x42c] sm:$0xf] }
 0x10d   : > { %2195 = vmatpush.bf16.msra.mxu1 %v2639_v51  ;;  %2208 = vmatpush.bf16.msra.mxu2 %v2767_v52  ;;  %v3673_v51 = vld [vmem:[%s4025_s7 + $0x5ac] sm:$0xf]  ;;  %v3471_v52 = vor.u32 %v3741_v41, %v3468_v46  ;;  %v3420_v17 = vld [vmem:[%s4025_s7 + $0x778] sm:$0xf0]  ;;  %v3295_v20 = vor.u32 %v3697_v14, %v3292_v15  ;;  %v294_v14 = vld [vmem:[#allocation2] sm:$0xff] }
 0x10e   : > { %2221 = vmatpush.bf16.msra.mxu3 %v2895_v59  ;;  %v3452_v59 = vld [vmem:[%s4025_s7 + $0x7b8] sm:$0xf0]  ;;  %v3423_v27 = vor.u32 %v3729_v16, %v3420_v17  ;;  %v3657_v41 = vld [vmem:[%s4025_s7 + $0x52c] sm:$0xf] }
 0x10f   : > { %2183 = vmatpush.bf16.msra.mxu0 %v2495_v1  ;;  %v3455_v63 = vor.u32 %v3737_v57, %v3452_v59  ;;  %v3308_v1 = vld [vmem:[%s4025_s7 + $0x698] sm:$0xf0]  ;;  %v3621_v56 = vld [vmem:[%s4025_s7 + $0x40c] sm:$0xf] }
 0x110   : > { %v3020_v24 = vld [vmem:[%s4025_s7 + $0x458] sm:$0xf0]  ;;  %v3653_v59 = vld [vmem:[%s4025_s7 + $0x50c] sm:$0xf] }
 0x111   : > { %2196 = vmatpush.bf16.msra.mxu1 %v2623_v4  ;;  %2209 = vmatpush.bf16.msra.mxu2 %v2751_v6  ;;  %v3148_v28 = vld [vmem:[%s4025_s7 + $0x558] sm:$0xf0]  ;;  %v3023_v34 = vor.u32 %v3629_v23, %v3020_v24 }
 0x112   : > { %2222 = vmatpush.bf16.msra.mxu3 %v2879_v11  ;;  %v3404_v33 = vld [vmem:[%s4025_s7 + $0x758] sm:$0xf0] }
 0x113   : > { %2184 = vmatpush.bf16.msra.mxu0 %v2479_v19  ;;  %v4585_v4 = vpop.f32.mrf.mxu0  ;;  %v3167_v19 = vor.u32 %v3665_v58, %v3164_v13  ;;  %v3004_v40 = vld [vmem:[%s4025_s7 + $0x438] sm:$0xf0] }
 0x114   : > { %v3260_v49 = vld [vmem:[%s4025_s7 + $0x638] sm:$0xf0] }
 0x115   : > { %2197 = vmatpush.bf16.msra.mxu1 %v2607_v25  ;;  %2210 = vmatpush.bf16.msra.mxu2 %v2735_v26  ;;  %v4590_v11 = vpop.f32.mrf.mxu1  ;;  %v3661_v25 = vld [vmem:[%s4025_s7 + $0x54c] sm:$0xf]  ;;  %v2988_v57 = vld [vmem:[%s4025_s7 + $0x418] sm:$0xf0] }
 0x116   : > { %2223 = vmatpush.bf16.msra.mxu3 %v2863_v29  ;;  %2185 = vmatmul.bf16.vlgmr.msra.gmra.mxu0 %v4154_v21  ;;  %v3701_v21 = vld [vmem:[%s4025_s7 + $0x68c] sm:$0xf] }
 0x117   : > { %2229 = vmatpush.bf16.msrb.mxu0 %v3103_v30  ;;  %v3311_v8 = vor.u32 %v3701_v21, %v3308_v1  ;;  %v3693_v29 = vld [vmem:[%s4025_s7 + $0x64c] sm:$0xf]  ;;  %v3276_v30 = vld [vmem:[%s4025_s7 + $0x658] sm:$0xf0]  ;;  %v2991_v21 = vor.u32 %v3621_v56, %v2988_v57 }
 0x118   : > { %2211 = vmatmul.bf16.vlgmr.msra.gmra.mxu2 %v4140_v5  ;;  %2198 = vmatmul.bf16.vlgmr.msra.gmra.mxu1 %v4157_v22  ;;  %v3199_v5 = vor.u32 %v3673_v51, %v3196_v54  ;;  %v3055_v22 = vor.u32 %v3637_v61, %v3052_v62  ;;  %v3279_v37 = vor.u32 %v3693_v29, %v3276_v30  ;;  %v3388_v51 = vld [vmem:[%s4025_s7 + $0x738] sm:$0xf0]  ;;  %v3685_v61 = vld [vmem:[%s4025_s7 + $0x60c] sm:$0xf] }
 0x119   : > { %2242 = vmatpush.bf16.msrb.mxu1 %v3231_v31  ;;  %2255 = vmatpush.bf16.msrb.mxu2 %v3359_v32  ;;  %v3725_v32 = vld [vmem:[%s4025_s7 + $0x74c] sm:$0xf]  ;;  %v3244_v62 = vld [vmem:[%s4025_s7 + $0x618] sm:$0xf0] }
 0x11a   : > { %2268 = vmatpush.bf16.msrb.mxu3 %v3487_v36  ;;  %v3151_v36 = vor.u32 %v3661_v25, %v3148_v28  ;;  %v3247_v2 = vor.u32 %v3685_v61, %v3244_v62 }
 0x11b   : > { %2224 = vmatmul.bf16.vlgmr.msra.gmra.mxu3 %v4143_v7  ;;  %2230 = vmatpush.bf16.msrb.mxu0 %v3087_v44  ;;  %v3669_v7 = vld [vmem:[%s4025_s7 + $0x58c] sm:$0xf]  ;;  %v2004_v26 = vpop.f32.mrf.mxu2  ;;  %v1980_v35 = vpop.f32.mrf.mxu0  ;;  %v3407_v44 = vor.u32 %v3725_v32, %v3404_v33 }
 0x11c   : > { %v3183_v6 = vor.u32 %v3669_v7, %v3180_v0  ;;  %v3372_v0 = vld [vmem:[%s4025_s7 + $0x718] sm:$0xf0] }
 0x11d   : > { %2243 = vmatpush.bf16.msrb.mxu1 %v3215_v47  ;;  %2256 = vmatpush.bf16.msrb.mxu2 %v3343_v48  ;;  %v1993_v46 = vpop.f32.mrf.mxu1  ;;  %v3132_v47 = vld [vmem:[%s4025_s7 + $0x538] sm:$0xf0]  ;;  %v3689_v48 = vld [vmem:[%s4025_s7 + $0x62c] sm:$0xf] }
 0x11e   : > { %2269 = vmatpush.bf16.msrb.mxu3 %v3471_v52  ;;  %v2017_v31 = vpop.f32.mrf.mxu3  ;;  %v3007_v52 = vor.u32 %v3625_v38, %v3004_v40  ;;  %v3135_v54 = vor.u32 %v3657_v41, %v3132_v47  ;;  %v3263_v55 = vor.u32 %v3689_v48, %v3260_v49 }
 0x11f   : > { %2231 = vmatpush.bf16.msrb.mxu0 %v3071_v53 }
 0x121   : > { %2244 = vmatpush.bf16.msrb.mxu1 %v3199_v5  ;;  %2257 = vmatpush.bf16.msrb.mxu2 %v3327_v60  ;;  %v3391_v5 = vor.u32 %v3721_v50, %v3388_v51  ;;  %v3116_v60 = vld [vmem:[%s4025_s7 + $0x518] sm:$0xf0] }
 0x122   : > { %2270 = vmatpush.bf16.msrb.mxu3 %v3455_v63  ;;  %v3717_v63 = vld [vmem:[%s4025_s7 + $0x70c] sm:$0xf]  ;;  %v3119_v1 = vor.u32 %v3653_v59, %v3116_v60 }
 0x123   : > { %2232 = vmatpush.bf16.msrb.mxu0 %v3055_v22  ;;  %v2006_v53 = vpop.f32.mrf.mxu2  ;;  %v3375_v3 = vor.u32 %v3717_v63, %v3372_v0  ;;  %v1992_v22 = vadd.f32 %v4590_v11, %v4585_v4 }
 0x125   : > { %2245 = vmatpush.bf16.msrb.mxu1 %v3183_v6  ;;  %2258 = vmatpush.bf16.msrb.mxu2 %v3311_v8  ;;  %v2005_v6 = vadd.f32 %v2004_v26, %v1992_v22 }
 0x126   : > { %2271 = vmatpush.bf16.msrb.mxu3 %v3439_v12  ;;  %v2019_v7 = vpop.f32.mrf.mxu3 }
 0x127   : > { %2233 = vmatpush.bf16.msrb.mxu0 %v3039_v18  ;;  %v2018_v8 = vadd.f32 %v2017_v31, %v2005_v6 }
 0x129   : > { %2246 = vmatpush.bf16.msrb.mxu1 %v3167_v19  ;;  %2259 = vmatpush.bf16.msrb.mxu2 %v3295_v20 }
 0x12a   : > { %2272 = vmatpush.bf16.msrb.mxu3 %v3423_v27 }
 0x12b   : > { %2234 = vmatpush.bf16.msrb.mxu0 %v3023_v34 }
 0x12d   : > { %2247 = vmatpush.bf16.msrb.mxu1 %v3151_v36  ;;  %2260 = vmatpush.bf16.msrb.mxu2 %v3279_v37  ;;  %v295_v37 = vld [vmem:[#allocation2 + $0x18] sm:$0xff] }
 0x12e   : > { %2273 = vmatpush.bf16.msrb.mxu3 %v3407_v44 }
 0x12f   : > { %2235 = vmatpush.bf16.msrb.mxu0 %v3007_v52 }
 0x131   : > { %2248 = vmatpush.bf16.msrb.mxu1 %v3135_v54  ;;  %2261 = vmatpush.bf16.msrb.mxu2 %v3263_v55 }
 0x132   : > { %2274 = vmatpush.bf16.msrb.mxu3 %v3391_v5 }
 0x133   : > { %2236 = vmatpush.bf16.msrb.mxu0 %v2991_v21  ;;  %v2030_v9 = vpop.f32.mrf.mxu0 }
 0x134   : > { %v2031_v10 = vadd.f32 %v2030_v9, %v2018_v8 }
 0x135   : > { %2249 = vmatpush.bf16.msrb.mxu1 %v3119_v1  ;;  %2262 = vmatpush.bf16.msrb.mxu2 %v3247_v2  ;;  %v2043_v58 = vpop.f32.mrf.mxu1  ;;  %v296_v1 = vld [vmem:[#allocation2 + $0x8] sm:$0xff] }
 0x136   : > { %2275 = vmatpush.bf16.msrb.mxu3 %v3375_v3  ;;  %2237 = vmatmul.bf16.vlgmr.msrb.gmra.mxu0 %v4213_v42  ;;  %v2044_v12 = vadd.f32 %v2043_v58, %v2031_v10 }
 0x138   : > { %2250 = vmatmul.bf16.vlgmr.msrb.gmra.mxu1 %v4217_v45  ;;  %2263 = vmatmul.bf16.vlgmr.msrb.gmra.mxu2 %v4209_v39 }
 0x139   : > { %2276 = vmatmul.bf16.vlgmr.msrb.gmra.mxu3 %v4215_v43 }
 0x13b   : > { %v2056_v13 = vpop.f32.mrf.mxu2  ;;  %v2032_v16 = vpop.f32.mrf.mxu0 }
 0x13c   : > { %v2057_v4 = vadd.f32 %v2056_v13, %v2044_v12 }
 0x13d   : > { %v2045_v17 = vpop.f32.mrf.mxu1 }
 0x13e   : > { %v2069_v11 = vpop.f32.mrf.mxu3 }
 0x13f   : > { %v2070_v15 = vadd.f32 %v2069_v11, %v2057_v4 }
 0x141   : > { %v2282_v42 = vadd.f32 %v2070_v15, %v294_v14 }
 0x143   : > { %2286 = vst [vmem:[#allocation2] sm:$0xff] %v2282_v42  ;;  %v2058_v18 = vpop.f32.mrf.mxu2 }
 0x146   : > { %v2071_v45 = vpop.f32.mrf.mxu3 }
 0x153   : > { %v2082_v19 = vpop.f32.mrf.mxu0 }
 0x155   : > { %v2095_v39 = vpop.f32.mrf.mxu1 }
 0x156   : > { %v2096_v27 = vadd.f32 %v2095_v39, %v2082_v19 }
 0x15b   : > { %v2108_v20 = vpop.f32.mrf.mxu2  ;;  %v2084_v23 = vpop.f32.mrf.mxu0 }
 0x15c   : > { %v2109_v28 = vadd.f32 %v2108_v20, %v2096_v27 }
 0x15d   : > { %v2097_v24 = vpop.f32.mrf.mxu1 }
 0x15e   : > { %v2121_v43 = vpop.f32.mrf.mxu3 }
 0x15f   : > { %v2122_v29 = vadd.f32 %v2121_v43, %v2109_v28 }
 0x163   : > { %v2110_v25 = vpop.f32.mrf.mxu2 }
 0x166   : > { %v2123_v26 = vpop.f32.mrf.mxu3 }
 0x173   : > { %v2134_v30 = vpop.f32.mrf.mxu0 }
 0x174   : > { %v2135_v31 = vadd.f32 %v2134_v30, %v2122_v29 }
 0x175   : > { %v2147_v32 = vpop.f32.mrf.mxu1 }
 0x176   : > { %v2148_v33 = vadd.f32 %v2147_v32, %v2135_v31 }
 0x17b   : > { %v2160_v34 = vpop.f32.mrf.mxu2  ;;  %v2136_v40 = vpop.f32.mrf.mxu0 }
 0x17c   : > { %v2161_v35 = vadd.f32 %v2160_v34, %v2148_v33 }
 0x17d   : > { %v2149_v41 = vpop.f32.mrf.mxu1 }
 0x17e   : > { %v2173_v36 = vpop.f32.mrf.mxu3 }
 0x17f   : > { %v2174_v38 = vadd.f32 %v2173_v36, %v2161_v35 }
 0x181   : > { %v2283_v46 = vadd.f32 %v2174_v38, %v295_v37 }
 0x183   : > { %2287 = vst [vmem:[#allocation2 + $0x18] sm:$0xff] %v2283_v46  ;;  %v2162_v44 = vpop.f32.mrf.mxu2 }
 0x186   : > { %v2175_v47 = vpop.f32.mrf.mxu3 }
 0x193   : > { %v2186_v48 = vpop.f32.mrf.mxu0 }
 0x195   : > { %v2199_v49 = vpop.f32.mrf.mxu1 }
 0x196   : > { %v2200_v57 = vadd.f32 %v2199_v49, %v2186_v48 }
 0x19b   : > { %v2212_v50 = vpop.f32.mrf.mxu2  ;;  %v2188_v52 = vpop.f32.mrf.mxu0 }
 0x19c   : > { %v2213_v59 = vadd.f32 %v2212_v50, %v2200_v57 }
 0x19d   : > { %v2201_v54 = vpop.f32.mrf.mxu1 }
 0x19e   : > { %v2225_v51 = vpop.f32.mrf.mxu3 }
 0x19f   : > { %v2226_v53 = vadd.f32 %v2225_v51, %v2213_v59 }
 0x1a3   : > { %v2214_v55 = vpop.f32.mrf.mxu2 }
 0x1a6   : > { %v2227_v56 = vpop.f32.mrf.mxu3 }
 0x1b3   : > { %v2238_v5 = vpop.f32.mrf.mxu0 }
 0x1b4   : > { %v2239_v61 = vadd.f32 %v2238_v5, %v2226_v53 }
 0x1b5   : > { %v2251_v60 = vpop.f32.mrf.mxu1 }
 0x1b6   : > { %v2252_v62 = vadd.f32 %v2251_v60, %v2239_v61 }
 0x1bb   : > { %v2264_v7 = vpop.f32.mrf.mxu2  ;;  %v2240_v21 = vpop.f32.mrf.mxu0 }
 0x1bc   : > { %v2265_v63 = vadd.f32 %v2264_v7, %v2252_v62  ;;  %v2277_v0 = vpop.f32.mrf.mxu3 }
 0x1bd   : > { %v2253_v2 = vpop.f32.mrf.mxu1 }
 0x1be   : > { %v2278_v3 = vadd.f32 %v2277_v0, %v2265_v63 }
 0x1c0   : > { %v2284_v22 = vadd.f32 %v2278_v3, %v296_v1  ;;  %2292 = sbr.rel (%p3488_p3) target bundleno = 464 (0x1d0), region = 44 }
 0x1c2   : > { %2288 = vst [vmem:[#allocation2 + $0x8] sm:$0xff] %v2284_v22 }
 0x1c3   : > { %v2266_v6 = vpop.f32.mrf.mxu2 }
 0x1c4   : > { %v2279_v8 = vpop.f32.mrf.mxu3 }
 0x1c5   : > { %v2293_v9 = vld [vmem:[#allocation2 + $0x10] sm:$0xff]  ;;  %v2297_v10 = vld [vmem:[%s273_s12] sm:$0xf]  ;;  %v2295_v4 = vld [vmem:[#allocation2 + $0x18] sm:$0xff] }
 0x1c6   : > { %v2294_v58 = vld [vmem:[#allocation2] sm:$0xff]  ;;  %v2299_v12 = vperm.slane %v2297_v10, 0  ;;  %v2300_v13 = vperm.slane %v2297_v10, 1  ;;  %v2301_v11 = vperm.slane %v2297_v10, 2  ;;  %v2302_v15 = vperm.slane %v2297_v10, 3 }
 0x1c8   : > { %v2307_v16 = vadd.f32 %v2299_v12, %v2293_v9  ;;  %v2308_v17 = vadd.f32 %v2300_v13, %v2294_v58  ;;  %v2309_v42 = vadd.f32 %v2301_v11, %v2295_v4 }
 0x1c9   : > { %v2296_v14 = vld [vmem:[#allocation2 + $0x8] sm:$0xff] }
 0x1ca   : > { %v2310_v18 = vadd.f32 %v2302_v15, %v2296_v14  ;;  %v2311_v45 = vmax.f32 %v2307_v16, 0.0  ;;  %v2312_v19 = vmax.f32 %v2308_v17, 0.0  ;;  %v2313_v39 = vmax.f32 %v2309_v42, 0.0 }
 0x1cc   : > { %v2314_v20 = vmax.f32 %v2310_v18, 0.0  ;;  %2315 = vst [vmem:[%s4048_s27] sm:$0xff] %v2311_v45 }
 0x1cd   : > { %2316 = vst [vmem:[%s4048_s27 + $0x8] sm:$0xff] %v2312_v19 }
 0x1ce   : > { %2317 = vst [vmem:[%s4048_s27 + $0x10] sm:$0xff] %v2313_v39 }
 0x1cf   : > { %2318 = vst [vmem:[%s4048_s27 + $0x18] sm:$0xff] %v2314_v20 }
 0x1d0 PF: > { %s16_s19 = sadd.s32 1, %s3919_s19   ;;  %s4669_s30 = sld [smem:[#allocation6_spill]] }
 0x1d1   : > { %p13_p4 = scmp.ge.s32.totalorder %s16_s19, 34   ;;  %s4670_s12 = smov %s3895_s13 }
 0x1d2   : > { %s4671_s13 = smov %s3899_s14  ;;  %s4672_s14 = smov %s4012_s5 }
 0x1d3   : > { %s4673_s15 = smov %s3911_s17  ;;  %s4674_s16 = smov %s3915_s18 }
 0x1d4   : > { %s4675_s17 = smov %s4678_s21  ;;  %15 = sbr.rel (!%p13_p4) target bundleno = 5 (0x5), region = 86 }
 0x1d6   : > { %s4676_s18 = smov %s4669_s30 }
 0x1d9   :  { %2349 = vsyncpa [#allocation4], 1 }
 0x1da   :  { %2351 = vsyncpa [#allocation4 + $0x1], 1 }

// kernel: forward.15
= control target key start
LH: loop header
LB: loop body
LE: loop exit
PB: predicated region body
PF: predicated region fallthrough
CT: control target
= control target key end

     0   :  { %s1436_s12 = smov 0   ;;  %s1438_s13 = smov 0   ;;  %s1553_s0 = inlined_call_operand.vmem [shape: bf16[8,4096], index: 0, kind: input, shape index: {}]   ;;  %s1554_s1 = inlined_call_operand.vmem [shape: bf16[4096,128], index: 1, kind: input, shape index: {}]   ;;  %s1555_s2 = inlined_call_operand.vmem [shape: f32[1,128], index: 2, kind: input, shape index: {}]   ;;  %s1556_s3 = inlined_call_operand.vmem [shape: f32[8,128], index: 3, kind: output, shape index: {}]  }
   0x1   :  { %s1440_s14 = smov 0  }
   0x2 LB: > { %s25_s15 = sadd.s32 1, %s1409_s13  ;;  %p1035_p0 = scmp.ge.s32.totalorder %s1413_s14, 1  ;;  %s1413_s14 = sphi %s1440_s14, %s13_s14   ;;  %s1409_s13 = sphi %s1438_s13, %s1558_s13   ;;  %s1405_s12 = sphi %s1436_s12, %s1557_s12  }
   0x3   : > { %p26_p1 = scmp.ge.s32.totalorder %s25_s15, 4  ;;  %p189_p2 = scmp.lt.s32.totalorder %s1413_s14, 5 }
   0x5   : > { %s1560_s15 = smov (%p26_p1, %s25_s15), 0  ;;  %p190_p3 = pnand %p1035_p0, %p189_p2 }
   0x6   : > { %s1036_s16 = sshll.u32 (!%p190_p3), %s1405_s12, 3  ;;  %s1038_s17 = sshll.u32 (!%p190_p3), %s1405_s12, 7 }
   0x7   : > { %193 = sbr.rel (%p190_p3) target bundleno = 237 (0xed), region = 32  ;;  %p233_p4 = scmp.lt.s32.totalorder (!%p190_p3), %s1036_s16, 31 }
   0x8   : > { %p241_p5 = scmp.lt.s32.totalorder (!%p190_p3), %s1038_s17, 511  ;;  %p1040_p6 = scmp.ne.s32.totalorder (!%p190_p3), %s1405_s12, 0 }
   0xc   : > { %s1562_s16 = smov (!%p233_p4, %s1036_s16), 31  ;;  %s1564_s17 = smov (!%p241_p5, %s1038_s17), 511 }
   0xd   : > { %s1037_s18 = sshll.u32 %s1562_s16, 2  ;;  %s1039_s22 = sshll.u32 %s1564_s17, 2 }
   0xe   : > { %s1461_s21 = scalar_lea.vmem %s1553_s0, %s1037_s18  ;;  %s1466_s25 = scalar_lea.vmem %s1554_s1, %s1039_s22 }
   0xf   : > { %262 = sbr.rel (%p1040_p6) target bundleno = 22 (0x16), region = 36 }
  0x14   : > { %v1415_v0 = vmov 0.0  }
  0x15   : > { %263 = vst [vmem:[#allocation2] sm:$0xff] %v1415_v0 }
  0x16 PF: > { %v1308_v1 = vld [vmem:[%s1466_s25 + $0x38] sm:$0xff]  ;;  %v1307_v5 = vld [vmem:[%s1466_s25 + $0x30] sm:$0xff]  ;;  %v1306_v9 = vld [vmem:[%s1466_s25 + $0x28] sm:$0xff]  ;;  %p1297_p7 = scmp.ne.s32.totalorder %s1405_s12, 3 }
  0x17   : > { %v1316_v2 = vld [vmem:[%s1466_s25 + $0x78] sm:$0xff]  ;;  %809 = vmatpush.bf16.msra.mxu0 %v1308_v1  ;;  %v1315_v6 = vld [vmem:[%s1466_s25 + $0x70] sm:$0xff]  ;;  %v1314_v10 = vld [vmem:[%s1466_s25 + $0x68] sm:$0xff] }
  0x18   : > { %v1324_v3 = vld [vmem:[%s1466_s25 + $0xb8] sm:$0xff]  ;;  %822 = vmatpush.bf16.msra.mxu1 %v1316_v2  ;;  %v1323_v7 = vld [vmem:[%s1466_s25 + $0xb0] sm:$0xff]  ;;  %v1322_v11 = vld [vmem:[%s1466_s25 + $0xa8] sm:$0xff] }
  0x19   : > { %v1332_v4 = vld [vmem:[%s1466_s25 + $0xf8] sm:$0xff]  ;;  %835 = vmatpush.bf16.msra.mxu2 %v1324_v3  ;;  %v1331_v8 = vld [vmem:[%s1466_s25 + $0xf0] sm:$0xff]  ;;  %v1330_v12 = vld [vmem:[%s1466_s25 + $0xe8] sm:$0xff] }
  0x1a   : > { %848 = vmatpush.bf16.msra.mxu3 %v1332_v4  ;;  %v1305_v13 = vld [vmem:[%s1466_s25 + $0x20] sm:$0xff]  ;;  %v1304_v17 = vld [vmem:[%s1466_s25 + $0x18] sm:$0xff]  ;;  %v1303_v21 = vld [vmem:[%s1466_s25 + $0x10] sm:$0xff] }
  0x1b   : > { %810 = vmatpush.bf16.msra.mxu0 %v1307_v5  ;;  %v1313_v14 = vld [vmem:[%s1466_s25 + $0x60] sm:$0xff]  ;;  %v1312_v18 = vld [vmem:[%s1466_s25 + $0x58] sm:$0xff]  ;;  %v1311_v22 = vld [vmem:[%s1466_s25 + $0x50] sm:$0xff] }
  0x1c   : > { %823 = vmatpush.bf16.msra.mxu1 %v1315_v6  ;;  %v1321_v15 = vld [vmem:[%s1466_s25 + $0xa0] sm:$0xff]  ;;  %v1320_v19 = vld [vmem:[%s1466_s25 + $0x98] sm:$0xff]  ;;  %v1319_v23 = vld [vmem:[%s1466_s25 + $0x90] sm:$0xff] }
  0x1d   : > { %836 = vmatpush.bf16.msra.mxu2 %v1323_v7  ;;  %v1329_v16 = vld [vmem:[%s1466_s25 + $0xe0] sm:$0xff]  ;;  %v1328_v20 = vld [vmem:[%s1466_s25 + $0xd8] sm:$0xff]  ;;  %v1327_v24 = vld [vmem:[%s1466_s25 + $0xd0] sm:$0xff] }
  0x1e   : > { %849 = vmatpush.bf16.msra.mxu3 %v1331_v8  ;;  %v1302_v25 = vld [vmem:[%s1466_s25 + $0x8] sm:$0xff]  ;;  %v265_v30 = vld [vmem:[%s1461_s21] sm:$0xff]  ;;  %v1340_v39 = vld [vmem:[%s1466_s25 + $0x138] sm:$0xff] }
  0x1f   : > { %811 = vmatpush.bf16.msra.mxu0 %v1306_v9  ;;  %v1310_v26 = vld [vmem:[%s1466_s25 + $0x48] sm:$0xff]  ;;  %v1301_v31 = vld [vmem:[%s1466_s25] sm:$0xff]  ;;  %v401_v37 = vunpack.c.l.b16 %v265_v30  ;;  %v402_v38 = vunpack.c.h.b16 %v265_v30  ;;  %v1348_v40 = vld [vmem:[%s1466_s25 + $0x178] sm:$0xff] }
  0x20   : > { %824 = vmatpush.bf16.msra.mxu1 %v1314_v10  ;;  %v1318_v27 = vld [vmem:[%s1466_s25 + $0x88] sm:$0xff]  ;;  %v1309_v32 = vld [vmem:[%s1466_s25 + $0x40] sm:$0xff]  ;;  %v1356_v41 = vld [vmem:[%s1466_s25 + $0x1b8] sm:$0xff] }
  0x21   : > { %837 = vmatpush.bf16.msra.mxu2 %v1322_v11  ;;  %v1326_v28 = vld [vmem:[%s1466_s25 + $0xc8] sm:$0xff]  ;;  %v1317_v35 = vld [vmem:[%s1466_s25 + $0x80] sm:$0xff]  ;;  %v1364_v42 = vld [vmem:[%s1466_s25 + $0x1f8] sm:$0xff]  ;;  %v409_v45 = vpack.c.b16 %v401_v37, %v401_v37  ;;  %v410_v46 = vpack.c.b16 %v402_v38, %v402_v38 }
  0x22   : > { %850 = vmatpush.bf16.msra.mxu3 %v1330_v12  ;;  %v266_v29 = vld [vmem:[%s1461_s21 + $0x8] sm:$0xff]  ;;  %v1325_v36 = vld [vmem:[%s1466_s25 + $0xc0] sm:$0xff]  ;;  %v1339_v47 = vld [vmem:[%s1466_s25 + $0x130] sm:$0xff] }
  0x23   : > { %812 = vmatpush.bf16.msra.mxu0 %v1305_v13  ;;  %v403_v33 = vunpack.c.l.b16 %v266_v29  ;;  %v404_v34 = vunpack.c.h.b16 %v266_v29  ;;  %v1347_v48 = vld [vmem:[%s1466_s25 + $0x170] sm:$0xff]  ;;  %v1338_v51 = vld [vmem:[%s1466_s25 + $0x128] sm:$0xff]  ;;  %v1337_v55 = vld [vmem:[%s1466_s25 + $0x120] sm:$0xff] }
  0x24   : > { %825 = vmatpush.bf16.msra.mxu1 %v1313_v14  ;;  %v1355_v49 = vld [vmem:[%s1466_s25 + $0x1b0] sm:$0xff]  ;;  %v1346_v52 = vld [vmem:[%s1466_s25 + $0x168] sm:$0xff]  ;;  %v1345_v56 = vld [vmem:[%s1466_s25 + $0x160] sm:$0xff] }
  0x25   : > { %838 = vmatpush.bf16.msra.mxu2 %v1321_v15  ;;  %v411_v43 = vpack.c.b16 %v403_v33, %v403_v33  ;;  %v412_v44 = vpack.c.b16 %v404_v34, %v404_v34  ;;  %v1363_v50 = vld [vmem:[%s1466_s25 + $0x1f0] sm:$0xff]  ;;  %v1354_v53 = vld [vmem:[%s1466_s25 + $0x1a8] sm:$0xff]  ;;  %v1353_v57 = vld [vmem:[%s1466_s25 + $0x1a0] sm:$0xff] }
  0x26   : > { %851 = vmatpush.bf16.msra.mxu3 %v1329_v16  ;;  %v1362_v54 = vld [vmem:[%s1466_s25 + $0x1e8] sm:$0xff]  ;;  %v1361_v58 = vld [vmem:[%s1466_s25 + $0x1e0] sm:$0xff]  ;;  %v1336_v59 = vld [vmem:[%s1466_s25 + $0x118] sm:$0xff] }
  0x27   : > { %813 = vmatpush.bf16.msra.mxu0 %v1304_v17  ;;  %v1344_v60 = vld [vmem:[%s1466_s25 + $0x158] sm:$0xff]  ;;  %v1335_v63 = vld [vmem:[%s1466_s25 + $0x110] sm:$0xff]  ;;  %v1334_v3 = vld [vmem:[%s1466_s25 + $0x108] sm:$0xff] }
  0x28   : > { %826 = vmatpush.bf16.msra.mxu1 %v1312_v18  ;;  %v1352_v61 = vld [vmem:[%s1466_s25 + $0x198] sm:$0xff]  ;;  %v1343_v0 = vld [vmem:[%s1466_s25 + $0x150] sm:$0xff]  ;;  %v1342_v4 = vld [vmem:[%s1466_s25 + $0x148] sm:$0xff] }
  0x29   : > { %839 = vmatpush.bf16.msra.mxu2 %v1320_v19  ;;  %v1360_v62 = vld [vmem:[%s1466_s25 + $0x1d8] sm:$0xff]  ;;  %v1351_v1 = vld [vmem:[%s1466_s25 + $0x190] sm:$0xff]  ;;  %v1350_v6 = vld [vmem:[%s1466_s25 + $0x188] sm:$0xff] }
  0x2a   : > { %852 = vmatpush.bf16.msra.mxu3 %v1328_v20  ;;  %v1359_v2 = vld [vmem:[%s1466_s25 + $0x1d0] sm:$0xff]  ;;  %v1358_v7 = vld [vmem:[%s1466_s25 + $0x1c8] sm:$0xff]  ;;  %v268_v8 = vld [vmem:[%s1461_s21 + $0x18] sm:$0xff] }
  0x2b   : > { %814 = vmatpush.bf16.msra.mxu0 %v1303_v21  ;;  %v267_v5 = vld [vmem:[%s1461_s21 + $0x10] sm:$0xff]  ;;  %v1333_v11 = vld [vmem:[%s1466_s25 + $0x100] sm:$0xff]  ;;  %v407_v13 = vunpack.c.l.b16 %v268_v8  ;;  %v408_v14 = vunpack.c.h.b16 %v268_v8 }
  0x2c   : > { %827 = vmatpush.bf16.msra.mxu1 %v1311_v22  ;;  %v405_v9 = vunpack.c.l.b16 %v267_v5  ;;  %v406_v10 = vunpack.c.h.b16 %v267_v5  ;;  %v1341_v12 = vld [vmem:[%s1466_s25 + $0x140] sm:$0xff] }
  0x2d   : > { %840 = vmatpush.bf16.msra.mxu2 %v1319_v23  ;;  %v1349_v15 = vld [vmem:[%s1466_s25 + $0x180] sm:$0xff]  ;;  %v415_v19 = vpack.c.b16 %v407_v13, %v407_v13  ;;  %v416_v20 = vpack.c.b16 %v408_v14, %v408_v14 }
  0x2e   : > { %853 = vmatpush.bf16.msra.mxu3 %v1327_v24  ;;  %v1357_v16 = vld [vmem:[%s1466_s25 + $0x1c0] sm:$0xff]  ;;  %v413_v17 = vpack.c.b16 %v405_v9, %v405_v9  ;;  %v414_v18 = vpack.c.b16 %v406_v10, %v406_v10 }
  0x2f   : > { %815 = vmatpush.bf16.msra.mxu0 %v1302_v25 }
  0x30   : > { %828 = vmatpush.bf16.msra.mxu1 %v1310_v26 }
  0x31   : > { %841 = vmatpush.bf16.msra.mxu2 %v1318_v27 }
  0x32   : > { %854 = vmatpush.bf16.msra.mxu3 %v1326_v28 }
  0x33   : > { %816 = vmatpush.bf16.msra.mxu0 %v1301_v31 }
  0x34   : > { %829 = vmatpush.bf16.msra.mxu1 %v1309_v32 }
  0x35   : > { %842 = vmatpush.bf16.msra.mxu2 %v1317_v35 }
  0x36   : > { %855 = vmatpush.bf16.msra.mxu3 %v1325_v36  ;;  %817 = vmatmul.bf16.vlgmr.msra.gmra.mxu0 %v409_v45 }
  0x37   : > { %861 = vmatpush.bf16.msrb.mxu0 %v1340_v39  ;;  %830 = vmatmul.bf16.vlgmr.msra.gmra.mxu1 %v410_v46 }
  0x38   : > { %874 = vmatpush.bf16.msrb.mxu1 %v1348_v40  ;;  %843 = vmatmul.bf16.vlgmr.msra.gmra.mxu2 %v411_v43 }
  0x39   : > { %887 = vmatpush.bf16.msrb.mxu2 %v1356_v41  ;;  %856 = vmatmul.bf16.vlgmr.msra.gmra.mxu3 %v412_v44  ;;  %v264_v41 = vld [vmem:[#allocation2] sm:$0xff] }
  0x3a   : > { %900 = vmatpush.bf16.msrb.mxu3 %v1364_v42 }
  0x3b   : > { %862 = vmatpush.bf16.msrb.mxu0 %v1339_v47 }
  0x3c   : > { %875 = vmatpush.bf16.msrb.mxu1 %v1347_v48 }
  0x3d   : > { %888 = vmatpush.bf16.msrb.mxu2 %v1355_v49 }
  0x3e   : > { %901 = vmatpush.bf16.msrb.mxu3 %v1363_v50 }
  0x3f   : > { %863 = vmatpush.bf16.msrb.mxu0 %v1338_v51 }
  0x40   : > { %876 = vmatpush.bf16.msrb.mxu1 %v1346_v52 }
  0x41   : > { %889 = vmatpush.bf16.msrb.mxu2 %v1354_v53 }
  0x42   : > { %902 = vmatpush.bf16.msrb.mxu3 %v1362_v54 }
  0x43   : > { %864 = vmatpush.bf16.msrb.mxu0 %v1337_v55 }
  0x44   : > { %877 = vmatpush.bf16.msrb.mxu1 %v1345_v56 }
  0x45   : > { %890 = vmatpush.bf16.msrb.mxu2 %v1353_v57 }
  0x46   : > { %903 = vmatpush.bf16.msrb.mxu3 %v1361_v58 }
  0x47   : > { %865 = vmatpush.bf16.msrb.mxu0 %v1336_v59 }
  0x48   : > { %878 = vmatpush.bf16.msrb.mxu1 %v1344_v60 }
  0x49   : > { %891 = vmatpush.bf16.msrb.mxu2 %v1352_v61 }
  0x4a   : > { %904 = vmatpush.bf16.msrb.mxu3 %v1360_v62 }
  0x4b   : > { %866 = vmatpush.bf16.msrb.mxu0 %v1335_v63 }
  0x4c   : > { %879 = vmatpush.bf16.msrb.mxu1 %v1343_v0 }
  0x4d   : > { %892 = vmatpush.bf16.msrb.mxu2 %v1351_v1 }
  0x4e   : > { %905 = vmatpush.bf16.msrb.mxu3 %v1359_v2 }
  0x4f   : > { %867 = vmatpush.bf16.msrb.mxu0 %v1334_v3 }
  0x50   : > { %880 = vmatpush.bf16.msrb.mxu1 %v1342_v4 }
  0x51   : > { %893 = vmatpush.bf16.msrb.mxu2 %v1350_v6 }
  0x52   : > { %906 = vmatpush.bf16.msrb.mxu3 %v1358_v7 }
  0x53   : > { %868 = vmatpush.bf16.msrb.mxu0 %v1333_v11 }
  0x54   : > { %881 = vmatpush.bf16.msrb.mxu1 %v1341_v12 }
  0x55   : > { %894 = vmatpush.bf16.msrb.mxu2 %v1349_v15 }
  0x56   : > { %907 = vmatpush.bf16.msrb.mxu3 %v1357_v16  ;;  %869 = vmatmul.bf16.vlgmr.msrb.gmra.mxu0 %v413_v17 }
  0x57   : > { %882 = vmatmul.bf16.vlgmr.msrb.gmra.mxu1 %v414_v18 }
  0x58   : > { %895 = vmatmul.bf16.vlgmr.msrb.gmra.mxu2 %v415_v19 }
  0x59   : > { %908 = vmatmul.bf16.vlgmr.msrb.gmra.mxu3 %v416_v20 }
  0xb3   : > { %v818_v21 = vpop.f32.mrf.mxu0 }
  0xb4   : > { %v831_v22 = vpop.f32.mrf.mxu1 }
  0xb5   : > { %v832_v29 = vadd.f32 %v831_v22, %v818_v21 }
  0xbb   : > { %v844_v23 = vpop.f32.mrf.mxu2  ;;  %v820_v25 = vpop.f32.mrf.mxu0 }
  0xbc   : > { %v857_v24 = vpop.f32.mrf.mxu3  ;;  %v833_v26 = vpop.f32.mrf.mxu1  ;;  %v845_v30 = vadd.f32 %v844_v23, %v832_v29 }
  0xbe   : > { %v858_v31 = vadd.f32 %v857_v24, %v845_v30 }
  0xc3   : > { %v846_v27 = vpop.f32.mrf.mxu2 }
  0xc4   : > { %v859_v28 = vpop.f32.mrf.mxu3 }
  0xd3   : > { %v870_v32 = vpop.f32.mrf.mxu0 }
  0xd4   : > { %v883_v33 = vpop.f32.mrf.mxu1  ;;  %v871_v34 = vadd.f32 %v870_v32, %v858_v31 }
  0xd6   : > { %v884_v35 = vadd.f32 %v883_v33, %v871_v34 }
  0xdb   : > { %v896_v36 = vpop.f32.mrf.mxu2  ;;  %v872_v39 = vpop.f32.mrf.mxu0 }
  0xdc   : > { %v909_v37 = vpop.f32.mrf.mxu3  ;;  %v897_v38 = vadd.f32 %v896_v36, %v884_v35  ;;  %v885_v40 = vpop.f32.mrf.mxu1 }
  0xde   : > { %v910_v42 = vadd.f32 %v909_v37, %v897_v38 }
  0xe0   : > { %v913_v43 = vadd.f32 %v910_v42, %v264_v41  ;;  %918 = sbr.rel (%p1297_p7) target bundleno = 237 (0xed), region = 40 }
  0xe2   : > { %914 = vst [vmem:[#allocation2] sm:$0xff] %v913_v43 }
  0xe3   : > { %v898_v44 = vpop.f32.mrf.mxu2 }
  0xe4   : > { %v911_v45 = vpop.f32.mrf.mxu3 }
  0xe5   : > { %v1390_v47 = vld [vmem:[%s1555_s2] ss:$0 sm:$0xff] }
  0xe9   : > { %v919_v46 = vld [vmem:[#allocation2] sm:$0xff] }
  0xea   : > { %v924_v48 = vadd.f32 %v1390_v47, %v919_v46 }
  0xec   : > { %925 = vst [vmem:[%s1556_s3] sm:$0xff] %v924_v48 }
  0xed PF: > { %s13_s14 = sadd.s32 1, %s1413_s14   ;;  %s1557_s12 = smov %s1409_s13 }
  0xee   : > { %p10_p8 = scmp.ge.s32.totalorder %s13_s14, 6   ;;  %s1558_s13 = smov %s1560_s15 }
  0xf0   :  { %12 = sbr.rel (!%p10_p8) target bundleno = 2 (0x2), region = 76 }

</bundles_post_ra>
